<compile_context>
chip_gen: v5e
topology: v5e:2x2
jax: 0.10.0
libtpu: 0.0.40
codegen_flags: <defaults>
</compile_context>

<pallas_src>
import jax
import jax.numpy as jnp
import numpy as np
from jax import lax
from jax.experimental import pallas as pl
from jax.experimental.pallas import tpu as pltpu

N, CIN, H, W = 2, 3, 32, 32          # Linear(2048,10) forces 32x32 spatial input
COUT, KH, KW = 8, 5, 5
PH, PW = H // 2, W // 2              # 16, 16 pooled spatial
FEAT = COUT * PH * PW                # 2048
NCLS = 10

EG = (H + 2 * 2) // 2                # 18: parity-decomposed padded grid (36/2)
EL = EG * EG                         # 324 flat extended spatial positions (lanes)
ELPAD = 384                          # lane-aligned, leaves room for max shift 2*18+2=38


# ---------------------------------------------------------------- kernel -----
def fused_kernel(xe_ref, cw_ref, cb_ref, wl_ref, lb_ref, logits_ref, feat_ref):
    # xe_ref : (1, 2, 2, CIN, ELPAD)  parity planes xe[r,s,c, I*18+J] = xpad[c,2I+r,2J+s]
    # cw_ref : (COUT, KH*KW*CIN)      conv weight, column order (dy, dx, cin)
    # cb_ref : (COUT, 1)
    # wl_ref : (COUT, NCLS, EL)       linear weight, zeros at padded (i>=16 or j>=16) lanes
    # lb_ref : (1, NCLS)
    planes = [[xe_ref[0, 0, 0], xe_ref[0, 0, 1]],
              [xe_ref[0, 1, 0], xe_ref[0, 1, 1]]]        # each (CIN, ELPAD)
    cwv = cw_ref[...]                                    # (COUT, 75)
    cb = cb_ref[...]                                     # (COUT, 1)

    # conv + bias + ReLU computed per pooling phase (a,b); pool = elementwise max.
    pooled = None
    for a in range(2):
        for b in range(2):
            acc = jnp.zeros((COUT, EL), jnp.float32)
            for dy in range(KH):
                r, u = (a + dy) % 2, (a + dy) // 2
                for dx in range(KW):
                    s, v = (b + dx) % 2, (b + dx) // 2
                    off = u * EG + v                     # static lane shift
                    rhs = planes[r][s][:, off:off + EL]  # (CIN, EL)
                    k0 = (dy * KW + dx) * CIN
                    lhs = cwv[:, k0:k0 + CIN]            # (COUT, CIN)
                    acc = acc + jnp.dot(lhs, rhs,
                                        preferred_element_type=jnp.float32)
            phase = jnp.maximum(acc + cb, 0.0)
            pooled = phase if pooled is None else jnp.maximum(pooled, phase)

    feat_ref[0] = pooled                                 # (COUT, EL), channel-major

    # Linear: logits[k] = lin_b[k] + sum_{c,q} pooled[c,q] * wl[c,k,q]
    logits = lb_ref[...]                                 # (1, NCLS)
    for c in range(COUT):
        logits = logits + lax.dot_general(
            pooled[c:c + 1, :], wl_ref[c],
            (((1,), (1,)), ((), ())), preferred_element_type=jnp.float32)
    logits_ref[0] = logits


# ---------------------------------------------------------------- wrapper ----
def single_network_forward(x, conv_w, conv_b, lin_w, lin_b):
    n = x.shape[0]

    # pad + parity-decompose the input (cheap, ~1.5x input size, no im2col blow-up)
    xpad = jnp.pad(x, ((0, 0), (0, 0), (2, 2), (2, 2)))            # (n,3,36,36)
    xe = xpad.reshape(n, CIN, EG, 2, EG, 2).transpose(0, 3, 5, 1, 2, 4)
    xe = xe.reshape(n, 2, 2, CIN, EL)
    xe = jnp.pad(xe, ((0, 0), (0, 0), (0, 0), (0, 0), (0, ELPAD - EL)))

    # conv weight -> (COUT, 75) with column order (dy, dx, cin)
    cw = jnp.transpose(conv_w, (0, 2, 3, 1)).reshape(COUT, KH * KW * CIN)
    cb = conv_b.reshape(COUT, 1)

    # linear weight -> (COUT, NCLS, EL), zero-padded at invalid spatial lanes
    wl = lin_w.reshape(NCLS, COUT, PH, PW)
    wl = jnp.pad(wl, ((0, 0), (0, 0), (0, EG - PH), (0, EG - PW)))
    wl = wl.reshape(NCLS, COUT, EL).transpose(1, 0, 2)
    lb = lin_b.reshape(1, NCLS)

    logits3, feat_big = pl.pallas_call(
        fused_kernel,
        out_shape=(jax.ShapeDtypeStruct((n, 1, NCLS), jnp.float32),
                   jax.ShapeDtypeStruct((n, COUT, EL), jnp.float32)),
        grid=(n,),
        in_specs=[
            pl.BlockSpec((1, 2, 2, CIN, ELPAD), lambda i: (i, 0, 0, 0, 0)),
            pl.BlockSpec((COUT, KH * KW * CIN), lambda i: (0, 0)),
            pl.BlockSpec((COUT, 1), lambda i: (0, 0)),
            pl.BlockSpec((COUT, NCLS, EL), lambda i: (0, 0, 0)),
            pl.BlockSpec((1, NCLS), lambda i: (0, 0)),
        ],
        out_specs=[
            pl.BlockSpec((1, 1, NCLS), lambda i: (i, 0, 0)),
            pl.BlockSpec((1, COUT, EL), lambda i: (i, 0, 0)),
        ],
        compiler_params=pltpu.CompilerParams(
            dimension_semantics=("parallel",)),
    )(xe, cw, cb, wl, lb)

    # drop the padded spatial lanes; flatten in PyTorch (C,H,W) order
    feat = feat_big.reshape(n, COUT, EG, EG)[:, :, :PH, :PW].reshape(n, FEAT)
    logits = logits3.reshape(n, NCLS)
    return logits, feat


# -------------------------------------------------------------- reference ----
def ref_forward(x, conv_w, conv_b, lin_w, lin_b):
    y = lax.conv_general_dilated(
        x, conv_w, window_strides=(1, 1), padding=((2, 2), (2, 2)),
        dimension_numbers=('NCHW', 'OIHW', 'NCHW'))
    y = jax.nn.relu(y + conv_b.reshape(1, COUT, 1, 1))
    y = lax.reduce_window(y, -jnp.inf, lax.max,
                          (1, 1, 2, 2), (1, 1, 2, 2), 'VALID')
    feat = y.reshape(x.shape[0], -1)
    logits = feat @ lin_w.T + lin_b
    return logits, feat


if __name__ == "__main__":
    key = jax.random.PRNGKey(0)
    k_x, k_cw, k_cb, k_lw, k_lb = jax.random.split(key, 5)

    x = jax.random.normal(k_x, (N, CIN, H, W), jnp.float32)
    conv_w = 0.1 * jax.random.normal(k_cw, (COUT, CIN, KH, KW), jnp.float32)
    conv_b = 0.1 * jax.random.normal(k_cb, (COUT,), jnp.float32)
    lin_w = 0.05 * jax.random.normal(k_lw, (NCLS, FEAT), jnp.float32)
    lin_b = 0.1 * jax.random.normal(k_lb, (NCLS,), jnp.float32)

    fwd = jax.jit(single_network_forward)
    logits, feat = fwd(x, conv_w, conv_b, lin_w, lin_b)
    jax.block_until_ready((logits, feat))

    ref_logits, ref_feat = ref_forward(x, conv_w, conv_b, lin_w, lin_b)
    np.testing.assert_allclose(np.asarray(feat), np.asarray(ref_feat),
                               rtol=2e-2, atol=2e-2)
    np.testing.assert_allclose(np.asarray(logits), np.asarray(ref_logits),
                               rtol=2e-2, atol=2e-2)

    assert logits.shape == (N, NCLS) and feat.shape == (N, FEAT)
    print("KERNEL_OK")
</pallas_src>

<mosaic_0001>
module attributes {stable_mosaic.version = 11 : i64} {
  func.func @fused_kernel(%arg0: i32, %arg1: memref<1x2x2x3x384xf32, #tpu.memory_space<vmem>>, %arg2: memref<8x75xf32, #tpu.memory_space<vmem>>, %arg3: memref<8x1xf32, #tpu.memory_space<vmem>>, %arg4: memref<8x10x324xf32, #tpu.memory_space<vmem>>, %arg5: memref<1x10xf32, #tpu.memory_space<vmem>>, %arg6: memref<1x1x10xf32, #tpu.memory_space<vmem>>, %arg7: memref<1x8x324xf32, #tpu.memory_space<vmem>>) attributes {dimension_semantics = [#tpu.dimension_semantics<parallel>], iteration_bounds = array<i64: 2>, scalar_prefetch = 0 : i64, scratch_operands = 0 : i64, tpu.core_type = #tpu.core_type<tc>, window_params = [{transform_indices = @transform_0, window_bounds = array<i64: 1, 2, 2, 3, 384>}, {pipeline_mode = #tpu.pipeline_mode<synchronous>, transform_indices = @transform_1, window_bounds = array<i64: 8, 75>}, {pipeline_mode = #tpu.pipeline_mode<synchronous>, transform_indices = @transform_2, window_bounds = array<i64: 8, 1>}, {pipeline_mode = #tpu.pipeline_mode<synchronous>, transform_indices = @transform_3, window_bounds = array<i64: 8, 10, 324>}, {pipeline_mode = #tpu.pipeline_mode<synchronous>, transform_indices = @transform_4, window_bounds = array<i64: 1, 10>}, {transform_indices = @transform_5, window_bounds = array<i64: 1, 1, 10>}, {transform_indices = @transform_6, window_bounds = array<i64: 1, 8, 324>}]} {
    %c0 = arith.constant 0 : index
    %c0_0 = arith.constant 0 : index
    %c0_1 = arith.constant 0 : index
    %c0_2 = arith.constant 0 : index
    %c0_3 = arith.constant 0 : index
    %0 = vector.load %arg1[%c0, %c0_0, %c0_1, %c0_2, %c0_3] : memref<1x2x2x3x384xf32, #tpu.memory_space<vmem>>, vector<1x1x1x3x384xf32>
    %1 = vector.shape_cast %0 : vector<1x1x1x3x384xf32> to vector<3x384xf32>
    %c0_4 = arith.constant 0 : index
    %c0_5 = arith.constant 0 : index
    %c1 = arith.constant 1 : index
    %c0_6 = arith.constant 0 : index
    %c0_7 = arith.constant 0 : index
    %2 = vector.load %arg1[%c0_4, %c0_5, %c1, %c0_6, %c0_7] : memref<1x2x2x3x384xf32, #tpu.memory_space<vmem>>, vector<1x1x1x3x384xf32>
    %3 = vector.shape_cast %2 : vector<1x1x1x3x384xf32> to vector<3x384xf32>
    %c0_8 = arith.constant 0 : index
    %c1_9 = arith.constant 1 : index
    %c0_10 = arith.constant 0 : index
    %c0_11 = arith.constant 0 : index
    %c0_12 = arith.constant 0 : index
    %4 = vector.load %arg1[%c0_8, %c1_9, %c0_10, %c0_11, %c0_12] : memref<1x2x2x3x384xf32, #tpu.memory_space<vmem>>, vector<1x1x1x3x384xf32>
    %5 = vector.shape_cast %4 : vector<1x1x1x3x384xf32> to vector<3x384xf32>
    %c0_13 = arith.constant 0 : index
    %c1_14 = arith.constant 1 : index
    %c1_15 = arith.constant 1 : index
    %c0_16 = arith.constant 0 : index
    %c0_17 = arith.constant 0 : index
    %6 = vector.load %arg1[%c0_13, %c1_14, %c1_15, %c0_16, %c0_17] : memref<1x2x2x3x384xf32, #tpu.memory_space<vmem>>, vector<1x1x1x3x384xf32>
    %7 = vector.shape_cast %6 : vector<1x1x1x3x384xf32> to vector<3x384xf32>
    %c0_18 = arith.constant 0 : index
    %c0_19 = arith.constant 0 : index
    %8 = vector.load %arg2[%c0_18, %c0_19] : memref<8x75xf32, #tpu.memory_space<vmem>>, vector<8x75xf32>
    %c0_20 = arith.constant 0 : index
    %c0_21 = arith.constant 0 : index
    %9 = vector.load %arg3[%c0_20, %c0_21] : memref<8x1xf32, #tpu.memory_space<vmem>>, vector<8x1xf32>
    %cst = arith.constant 0.000000e+00 : f32
    %10 = vector.broadcast %cst : f32 to vector<8x324xf32>
    %11 = vector.extract_strided_slice %1 {offsets = [0, 0], sizes = [3, 324], strides = [1, 1]} : vector<3x384xf32> to vector<3x324xf32>
    %12 = vector.extract_strided_slice %8 {offsets = [0, 0], sizes = [8, 3], strides = [1, 1]} : vector<8x75xf32> to vector<8x3xf32>
    %cst_22 = arith.constant dense<0.000000e+00> : vector<8x324xf32>
    %13 = tpu.matmul %12, %11, %cst_22 {dimension_numbers = #tpu.dot_dimension_numbers<[1], [0], [0], [1], [0, 0, 1, 1], [], []>} : vector<8x3xf32>, vector<3x324xf32>, vector<8x324xf32> -> vector<8x324xf32>
    %14 = arith.addf %10, %13 : vector<8x324xf32>
    %15 = vector.extract_strided_slice %3 {offsets = [0, 0], sizes = [3, 324], strides = [1, 1]} : vector<3x384xf32> to vector<3x324xf32>
    %16 = vector.extract_strided_slice %8 {offsets = [0, 3], sizes = [8, 3], strides = [1, 1]} : vector<8x75xf32> to vector<8x3xf32>
    %cst_23 = arith.constant dense<0.000000e+00> : vector<8x324xf32>
    %17 = tpu.matmul %16, %15, %cst_23 {dimension_numbers = #tpu.dot_dimension_numbers<[1], [0], [0], [1], [0, 0, 1, 1], [], []>} : vector<8x3xf32>, vector<3x324xf32>, vector<8x324xf32> -> vector<8x324xf32>
    %18 = arith.addf %14, %17 : vector<8x324xf32>
    %19 = vector.extract_strided_slice %1 {offsets = [0, 1], sizes = [3, 324], strides = [1, 1]} : vector<3x384xf32> to vector<3x324xf32>
    %20 = vector.extract_strided_slice %8 {offsets = [0, 6], sizes = [8, 3], strides = [1, 1]} : vector<8x75xf32> to vector<8x3xf32>
    %cst_24 = arith.constant dense<0.000000e+00> : vector<8x324xf32>
    %21 = tpu.matmul %20, %19, %cst_24 {dimension_numbers = #tpu.dot_dimension_numbers<[1], [0], [0], [1], [0, 0, 1, 1], [], []>} : vector<8x3xf32>, vector<3x324xf32>, vector<8x324xf32> -> vector<8x324xf32>
    %22 = arith.addf %18, %21 : vector<8x324xf32>
    %23 = vector.extract_strided_slice %3 {offsets = [0, 1], sizes = [3, 324], strides = [1, 1]} : vector<3x384xf32> to vector<3x324xf32>
    %24 = vector.extract_strided_slice %8 {offsets = [0, 9], sizes = [8, 3], strides = [1, 1]} : vector<8x75xf32> to vector<8x3xf32>
    %cst_25 = arith.constant dense<0.000000e+00> : vector<8x324xf32>
    %25 = tpu.matmul %24, %23, %cst_25 {dimension_numbers = #tpu.dot_dimension_numbers<[1], [0], [0], [1], [0, 0, 1, 1], [], []>} : vector<8x3xf32>, vector<3x324xf32>, vector<8x324xf32> -> vector<8x324xf32>
    %26 = arith.addf %22, %25 : vector<8x324xf32>
    %27 = vector.extract_strided_slice %1 {offsets = [0, 2], sizes = [3, 324], strides = [1, 1]} : vector<3x384xf32> to vector<3x324xf32>
    %28 = vector.extract_strided_slice %8 {offsets = [0, 12], sizes = [8, 3], strides = [1, 1]} : vector<8x75xf32> to vector<8x3xf32>
    %cst_26 = arith.constant dense<0.000000e+00> : vector<8x324xf32>
    %29 = tpu.matmul %28, %27, %cst_26 {dimension_numbers = #tpu.dot_dimension_numbers<[1], [0], [0], [1], [0, 0, 1, 1], [], []>} : vector<8x3xf32>, vector<3x324xf32>, vector<8x324xf32> -> vector<8x324xf32>
    %30 = arith.addf %26, %29 : vector<8x324xf32>
    %31 = vector.extract_strided_slice %5 {offsets = [0, 0], sizes = [3, 324], strides = [1, 1]} : vector<3x384xf32> to vector<3x324xf32>
    %32 = vector.extract_strided_slice %8 {offsets = [0, 15], sizes = [8, 3], strides = [1, 1]} : vector<8x75xf32> to vector<8x3xf32>
    %cst_27 = arith.constant dense<0.000000e+00> : vector<8x324xf32>
    %33 = tpu.matmul %32, %31, %cst_27 {dimension_numbers = #tpu.dot_dimension_numbers<[1], [0], [0], [1], [0, 0, 1, 1], [], []>} : vector<8x3xf32>, vector<3x324xf32>, vector<8x324xf32> -> vector<8x324xf32>
    %34 = arith.addf %30, %33 : vector<8x324xf32>
    %35 = vector.extract_strided_slice %7 {offsets = [0, 0], sizes = [3, 324], strides = [1, 1]} : vector<3x384xf32> to vector<3x324xf32>
    %36 = vector.extract_strided_slice %8 {offsets = [0, 18], sizes = [8, 3], strides = [1, 1]} : vector<8x75xf32> to vector<8x3xf32>
    %cst_28 = arith.constant dense<0.000000e+00> : vector<8x324xf32>
    %37 = tpu.matmul %36, %35, %cst_28 {dimension_numbers = #tpu.dot_dimension_numbers<[1], [0], [0], [1], [0, 0, 1, 1], [], []>} : vector<8x3xf32>, vector<3x324xf32>, vector<8x324xf32> -> vector<8x324xf32>
    %38 = arith.addf %34, %37 : vector<8x324xf32>
    %39 = vector.extract_strided_slice %5 {offsets = [0, 1], sizes = [3, 324], strides = [1, 1]} : vector<3x384xf32> to vector<3x324xf32>
    %40 = vector.extract_strided_slice %8 {offsets = [0, 21], sizes = [8, 3], strides = [1, 1]} : vector<8x75xf32> to vector<8x3xf32>
    %cst_29 = arith.constant dense<0.000000e+00> : vector<8x324xf32>
    %41 = tpu.matmul %40, %39, %cst_29 {dimension_numbers = #tpu.dot_dimension_numbers<[1], [0], [0], [1], [0, 0, 1, 1], [], []>} : vector<8x3xf32>, vector<3x324xf32>, vector<8x324xf32> -> vector<8x324xf32>
    %42 = arith.addf %38, %41 : vector<8x324xf32>
    %43 = vector.extract_strided_slice %7 {offsets = [0, 1], sizes = [3, 324], strides = [1, 1]} : vector<3x384xf32> to vector<3x324xf32>
    %44 = vector.extract_strided_slice %8 {offsets = [0, 24], sizes = [8, 3], strides = [1, 1]} : vector<8x75xf32> to vector<8x3xf32>
    %cst_30 = arith.constant dense<0.000000e+00> : vector<8x324xf32>
    %45 = tpu.matmul %44, %43, %cst_30 {dimension_numbers = #tpu.dot_dimension_numbers<[1], [0], [0], [1], [0, 0, 1, 1], [], []>} : vector<8x3xf32>, vector<3x324xf32>, vector<8x324xf32> -> vector<8x324xf32>
    %46 = arith.addf %42, %45 : vector<8x324xf32>
    %47 = vector.extract_strided_slice %5 {offsets = [0, 2], sizes = [3, 324], strides = [1, 1]} : vector<3x384xf32> to vector<3x324xf32>
    %48 = vector.extract_strided_slice %8 {offsets = [0, 27], sizes = [8, 3], strides = [1, 1]} : vector<8x75xf32> to vector<8x3xf32>
    %cst_31 = arith.constant dense<0.000000e+00> : vector<8x324xf32>
    %49 = tpu.matmul %48, %47, %cst_31 {dimension_numbers = #tpu.dot_dimension_numbers<[1], [0], [0], [1], [0, 0, 1, 1], [], []>} : vector<8x3xf32>, vector<3x324xf32>, vector<8x324xf32> -> vector<8x324xf32>
    %50 = arith.addf %46, %49 : vector<8x324xf32>
    %51 = vector.extract_strided_slice %1 {offsets = [0, 18], sizes = [3, 324], strides = [1, 1]} : vector<3x384xf32> to vector<3x324xf32>
    %52 = vector.extract_strided_slice %8 {offsets = [0, 30], sizes = [8, 3], strides = [1, 1]} : vector<8x75xf32> to vector<8x3xf32>
    %cst_32 = arith.constant dense<0.000000e+00> : vector<8x324xf32>
    %53 = tpu.matmul %52, %51, %cst_32 {dimension_numbers = #tpu.dot_dimension_numbers<[1], [0], [0], [1], [0, 0, 1, 1], [], []>} : vector<8x3xf32>, vector<3x324xf32>, vector<8x324xf32> -> vector<8x324xf32>
    %54 = arith.addf %50, %53 : vector<8x324xf32>
    %55 = vector.extract_strided_slice %3 {offsets = [0, 18], sizes = [3, 324], strides = [1, 1]} : vector<3x384xf32> to vector<3x324xf32>
    %56 = vector.extract_strided_slice %8 {offsets = [0, 33], sizes = [8, 3], strides = [1, 1]} : vector<8x75xf32> to vector<8x3xf32>
    %cst_33 = arith.constant dense<0.000000e+00> : vector<8x324xf32>
    %57 = tpu.matmul %56, %55, %cst_33 {dimension_numbers = #tpu.dot_dimension_numbers<[1], [0], [0], [1], [0, 0, 1, 1], [], []>} : vector<8x3xf32>, vector<3x324xf32>, vector<8x324xf32> -> vector<8x324xf32>
    %58 = arith.addf %54, %57 : vector<8x324xf32>
    %59 = vector.extract_strided_slice %1 {offsets = [0, 19], sizes = [3, 324], strides = [1, 1]} : vector<3x384xf32> to vector<3x324xf32>
    %60 = vector.extract_strided_slice %8 {offsets = [0, 36], sizes = [8, 3], strides = [1, 1]} : vector<8x75xf32> to vector<8x3xf32>
    %cst_34 = arith.constant dense<0.000000e+00> : vector<8x324xf32>
    %61 = tpu.matmul %60, %59, %cst_34 {dimension_numbers = #tpu.dot_dimension_numbers<[1], [0], [0], [1], [0, 0, 1, 1], [], []>} : vector<8x3xf32>, vector<3x324xf32>, vector<8x324xf32> -> vector<8x324xf32>
    %62 = arith.addf %58, %61 : vector<8x324xf32>
    %63 = vector.extract_strided_slice %3 {offsets = [0, 19], sizes = [3, 324], strides = [1, 1]} : vector<3x384xf32> to vector<3x324xf32>
    %64 = vector.extract_strided_slice %8 {offsets = [0, 39], sizes = [8, 3], strides = [1, 1]} : vector<8x75xf32> to vector<8x3xf32>
    %cst_35 = arith.constant dense<0.000000e+00> : vector<8x324xf32>
    %65 = tpu.matmul %64, %63, %cst_35 {dimension_numbers = #tpu.dot_dimension_numbers<[1], [0], [0], [1], [0, 0, 1, 1], [], []>} : vector<8x3xf32>, vector<3x324xf32>, vector<8x324xf32> -> vector<8x324xf32>
    %66 = arith.addf %62, %65 : vector<8x324xf32>
    %67 = vector.extract_strided_slice %1 {offsets = [0, 20], sizes = [3, 324], strides = [1, 1]} : vector<3x384xf32> to vector<3x324xf32>
    %68 = vector.extract_strided_slice %8 {offsets = [0, 42], sizes = [8, 3], strides = [1, 1]} : vector<8x75xf32> to vector<8x3xf32>
    %cst_36 = arith.constant dense<0.000000e+00> : vector<8x324xf32>
    %69 = tpu.matmul %68, %67, %cst_36 {dimension_numbers = #tpu.dot_dimension_numbers<[1], [0], [0], [1], [0, 0, 1, 1], [], []>} : vector<8x3xf32>, vector<3x324xf32>, vector<8x324xf32> -> vector<8x324xf32>
    %70 = arith.addf %66, %69 : vector<8x324xf32>
    %71 = vector.extract_strided_slice %5 {offsets = [0, 18], sizes = [3, 324], strides = [1, 1]} : vector<3x384xf32> to vector<3x324xf32>
    %72 = vector.extract_strided_slice %8 {offsets = [0, 45], sizes = [8, 3], strides = [1, 1]} : vector<8x75xf32> to vector<8x3xf32>
    %cst_37 = arith.constant dense<0.000000e+00> : vector<8x324xf32>
    %73 = tpu.matmul %72, %71, %cst_37 {dimension_numbers = #tpu.dot_dimension_numbers<[1], [0], [0], [1], [0, 0, 1, 1], [], []>} : vector<8x3xf32>, vector<3x324xf32>, vector<8x324xf32> -> vector<8x324xf32>
    %74 = arith.addf %70, %73 : vector<8x324xf32>
    %75 = vector.extract_strided_slice %7 {offsets = [0, 18], sizes = [3, 324], strides = [1, 1]} : vector<3x384xf32> to vector<3x324xf32>
    %76 = vector.extract_strided_slice %8 {offsets = [0, 48], sizes = [8, 3], strides = [1, 1]} : vector<8x75xf32> to vector<8x3xf32>
    %cst_38 = arith.constant dense<0.000000e+00> : vector<8x324xf32>
    %77 = tpu.matmul %76, %75, %cst_38 {dimension_numbers = #tpu.dot_dimension_numbers<[1], [0], [0], [1], [0, 0, 1, 1], [], []>} : vector<8x3xf32>, vector<3x324xf32>, vector<8x324xf32> -> vector<8x324xf32>
    %78 = arith.addf %74, %77 : vector<8x324xf32>
    %79 = vector.extract_strided_slice %5 {offsets = [0, 19], sizes = [3, 324], strides = [1, 1]} : vector<3x384xf32> to vector<3x324xf32>
    %80 = vector.extract_strided_slice %8 {offsets = [0, 51], sizes = [8, 3], strides = [1, 1]} : vector<8x75xf32> to vector<8x3xf32>
    %cst_39 = arith.constant dense<0.000000e+00> : vector<8x324xf32>
    %81 = tpu.matmul %80, %79, %cst_39 {dimension_numbers = #tpu.dot_dimension_numbers<[1], [0], [0], [1], [0, 0, 1, 1], [], []>} : vector<8x3xf32>, vector<3x324xf32>, vector<8x324xf32> -> vector<8x324xf32>
    %82 = arith.addf %78, %81 : vector<8x324xf32>
    %83 = vector.extract_strided_slice %7 {offsets = [0, 19], sizes = [3, 324], strides = [1, 1]} : vector<3x384xf32> to vector<3x324xf32>
    %84 = vector.extract_strided_slice %8 {offsets = [0, 54], sizes = [8, 3], strides = [1, 1]} : vector<8x75xf32> to vector<8x3xf32>
    %cst_40 = arith.constant dense<0.000000e+00> : vector<8x324xf32>
    %85 = tpu.matmul %84, %83, %cst_40 {dimension_numbers = #tpu.dot_dimension_numbers<[1], [0], [0], [1], [0, 0, 1, 1], [], []>} : vector<8x3xf32>, vector<3x324xf32>, vector<8x324xf32> -> vector<8x324xf32>
    %86 = arith.addf %82, %85 : vector<8x324xf32>
    %87 = vector.extract_strided_slice %5 {offsets = [0, 20], sizes = [3, 324], strides = [1, 1]} : vector<3x384xf32> to vector<3x324xf32>
    %88 = vector.extract_strided_slice %8 {offsets = [0, 57], sizes = [8, 3], strides = [1, 1]} : vector<8x75xf32> to vector<8x3xf32>
    %cst_41 = arith.constant dense<0.000000e+00> : vector<8x324xf32>
    %89 = tpu.matmul %88, %87, %cst_41 {dimension_numbers = #tpu.dot_dimension_numbers<[1], [0], [0], [1], [0, 0, 1, 1], [], []>} : vector<8x3xf32>, vector<3x324xf32>, vector<8x324xf32> -> vector<8x324xf32>
    %90 = arith.addf %86, %89 : vector<8x324xf32>
    %91 = vector.extract_strided_slice %1 {offsets = [0, 36], sizes = [3, 324], strides = [1, 1]} : vector<3x384xf32> to vector<3x324xf32>
    %92 = vector.extract_strided_slice %8 {offsets = [0, 60], sizes = [8, 3], strides = [1, 1]} : vector<8x75xf32> to vector<8x3xf32>
    %cst_42 = arith.constant dense<0.000000e+00> : vector<8x324xf32>
    %93 = tpu.matmul %92, %91, %cst_42 {dimension_numbers = #tpu.dot_dimension_numbers<[1], [0], [0], [1], [0, 0, 1, 1], [], []>} : vector<8x3xf32>, vector<3x324xf32>, vector<8x324xf32> -> vector<8x324xf32>
    %94 = arith.addf %90, %93 : vector<8x324xf32>
    %95 = vector.extract_strided_slice %3 {offsets = [0, 36], sizes = [3, 324], strides = [1, 1]} : vector<3x384xf32> to vector<3x324xf32>
    %96 = vector.extract_strided_slice %8 {offsets = [0, 63], sizes = [8, 3], strides = [1, 1]} : vector<8x75xf32> to vector<8x3xf32>
    %cst_43 = arith.constant dense<0.000000e+00> : vector<8x324xf32>
    %97 = tpu.matmul %96, %95, %cst_43 {dimension_numbers = #tpu.dot_dimension_numbers<[1], [0], [0], [1], [0, 0, 1, 1], [], []>} : vector<8x3xf32>, vector<3x324xf32>, vector<8x324xf32> -> vector<8x324xf32>
    %98 = arith.addf %94, %97 : vector<8x324xf32>
    %99 = vector.extract_strided_slice %1 {offsets = [0, 37], sizes = [3, 324], strides = [1, 1]} : vector<3x384xf32> to vector<3x324xf32>
    %100 = vector.extract_strided_slice %8 {offsets = [0, 66], sizes = [8, 3], strides = [1, 1]} : vector<8x75xf32> to vector<8x3xf32>
    %cst_44 = arith.constant dense<0.000000e+00> : vector<8x324xf32>
    %101 = tpu.matmul %100, %99, %cst_44 {dimension_numbers = #tpu.dot_dimension_numbers<[1], [0], [0], [1], [0, 0, 1, 1], [], []>} : vector<8x3xf32>, vector<3x324xf32>, vector<8x324xf32> -> vector<8x324xf32>
    %102 = arith.addf %98, %101 : vector<8x324xf32>
    %103 = vector.extract_strided_slice %3 {offsets = [0, 37], sizes = [3, 324], strides = [1, 1]} : vector<3x384xf32> to vector<3x324xf32>
    %104 = vector.extract_strided_slice %8 {offsets = [0, 69], sizes = [8, 3], strides = [1, 1]} : vector<8x75xf32> to vector<8x3xf32>
    %cst_45 = arith.constant dense<0.000000e+00> : vector<8x324xf32>
    %105 = tpu.matmul %104, %103, %cst_45 {dimension_numbers = #tpu.dot_dimension_numbers<[1], [0], [0], [1], [0, 0, 1, 1], [], []>} : vector<8x3xf32>, vector<3x324xf32>, vector<8x324xf32> -> vector<8x324xf32>
    %106 = arith.addf %102, %105 : vector<8x324xf32>
    %107 = vector.extract_strided_slice %1 {offsets = [0, 38], sizes = [3, 324], strides = [1, 1]} : vector<3x384xf32> to vector<3x324xf32>
    %108 = vector.extract_strided_slice %8 {offsets = [0, 72], sizes = [8, 3], strides = [1, 1]} : vector<8x75xf32> to vector<8x3xf32>
    %cst_46 = arith.constant dense<0.000000e+00> : vector<8x324xf32>
    %109 = tpu.matmul %108, %107, %cst_46 {dimension_numbers = #tpu.dot_dimension_numbers<[1], [0], [0], [1], [0, 0, 1, 1], [], []>} : vector<8x3xf32>, vector<3x324xf32>, vector<8x324xf32> -> vector<8x324xf32>
    %110 = arith.addf %106, %109 : vector<8x324xf32>
    %111 = vector.broadcast %9 : vector<8x1xf32> to vector<8x324xf32>
    %112 = arith.addf %110, %111 : vector<8x324xf32>
    %cst_47 = arith.constant 0.000000e+00 : f32
    %113 = vector.broadcast %cst_47 : f32 to vector<8x324xf32>
    %114 = arith.maximumf %112, %113 : vector<8x324xf32>
    %cst_48 = arith.constant 0.000000e+00 : f32
    %115 = vector.broadcast %cst_48 : f32 to vector<8x324xf32>
    %116 = vector.extract_strided_slice %3 {offsets = [0, 0], sizes = [3, 324], strides = [1, 1]} : vector<3x384xf32> to vector<3x324xf32>
    %117 = vector.extract_strided_slice %8 {offsets = [0, 0], sizes = [8, 3], strides = [1, 1]} : vector<8x75xf32> to vector<8x3xf32>
    %cst_49 = arith.constant dense<0.000000e+00> : vector<8x324xf32>
    %118 = tpu.matmul %117, %116, %cst_49 {dimension_numbers = #tpu.dot_dimension_numbers<[1], [0], [0], [1], [0, 0, 1, 1], [], []>} : vector<8x3xf32>, vector<3x324xf32>, vector<8x324xf32> -> vector<8x324xf32>
    %119 = arith.addf %115, %118 : vector<8x324xf32>
    %120 = vector.extract_strided_slice %1 {offsets = [0, 1], sizes = [3, 324], strides = [1, 1]} : vector<3x384xf32> to vector<3x324xf32>
    %121 = vector.extract_strided_slice %8 {offsets = [0, 3], sizes = [8, 3], strides = [1, 1]} : vector<8x75xf32> to vector<8x3xf32>
    %cst_50 = arith.constant dense<0.000000e+00> : vector<8x324xf32>
    %122 = tpu.matmul %121, %120, %cst_50 {dimension_numbers = #tpu.dot_dimension_numbers<[1], [0], [0], [1], [0, 0, 1, 1], [], []>} : vector<8x3xf32>, vector<3x324xf32>, vector<8x324xf32> -> vector<8x324xf32>
    %123 = arith.addf %119, %122 : vector<8x324xf32>
    %124 = vector.extract_strided_slice %3 {offsets = [0, 1], sizes = [3, 324], strides = [1, 1]} : vector<3x384xf32> to vector<3x324xf32>
    %125 = vector.extract_strided_slice %8 {offsets = [0, 6], sizes = [8, 3], strides = [1, 1]} : vector<8x75xf32> to vector<8x3xf32>
    %cst_51 = arith.constant dense<0.000000e+00> : vector<8x324xf32>
    %126 = tpu.matmul %125, %124, %cst_51 {dimension_numbers = #tpu.dot_dimension_numbers<[1], [0], [0], [1], [0, 0, 1, 1], [], []>} : vector<8x3xf32>, vector<3x324xf32>, vector<8x324xf32> -> vector<8x324xf32>
    %127 = arith.addf %123, %126 : vector<8x324xf32>
    %128 = vector.extract_strided_slice %1 {offsets = [0, 2], sizes = [3, 324], strides = [1, 1]} : vector<3x384xf32> to vector<3x324xf32>
    %129 = vector.extract_strided_slice %8 {offsets = [0, 9], sizes = [8, 3], strides = [1, 1]} : vector<8x75xf32> to vector<8x3xf32>
    %cst_52 = arith.constant dense<0.000000e+00> : vector<8x324xf32>
    %130 = tpu.matmul %129, %128, %cst_52 {dimension_numbers = #tpu.dot_dimension_numbers<[1], [0], [0], [1], [0, 0, 1, 1], [], []>} : vector<8x3xf32>, vector<3x324xf32>, vector<8x324xf32> -> vector<8x324xf32>
    %131 = arith.addf %127, %130 : vector<8x324xf32>
    %132 = vector.extract_strided_slice %3 {offsets = [0, 2], sizes = [3, 324], strides = [1, 1]} : vector<3x384xf32> to vector<3x324xf32>
    %133 = vector.extract_strided_slice %8 {offsets = [0, 12], sizes = [8, 3], strides = [1, 1]} : vector<8x75xf32> to vector<8x3xf32>
    %cst_53 = arith.constant dense<0.000000e+00> : vector<8x324xf32>
    %134 = tpu.matmul %133, %132, %cst_53 {dimension_numbers = #tpu.dot_dimension_numbers<[1], [0], [0], [1], [0, 0, 1, 1], [], []>} : vector<8x3xf32>, vector<3x324xf32>, vector<8x324xf32> -> vector<8x324xf32>
    %135 = arith.addf %131, %134 : vector<8x324xf32>
    %136 = vector.extract_strided_slice %7 {offsets = [0, 0], sizes = [3, 324], strides = [1, 1]} : vector<3x384xf32> to vector<3x324xf32>
    %137 = vector.extract_strided_slice %8 {offsets = [0, 15], sizes = [8, 3], strides = [1, 1]} : vector<8x75xf32> to vector<8x3xf32>
    %cst_54 = arith.constant dense<0.000000e+00> : vector<8x324xf32>
    %138 = tpu.matmul %137, %136, %cst_54 {dimension_numbers = #tpu.dot_dimension_numbers<[1], [0], [0], [1], [0, 0, 1, 1], [], []>} : vector<8x3xf32>, vector<3x324xf32>, vector<8x324xf32> -> vector<8x324xf32>
    %139 = arith.addf %135, %138 : vector<8x324xf32>
    %140 = vector.extract_strided_slice %5 {offsets = [0, 1], sizes = [3, 324], strides = [1, 1]} : vector<3x384xf32> to vector<3x324xf32>
    %141 = vector.extract_strided_slice %8 {offsets = [0, 18], sizes = [8, 3], strides = [1, 1]} : vector<8x75xf32> to vector<8x3xf32>
    %cst_55 = arith.constant dense<0.000000e+00> : vector<8x324xf32>
    %142 = tpu.matmul %141, %140, %cst_55 {dimension_numbers = #tpu.dot_dimension_numbers<[1], [0], [0], [1], [0, 0, 1, 1], [], []>} : vector<8x3xf32>, vector<3x324xf32>, vector<8x324xf32> -> vector<8x324xf32>
    %143 = arith.addf %139, %142 : vector<8x324xf32>
    %144 = vector.extract_strided_slice %7 {offsets = [0, 1], sizes = [3, 324], strides = [1, 1]} : vector<3x384xf32> to vector<3x324xf32>
    %145 = vector.extract_strided_slice %8 {offsets = [0, 21], sizes = [8, 3], strides = [1, 1]} : vector<8x75xf32> to vector<8x3xf32>
    %cst_56 = arith.constant dense<0.000000e+00> : vector<8x324xf32>
    %146 = tpu.matmul %145, %144, %cst_56 {dimension_numbers = #tpu.dot_dimension_numbers<[1], [0], [0], [1], [0, 0, 1, 1], [], []>} : vector<8x3xf32>, vector<3x324xf32>, vector<8x324xf32> -> vector<8x324xf32>
    %147 = arith.addf %143, %146 : vector<8x324xf32>
    %148 = vector.extract_strided_slice %5 {offsets = [0, 2], sizes = [3, 324], strides = [1, 1]} : vector<3x384xf32> to vector<3x324xf32>
    %149 = vector.extract_strided_slice %8 {offsets = [0, 24], sizes = [8, 3], strides = [1, 1]} : vector<8x75xf32> to vector<8x3xf32>
    %cst_57 = arith.constant dense<0.000000e+00> : vector<8x324xf32>
    %150 = tpu.matmul %149, %148, %cst_57 {dimension_numbers = #tpu.dot_dimension_numbers<[1], [0], [0], [1], [0, 0, 1, 1], [], []>} : vector<8x3xf32>, vector<3x324xf32>, vector<8x324xf32> -> vector<8x324xf32>
    %151 = arith.addf %147, %150 : vector<8x324xf32>
    %152 = vector.extract_strided_slice %7 {offsets = [0, 2], sizes = [3, 324], strides = [1, 1]} : vector<3x384xf32> to vector<3x324xf32>
    %153 = vector.extract_strided_slice %8 {offsets = [0, 27], sizes = [8, 3], strides = [1, 1]} : vector<8x75xf32> to vector<8x3xf32>
    %cst_58 = arith.constant dense<0.000000e+00> : vector<8x324xf32>
    %154 = tpu.matmul %153, %152, %cst_58 {dimension_numbers = #tpu.dot_dimension_numbers<[1], [0], [0], [1], [0, 0, 1, 1], [], []>} : vector<8x3xf32>, vector<3x324xf32>, vector<8x324xf32> -> vector<8x324xf32>
    %155 = arith.addf %151, %154 : vector<8x324xf32>
    %156 = vector.extract_strided_slice %3 {offsets = [0, 18], sizes = [3, 324], strides = [1, 1]} : vector<3x384xf32> to vector<3x324xf32>
    %157 = vector.extract_strided_slice %8 {offsets = [0, 30], sizes = [8, 3], strides = [1, 1]} : vector<8x75xf32> to vector<8x3xf32>
    %cst_59 = arith.constant dense<0.000000e+00> : vector<8x324xf32>
    %158 = tpu.matmul %157, %156, %cst_59 {dimension_numbers = #tpu.dot_dimension_numbers<[1], [0], [0], [1], [0, 0, 1, 1], [], []>} : vector<8x3xf32>, vector<3x324xf32>, vector<8x324xf32> -> vector<8x324xf32>
    %159 = arith.addf %155, %158 : vector<8x324xf32>
    %160 = vector.extract_strided_slice %1 {offsets = [0, 19], sizes = [3, 324], strides = [1, 1]} : vector<3x384xf32> to vector<3x324xf32>
    %161 = vector.extract_strided_slice %8 {offsets = [0, 33], sizes = [8, 3], strides = [1, 1]} : vector<8x75xf32> to vector<8x3xf32>
    %cst_60 = arith.constant dense<0.000000e+00> : vector<8x324xf32>
    %162 = tpu.matmul %161, %160, %cst_60 {dimension_numbers = #tpu.dot_dimension_numbers<[1], [0], [0], [1], [0, 0, 1, 1], [], []>} : vector<8x3xf32>, vector<3x324xf32>, vector<8x324xf32> -> vector<8x324xf32>
    %163 = arith.addf %159, %162 : vector<8x324xf32>
    %164 = vector.extract_strided_slice %3 {offsets = [0, 19], sizes = [3, 324], strides = [1, 1]} : vector<3x384xf32> to vector<3x324xf32>
    %165 = vector.extract_strided_slice %8 {offsets = [0, 36], sizes = [8, 3], strides = [1, 1]} : vector<8x75xf32> to vector<8x3xf32>
    %cst_61 = arith.constant dense<0.000000e+00> : vector<8x324xf32>
    %166 = tpu.matmul %165, %164, %cst_61 {dimension_numbers = #tpu.dot_dimension_numbers<[1], [0], [0], [1], [0, 0, 1, 1], [], []>} : vector<8x3xf32>, vector<3x324xf32>, vector<8x324xf32> -> vector<8x324xf32>
    %167 = arith.addf %163, %166 : vector<8x324xf32>
    %168 = vector.extract_strided_slice %1 {offsets = [0, 20], sizes = [3, 324], strides = [1, 1]} : vector<3x384xf32> to vector<3x324xf32>
    %169 = vector.extract_strided_slice %8 {offsets = [0, 39], sizes = [8, 3], strides = [1, 1]} : vector<8x75xf32> to vector<8x3xf32>
    %cst_62 = arith.constant dense<0.000000e+00> : vector<8x324xf32>
    %170 = tpu.matmul %169, %168, %cst_62 {dimension_numbers = #tpu.dot_dimension_numbers<[1], [0], [0], [1], [0, 0, 1, 1], [], []>} : vector<8x3xf32>, vector<3x324xf32>, vector<8x324xf32> -> vector<8x324xf32>
    %171 = arith.addf %167, %170 : vector<8x324xf32>
    %172 = vector.extract_strided_slice %3 {offsets = [0, 20], sizes = [3, 324], strides = [1, 1]} : vector<3x384xf32> to vector<3x324xf32>
    %173 = vector.extract_strided_slice %8 {offsets = [0, 42], sizes = [8, 3], strides = [1, 1]} : vector<8x75xf32> to vector<8x3xf32>
    %cst_63 = arith.constant dense<0.000000e+00> : vector<8x324xf32>
    %174 = tpu.matmul %173, %172, %cst_63 {dimension_numbers = #tpu.dot_dimension_numbers<[1], [0], [0], [1], [0, 0, 1, 1], [], []>} : vector<8x3xf32>, vector<3x324xf32>, vector<8x324xf32> -> vector<8x324xf32>
    %175 = arith.addf %171, %174 : vector<8x324xf32>
    %176 = vector.extract_strided_slice %7 {offsets = [0, 18], sizes = [3, 324], strides = [1, 1]} : vector<3x384xf32> to vector<3x324xf32>
    %177 = vector.extract_strided_slice %8 {offsets = [0, 45], sizes = [8, 3], strides = [1, 1]} : vector<8x75xf32> to vector<8x3xf32>
    %cst_64 = arith.constant dense<0.000000e+00> : vector<8x324xf32>
    %178 = tpu.matmul %177, %176, %cst_64 {dimension_numbers = #tpu.dot_dimension_numbers<[1], [0], [0], [1], [0, 0, 1, 1], [], []>} : vector<8x3xf32>, vector<3x324xf32>, vector<8x324xf32> -> vector<8x324xf32>
    %179 = arith.addf %175, %178 : vector<8x324xf32>
    %180 = vector.extract_strided_slice %5 {offsets = [0, 19], sizes = [3, 324], strides = [1, 1]} : vector<3x384xf32> to vector<3x324xf32>
    %181 = vector.extract_strided_slice %8 {offsets = [0, 48], sizes = [8, 3], strides = [1, 1]} : vector<8x75xf32> to vector<8x3xf32>
    %cst_65 = arith.constant dense<0.000000e+00> : vector<8x324xf32>
    %182 = tpu.matmul %181, %180, %cst_65 {dimension_numbers = #tpu.dot_dimension_numbers<[1], [0], [0], [1], [0, 0, 1, 1], [], []>} : vector<8x3xf32>, vector<3x324xf32>, vector<8x324xf32> -> vector<8x324xf32>
    %183 = arith.addf %179, %182 : vector<8x324xf32>
    %184 = vector.extract_strided_slice %7 {offsets = [0, 19], sizes = [3, 324], strides = [1, 1]} : vector<3x384xf32> to vector<3x324xf32>
    %185 = vector.extract_strided_slice %8 {offsets = [0, 51], sizes = [8, 3], strides = [1, 1]} : vector<8x75xf32> to vector<8x3xf32>
    %cst_66 = arith.constant dense<0.000000e+00> : vector<8x324xf32>
    %186 = tpu.matmul %185, %184, %cst_66 {dimension_numbers = #tpu.dot_dimension_numbers<[1], [0], [0], [1], [0, 0, 1, 1], [], []>} : vector<8x3xf32>, vector<3x324xf32>, vector<8x324xf32> -> vector<8x324xf32>
    %187 = arith.addf %183, %186 : vector<8x324xf32>
    %188 = vector.extract_strided_slice %5 {offsets = [0, 20], sizes = [3, 324], strides = [1, 1]} : vector<3x384xf32> to vector<3x324xf32>
    %189 = vector.extract_strided_slice %8 {offsets = [0, 54], sizes = [8, 3], strides = [1, 1]} : vector<8x75xf32> to vector<8x3xf32>
    %cst_67 = arith.constant dense<0.000000e+00> : vector<8x324xf32>
    %190 = tpu.matmul %189, %188, %cst_67 {dimension_numbers = #tpu.dot_dimension_numbers<[1], [0], [0], [1], [0, 0, 1, 1], [], []>} : vector<8x3xf32>, vector<3x324xf32>, vector<8x324xf32> -> vector<8x324xf32>
    %191 = arith.addf %187, %190 : vector<8x324xf32>
    %192 = vector.extract_strided_slice %7 {offsets = [0, 20], sizes = [3, 324], strides = [1, 1]} : vector<3x384xf32> to vector<3x324xf32>
    %193 = vector.extract_strided_slice %8 {offsets = [0, 57], sizes = [8, 3], strides = [1, 1]} : vector<8x75xf32> to vector<8x3xf32>
    %cst_68 = arith.constant dense<0.000000e+00> : vector<8x324xf32>
    %194 = tpu.matmul %193, %192, %cst_68 {dimension_numbers = #tpu.dot_dimension_numbers<[1], [0], [0], [1], [0, 0, 1, 1], [], []>} : vector<8x3xf32>, vector<3x324xf32>, vector<8x324xf32> -> vector<8x324xf32>
    %195 = arith.addf %191, %194 : vector<8x324xf32>
    %196 = vector.extract_strided_slice %3 {offsets = [0, 36], sizes = [3, 324], strides = [1, 1]} : vector<3x384xf32> to vector<3x324xf32>
    %197 = vector.extract_strided_slice %8 {offsets = [0, 60], sizes = [8, 3], strides = [1, 1]} : vector<8x75xf32> to vector<8x3xf32>
    %cst_69 = arith.constant dense<0.000000e+00> : vector<8x324xf32>
    %198 = tpu.matmul %197, %196, %cst_69 {dimension_numbers = #tpu.dot_dimension_numbers<[1], [0], [0], [1], [0, 0, 1, 1], [], []>} : vector<8x3xf32>, vector<3x324xf32>, vector<8x324xf32> -> vector<8x324xf32>
    %199 = arith.addf %195, %198 : vector<8x324xf32>
    %200 = vector.extract_strided_slice %1 {offsets = [0, 37], sizes = [3, 324], strides = [1, 1]} : vector<3x384xf32> to vector<3x324xf32>
    %201 = vector.extract_strided_slice %8 {offsets = [0, 63], sizes = [8, 3], strides = [1, 1]} : vector<8x75xf32> to vector<8x3xf32>
    %cst_70 = arith.constant dense<0.000000e+00> : vector<8x324xf32>
    %202 = tpu.matmul %201, %200, %cst_70 {dimension_numbers = #tpu.dot_dimension_numbers<[1], [0], [0], [1], [0, 0, 1, 1], [], []>} : vector<8x3xf32>, vector<3x324xf32>, vector<8x324xf32> -> vector<8x324xf32>
    %203 = arith.addf %199, %202 : vector<8x324xf32>
    %204 = vector.extract_strided_slice %3 {offsets = [0, 37], sizes = [3, 324], strides = [1, 1]} : vector<3x384xf32> to vector<3x324xf32>
    %205 = vector.extract_strided_slice %8 {offsets = [0, 66], sizes = [8, 3], strides = [1, 1]} : vector<8x75xf32> to vector<8x3xf32>
    %cst_71 = arith.constant dense<0.000000e+00> : vector<8x324xf32>
    %206 = tpu.matmul %205, %204, %cst_71 {dimension_numbers = #tpu.dot_dimension_numbers<[1], [0], [0], [1], [0, 0, 1, 1], [], []>} : vector<8x3xf32>, vector<3x324xf32>, vector<8x324xf32> -> vector<8x324xf32>
    %207 = arith.addf %203, %206 : vector<8x324xf32>
    %208 = vector.extract_strided_slice %1 {offsets = [0, 38], sizes = [3, 324], strides = [1, 1]} : vector<3x384xf32> to vector<3x324xf32>
    %209 = vector.extract_strided_slice %8 {offsets = [0, 69], sizes = [8, 3], strides = [1, 1]} : vector<8x75xf32> to vector<8x3xf32>
    %cst_72 = arith.constant dense<0.000000e+00> : vector<8x324xf32>
    %210 = tpu.matmul %209, %208, %cst_72 {dimension_numbers = #tpu.dot_dimension_numbers<[1], [0], [0], [1], [0, 0, 1, 1], [], []>} : vector<8x3xf32>, vector<3x324xf32>, vector<8x324xf32> -> vector<8x324xf32>
    %211 = arith.addf %207, %210 : vector<8x324xf32>
    %212 = vector.extract_strided_slice %3 {offsets = [0, 38], sizes = [3, 324], strides = [1, 1]} : vector<3x384xf32> to vector<3x324xf32>
    %213 = vector.extract_strided_slice %8 {offsets = [0, 72], sizes = [8, 3], strides = [1, 1]} : vector<8x75xf32> to vector<8x3xf32>
    %cst_73 = arith.constant dense<0.000000e+00> : vector<8x324xf32>
    %214 = tpu.matmul %213, %212, %cst_73 {dimension_numbers = #tpu.dot_dimension_numbers<[1], [0], [0], [1], [0, 0, 1, 1], [], []>} : vector<8x3xf32>, vector<3x324xf32>, vector<8x324xf32> -> vector<8x324xf32>
    %215 = arith.addf %211, %214 : vector<8x324xf32>
    %216 = vector.broadcast %9 : vector<8x1xf32> to vector<8x324xf32>
    %217 = arith.addf %215, %216 : vector<8x324xf32>
    %cst_74 = arith.constant 0.000000e+00 : f32
    %218 = vector.broadcast %cst_74 : f32 to vector<8x324xf32>
    %219 = arith.maximumf %217, %218 : vector<8x324xf32>
    %220 = arith.maximumf %114, %219 : vector<8x324xf32>
    %cst_75 = arith.constant 0.000000e+00 : f32
    %221 = vector.broadcast %cst_75 : f32 to vector<8x324xf32>
    %222 = vector.extract_strided_slice %5 {offsets = [0, 0], sizes = [3, 324], strides = [1, 1]} : vector<3x384xf32> to vector<3x324xf32>
    %223 = vector.extract_strided_slice %8 {offsets = [0, 0], sizes = [8, 3], strides = [1, 1]} : vector<8x75xf32> to vector<8x3xf32>
    %cst_76 = arith.constant dense<0.000000e+00> : vector<8x324xf32>
    %224 = tpu.matmul %223, %222, %cst_76 {dimension_numbers = #tpu.dot_dimension_numbers<[1], [0], [0], [1], [0, 0, 1, 1], [], []>} : vector<8x3xf32>, vector<3x324xf32>, vector<8x324xf32> -> vector<8x324xf32>
    %225 = arith.addf %221, %224 : vector<8x324xf32>
    %226 = vector.extract_strided_slice %7 {offsets = [0, 0], sizes = [3, 324], strides = [1, 1]} : vector<3x384xf32> to vector<3x324xf32>
    %227 = vector.extract_strided_slice %8 {offsets = [0, 3], sizes = [8, 3], strides = [1, 1]} : vector<8x75xf32> to vector<8x3xf32>
    %cst_77 = arith.constant dense<0.000000e+00> : vector<8x324xf32>
    %228 = tpu.matmul %227, %226, %cst_77 {dimension_numbers = #tpu.dot_dimension_numbers<[1], [0], [0], [1], [0, 0, 1, 1], [], []>} : vector<8x3xf32>, vector<3x324xf32>, vector<8x324xf32> -> vector<8x324xf32>
    %229 = arith.addf %225, %228 : vector<8x324xf32>
    %230 = vector.extract_strided_slice %5 {offsets = [0, 1], sizes = [3, 324], strides = [1, 1]} : vector<3x384xf32> to vector<3x324xf32>
    %231 = vector.extract_strided_slice %8 {offsets = [0, 6], sizes = [8, 3], strides = [1, 1]} : vector<8x75xf32> to vector<8x3xf32>
    %cst_78 = arith.constant dense<0.000000e+00> : vector<8x324xf32>
    %232 = tpu.matmul %231, %230, %cst_78 {dimension_numbers = #tpu.dot_dimension_numbers<[1], [0], [0], [1], [0, 0, 1, 1], [], []>} : vector<8x3xf32>, vector<3x324xf32>, vector<8x324xf32> -> vector<8x324xf32>
    %233 = arith.addf %229, %232 : vector<8x324xf32>
    %234 = vector.extract_strided_slice %7 {offsets = [0, 1], sizes = [3, 324], strides = [1, 1]} : vector<3x384xf32> to vector<3x324xf32>
    %235 = vector.extract_strided_slice %8 {offsets = [0, 9], sizes = [8, 3], strides = [1, 1]} : vector<8x75xf32> to vector<8x3xf32>
    %cst_79 = arith.constant dense<0.000000e+00> : vector<8x324xf32>
    %236 = tpu.matmul %235, %234, %cst_79 {dimension_numbers = #tpu.dot_dimension_numbers<[1], [0], [0], [1], [0, 0, 1, 1], [], []>} : vector<8x3xf32>, vector<3x324xf32>, vector<8x324xf32> -> vector<8x324xf32>
    %237 = arith.addf %233, %236 : vector<8x324xf32>
    %238 = vector.extract_strided_slice %5 {offsets = [0, 2], sizes = [3, 324], strides = [1, 1]} : vector<3x384xf32> to vector<3x324xf32>
    %239 = vector.extract_strided_slice %8 {offsets = [0, 12], sizes = [8, 3], strides = [1, 1]} : vector<8x75xf32> to vector<8x3xf32>
    %cst_80 = arith.constant dense<0.000000e+00> : vector<8x324xf32>
    %240 = tpu.matmul %239, %238, %cst_80 {dimension_numbers = #tpu.dot_dimension_numbers<[1], [0], [0], [1], [0, 0, 1, 1], [], []>} : vector<8x3xf32>, vector<3x324xf32>, vector<8x324xf32> -> vector<8x324xf32>
    %241 = arith.addf %237, %240 : vector<8x324xf32>
    %242 = vector.extract_strided_slice %1 {offsets = [0, 18], sizes = [3, 324], strides = [1, 1]} : vector<3x384xf32> to vector<3x324xf32>
    %243 = vector.extract_strided_slice %8 {offsets = [0, 15], sizes = [8, 3], strides = [1, 1]} : vector<8x75xf32> to vector<8x3xf32>
    %cst_81 = arith.constant dense<0.000000e+00> : vector<8x324xf32>
    %244 = tpu.matmul %243, %242, %cst_81 {dimension_numbers = #tpu.dot_dimension_numbers<[1], [0], [0], [1], [0, 0, 1, 1], [], []>} : vector<8x3xf32>, vector<3x324xf32>, vector<8x324xf32> -> vector<8x324xf32>
    %245 = arith.addf %241, %244 : vector<8x324xf32>
    %246 = vector.extract_strided_slice %3 {offsets = [0, 18], sizes = [3, 324], strides = [1, 1]} : vector<3x384xf32> to vector<3x324xf32>
    %247 = vector.extract_strided_slice %8 {offsets = [0, 18], sizes = [8, 3], strides = [1, 1]} : vector<8x75xf32> to vector<8x3xf32>
    %cst_82 = arith.constant dense<0.000000e+00> : vector<8x324xf32>
    %248 = tpu.matmul %247, %246, %cst_82 {dimension_numbers = #tpu.dot_dimension_numbers<[1], [0], [0], [1], [0, 0, 1, 1], [], []>} : vector<8x3xf32>, vector<3x324xf32>, vector<8x324xf32> -> vector<8x324xf32>
    %249 = arith.addf %245, %248 : vector<8x324xf32>
    %250 = vector.extract_strided_slice %1 {offsets = [0, 19], sizes = [3, 324], strides = [1, 1]} : vector<3x384xf32> to vector<3x324xf32>
    %251 = vector.extract_strided_slice %8 {offsets = [0, 21], sizes = [8, 3], strides = [1, 1]} : vector<8x75xf32> to vector<8x3xf32>
    %cst_83 = arith.constant dense<0.000000e+00> : vector<8x324xf32>
    %252 = tpu.matmul %251, %250, %cst_83 {dimension_numbers = #tpu.dot_dimension_numbers<[1], [0], [0], [1], [0, 0, 1, 1], [], []>} : vector<8x3xf32>, vector<3x324xf32>, vector<8x324xf32> -> vector<8x324xf32>
    %253 = arith.addf %249, %252 : vector<8x324xf32>
    %254 = vector.extract_strided_slice %3 {offsets = [0, 19], sizes = [3, 324], strides = [1, 1]} : vector<3x384xf32> to vector<3x324xf32>
    %255 = vector.extract_strided_slice %8 {offsets = [0, 24], sizes = [8, 3], strides = [1, 1]} : vector<8x75xf32> to vector<8x3xf32>
    %cst_84 = arith.constant dense<0.000000e+00> : vector<8x324xf32>
    %256 = tpu.matmul %255, %254, %cst_84 {dimension_numbers = #tpu.dot_dimension_numbers<[1], [0], [0], [1], [0, 0, 1, 1], [], []>} : vector<8x3xf32>, vector<3x324xf32>, vector<8x324xf32> -> vector<8x324xf32>
    %257 = arith.addf %253, %256 : vector<8x324xf32>
    %258 = vector.extract_strided_slice %1 {offsets = [0, 20], sizes = [3, 324], strides = [1, 1]} : vector<3x384xf32> to vector<3x324xf32>
    %259 = vector.extract_strided_slice %8 {offsets = [0, 27], sizes = [8, 3], strides = [1, 1]} : vector<8x75xf32> to vector<8x3xf32>
    %cst_85 = arith.constant dense<0.000000e+00> : vector<8x324xf32>
    %260 = tpu.matmul %259, %258, %cst_85 {dimension_numbers = #tpu.dot_dimension_numbers<[1], [0], [0], [1], [0, 0, 1, 1], [], []>} : vector<8x3xf32>, vector<3x324xf32>, vector<8x324xf32> -> vector<8x324xf32>
    %261 = arith.addf %257, %260 : vector<8x324xf32>
    %262 = vector.extract_strided_slice %5 {offsets = [0, 18], sizes = [3, 324], strides = [1, 1]} : vector<3x384xf32> to vector<3x324xf32>
    %263 = vector.extract_strided_slice %8 {offsets = [0, 30], sizes = [8, 3], strides = [1, 1]} : vector<8x75xf32> to vector<8x3xf32>
    %cst_86 = arith.constant dense<0.000000e+00> : vector<8x324xf32>
    %264 = tpu.matmul %263, %262, %cst_86 {dimension_numbers = #tpu.dot_dimension_numbers<[1], [0], [0], [1], [0, 0, 1, 1], [], []>} : vector<8x3xf32>, vector<3x324xf32>, vector<8x324xf32> -> vector<8x324xf32>
    %265 = arith.addf %261, %264 : vector<8x324xf32>
    %266 = vector.extract_strided_slice %7 {offsets = [0, 18], sizes = [3, 324], strides = [1, 1]} : vector<3x384xf32> to vector<3x324xf32>
    %267 = vector.extract_strided_slice %8 {offsets = [0, 33], sizes = [8, 3], strides = [1, 1]} : vector<8x75xf32> to vector<8x3xf32>
    %cst_87 = arith.constant dense<0.000000e+00> : vector<8x324xf32>
    %268 = tpu.matmul %267, %266, %cst_87 {dimension_numbers = #tpu.dot_dimension_numbers<[1], [0], [0], [1], [0, 0, 1, 1], [], []>} : vector<8x3xf32>, vector<3x324xf32>, vector<8x324xf32> -> vector<8x324xf32>
    %269 = arith.addf %265, %268 : vector<8x324xf32>
    %270 = vector.extract_strided_slice %5 {offsets = [0, 19], sizes = [3, 324], strides = [1, 1]} : vector<3x384xf32> to vector<3x324xf32>
    %271 = vector.extract_strided_slice %8 {offsets = [0, 36], sizes = [8, 3], strides = [1, 1]} : vector<8x75xf32> to vector<8x3xf32>
    %cst_88 = arith.constant dense<0.000000e+00> : vector<8x324xf32>
    %272 = tpu.matmul %271, %270, %cst_88 {dimension_numbers = #tpu.dot_dimension_numbers<[1], [0], [0], [1], [0, 0, 1, 1], [], []>} : vector<8x3xf32>, vector<3x324xf32>, vector<8x324xf32> -> vector<8x324xf32>
    %273 = arith.addf %269, %272 : vector<8x324xf32>
    %274 = vector.extract_strided_slice %7 {offsets = [0, 19], sizes = [3, 324], strides = [1, 1]} : vector<3x384xf32> to vector<3x324xf32>
    %275 = vector.extract_strided_slice %8 {offsets = [0, 39], sizes = [8, 3], strides = [1, 1]} : vector<8x75xf32> to vector<8x3xf32>
    %cst_89 = arith.constant dense<0.000000e+00> : vector<8x324xf32>
    %276 = tpu.matmul %275, %274, %cst_89 {dimension_numbers = #tpu.dot_dimension_numbers<[1], [0], [0], [1], [0, 0, 1, 1], [], []>} : vector<8x3xf32>, vector<3x324xf32>, vector<8x324xf32> -> vector<8x324xf32>
    %277 = arith.addf %273, %276 : vector<8x324xf32>
    %278 = vector.extract_strided_slice %5 {offsets = [0, 20], sizes = [3, 324], strides = [1, 1]} : vector<3x384xf32> to vector<3x324xf32>
    %279 = vector.extract_strided_slice %8 {offsets = [0, 42], sizes = [8, 3], strides = [1, 1]} : vector<8x75xf32> to vector<8x3xf32>
    %cst_90 = arith.constant dense<0.000000e+00> : vector<8x324xf32>
    %280 = tpu.matmul %279, %278, %cst_90 {dimension_numbers = #tpu.dot_dimension_numbers<[1], [0], [0], [1], [0, 0, 1, 1], [], []>} : vector<8x3xf32>, vector<3x324xf32>, vector<8x324xf32> -> vector<8x324xf32>
    %281 = arith.addf %277, %280 : vector<8x324xf32>
    %282 = vector.extract_strided_slice %1 {offsets = [0, 36], sizes = [3, 324], strides = [1, 1]} : vector<3x384xf32> to vector<3x324xf32>
    %283 = vector.extract_strided_slice %8 {offsets = [0, 45], sizes = [8, 3], strides = [1, 1]} : vector<8x75xf32> to vector<8x3xf32>
    %cst_91 = arith.constant dense<0.000000e+00> : vector<8x324xf32>
    %284 = tpu.matmul %283, %282, %cst_91 {dimension_numbers = #tpu.dot_dimension_numbers<[1], [0], [0], [1], [0, 0, 1, 1], [], []>} : vector<8x3xf32>, vector<3x324xf32>, vector<8x324xf32> -> vector<8x324xf32>
    %285 = arith.addf %281, %284 : vector<8x324xf32>
    %286 = vector.extract_strided_slice %3 {offsets = [0, 36], sizes = [3, 324], strides = [1, 1]} : vector<3x384xf32> to vector<3x324xf32>
    %287 = vector.extract_strided_slice %8 {offsets = [0, 48], sizes = [8, 3], strides = [1, 1]} : vector<8x75xf32> to vector<8x3xf32>
    %cst_92 = arith.constant dense<0.000000e+00> : vector<8x324xf32>
    %288 = tpu.matmul %287, %286, %cst_92 {dimension_numbers = #tpu.dot_dimension_numbers<[1], [0], [0], [1], [0, 0, 1, 1], [], []>} : vector<8x3xf32>, vector<3x324xf32>, vector<8x324xf32> -> vector<8x324xf32>
    %289 = arith.addf %285, %288 : vector<8x324xf32>
    %290 = vector.extract_strided_slice %1 {offsets = [0, 37], sizes = [3, 324], strides = [1, 1]} : vector<3x384xf32> to vector<3x324xf32>
    %291 = vector.extract_strided_slice %8 {offsets = [0, 51], sizes = [8, 3], strides = [1, 1]} : vector<8x75xf32> to vector<8x3xf32>
    %cst_93 = arith.constant dense<0.000000e+00> : vector<8x324xf32>
    %292 = tpu.matmul %291, %290, %cst_93 {dimension_numbers = #tpu.dot_dimension_numbers<[1], [0], [0], [1], [0, 0, 1, 1], [], []>} : vector<8x3xf32>, vector<3x324xf32>, vector<8x324xf32> -> vector<8x324xf32>
    %293 = arith.addf %289, %292 : vector<8x324xf32>
    %294 = vector.extract_strided_slice %3 {offsets = [0, 37], sizes = [3, 324], strides = [1, 1]} : vector<3x384xf32> to vector<3x324xf32>
    %295 = vector.extract_strided_slice %8 {offsets = [0, 54], sizes = [8, 3], strides = [1, 1]} : vector<8x75xf32> to vector<8x3xf32>
    %cst_94 = arith.constant dense<0.000000e+00> : vector<8x324xf32>
    %296 = tpu.matmul %295, %294, %cst_94 {dimension_numbers = #tpu.dot_dimension_numbers<[1], [0], [0], [1], [0, 0, 1, 1], [], []>} : vector<8x3xf32>, vector<3x324xf32>, vector<8x324xf32> -> vector<8x324xf32>
    %297 = arith.addf %293, %296 : vector<8x324xf32>
    %298 = vector.extract_strided_slice %1 {offsets = [0, 38], sizes = [3, 324], strides = [1, 1]} : vector<3x384xf32> to vector<3x324xf32>
    %299 = vector.extract_strided_slice %8 {offsets = [0, 57], sizes = [8, 3], strides = [1, 1]} : vector<8x75xf32> to vector<8x3xf32>
    %cst_95 = arith.constant dense<0.000000e+00> : vector<8x324xf32>
    %300 = tpu.matmul %299, %298, %cst_95 {dimension_numbers = #tpu.dot_dimension_numbers<[1], [0], [0], [1], [0, 0, 1, 1], [], []>} : vector<8x3xf32>, vector<3x324xf32>, vector<8x324xf32> -> vector<8x324xf32>
    %301 = arith.addf %297, %300 : vector<8x324xf32>
    %302 = vector.extract_strided_slice %5 {offsets = [0, 36], sizes = [3, 324], strides = [1, 1]} : vector<3x384xf32> to vector<3x324xf32>
    %303 = vector.extract_strided_slice %8 {offsets = [0, 60], sizes = [8, 3], strides = [1, 1]} : vector<8x75xf32> to vector<8x3xf32>
    %cst_96 = arith.constant dense<0.000000e+00> : vector<8x324xf32>
    %304 = tpu.matmul %303, %302, %cst_96 {dimension_numbers = #tpu.dot_dimension_numbers<[1], [0], [0], [1], [0, 0, 1, 1], [], []>} : vector<8x3xf32>, vector<3x324xf32>, vector<8x324xf32> -> vector<8x324xf32>
    %305 = arith.addf %301, %304 : vector<8x324xf32>
    %306 = vector.extract_strided_slice %7 {offsets = [0, 36], sizes = [3, 324], strides = [1, 1]} : vector<3x384xf32> to vector<3x324xf32>
    %307 = vector.extract_strided_slice %8 {offsets = [0, 63], sizes = [8, 3], strides = [1, 1]} : vector<8x75xf32> to vector<8x3xf32>
    %cst_97 = arith.constant dense<0.000000e+00> : vector<8x324xf32>
    %308 = tpu.matmul %307, %306, %cst_97 {dimension_numbers = #tpu.dot_dimension_numbers<[1], [0], [0], [1], [0, 0, 1, 1], [], []>} : vector<8x3xf32>, vector<3x324xf32>, vector<8x324xf32> -> vector<8x324xf32>
    %309 = arith.addf %305, %308 : vector<8x324xf32>
    %310 = vector.extract_strided_slice %5 {offsets = [0, 37], sizes = [3, 324], strides = [1, 1]} : vector<3x384xf32> to vector<3x324xf32>
    %311 = vector.extract_strided_slice %8 {offsets = [0, 66], sizes = [8, 3], strides = [1, 1]} : vector<8x75xf32> to vector<8x3xf32>
    %cst_98 = arith.constant dense<0.000000e+00> : vector<8x324xf32>
    %312 = tpu.matmul %311, %310, %cst_98 {dimension_numbers = #tpu.dot_dimension_numbers<[1], [0], [0], [1], [0, 0, 1, 1], [], []>} : vector<8x3xf32>, vector<3x324xf32>, vector<8x324xf32> -> vector<8x324xf32>
    %313 = arith.addf %309, %312 : vector<8x324xf32>
    %314 = vector.extract_strided_slice %7 {offsets = [0, 37], sizes = [3, 324], strides = [1, 1]} : vector<3x384xf32> to vector<3x324xf32>
    %315 = vector.extract_strided_slice %8 {offsets = [0, 69], sizes = [8, 3], strides = [1, 1]} : vector<8x75xf32> to vector<8x3xf32>
    %cst_99 = arith.constant dense<0.000000e+00> : vector<8x324xf32>
    %316 = tpu.matmul %315, %314, %cst_99 {dimension_numbers = #tpu.dot_dimension_numbers<[1], [0], [0], [1], [0, 0, 1, 1], [], []>} : vector<8x3xf32>, vector<3x324xf32>, vector<8x324xf32> -> vector<8x324xf32>
    %317 = arith.addf %313, %316 : vector<8x324xf32>
    %318 = vector.extract_strided_slice %5 {offsets = [0, 38], sizes = [3, 324], strides = [1, 1]} : vector<3x384xf32> to vector<3x324xf32>
    %319 = vector.extract_strided_slice %8 {offsets = [0, 72], sizes = [8, 3], strides = [1, 1]} : vector<8x75xf32> to vector<8x3xf32>
    %cst_100 = arith.constant dense<0.000000e+00> : vector<8x324xf32>
    %320 = tpu.matmul %319, %318, %cst_100 {dimension_numbers = #tpu.dot_dimension_numbers<[1], [0], [0], [1], [0, 0, 1, 1], [], []>} : vector<8x3xf32>, vector<3x324xf32>, vector<8x324xf32> -> vector<8x324xf32>
    %321 = arith.addf %317, %320 : vector<8x324xf32>
    %322 = vector.broadcast %9 : vector<8x1xf32> to vector<8x324xf32>
    %323 = arith.addf %321, %322 : vector<8x324xf32>
    %cst_101 = arith.constant 0.000000e+00 : f32
    %324 = vector.broadcast %cst_101 : f32 to vector<8x324xf32>
    %325 = arith.maximumf %323, %324 : vector<8x324xf32>
    %326 = arith.maximumf %220, %325 : vector<8x324xf32>
    %cst_102 = arith.constant 0.000000e+00 : f32
    %327 = vector.broadcast %cst_102 : f32 to vector<8x324xf32>
    %328 = vector.extract_strided_slice %7 {offsets = [0, 0], sizes = [3, 324], strides = [1, 1]} : vector<3x384xf32> to vector<3x324xf32>
    %329 = vector.extract_strided_slice %8 {offsets = [0, 0], sizes = [8, 3], strides = [1, 1]} : vector<8x75xf32> to vector<8x3xf32>
    %cst_103 = arith.constant dense<0.000000e+00> : vector<8x324xf32>
    %330 = tpu.matmul %329, %328, %cst_103 {dimension_numbers = #tpu.dot_dimension_numbers<[1], [0], [0], [1], [0, 0, 1, 1], [], []>} : vector<8x3xf32>, vector<3x324xf32>, vector<8x324xf32> -> vector<8x324xf32>
    %331 = arith.addf %327, %330 : vector<8x324xf32>
    %332 = vector.extract_strided_slice %5 {offsets = [0, 1], sizes = [3, 324], strides = [1, 1]} : vector<3x384xf32> to vector<3x324xf32>
    %333 = vector.extract_strided_slice %8 {offsets = [0, 3], sizes = [8, 3], strides = [1, 1]} : vector<8x75xf32> to vector<8x3xf32>
    %cst_104 = arith.constant dense<0.000000e+00> : vector<8x324xf32>
    %334 = tpu.matmul %333, %332, %cst_104 {dimension_numbers = #tpu.dot_dimension_numbers<[1], [0], [0], [1], [0, 0, 1, 1], [], []>} : vector<8x3xf32>, vector<3x324xf32>, vector<8x324xf32> -> vector<8x324xf32>
    %335 = arith.addf %331, %334 : vector<8x324xf32>
    %336 = vector.extract_strided_slice %7 {offsets = [0, 1], sizes = [3, 324], strides = [1, 1]} : vector<3x384xf32> to vector<3x324xf32>
    %337 = vector.extract_strided_slice %8 {offsets = [0, 6], sizes = [8, 3], strides = [1, 1]} : vector<8x75xf32> to vector<8x3xf32>
    %cst_105 = arith.constant dense<0.000000e+00> : vector<8x324xf32>
    %338 = tpu.matmul %337, %336, %cst_105 {dimension_numbers = #tpu.dot_dimension_numbers<[1], [0], [0], [1], [0, 0, 1, 1], [], []>} : vector<8x3xf32>, vector<3x324xf32>, vector<8x324xf32> -> vector<8x324xf32>
    %339 = arith.addf %335, %338 : vector<8x324xf32>
    %340 = vector.extract_strided_slice %5 {offsets = [0, 2], sizes = [3, 324], strides = [1, 1]} : vector<3x384xf32> to vector<3x324xf32>
    %341 = vector.extract_strided_slice %8 {offsets = [0, 9], sizes = [8, 3], strides = [1, 1]} : vector<8x75xf32> to vector<8x3xf32>
    %cst_106 = arith.constant dense<0.000000e+00> : vector<8x324xf32>
    %342 = tpu.matmul %341, %340, %cst_106 {dimension_numbers = #tpu.dot_dimension_numbers<[1], [0], [0], [1], [0, 0, 1, 1], [], []>} : vector<8x3xf32>, vector<3x324xf32>, vector<8x324xf32> -> vector<8x324xf32>
    %343 = arith.addf %339, %342 : vector<8x324xf32>
    %344 = vector.extract_strided_slice %7 {offsets = [0, 2], sizes = [3, 324], strides = [1, 1]} : vector<3x384xf32> to vector<3x324xf32>
    %345 = vector.extract_strided_slice %8 {offsets = [0, 12], sizes = [8, 3], strides = [1, 1]} : vector<8x75xf32> to vector<8x3xf32>
    %cst_107 = arith.constant dense<0.000000e+00> : vector<8x324xf32>
    %346 = tpu.matmul %345, %344, %cst_107 {dimension_numbers = #tpu.dot_dimension_numbers<[1], [0], [0], [1], [0, 0, 1, 1], [], []>} : vector<8x3xf32>, vector<3x324xf32>, vector<8x324xf32> -> vector<8x324xf32>
    %347 = arith.addf %343, %346 : vector<8x324xf32>
    %348 = vector.extract_strided_slice %3 {offsets = [0, 18], sizes = [3, 324], strides = [1, 1]} : vector<3x384xf32> to vector<3x324xf32>
    %349 = vector.extract_strided_slice %8 {offsets = [0, 15], sizes = [8, 3], strides = [1, 1]} : vector<8x75xf32> to vector<8x3xf32>
    %cst_108 = arith.constant dense<0.000000e+00> : vector<8x324xf32>
    %350 = tpu.matmul %349, %348, %cst_108 {dimension_numbers = #tpu.dot_dimension_numbers<[1], [0], [0], [1], [0, 0, 1, 1], [], []>} : vector<8x3xf32>, vector<3x324xf32>, vector<8x324xf32> -> vector<8x324xf32>
    %351 = arith.addf %347, %350 : vector<8x324xf32>
    %352 = vector.extract_strided_slice %1 {offsets = [0, 19], sizes = [3, 324], strides = [1, 1]} : vector<3x384xf32> to vector<3x324xf32>
    %353 = vector.extract_strided_slice %8 {offsets = [0, 18], sizes = [8, 3], strides = [1, 1]} : vector<8x75xf32> to vector<8x3xf32>
    %cst_109 = arith.constant dense<0.000000e+00> : vector<8x324xf32>
    %354 = tpu.matmul %353, %352, %cst_109 {dimension_numbers = #tpu.dot_dimension_numbers<[1], [0], [0], [1], [0, 0, 1, 1], [], []>} : vector<8x3xf32>, vector<3x324xf32>, vector<8x324xf32> -> vector<8x324xf32>
    %355 = arith.addf %351, %354 : vector<8x324xf32>
    %356 = vector.extract_strided_slice %3 {offsets = [0, 19], sizes = [3, 324], strides = [1, 1]} : vector<3x384xf32> to vector<3x324xf32>
    %357 = vector.extract_strided_slice %8 {offsets = [0, 21], sizes = [8, 3], strides = [1, 1]} : vector<8x75xf32> to vector<8x3xf32>
    %cst_110 = arith.constant dense<0.000000e+00> : vector<8x324xf32>
    %358 = tpu.matmul %357, %356, %cst_110 {dimension_numbers = #tpu.dot_dimension_numbers<[1], [0], [0], [1], [0, 0, 1, 1], [], []>} : vector<8x3xf32>, vector<3x324xf32>, vector<8x324xf32> -> vector<8x324xf32>
    %359 = arith.addf %355, %358 : vector<8x324xf32>
    %360 = vector.extract_strided_slice %1 {offsets = [0, 20], sizes = [3, 324], strides = [1, 1]} : vector<3x384xf32> to vector<3x324xf32>
    %361 = vector.extract_strided_slice %8 {offsets = [0, 24], sizes = [8, 3], strides = [1, 1]} : vector<8x75xf32> to vector<8x3xf32>
    %cst_111 = arith.constant dense<0.000000e+00> : vector<8x324xf32>
    %362 = tpu.matmul %361, %360, %cst_111 {dimension_numbers = #tpu.dot_dimension_numbers<[1], [0], [0], [1], [0, 0, 1, 1], [], []>} : vector<8x3xf32>, vector<3x324xf32>, vector<8x324xf32> -> vector<8x324xf32>
    %363 = arith.addf %359, %362 : vector<8x324xf32>
    %364 = vector.extract_strided_slice %3 {offsets = [0, 20], sizes = [3, 324], strides = [1, 1]} : vector<3x384xf32> to vector<3x324xf32>
    %365 = vector.extract_strided_slice %8 {offsets = [0, 27], sizes = [8, 3], strides = [1, 1]} : vector<8x75xf32> to vector<8x3xf32>
    %cst_112 = arith.constant dense<0.000000e+00> : vector<8x324xf32>
    %366 = tpu.matmul %365, %364, %cst_112 {dimension_numbers = #tpu.dot_dimension_numbers<[1], [0], [0], [1], [0, 0, 1, 1], [], []>} : vector<8x3xf32>, vector<3x324xf32>, vector<8x324xf32> -> vector<8x324xf32>
    %367 = arith.addf %363, %366 : vector<8x324xf32>
    %368 = vector.extract_strided_slice %7 {offsets = [0, 18], sizes = [3, 324], strides = [1, 1]} : vector<3x384xf32> to vector<3x324xf32>
    %369 = vector.extract_strided_slice %8 {offsets = [0, 30], sizes = [8, 3], strides = [1, 1]} : vector<8x75xf32> to vector<8x3xf32>
    %cst_113 = arith.constant dense<0.000000e+00> : vector<8x324xf32>
    %370 = tpu.matmul %369, %368, %cst_113 {dimension_numbers = #tpu.dot_dimension_numbers<[1], [0], [0], [1], [0, 0, 1, 1], [], []>} : vector<8x3xf32>, vector<3x324xf32>, vector<8x324xf32> -> vector<8x324xf32>
    %371 = arith.addf %367, %370 : vector<8x324xf32>
    %372 = vector.extract_strided_slice %5 {offsets = [0, 19], sizes = [3, 324], strides = [1, 1]} : vector<3x384xf32> to vector<3x324xf32>
    %373 = vector.extract_strided_slice %8 {offsets = [0, 33], sizes = [8, 3], strides = [1, 1]} : vector<8x75xf32> to vector<8x3xf32>
    %cst_114 = arith.constant dense<0.000000e+00> : vector<8x324xf32>
    %374 = tpu.matmul %373, %372, %cst_114 {dimension_numbers = #tpu.dot_dimension_numbers<[1], [0], [0], [1], [0, 0, 1, 1], [], []>} : vector<8x3xf32>, vector<3x324xf32>, vector<8x324xf32> -> vector<8x324xf32>
    %375 = arith.addf %371, %374 : vector<8x324xf32>
    %376 = vector.extract_strided_slice %7 {offsets = [0, 19], sizes = [3, 324], strides = [1, 1]} : vector<3x384xf32> to vector<3x324xf32>
    %377 = vector.extract_strided_slice %8 {offsets = [0, 36], sizes = [8, 3], strides = [1, 1]} : vector<8x75xf32> to vector<8x3xf32>
    %cst_115 = arith.constant dense<0.000000e+00> : vector<8x324xf32>
    %378 = tpu.matmul %377, %376, %cst_115 {dimension_numbers = #tpu.dot_dimension_numbers<[1], [0], [0], [1], [0, 0, 1, 1], [], []>} : vector<8x3xf32>, vector<3x324xf32>, vector<8x324xf32> -> vector<8x324xf32>
    %379 = arith.addf %375, %378 : vector<8x324xf32>
    %380 = vector.extract_strided_slice %5 {offsets = [0, 20], sizes = [3, 324], strides = [1, 1]} : vector<3x384xf32> to vector<3x324xf32>
    %381 = vector.extract_strided_slice %8 {offsets = [0, 39], sizes = [8, 3], strides = [1, 1]} : vector<8x75xf32> to vector<8x3xf32>
    %cst_116 = arith.constant dense<0.000000e+00> : vector<8x324xf32>
    %382 = tpu.matmul %381, %380, %cst_116 {dimension_numbers = #tpu.dot_dimension_numbers<[1], [0], [0], [1], [0, 0, 1, 1], [], []>} : vector<8x3xf32>, vector<3x324xf32>, vector<8x324xf32> -> vector<8x324xf32>
    %383 = arith.addf %379, %382 : vector<8x324xf32>
    %384 = vector.extract_strided_slice %7 {offsets = [0, 20], sizes = [3, 324], strides = [1, 1]} : vector<3x384xf32> to vector<3x324xf32>
    %385 = vector.extract_strided_slice %8 {offsets = [0, 42], sizes = [8, 3], strides = [1, 1]} : vector<8x75xf32> to vector<8x3xf32>
    %cst_117 = arith.constant dense<0.000000e+00> : vector<8x324xf32>
    %386 = tpu.matmul %385, %384, %cst_117 {dimension_numbers = #tpu.dot_dimension_numbers<[1], [0], [0], [1], [0, 0, 1, 1], [], []>} : vector<8x3xf32>, vector<3x324xf32>, vector<8x324xf32> -> vector<8x324xf32>
    %387 = arith.addf %383, %386 : vector<8x324xf32>
    %388 = vector.extract_strided_slice %3 {offsets = [0, 36], sizes = [3, 324], strides = [1, 1]} : vector<3x384xf32> to vector<3x324xf32>
    %389 = vector.extract_strided_slice %8 {offsets = [0, 45], sizes = [8, 3], strides = [1, 1]} : vector<8x75xf32> to vector<8x3xf32>
    %cst_118 = arith.constant dense<0.000000e+00> : vector<8x324xf32>
    %390 = tpu.matmul %389, %388, %cst_118 {dimension_numbers = #tpu.dot_dimension_numbers<[1], [0], [0], [1], [0, 0, 1, 1], [], []>} : vector<8x3xf32>, vector<3x324xf32>, vector<8x324xf32> -> vector<8x324xf32>
    %391 = arith.addf %387, %390 : vector<8x324xf32>
    %392 = vector.extract_strided_slice %1 {offsets = [0, 37], sizes = [3, 324], strides = [1, 1]} : vector<3x384xf32> to vector<3x324xf32>
    %393 = vector.extract_strided_slice %8 {offsets = [0, 48], sizes = [8, 3], strides = [1, 1]} : vector<8x75xf32> to vector<8x3xf32>
    %cst_119 = arith.constant dense<0.000000e+00> : vector<8x324xf32>
    %394 = tpu.matmul %393, %392, %cst_119 {dimension_numbers = #tpu.dot_dimension_numbers<[1], [0], [0], [1], [0, 0, 1, 1], [], []>} : vector<8x3xf32>, vector<3x324xf32>, vector<8x324xf32> -> vector<8x324xf32>
    %395 = arith.addf %391, %394 : vector<8x324xf32>
    %396 = vector.extract_strided_slice %3 {offsets = [0, 37], sizes = [3, 324], strides = [1, 1]} : vector<3x384xf32> to vector<3x324xf32>
    %397 = vector.extract_strided_slice %8 {offsets = [0, 51], sizes = [8, 3], strides = [1, 1]} : vector<8x75xf32> to vector<8x3xf32>
    %cst_120 = arith.constant dense<0.000000e+00> : vector<8x324xf32>
    %398 = tpu.matmul %397, %396, %cst_120 {dimension_numbers = #tpu.dot_dimension_numbers<[1], [0], [0], [1], [0, 0, 1, 1], [], []>} : vector<8x3xf32>, vector<3x324xf32>, vector<8x324xf32> -> vector<8x324xf32>
    %399 = arith.addf %395, %398 : vector<8x324xf32>
    %400 = vector.extract_strided_slice %1 {offsets = [0, 38], sizes = [3, 324], strides = [1, 1]} : vector<3x384xf32> to vector<3x324xf32>
    %401 = vector.extract_strided_slice %8 {offsets = [0, 54], sizes = [8, 3], strides = [1, 1]} : vector<8x75xf32> to vector<8x3xf32>
    %cst_121 = arith.constant dense<0.000000e+00> : vector<8x324xf32>
    %402 = tpu.matmul %401, %400, %cst_121 {dimension_numbers = #tpu.dot_dimension_numbers<[1], [0], [0], [1], [0, 0, 1, 1], [], []>} : vector<8x3xf32>, vector<3x324xf32>, vector<8x324xf32> -> vector<8x324xf32>
    %403 = arith.addf %399, %402 : vector<8x324xf32>
    %404 = vector.extract_strided_slice %3 {offsets = [0, 38], sizes = [3, 324], strides = [1, 1]} : vector<3x384xf32> to vector<3x324xf32>
    %405 = vector.extract_strided_slice %8 {offsets = [0, 57], sizes = [8, 3], strides = [1, 1]} : vector<8x75xf32> to vector<8x3xf32>
    %cst_122 = arith.constant dense<0.000000e+00> : vector<8x324xf32>
    %406 = tpu.matmul %405, %404, %cst_122 {dimension_numbers = #tpu.dot_dimension_numbers<[1], [0], [0], [1], [0, 0, 1, 1], [], []>} : vector<8x3xf32>, vector<3x324xf32>, vector<8x324xf32> -> vector<8x324xf32>
    %407 = arith.addf %403, %406 : vector<8x324xf32>
    %408 = vector.extract_strided_slice %7 {offsets = [0, 36], sizes = [3, 324], strides = [1, 1]} : vector<3x384xf32> to vector<3x324xf32>
    %409 = vector.extract_strided_slice %8 {offsets = [0, 60], sizes = [8, 3], strides = [1, 1]} : vector<8x75xf32> to vector<8x3xf32>
    %cst_123 = arith.constant dense<0.000000e+00> : vector<8x324xf32>
    %410 = tpu.matmul %409, %408, %cst_123 {dimension_numbers = #tpu.dot_dimension_numbers<[1], [0], [0], [1], [0, 0, 1, 1], [], []>} : vector<8x3xf32>, vector<3x324xf32>, vector<8x324xf32> -> vector<8x324xf32>
    %411 = arith.addf %407, %410 : vector<8x324xf32>
    %412 = vector.extract_strided_slice %5 {offsets = [0, 37], sizes = [3, 324], strides = [1, 1]} : vector<3x384xf32> to vector<3x324xf32>
    %413 = vector.extract_strided_slice %8 {offsets = [0, 63], sizes = [8, 3], strides = [1, 1]} : vector<8x75xf32> to vector<8x3xf32>
    %cst_124 = arith.constant dense<0.000000e+00> : vector<8x324xf32>
    %414 = tpu.matmul %413, %412, %cst_124 {dimension_numbers = #tpu.dot_dimension_numbers<[1], [0], [0], [1], [0, 0, 1, 1], [], []>} : vector<8x3xf32>, vector<3x324xf32>, vector<8x324xf32> -> vector<8x324xf32>
    %415 = arith.addf %411, %414 : vector<8x324xf32>
    %416 = vector.extract_strided_slice %7 {offsets = [0, 37], sizes = [3, 324], strides = [1, 1]} : vector<3x384xf32> to vector<3x324xf32>
    %417 = vector.extract_strided_slice %8 {offsets = [0, 66], sizes = [8, 3], strides = [1, 1]} : vector<8x75xf32> to vector<8x3xf32>
    %cst_125 = arith.constant dense<0.000000e+00> : vector<8x324xf32>
    %418 = tpu.matmul %417, %416, %cst_125 {dimension_numbers = #tpu.dot_dimension_numbers<[1], [0], [0], [1], [0, 0, 1, 1], [], []>} : vector<8x3xf32>, vector<3x324xf32>, vector<8x324xf32> -> vector<8x324xf32>
    %419 = arith.addf %415, %418 : vector<8x324xf32>
    %420 = vector.extract_strided_slice %5 {offsets = [0, 38], sizes = [3, 324], strides = [1, 1]} : vector<3x384xf32> to vector<3x324xf32>
    %421 = vector.extract_strided_slice %8 {offsets = [0, 69], sizes = [8, 3], strides = [1, 1]} : vector<8x75xf32> to vector<8x3xf32>
    %cst_126 = arith.constant dense<0.000000e+00> : vector<8x324xf32>
    %422 = tpu.matmul %421, %420, %cst_126 {dimension_numbers = #tpu.dot_dimension_numbers<[1], [0], [0], [1], [0, 0, 1, 1], [], []>} : vector<8x3xf32>, vector<3x324xf32>, vector<8x324xf32> -> vector<8x324xf32>
    %423 = arith.addf %419, %422 : vector<8x324xf32>
    %424 = vector.extract_strided_slice %7 {offsets = [0, 38], sizes = [3, 324], strides = [1, 1]} : vector<3x384xf32> to vector<3x324xf32>
    %425 = vector.extract_strided_slice %8 {offsets = [0, 72], sizes = [8, 3], strides = [1, 1]} : vector<8x75xf32> to vector<8x3xf32>
    %cst_127 = arith.constant dense<0.000000e+00> : vector<8x324xf32>
    %426 = tpu.matmul %425, %424, %cst_127 {dimension_numbers = #tpu.dot_dimension_numbers<[1], [0], [0], [1], [0, 0, 1, 1], [], []>} : vector<8x3xf32>, vector<3x324xf32>, vector<8x324xf32> -> vector<8x324xf32>
    %427 = arith.addf %423, %426 : vector<8x324xf32>
    %428 = vector.broadcast %9 : vector<8x1xf32> to vector<8x324xf32>
    %429 = arith.addf %427, %428 : vector<8x324xf32>
    %cst_128 = arith.constant 0.000000e+00 : f32
    %430 = vector.broadcast %cst_128 : f32 to vector<8x324xf32>
    %431 = arith.maximumf %429, %430 : vector<8x324xf32>
    %432 = arith.maximumf %326, %431 : vector<8x324xf32>
    %c0_129 = arith.constant 0 : index
    %c0_130 = arith.constant 0 : index
    %c0_131 = arith.constant 0 : index
    %433 = vector.load %arg7[%c0_129, %c0_130, %c0_131] : memref<1x8x324xf32, #tpu.memory_space<vmem>>, vector<1x8x324xf32>
    %434 = vector.shape_cast %433 : vector<1x8x324xf32> to vector<8x324xf32>
    %435 = vector.shape_cast %432 : vector<8x324xf32> to vector<1x8x324xf32>
    tpu.vector_store %arg7[%c0_129, %c0_130, %c0_131], %435 {strides = array<i32>} : memref<1x8x324xf32, #tpu.memory_space<vmem>>, vector<1x8x324xf32>,
    %c0_132 = arith.constant 0 : index
    %c0_133 = arith.constant 0 : index
    %436 = vector.load %arg5[%c0_132, %c0_133] : memref<1x10xf32, #tpu.memory_space<vmem>>, vector<1x10xf32>
    %437 = vector.extract_strided_slice %432 {offsets = [0, 0], sizes = [1, 324], strides = [1, 1]} : vector<8x324xf32> to vector<1x324xf32>
    %c0_134 = arith.constant 0 : index
    %c0_135 = arith.constant 0 : index
    %c0_136 = arith.constant 0 : index
    %438 = vector.load %arg4[%c0_134, %c0_135, %c0_136] : memref<8x10x324xf32, #tpu.memory_space<vmem>>, vector<1x10x324xf32>
    %439 = vector.shape_cast %438 : vector<1x10x324xf32> to vector<10x324xf32>
    %cst_137 = arith.constant dense<0.000000e+00> : vector<1x10xf32>
    %440 = tpu.matmul %437, %439, %cst_137 {dimension_numbers = #tpu.dot_dimension_numbers<[1], [1], [0], [0], [0, 0, 1, 0], [], []>} : vector<1x324xf32>, vector<10x324xf32>, vector<1x10xf32> -> vector<1x10xf32>
    %441 = arith.addf %436, %440 : vector<1x10xf32>
    %442 = vector.extract_strided_slice %432 {offsets = [1, 0], sizes = [1, 324], strides = [1, 1]} : vector<8x324xf32> to vector<1x324xf32>
    %c1_138 = arith.constant 1 : index
    %c0_139 = arith.constant 0 : index
    %c0_140 = arith.constant 0 : index
    %443 = vector.load %arg4[%c1_138, %c0_139, %c0_140] : memref<8x10x324xf32, #tpu.memory_space<vmem>>, vector<1x10x324xf32>
    %444 = vector.shape_cast %443 : vector<1x10x324xf32> to vector<10x324xf32>
    %cst_141 = arith.constant dense<0.000000e+00> : vector<1x10xf32>
    %445 = tpu.matmul %442, %444, %cst_141 {dimension_numbers = #tpu.dot_dimension_numbers<[1], [1], [0], [0], [0, 0, 1, 0], [], []>} : vector<1x324xf32>, vector<10x324xf32>, vector<1x10xf32> -> vector<1x10xf32>
    %446 = arith.addf %441, %445 : vector<1x10xf32>
    %447 = vector.extract_strided_slice %432 {offsets = [2, 0], sizes = [1, 324], strides = [1, 1]} : vector<8x324xf32> to vector<1x324xf32>
    %c2 = arith.constant 2 : index
    %c0_142 = arith.constant 0 : index
    %c0_143 = arith.constant 0 : index
    %448 = vector.load %arg4[%c2, %c0_142, %c0_143] : memref<8x10x324xf32, #tpu.memory_space<vmem>>, vector<1x10x324xf32>
    %449 = vector.shape_cast %448 : vector<1x10x324xf32> to vector<10x324xf32>
    %cst_144 = arith.constant dense<0.000000e+00> : vector<1x10xf32>
    %450 = tpu.matmul %447, %449, %cst_144 {dimension_numbers = #tpu.dot_dimension_numbers<[1], [1], [0], [0], [0, 0, 1, 0], [], []>} : vector<1x324xf32>, vector<10x324xf32>, vector<1x10xf32> -> vector<1x10xf32>
    %451 = arith.addf %446, %450 : vector<1x10xf32>
    %452 = vector.extract_strided_slice %432 {offsets = [3, 0], sizes = [1, 324], strides = [1, 1]} : vector<8x324xf32> to vector<1x324xf32>
    %c3 = arith.constant 3 : index
    %c0_145 = arith.constant 0 : index
    %c0_146 = arith.constant 0 : index
    %453 = vector.load %arg4[%c3, %c0_145, %c0_146] : memref<8x10x324xf32, #tpu.memory_space<vmem>>, vector<1x10x324xf32>
    %454 = vector.shape_cast %453 : vector<1x10x324xf32> to vector<10x324xf32>
    %cst_147 = arith.constant dense<0.000000e+00> : vector<1x10xf32>
    %455 = tpu.matmul %452, %454, %cst_147 {dimension_numbers = #tpu.dot_dimension_numbers<[1], [1], [0], [0], [0, 0, 1, 0], [], []>} : vector<1x324xf32>, vector<10x324xf32>, vector<1x10xf32> -> vector<1x10xf32>
    %456 = arith.addf %451, %455 : vector<1x10xf32>
    %457 = vector.extract_strided_slice %432 {offsets = [4, 0], sizes = [1, 324], strides = [1, 1]} : vector<8x324xf32> to vector<1x324xf32>
    %c4 = arith.constant 4 : index
    %c0_148 = arith.constant 0 : index
    %c0_149 = arith.constant 0 : index
    %458 = vector.load %arg4[%c4, %c0_148, %c0_149] : memref<8x10x324xf32, #tpu.memory_space<vmem>>, vector<1x10x324xf32>
    %459 = vector.shape_cast %458 : vector<1x10x324xf32> to vector<10x324xf32>
    %cst_150 = arith.constant dense<0.000000e+00> : vector<1x10xf32>
    %460 = tpu.matmul %457, %459, %cst_150 {dimension_numbers = #tpu.dot_dimension_numbers<[1], [1], [0], [0], [0, 0, 1, 0], [], []>} : vector<1x324xf32>, vector<10x324xf32>, vector<1x10xf32> -> vector<1x10xf32>
    %461 = arith.addf %456, %460 : vector<1x10xf32>
    %462 = vector.extract_strided_slice %432 {offsets = [5, 0], sizes = [1, 324], strides = [1, 1]} : vector<8x324xf32> to vector<1x324xf32>
    %c5 = arith.constant 5 : index
    %c0_151 = arith.constant 0 : index
    %c0_152 = arith.constant 0 : index
    %463 = vector.load %arg4[%c5, %c0_151, %c0_152] : memref<8x10x324xf32, #tpu.memory_space<vmem>>, vector<1x10x324xf32>
    %464 = vector.shape_cast %463 : vector<1x10x324xf32> to vector<10x324xf32>
    %cst_153 = arith.constant dense<0.000000e+00> : vector<1x10xf32>
    %465 = tpu.matmul %462, %464, %cst_153 {dimension_numbers = #tpu.dot_dimension_numbers<[1], [1], [0], [0], [0, 0, 1, 0], [], []>} : vector<1x324xf32>, vector<10x324xf32>, vector<1x10xf32> -> vector<1x10xf32>
    %466 = arith.addf %461, %465 : vector<1x10xf32>
    %467 = vector.extract_strided_slice %432 {offsets = [6, 0], sizes = [1, 324], strides = [1, 1]} : vector<8x324xf32> to vector<1x324xf32>
    %c6 = arith.constant 6 : index
    %c0_154 = arith.constant 0 : index
    %c0_155 = arith.constant 0 : index
    %468 = vector.load %arg4[%c6, %c0_154, %c0_155] : memref<8x10x324xf32, #tpu.memory_space<vmem>>, vector<1x10x324xf32>
    %469 = vector.shape_cast %468 : vector<1x10x324xf32> to vector<10x324xf32>
    %cst_156 = arith.constant dense<0.000000e+00> : vector<1x10xf32>
    %470 = tpu.matmul %467, %469, %cst_156 {dimension_numbers = #tpu.dot_dimension_numbers<[1], [1], [0], [0], [0, 0, 1, 0], [], []>} : vector<1x324xf32>, vector<10x324xf32>, vector<1x10xf32> -> vector<1x10xf32>
    %471 = arith.addf %466, %470 : vector<1x10xf32>
    %472 = vector.extract_strided_slice %432 {offsets = [7, 0], sizes = [1, 324], strides = [1, 1]} : vector<8x324xf32> to vector<1x324xf32>
    %c7 = arith.constant 7 : index
    %c0_157 = arith.constant 0 : index
    %c0_158 = arith.constant 0 : index
    %473 = vector.load %arg4[%c7, %c0_157, %c0_158] : memref<8x10x324xf32, #tpu.memory_space<vmem>>, vector<1x10x324xf32>
    %474 = vector.shape_cast %473 : vector<1x10x324xf32> to vector<10x324xf32>
    %cst_159 = arith.constant dense<0.000000e+00> : vector<1x10xf32>
    %475 = tpu.matmul %472, %474, %cst_159 {dimension_numbers = #tpu.dot_dimension_numbers<[1], [1], [0], [0], [0, 0, 1, 0], [], []>} : vector<1x324xf32>, vector<10x324xf32>, vector<1x10xf32> -> vector<1x10xf32>
    %476 = arith.addf %471, %475 : vector<1x10xf32>
    %c0_160 = arith.constant 0 : index
    %c0_161 = arith.constant 0 : index
    %c0_162 = arith.constant 0 : index
    %477 = vector.load %arg6[%c0_160, %c0_161, %c0_162] : memref<1x1x10xf32, #tpu.memory_space<vmem>>, vector<1x1x10xf32>
    %478 = vector.shape_cast %477 : vector<1x1x10xf32> to vector<1x10xf32>
    %479 = vector.shape_cast %476 : vector<1x10xf32> to vector<1x1x10xf32>
    tpu.vector_store %arg6[%c0_160, %c0_161, %c0_162], %479 {strides = array<i32>} : memref<1x1x10xf32, #tpu.memory_space<vmem>>, vector<1x1x10xf32>,
    return
  }
  func.func @transform_0(%arg0: i32) -> (i32, i32, i32, i32, i32) {
    %c0_i32 = arith.constant 0 : i32
    %c0_i32_0 = arith.constant 0 : i32
    %c0_i32_1 = arith.constant 0 : i32
    %c0_i32_2 = arith.constant 0 : i32
    %c0_i32_3 = arith.constant 0 : i32
    return %arg0, %c0_i32, %c0_i32_0, %c0_i32_1, %c0_i32_2 : i32, i32, i32, i32, i32
  }
  func.func @transform_1(%arg0: i32) -> (i32, i32) {
    %c0_i32 = arith.constant 0 : i32
    %c0_i32_0 = arith.constant 0 : i32
    %c0_i32_1 = arith.constant 0 : i32
    return %c0_i32, %c0_i32_0 : i32, i32
  }
  func.func @transform_2(%arg0: i32) -> (i32, i32) {
    %c0_i32 = arith.constant 0 : i32
    %c0_i32_0 = arith.constant 0 : i32
    %c0_i32_1 = arith.constant 0 : i32
    return %c0_i32, %c0_i32_0 : i32, i32
  }
  func.func @transform_3(%arg0: i32) -> (i32, i32, i32) {
    %c0_i32 = arith.constant 0 : i32
    %c0_i32_0 = arith.constant 0 : i32
    %c0_i32_1 = arith.constant 0 : i32
    %c0_i32_2 = arith.constant 0 : i32
    return %c0_i32, %c0_i32_0, %c0_i32_1 : i32, i32, i32
  }
  func.func @transform_4(%arg0: i32) -> (i32, i32) {
    %c0_i32 = arith.constant 0 : i32
    %c0_i32_0 = arith.constant 0 : i32
    %c0_i32_1 = arith.constant 0 : i32
    return %c0_i32, %c0_i32_0 : i32, i32
  }
  func.func @transform_5(%arg0: i32) -> (i32, i32, i32) {
    %c0_i32 = arith.constant 0 : i32
    %c0_i32_0 = arith.constant 0 : i32
    %c0_i32_1 = arith.constant 0 : i32
    return %arg0, %c0_i32, %c0_i32_0 : i32, i32, i32
  }
  func.func @transform_6(%arg0: i32) -> (i32, i32, i32) {
    %c0_i32 = arith.constant 0 : i32
    %c0_i32_0 = arith.constant 0 : i32
    %c0_i32_1 = arith.constant 0 : i32
    return %arg0, %c0_i32, %c0_i32_0 : i32, i32, i32
  }
}

</mosaic_0001>

<bundles_post_ra>
// kernel: single_network_forward.1
= control target key start
LH: loop header
LB: loop body
LE: loop exit
PB: predicated region body
PF: predicated region fallthrough
CT: control target
= control target key end

     0   :  { %12 = vsyncpa [#allocation3], 0  ;;  %s13281_s0 = inlined_call_operand.vmem [shape: f32[2,2,2,3,384], index: 0, kind: input, shape index: {}]   ;;  %s13282_s1 = inlined_call_operand.vmem [shape: f32[8,75], index: 1, kind: input, shape index: {}]   ;;  %s13283_s2 = inlined_call_operand.vmem [shape: f32[8,1], index: 2, kind: input, shape index: {}]   ;;  %s13284_s3 = inlined_call_operand.vmem [shape: f32[8,10,324], index: 3, kind: input, shape index: {}]   ;;  %s13285_s4 = inlined_call_operand.vmem [shape: f32[1,10], index: 4, kind: input, shape index: {}]   ;;  %s13286_s5 = inlined_call_operand.hbm [shape: f32[2,1,10], index: 5, kind: output, shape index: {0}]   ;;  %s13287_s6 = inlined_call_operand.vmem [shape: f32[2,8,324], index: 6, kind: output, shape index: {1}]  }
   0x1   :  { %14 = vsyncpa [#allocation3 + $0x1], 0  ;;  %s10273_s21 = smov 0   ;;  %s10275_s22 = smov 0  }
   0x2   :  { %s10277_s23 = smov 0   ;;  %s10279_s24 = smov 0  }
   0x3 LB: > { %s10294_s25 = sadd.s32 4294967295, %s10205_s24   ;;  %s9387_s26 = sadd.s32 4294967294, %s10205_s24   ;;  %s10205_s24 = sphi %s10279_s24, %s13693_s24   ;;  %s10201_s23 = sphi %s10277_s23, %s13692_s23   ;;  %s10197_s22 = sphi %s10275_s22, %s13691_s22   ;;  %s10193_s21 = sphi %s10273_s21, %s13690_s21  }
   0x4   : > { %s10298_s27 = sadd.s32 1, %s10205_s24   ;;  %s137_s28 = sadd.s32 1, %s10201_s23 }
   0x5   : > { %s134_s29 = ssub.s32 %s10205_s24, %s10298_s27  ;;  %p147_p0 = scmp.ne.s32.totalorder %s10201_s23, %s10197_s22 }
   0x6   : > { %p135_p1 = scmp.eq.s32.totalorder %s134_s29, 0  ;;  %p148_p2 = scmp.eq.s32.totalorder %s10294_s25, 1 }
   0x7   : > { %p153_p3 = scmp.ne.s32.totalorder %s10197_s22, %s10193_s21  ;;  %p154_p4 = scmp.eq.s32.totalorder %s9387_s26, 1 }
   0x8   : > { %s10309_s30 = scalar_select %p135_p1, %s10201_s23, %s137_s28  }
   0x9   : > { %p10311_p5 = por %p148_p2, %p147_p0  ;;  %p10315_p6 = por %p154_p4, %p153_p3 }
   0xa   : > { %p9390_p7 = scmp.ge.s32.totalorder %s10205_s24, 1  ;;  %p218_p8 = scmp.lt.s32.totalorder %s10205_s24, 3 }
   0xc   : > { %p219_p9 = pnand %p9390_p7, %p218_p8 }
   0xe   : > { %222 = sbr.rel (%p219_p9) target bundleno = 1272 (0x4f8), region = 40 }
  0x13   : > { %v10324_v0 = vld [vmem:[%s13282_s1] sm:$0xff]  ;;  %s10207_s11 = smov 125   ;;  %s10208_s12 = smov 122   ;;  %vm289_vm0 = vcmask 1042432   ;;  %vm286_vm1 = vcmask 23552   ;;  %vm446_vm2 = vcmask 1039360  }
  0x14   : > { %276 = vrot.lane.b32.xlu0 %v10324_v0, %s10207_s11  ;;  %432 = vrot.lane.b32.xlu1 %v10324_v0, %s10208_s12  ;;  %s10209_s13 = smov 110   ;;  %p252_p10 = scmp.lt.s32.totalorder %s10294_s25, 1  ;;  %vm621_vm3 = vcmask 1031168   ;;  %vm1132_vm4 = vcmask 900096   ;;  %vm1307_vm5 = vcmask 891904   ;;  %vm1482_vm6 = vcmask 883712  }
  0x15   : > { %776 = vrot.lane.b32.xlu2 %v10324_v0, %s10209_s13  ;;  %s10210_s16 = smov 119   ;;  %s10211_s17 = smov 107   ;;  %vm2005_vm7 = vcmask 752640   ;;  %vm2180_vm8 = vcmask 744448   ;;  %vm2355_vm9 = vcmask 736256   ;;  %vm8636_vm10 = vcmask 556032  }
  0x16   : > { %s10332_s14 = scalar_select %p252_p10, %s10294_s25, 1  ;;  %vm9284_vm11 = vcmask 73728  }
  0x17   : > { %s10212_s26 = smov 95   ;;  %s10213_s28 = smov 113  }
  0x18   : > { %s10067_s15 = smul.u32 48, %s10332_s14  ;;  %s10214_s29 = smov 98  }
  0x19   : > { %s10215_s9 = smov 116   ;;  %s10216_s10 = smov 127  }
  0x1a   : > { %s10340_s20 = scalar_lea.vmem %s13281_s0, %s10067_s15  ;;  %s10217_s11 = smov 101  }
  0x1b   : > { %v10344_v1 = vld [vmem:[%s10340_s20 + $0x14] sm:$0x7]  ;;  %v10348_v2 = vld [vmem:[%s10340_s20 + $0xc] sm:$0x77]  ;;  %v10354_v3 = vld [vmem:[%s10340_s20 + $0x8] sm:$0x7] }
  0x1c   : > { %520 = vrot.lane.b32.xlu0 %v10324_v0, %s10210_s16  ;;  %857 = vrot.lane.b32.xlu1 %v10324_v0, %s10211_s17  ;;  %282 = vst [vmem:[#allocation1 + $0x10] ss:$2 sm:$0xff] %v10344_v1  ;;  %v10359_v5 = vld [vmem:[%s10340_s20] sm:$0x77]  ;;  %v10390_v19 = vld [vmem:[%s10340_s20 + $0x18] sm:$0x77] }
  0x1d   : > { %1206 = vrot.lane.b32.xlu2 %v10324_v0, %s10212_s26  ;;  %280 = vst [vmem:[#allocation1] ss:$2 sm:$0xff] %v10348_v2  ;;  %v10387_v17 = vld [vmem:[%s10340_s20 + $0x20] sm:$0x7]  ;;  %s10218_s12 = smov 126   ;;  %s10219_s15 = smov 104  }
  0x1e   : > { %v10398_v22 = vld [vmem:[%s10340_s20 + $0x2c] sm:$0x7]  ;;  %v10403_v24 = vld [vmem:[%s10340_s20 + $0x24] sm:$0x77]  ;;  %s10220_s16 = smov 83   ;;  %s10221_s17 = smov 89  }
  0x1f   : > { %s10222_s18 = smov 86   ;;  %s10223_s19 = smov 92  }
  0x20   : > { %s10224_s20 = smov 77   ;;  %s10225_s26 = smov 109  }
  0x23   : > { %v10356_v4 = vld.sshfl [vmem:[#allocation1 + $0x10] sm:$0xff pattern:$0x75316420] }
  0x24   : > { %695 = vrot.lane.b32.xlu0 %v10324_v0, %s10213_s28  ;;  %1118 = vrot.lane.b32.xlu1 %v10324_v0, %s10214_s29  ;;  %360 = vst [vmem:[#allocation1 + $0x10] ss:$2 sm:$0xff] %v10354_v3  ;;  %v10362_v6 = vld.sshfl [vmem:[#allocation1] sm:$0xff pattern:$0x75316420]  ;;  %s10226_s28 = smov 108  }
  0x25   : > { %v10364_v7 = vld.sshfl [vmem:[#allocation1 + $0x8] sm:$0xff pattern:$0x75316420]  ;;  %9399 = vmatpush.msk.msra.mxu0 %vm289_vm0, %v10362_v6  ;;  %9403 = vmatpush.msk.msra.mxu2 %vm289_vm0, %v10356_v4  ;;  %s10227_s29 = smov 80  }
  0x26   : > { %358 = vst [vmem:[#allocation1] ss:$2 sm:$0xff] %v10359_v5  ;;  %9401 = vmatpush.msk.msra.mxu1 %vm289_vm0, %v10364_v7 }
  0x2b   : > { %v10368_v8 = vld.sshfl [vmem:[#allocation1 + $0x10] sm:$0xff pattern:$0x75316420] }
  0x2c   : > { %607 = vrot.lane.b32.xlu0 %v10324_v0, %s10215_s9  ;;  %436 = vst [vmem:[#allocation1 + $0x10] ss:$2 sm:$0xff] %v10354_v3  ;;  %9409 = vmatpush.msk.msrb.mxu1 %vm289_vm0, %v10368_v8  ;;  %s10228_s9 = smov 74  }
  0x2d   : > { %v10371_v9 = vld.sshfl [vmem:[#allocation1] sm:$0xff pattern:$0x75316420]  ;;  %v10373_v10 = vld.sshfl [vmem:[#allocation1 + $0x8] sm:$0xff pattern:$0x75316420] }
  0x2e   : > { %434 = vst [vmem:[#allocation1] ss:$2 sm:$0xff] %v10359_v5  ;;  %9405 = vmatpush.msk.msra.mxu3 %vm289_vm0, %v10371_v9  ;;  %9407 = vmatpush.msk.msrb.mxu0 %vm289_vm0, %v10373_v10 }
  0x2f   : > { %9406 = vmatmul.msk.f32.vlgmr.msra.gmra.mxu3 %vm286_vm1, %v10324_v0 }
  0x33   : > { %v439_v11 = vld.sshfl [vmem:[#allocation1 + $0x10] sm:$0xff pattern:$0x75316420] }
  0x34   : > { %444 = vrot.lane.b32.xlu1 %v439_v11, %s10216_s10  ;;  %524 = vst [vmem:[#allocation1 + $0x10] ss:$2 sm:$0xff] %v10344_v1 }
  0x35   : > { %v438_v12 = vld.sshfl [vmem:[#allocation1 + $0x8] sm:$0xff pattern:$0x75316420]  ;;  %v437_v13 = vld.sshfl [vmem:[#allocation1] sm:$0xff pattern:$0x75316420] }
  0x36   : > { %442 = vrot.lane.b32.xlu0 %v438_v12, %s10216_s10  ;;  %440 = vrot.lane.b32.xlu2 %v437_v13, %s10216_s10  ;;  %522 = vst [vmem:[#allocation1] ss:$2 sm:$0xff] %v10348_v2 }
  0x3b   : > { %v527_v14 = vld.sshfl [vmem:[#allocation1 + $0x10] sm:$0xff pattern:$0x75316420] }
  0x3c   : > { %611 = vst [vmem:[#allocation1 + $0x10] ss:$2 sm:$0xff] %v10354_v3 }
  0x3d   : > { %v525_v15 = vld.sshfl [vmem:[#allocation1] sm:$0xff pattern:$0x75316420]  ;;  %v526_v16 = vld.sshfl [vmem:[#allocation1 + $0x8] sm:$0xff pattern:$0x75316420] }
  0x3e   : > { %528 = vrot.lane.b32.xlu1 %v525_v15, %s10216_s10  ;;  %609 = vst [vmem:[#allocation1] ss:$2 sm:$0xff] %v10359_v5  ;;  %1031 = vrot.lane.b32.xlu0 %v10324_v0, %s10217_s11  ;;  %s10229_s11 = smov 71  }
  0x3f   : > { %532 = vrot.lane.b32.xlu2 %v527_v14, %s10216_s10 }
  0x43   : > { %v614_v18 = vld.sshfl [vmem:[#allocation1 + $0x10] sm:$0xff pattern:$0x75316420] }
  0x44   : > { %701 = vst [vmem:[#allocation1 + $0x10] ss:$2 sm:$0xff] %v10387_v17 }
  0x45   : > { %v612_v20 = vld.sshfl [vmem:[#allocation1] sm:$0xff pattern:$0x75316420]  ;;  %v613_v21 = vld.sshfl [vmem:[#allocation1 + $0x8] sm:$0xff pattern:$0x75316420] }
  0x46   : > { %615 = vrot.lane.b32.xlu1 %v612_v20, %s10218_s12  ;;  %944 = vrot.lane.b32.xlu0 %v10324_v0, %s10219_s15  ;;  %699 = vst [vmem:[#allocation1] ss:$2 sm:$0xff] %v10390_v19  ;;  %s10230_s15 = smov 65  }
  0x47   : > { %530 = vrot.lane.b32.xlu2 %v526_v16, %s10216_s10 }
  0x4b   : > { %v10400_v23 = vld.sshfl [vmem:[#allocation1 + $0x10] sm:$0xff pattern:$0x75316420] }
  0x4c   : > { %782 = vst [vmem:[#allocation1 + $0x10] ss:$2 sm:$0xff] %v10398_v22 }
  0x4d   : > { %v10406_v25 = vld.sshfl [vmem:[#allocation1] sm:$0xff pattern:$0x75316420]  ;;  %v10408_v26 = vld.sshfl [vmem:[#allocation1 + $0x8] sm:$0xff pattern:$0x75316420] }
  0x4e   : > { %619 = vrot.lane.b32.xlu1 %v614_v18, %s10218_s12  ;;  %1556 = vrot.lane.b32.xlu0 %v10324_v0, %s10220_s16  ;;  %780 = vst [vmem:[#allocation1] ss:$2 sm:$0xff] %v10403_v24  ;;  %s10231_s16 = smov 68  }
  0x4f   : > { %617 = vrot.lane.b32.xlu2 %v613_v21, %s10218_s12 }
  0x53   : > { %v10414_v27 = vld.sshfl [vmem:[#allocation1 + $0x10] sm:$0xff pattern:$0x75316420] }
  0x54   : > { %861 = vst [vmem:[#allocation1 + $0x10] ss:$2 sm:$0xff] %v10387_v17 }
  0x55   : > { %v10417_v28 = vld.sshfl [vmem:[#allocation1] sm:$0xff pattern:$0x75316420]  ;;  %v10419_v29 = vld.sshfl [vmem:[#allocation1 + $0x8] sm:$0xff pattern:$0x75316420] }
  0x56   : > { %1381 = vrot.lane.b32.xlu1 %v10324_v0, %s10221_s17  ;;  %859 = vst [vmem:[#allocation1] ss:$2 sm:$0xff] %v10390_v19  ;;  %s10232_s17 = smov 91  }
  0x57   : > { %1468 = vrot.lane.b32.xlu2 %v10324_v0, %s10222_s18  ;;  %s10233_s18 = smov 62  }
  0x5b   : > { %v864_v30 = vld.sshfl [vmem:[#allocation1 + $0x10] sm:$0xff pattern:$0x75316420] }
  0x5c   : > { %869 = vrot.lane.b32.xlu0 %v864_v30, %s10216_s10  ;;  %948 = vst [vmem:[#allocation1 + $0x10] ss:$2 sm:$0xff] %v10398_v22 }
  0x5d   : > { %v863_v31 = vld.sshfl [vmem:[#allocation1 + $0x8] sm:$0xff pattern:$0x75316420]  ;;  %v862_v32 = vld.sshfl [vmem:[#allocation1] sm:$0xff pattern:$0x75316420] }
  0x5e   : > { %1293 = vrot.lane.b32.xlu1 %v10324_v0, %s10223_s19  ;;  %946 = vst [vmem:[#allocation1] ss:$2 sm:$0xff] %v10403_v24 }
  0x5f   : > { %1730 = vrot.lane.b32.xlu2 %v10324_v0, %s10224_s20  ;;  %s10234_s20 = smov 59  }
  0x63   : > { %v951_v33 = vld.sshfl [vmem:[#allocation1 + $0x10] sm:$0xff pattern:$0x75316420] }
  0x64   : > { %867 = vrot.lane.b32.xlu0 %v863_v31, %s10216_s10  ;;  %1035 = vst [vmem:[#allocation1 + $0x10] ss:$2 sm:$0xff] %v10387_v17 }
  0x65   : > { %v949_v34 = vld.sshfl [vmem:[#allocation1] sm:$0xff pattern:$0x75316420]  ;;  %v950_v35 = vld.sshfl [vmem:[#allocation1 + $0x8] sm:$0xff pattern:$0x75316420] }
  0x66   : > { %952 = vrot.lane.b32.xlu1 %v949_v34, %s10216_s10  ;;  %1033 = vst [vmem:[#allocation1] ss:$2 sm:$0xff] %v10390_v19 }
  0x67   : > { %865 = vrot.lane.b32.xlu2 %v862_v32, %s10216_s10 }
  0x6b   : > { %v1038_v36 = vld.sshfl [vmem:[#allocation1 + $0x10] sm:$0xff pattern:$0x75316420] }
  0x6c   : > { %1122 = vst [vmem:[#allocation1 + $0x10] ss:$2 sm:$0xff] %v10354_v3 }
  0x6d   : > { %v1036_v37 = vld.sshfl [vmem:[#allocation1] sm:$0xff pattern:$0x75316420]  ;;  %v1037_v38 = vld.sshfl [vmem:[#allocation1 + $0x8] sm:$0xff pattern:$0x75316420] }
  0x6e   : > { %956 = vrot.lane.b32.xlu1 %v951_v33, %s10216_s10  ;;  %1120 = vst [vmem:[#allocation1] ss:$2 sm:$0xff] %v10359_v5 }
  0x6f   : > { %954 = vrot.lane.b32.xlu2 %v950_v35, %s10216_s10  ;;  %v10460_v43 = vpop.permute.xlu2 %776 }
  0x73   : > { %v1125_v39 = vld.sshfl [vmem:[#allocation1 + $0x10] sm:$0xff pattern:$0x75316420] }
  0x74   : > { %1130 = vrot.lane.b32.xlu0 %v1125_v39, %s10209_s13  ;;  %1210 = vst [vmem:[#allocation1 + $0x10] ss:$2 sm:$0xff] %v10344_v1 }
  0x75   : > { %v1123_v40 = vld.sshfl [vmem:[#allocation1] sm:$0xff pattern:$0x75316420]  ;;  %v1124_v41 = vld.sshfl [vmem:[#allocation1 + $0x8] sm:$0xff pattern:$0x75316420] }
  0x76   : > { %1039 = vrot.lane.b32.xlu1 %v1036_v37, %s10218_s12  ;;  %1208 = vst [vmem:[#allocation1] ss:$2 sm:$0xff] %v10348_v2 }
  0x77   : > { %1041 = vrot.lane.b32.xlu2 %v1037_v38, %s10218_s12  ;;  %v10477_v50 = vpop.permute.xlu2 %1206 }
  0x7b   : > { %v1213_v42 = vld.sshfl [vmem:[#allocation1 + $0x10] sm:$0xff pattern:$0x75316420] }
  0x7c   : > { %1297 = vst [vmem:[#allocation1 + $0x10] ss:$2 sm:$0xff] %v10354_v3  ;;  %1126 = vrot.lane.b32.xlu0 %v1123_v40, %s10209_s13 }
  0x7d   : > { %v1212_v44 = vld.sshfl [vmem:[#allocation1 + $0x8] sm:$0xff pattern:$0x75316420]  ;;  %v1211_v45 = vld.sshfl [vmem:[#allocation1] sm:$0xff pattern:$0x75316420] }
  0x7e   : > { %1218 = vrot.lane.b32.xlu1 %v1213_v42, %s10209_s13  ;;  %1295 = vst [vmem:[#allocation1] ss:$2 sm:$0xff] %v10359_v5 }
  0x7f   : > { %1043 = vrot.lane.b32.xlu2 %v1038_v36, %s10218_s12 }
  0x83   : > { %v1300_v47 = vld.sshfl [vmem:[#allocation1 + $0x10] sm:$0xff pattern:$0x75316420] }
  0x84   : > { %1214 = vrot.lane.b32.xlu0 %v1211_v45, %s10209_s13  ;;  %1385 = vst [vmem:[#allocation1 + $0x10] ss:$2 sm:$0xff] %v10344_v1 }
  0x85   : > { %v1299_v48 = vld.sshfl [vmem:[#allocation1 + $0x8] sm:$0xff pattern:$0x75316420]  ;;  %v1298_v49 = vld.sshfl [vmem:[#allocation1] sm:$0xff pattern:$0x75316420] }
  0x86   : > { %v10465_v46 = vpop.permute.xlu0 %276  ;;  %1216 = vrot.lane.b32.xlu1 %v1212_v44, %s10209_s13  ;;  %1383 = vst [vmem:[#allocation1] ss:$2 sm:$0xff] %v10348_v2  ;;  %v10480_v51 = vpop.permute.xlu1 %432 }
  0x87   : > { %9400 = vmatmul.msk.f32.vlgmr.msra.gmra.mxu0 %vm286_vm1, %v10465_v46  ;;  %9402 = vmatmul.msk.f32.vlgmr.msra.gmra.mxu1 %vm286_vm1, %v10465_v46 }
  0x88   : > { %9404 = vmatmul.msk.f32.vlgmr.msra.gmra.mxu2 %vm286_vm1, %v10465_v46  ;;  %1128 = vrot.lane.b32.xlu2 %v1124_v41, %s10209_s13 }
  0x8b   : > { %v1388_v53 = vld.sshfl [vmem:[#allocation1 + $0x10] sm:$0xff pattern:$0x75316420] }
  0x8c   : > { %1303 = vrot.lane.b32.xlu0 %v1299_v48, %s10225_s26  ;;  %1472 = vst [vmem:[#allocation1 + $0x10] ss:$2 sm:$0xff] %v10354_v3 }
  0x8d   : > { %v1387_v54 = vld.sshfl [vmem:[#allocation1 + $0x8] sm:$0xff pattern:$0x75316420]  ;;  %v1386_v55 = vld.sshfl [vmem:[#allocation1] sm:$0xff pattern:$0x75316420] }
  0x8e   : > { %v10482_v52 = vpop.permute.xlu0 %520  ;;  %1470 = vst [vmem:[#allocation1] ss:$2 sm:$0xff] %v10359_v5  ;;  %v10492_v57 = vpop.permute.xlu1 %857 }
  0x8f   : > { %9408 = vmatmul.msk.f32.vlgmr.msrb.gmra.mxu0 %vm286_vm1, %v10324_v0  ;;  %9410 = vmatmul.msk.f32.vlgmr.msrb.gmra.mxu1 %vm286_vm1, %v10324_v0 }
  0x90   : > { %1301 = vrot.lane.b32.xlu2 %v1298_v49, %s10225_s26  ;;  %v441_v56 = vpop.permute.xlu2 %440 }
  0x93   : > { %v1475_v58 = vld.sshfl [vmem:[#allocation1 + $0x10] sm:$0xff pattern:$0x75316420] }
  0x94   : > { %1480 = vrot.lane.b32.xlu1 %v1475_v58, %s10226_s28  ;;  %1560 = vst [vmem:[#allocation1 + $0x10] ss:$2 sm:$0xff] %v10387_v17  ;;  %1391 = vrot.lane.b32.xlu0 %v1387_v54, %s10225_s26 }
  0x95   : > { %v1473_v60 = vld.sshfl [vmem:[#allocation1] sm:$0xff pattern:$0x75316420]  ;;  %v1474_v61 = vld.sshfl [vmem:[#allocation1 + $0x8] sm:$0xff pattern:$0x75316420] }
  0x96   : > { %v10497_v59 = vpop.permute.xlu0 %695  ;;  %1558 = vst [vmem:[#allocation1] ss:$2 sm:$0xff] %v10390_v19  ;;  %v10503_v4 = vpop.permute.xlu1 %1118 }
  0x98   : > { %1305 = vrot.lane.b32.xlu2 %v1300_v47, %s10225_s26 }
  0x99   : > { %v533_v62 = vpop.permute.xlu2 %532 }
  0x9b   : > { %v1563_v63 = vld.sshfl [vmem:[#allocation1 + $0x10] sm:$0xff pattern:$0x75316420] }
  0x9c   : > { %1393 = vrot.lane.b32.xlu0 %v1388_v53, %s10225_s26  ;;  %1476 = vrot.lane.b32.xlu1 %v1473_v60, %s10226_s28  ;;  %1647 = vst [vmem:[#allocation1 + $0x10] ss:$2 sm:$0xff] %v10398_v22 }
  0x9d   : > { %v1561_v6 = vld.sshfl [vmem:[#allocation1] sm:$0xff pattern:$0x75316420]  ;;  %v1562_v7 = vld.sshfl [vmem:[#allocation1 + $0x8] sm:$0xff pattern:$0x75316420] }
  0x9e   : > { %v10506_v8 = vpop.permute.xlu0 %607  ;;  %1645 = vst [vmem:[#allocation1] ss:$2 sm:$0xff] %v10403_v24 }
  0xa0   : > { %1389 = vrot.lane.b32.xlu2 %v1386_v55, %s10225_s26 }
  0xa1   : > { %v531_v9 = vpop.permute.xlu2 %530 }
  0xa2   : > { %v535_v20 = vsel %vm446_vm2, %v531_v9, %v533_v62 }
  0xa3   : > { %v1650_v10 = vld.sshfl [vmem:[#allocation1 + $0x10] sm:$0xff pattern:$0x75316420] }
  0xa4   : > { %1478 = vrot.lane.b32.xlu0 %v1474_v61, %s10226_s28  ;;  %1564 = vrot.lane.b32.xlu1 %v1561_v6, %s10209_s13  ;;  %1734 = vst [vmem:[#allocation1 + $0x10] ss:$2 sm:$0xff] %v10387_v17 }
  0xa5   : > { %v1649_v11 = vld.sshfl [vmem:[#allocation1 + $0x8] sm:$0xff pattern:$0x75316420]  ;;  %v1648_v12 = vld.sshfl [vmem:[#allocation1] sm:$0xff pattern:$0x75316420] }
  0xa6   : > { %v445_v13 = vpop.permute.xlu1 %444  ;;  %1732 = vst [vmem:[#allocation1] ss:$2 sm:$0xff] %v10390_v19 }
  0xa7   : > { %9415 = vmatpush.msk.msra.mxu0 %vm289_vm0, %v445_v13 }
  0xa8   : > { %1568 = vrot.lane.b32.xlu2 %v1563_v63, %s10209_s13  ;;  %v443_v14 = vpop.permute.xlu0 %442  ;;  %9416 = vmatmul.msk.f32.vlgmr.msra.gmra.mxu0 %vm286_vm1, %v10480_v51 }
  0xa9   : > { %v447_v15 = vsel %vm446_vm2, %v441_v56, %v443_v14  ;;  %v448_v16 = vsel %vm446_vm2, %v443_v14, %v445_v13  ;;  %v618_v18 = vpop.permute.xlu2 %617 }
  0xaa   : > { %9411 = vmatpush.msk.msrb.mxu2 %vm289_vm0, %v447_v15  ;;  %9413 = vmatpush.msk.msrb.mxu3 %vm289_vm0, %v448_v16 }
  0xab   : > { %9412 = vmatmul.msk.f32.vlgmr.msrb.gmra.mxu2 %vm286_vm1, %v10480_v51  ;;  %9414 = vmatmul.msk.f32.vlgmr.msrb.gmra.mxu3 %vm286_vm1, %v10480_v51  ;;  %v1737_v21 = vld.sshfl [vmem:[#allocation1 + $0x10] sm:$0xff pattern:$0x75316420] }
  0xac   : > { %1653 = vrot.lane.b32.xlu1 %v1649_v11, %s10209_s13  ;;  %1651 = vrot.lane.b32.xlu0 %v1648_v12, %s10209_s13  ;;  %1821 = vst [vmem:[#allocation1 + $0x10] ss:$2 sm:$0xff] %v10398_v22 }
  0xad   : > { %9419 = vmatpush.msk.msra.mxu2 %vm289_vm0, %v535_v20  ;;  %9421 = vmatpush.msk.msra.mxu3 %vm289_vm0, %v533_v62  ;;  %v1736_v30 = vld.sshfl [vmem:[#allocation1 + $0x8] sm:$0xff pattern:$0x75316420]  ;;  %v1735_v31 = vld.sshfl [vmem:[#allocation1] sm:$0xff pattern:$0x75316420] }
  0xae   : > { %1819 = vst [vmem:[#allocation1] ss:$2 sm:$0xff] %v10403_v24 }
  0xaf   : > { %9429 = vmatpush.msk.msrb.mxu3 %vm289_vm0, %v10406_v25 }
  0xb0   : > { %1566 = vrot.lane.b32.xlu2 %v1562_v7, %s10209_s13  ;;  %v529_v32 = vpop.permute.xlu1 %528  ;;  %v10536_v33 = vpop.permute.xlu0 %1031 }
  0xb1   : > { %v534_v34 = vsel %vm446_vm2, %v529_v32, %v531_v9  ;;  %v10539_v35 = vpop.permute.xlu2 %1468 }
  0xb2   : > { %9417 = vmatpush.msk.msra.mxu1 %vm289_vm0, %v534_v34 }
  0xb3   : > { %9418 = vmatmul.msk.f32.vlgmr.msra.gmra.mxu1 %vm286_vm1, %v10482_v52  ;;  %9420 = vmatmul.msk.f32.vlgmr.msra.gmra.mxu2 %vm286_vm1, %v10482_v52  ;;  %v1824_v25 = vld.sshfl [vmem:[#allocation1 + $0x10] sm:$0xff pattern:$0x75316420] }
  0xb4   : > { %9422 = vmatmul.msk.f32.vlgmr.msra.gmra.mxu3 %vm286_vm1, %v10482_v52  ;;  %1655 = vrot.lane.b32.xlu0 %v1650_v10, %s10209_s13  ;;  %1908 = vst [vmem:[#allocation1 + $0x10] ss:$2 sm:$0xff] %v10387_v17 }
  0xb5   : > { %1740 = vrot.lane.b32.xlu1 %v1736_v30, %s10225_s26  ;;  %9437 = vmatpush.msk.msra.mxu3 %vm289_vm0, %v10419_v29  ;;  %v1823_v36 = vld.sshfl [vmem:[#allocation1 + $0x8] sm:$0xff pattern:$0x75316420]  ;;  %v1822_v37 = vld.sshfl [vmem:[#allocation1] sm:$0xff pattern:$0x75316420] }
  0xb6   : > { %1906 = vst [vmem:[#allocation1] ss:$2 sm:$0xff] %v10390_v19 }
  0xb8   : > { %1643 = vrot.lane.b32.xlu2 %v10324_v0, %s10227_s29  ;;  %v616_v38 = vpop.permute.xlu1 %615  ;;  %v10559_v41 = vpop.permute.xlu0 %944  ;;  %s10235_s29 = smov 90  }
  0xb9   : > { %v622_v39 = vsel %vm621_vm3, %v616_v38, %v618_v18  ;;  %v10556_v40 = vpop.permute.xlu2 %1730 }
  0xba   : > { %9423 = vmatpush.msk.msrb.mxu0 %vm289_vm0, %v622_v39 }
  0xbb   : > { %9424 = vmatmul.msk.f32.vlgmr.msrb.gmra.mxu0 %vm286_vm1, %v10506_v8  ;;  %v1911_v29 = vld.sshfl [vmem:[#allocation1 + $0x10] sm:$0xff pattern:$0x75316420] }
  0xbc   : > { %9430 = vmatmul.msk.f32.vlgmr.msrb.gmra.mxu3 %vm286_vm1, %v10497_v59  ;;  %1738 = vrot.lane.b32.xlu0 %v1735_v31, %s10225_s26  ;;  %1995 = vst [vmem:[#allocation1 + $0x10] ss:$2 sm:$0xff] %v10354_v3 }
  0xbd   : > { %1742 = vrot.lane.b32.xlu1 %v1737_v21, %s10225_s26  ;;  %9431 = vmatpush.msk.msra.mxu0 %vm289_vm0, %v10408_v26  ;;  %v1910_v42 = vld.sshfl [vmem:[#allocation1 + $0x8] sm:$0xff pattern:$0x75316420]  ;;  %v1909_v44 = vld.sshfl [vmem:[#allocation1] sm:$0xff pattern:$0x75316420] }
  0xbe   : > { %1993 = vst [vmem:[#allocation1] ss:$2 sm:$0xff] %v10359_v5 }
  0xbf   : > { %9439 = vmatpush.msk.msrb.mxu0 %vm289_vm0, %v10414_v27 }
  0xc0   : > { %1829 = vrot.lane.b32.xlu2 %v1824_v25, %s10225_s26  ;;  %v620_v45 = vpop.permute.xlu1 %619  ;;  %v10588_v27 = vpop.permute.xlu0 %1556 }
  0xc1   : > { %v623_v47 = vsel %vm621_vm3, %v618_v18, %v620_v45  ;;  %9427 = vmatpush.msk.msrb.mxu2 %vm289_vm0, %v620_v45  ;;  %v866_v48 = vpop.permute.xlu2 %865 }
  0xc2   : > { %9425 = vmatpush.msk.msrb.mxu1 %vm289_vm0, %v623_v47  ;;  %9428 = vmatmul.msk.f32.vlgmr.msrb.gmra.mxu2 %vm286_vm1, %v10506_v8 }
  0xc3   : > { %9426 = vmatmul.msk.f32.vlgmr.msrb.gmra.mxu1 %vm286_vm1, %v10506_v8  ;;  %9432 = vmatmul.msk.f32.vlgmr.msra.gmra.mxu0 %vm286_vm1, %v10497_v59  ;;  %v10583_v26 = vld.sshfl [vmem:[#allocation1 + $0x10] sm:$0xff pattern:$0x75316420] }
  0xc4   : > { %9438 = vmatmul.msk.f32.vlgmr.msra.gmra.mxu3 %vm286_vm1, %v10460_v43  ;;  %1817 = vrot.lane.b32.xlu0 %v10324_v0, %s10228_s9  ;;  %2083 = vst [vmem:[#allocation1 + $0x10] ss:$2 sm:$0xff] %v10344_v1  ;;  %s10236_s9 = smov 56  }
  0xc5   : > { %1827 = vrot.lane.b32.xlu1 %v1823_v36, %s10225_s26  ;;  %9435 = vmatpush.msk.msra.mxu2 %vm289_vm0, %v10417_v28  ;;  %v1996_v49 = vld.sshfl [vmem:[#allocation1] sm:$0xff pattern:$0x75316420]  ;;  %v1997_v53 = vld.sshfl [vmem:[#allocation1 + $0x8] sm:$0xff pattern:$0x75316420] }
  0xc6   : > { %9433 = vmatpush.msk.msra.mxu1 %vm289_vm0, %v10400_v23  ;;  %2081 = vst [vmem:[#allocation1] ss:$2 sm:$0xff] %v10348_v2 }
  0xc8   : > { %1825 = vrot.lane.b32.xlu2 %v1822_v37, %s10225_s26  ;;  %v10598_v54 = vpop.permute.xlu1 %1381 }
  0xc9   : > { %v955_v55 = vpop.permute.xlu2 %954 }
  0xca   : > { %9436 = vmatmul.msk.f32.vlgmr.msra.gmra.mxu2 %vm286_vm1, %v10460_v43 }
  0xcb   : > { %9434 = vmatmul.msk.f32.vlgmr.msra.gmra.mxu1 %vm286_vm1, %v10497_v59  ;;  %9440 = vmatmul.msk.f32.vlgmr.msrb.gmra.mxu0 %vm286_vm1, %v10460_v43  ;;  %v10606_v28 = vld.sshfl [vmem:[#allocation1 + $0x10] sm:$0xff pattern:$0x75316420] }
  0xcc   : > { %1916 = vrot.lane.b32.xlu0 %v1911_v29, %s10226_s28  ;;  %2170 = vst [vmem:[#allocation1 + $0x10] ss:$2 sm:$0xff] %v10354_v3 }
  0xcd   : > { %1904 = vrot.lane.b32.xlu1 %v10324_v0, %s10229_s11  ;;  %v2084_v23 = vld.sshfl [vmem:[#allocation1] sm:$0xff pattern:$0x75316420]  ;;  %v2085_v56 = vld.sshfl [vmem:[#allocation1 + $0x8] sm:$0xff pattern:$0x75316420] }
  0xce   : > { %v870_v58 = vpop.permute.xlu0 %869  ;;  %2168 = vst [vmem:[#allocation1] ss:$2 sm:$0xff] %v10359_v5 }
  0xcf   : > { %9445 = vmatpush.msk.msrb.mxu3 %vm289_vm0, %v870_v58 }
  0xd0   : > { %1912 = vrot.lane.b32.xlu2 %v1909_v44, %s10226_s28  ;;  %v10614_v60 = vpop.permute.xlu1 %1293  ;;  %9446 = vmatmul.msk.f32.vlgmr.msrb.gmra.mxu3 %vm286_vm1, %v10492_v57 }
  0xd1   : > { %v1042_v61 = vpop.permute.xlu2 %1041 }
  0xd3   : > { %v2173_v62 = vld.sshfl [vmem:[#allocation1 + $0x10] sm:$0xff pattern:$0x75316420] }
  0xd4   : > { %1914 = vrot.lane.b32.xlu0 %v1910_v42, %s10226_s28  ;;  %2258 = vst [vmem:[#allocation1 + $0x10] ss:$2 sm:$0xff] %v10344_v1 }
  0xd5   : > { %1999 = vrot.lane.b32.xlu1 %v1996_v49, %s10223_s19  ;;  %v2172_v63 = vld.sshfl [vmem:[#allocation1 + $0x8] sm:$0xff pattern:$0x75316420]  ;;  %v10621_v6 = vld.sshfl [vmem:[#allocation1] sm:$0xff pattern:$0x75316420] }
  0xd6   : > { %v868_v7 = vpop.permute.xlu0 %867  ;;  %2256 = vst [vmem:[#allocation1] ss:$2 sm:$0xff] %v10348_v2 }
  0xd7   : > { %v871_v9 = vsel %vm446_vm2, %v866_v48, %v868_v7  ;;  %v872_v10 = vsel %vm446_vm2, %v868_v7, %v870_v58 }
  0xd8   : > { %2001 = vrot.lane.b32.xlu2 %v1997_v53, %s10223_s19  ;;  %v953_v11 = vpop.permute.xlu1 %952  ;;  %9441 = vmatpush.msk.msrb.mxu1 %vm289_vm0, %v871_v9 }
  0xd9   : > { %9443 = vmatpush.msk.msrb.mxu2 %vm289_vm0, %v872_v10  ;;  %v958_v12 = vsel %vm446_vm2, %v953_v11, %v955_v55  ;;  %9442 = vmatmul.msk.f32.vlgmr.msrb.gmra.mxu1 %vm286_vm1, %v10492_v57  ;;  %v1044_v13 = vpop.permute.xlu2 %1043 }
  0xda   : > { %9444 = vmatmul.msk.f32.vlgmr.msrb.gmra.mxu2 %vm286_vm1, %v10492_v57  ;;  %9447 = vmatpush.msk.msra.mxu0 %vm289_vm0, %v958_v12  ;;  %v1046_v14 = vsel %vm621_vm3, %v1042_v61, %v1044_v13 }
  0xdb   : > { %9448 = vmatmul.msk.f32.vlgmr.msra.gmra.mxu0 %vm286_vm1, %v10559_v41  ;;  %v2261_v15 = vld.sshfl [vmem:[#allocation1 + $0x10] sm:$0xff pattern:$0x75316420] }
  0xdc   : > { %2079 = vrot.lane.b32.xlu0 %v10324_v0, %s10230_s15  ;;  %9455 = vmatpush.msk.msrb.mxu0 %vm289_vm0, %v1046_v14  ;;  %2345 = vst [vmem:[#allocation1 + $0x10] ss:$2 sm:$0xff] %v10354_v3 }
  0xdd   : > { %2087 = vrot.lane.b32.xlu1 %v2084_v23, %s10223_s19  ;;  %v10642_v16 = vld.sshfl [vmem:[#allocation1 + $0x8] sm:$0xff pattern:$0x75316420]  ;;  %v10644_v18 = vld.sshfl [vmem:[#allocation1] sm:$0xff pattern:$0x75316420] }
  0xde   : > { %2343 = vst [vmem:[#allocation1] ss:$2 sm:$0xff] %v10359_v5 }
  0xe0   : > { %2089 = vrot.lane.b32.xlu2 %v2085_v56, %s10223_s19  ;;  %v957_v20 = vpop.permute.xlu1 %956 }
  0xe1   : > { %v959_v21 = vsel %vm446_vm2, %v955_v55, %v957_v20  ;;  %9451 = vmatpush.msk.msra.mxu2 %vm289_vm0, %v957_v20 }
  0xe2   : > { %v1129_v30 = vpop.permute.xlu2 %1128  ;;  %9449 = vmatpush.msk.msra.mxu1 %vm289_vm0, %v959_v21  ;;  %9452 = vmatmul.msk.f32.vlgmr.msra.gmra.mxu2 %vm286_vm1, %v10559_v41 }
  0xe3   : > { %9450 = vmatmul.msk.f32.vlgmr.msra.gmra.mxu1 %vm286_vm1, %v10559_v41  ;;  %9456 = vmatmul.msk.f32.vlgmr.msrb.gmra.mxu0 %vm286_vm1, %v10536_v33  ;;  %v10657_v31 = vld.sshfl [vmem:[#allocation1 + $0x10] sm:$0xff pattern:$0x75316420] }
  0xe4   : > { %1991 = vrot.lane.b32.xlu0 %v10324_v0, %s10231_s16  ;;  %9457 = vmatpush.msk.msrb.mxu1 %vm289_vm0, %v1044_v13  ;;  %2442 = vst [vmem:[#allocation1 + $0x10] ss:$2 sm:$0xff] %v10354_v3 }
  0xe5   : > { %2003 = vrot.lane.b32.xlu1 %v10583_v26, %s10223_s19  ;;  %v10664_v32 = vld.sshfl [vmem:[#allocation1] sm:$0xff pattern:$0x75316420]  ;;  %v10666_v34 = vld.sshfl [vmem:[#allocation1 + $0x8] sm:$0xff pattern:$0x75316420] }
  0xe6   : > { %v1131_v25 = vpop.permute.xlu0 %1130  ;;  %2440 = vst [vmem:[#allocation1] ss:$2 sm:$0xff] %v10359_v5 }
  0xe7   : > { %9463 = vmatpush.msk.msra.mxu0 %vm289_vm0, %v1131_v25  ;;  %v1134_v39 = vsel %vm1132_vm4, %v1129_v30, %v1131_v25 }
  0xe8   : > { %2176 = vrot.lane.b32.xlu2 %v2172_v63, %s10232_s17  ;;  %v1040_v36 = vpop.permute.xlu1 %1039 }
  0xe9   : > { %v1045_v37 = vsel %vm621_vm3, %v1040_v36, %v1042_v61 }
  0xea   : > { %v1302_v38 = vpop.permute.xlu2 %1301  ;;  %9453 = vmatpush.msk.msra.mxu3 %vm289_vm0, %v1045_v37 }
  0xeb   : > { %9454 = vmatmul.msk.f32.vlgmr.msra.gmra.mxu3 %vm286_vm1, %v10536_v33  ;;  %9458 = vmatmul.msk.f32.vlgmr.msrb.gmra.mxu1 %vm286_vm1, %v10536_v33  ;;  %v10678_v29 = vld.sshfl [vmem:[#allocation1 + $0x10] sm:$0xff pattern:$0x75316420] }
  0xec   : > { %9464 = vmatmul.msk.f32.vlgmr.msra.gmra.mxu0 %vm286_vm1, %v10503_v4  ;;  %2178 = vrot.lane.b32.xlu0 %v2173_v62, %s10232_s17  ;;  %2522 = vst [vmem:[#allocation1 + $0x10] ss:$2 sm:$0xff] %v10344_v1 }
  0xed   : > { %2166 = vrot.lane.b32.xlu1 %v10324_v0, %s10233_s18  ;;  %9461 = vmatpush.msk.msrb.mxu3 %vm289_vm0, %v1134_v39  ;;  %v2444_v42 = vld.sshfl [vmem:[#allocation1 + $0x8] sm:$0xff pattern:$0x75316420]  ;;  %v2443_v44 = vld.sshfl [vmem:[#allocation1] sm:$0xff pattern:$0x75316420] }
  0xee   : > { %v1127_v45 = vpop.permute.xlu0 %1126  ;;  %2520 = vst [vmem:[#allocation1] ss:$2 sm:$0xff] %v10348_v2  ;;  %s10163_s18 = scalar_lea.hbm %s13286_s5, 2 }
  0xef   : > { %v1133_v47 = vsel %vm1132_vm4, %v1127_v45, %v1129_v30 }
  0xf0   : > { %2091 = vrot.lane.b32.xlu2 %v10606_v28, %s10223_s19  ;;  %v1219_v48 = vpop.permute.xlu1 %1218  ;;  %9459 = vmatpush.msk.msrb.mxu2 %vm289_vm0, %v1133_v47 }
  0xf1   : > { %9460 = vmatmul.msk.f32.vlgmr.msrb.gmra.mxu2 %vm286_vm1, %v10503_v4  ;;  %9469 = vmatpush.msk.msra.mxu3 %vm289_vm0, %v1219_v48 }
  0xf2   : > { %v1306_v26 = vpop.permute.xlu2 %1305 }
  0xf3   : > { %9462 = vmatmul.msk.f32.vlgmr.msrb.gmra.mxu3 %vm286_vm1, %v10503_v4  ;;  %v10696_v49 = vld.sshfl [vmem:[#allocation1 + $0x10] sm:$0xff pattern:$0x75316420] }
  0xf4   : > { %2174 = vrot.lane.b32.xlu0 %v10621_v6, %s10232_s17  ;;  %2594 = vst [vmem:[#allocation1 + $0x10] ss:$2 sm:$0xff] %v10344_v1 }
  0xf5   : > { %2266 = vrot.lane.b32.xlu1 %v2261_v15, %s10232_s17  ;;  %v10702_v53 = vld.sshfl [vmem:[#allocation1] sm:$0xff pattern:$0x75316420]  ;;  %v10704_v55 = vld.sshfl [vmem:[#allocation1 + $0x8] sm:$0xff pattern:$0x75316420] }
  0xf6   : > { %v1215_v28 = vpop.permute.xlu0 %1214  ;;  %2592 = vst [vmem:[#allocation1] ss:$2 sm:$0xff] %v10348_v2 }
  0xf8   : > { %2254 = vrot.lane.b32.xlu2 %v10324_v0, %s10234_s20  ;;  %v1217_v23 = vpop.permute.xlu1 %1216 }
  0xf9   : > { %v1221_v56 = vsel %vm1132_vm4, %v1217_v23, %v1219_v48  ;;  %v1220_v58 = vsel %vm1132_vm4, %v1215_v28, %v1217_v23 }
  0xfa   : > { %v1390_v61 = vpop.permute.xlu2 %1389  ;;  %9465 = vmatpush.msk.msra.mxu1 %vm289_vm0, %v1220_v58  ;;  %9467 = vmatpush.msk.msra.mxu2 %vm289_vm0, %v1221_v56 }
  0xfb   : > { %9466 = vmatmul.msk.f32.vlgmr.msra.gmra.mxu1 %vm286_vm1, %v10477_v50  ;;  %9468 = vmatmul.msk.f32.vlgmr.msra.gmra.mxu2 %vm286_vm1, %v10477_v50  ;;  %v2597_v62 = vld.sshfl [vmem:[#allocation1 + $0x10] sm:$0xff pattern:$0x75316420] }
  0xfc   : > { %9470 = vmatmul.msk.f32.vlgmr.msra.gmra.mxu3 %vm286_vm1, %v10477_v50  ;;  %2262 = vrot.lane.b32.xlu0 %v10644_v18, %s10232_s17  ;;  %2677 = vst [vmem:[#allocation1 + $0x10] ss:$2 sm:$0xff] %v10354_v3 }
  0xfd   : > { %2264 = vrot.lane.b32.xlu1 %v10642_v16, %s10232_s17  ;;  %9475 = vmatpush.msk.msrb.mxu2 %vm289_vm0, %v1306_v26  ;;  %v2595_v63 = vld.sshfl [vmem:[#allocation1] sm:$0xff pattern:$0x75316420]  ;;  %v2596_v6 = vld.sshfl [vmem:[#allocation1 + $0x8] sm:$0xff pattern:$0x75316420] }
  0xfe   : > { %v1304_v7 = vpop.permute.xlu0 %1303  ;;  %2675 = vst [vmem:[#allocation1] ss:$2 sm:$0xff] %v10359_v5 }
  0xff   : > { %v1308_v9 = vsel %vm1307_vm5, %v1302_v38, %v1304_v7  ;;  %v1309_v10 = vsel %vm1307_vm5, %v1304_v7, %v1306_v26 }
 0x100   : > { %2446 = vrot.lane.b32.xlu2 %v2443_v44, %s10216_s10  ;;  %9471 = vmatpush.msk.msrb.mxu0 %vm289_vm0, %v1308_v9 }
 0x101   : > { %9473 = vmatpush.msk.msrb.mxu1 %vm289_vm0, %v1309_v10  ;;  %9472 = vmatmul.msk.f32.vlgmr.msrb.gmra.mxu0 %vm286_vm1, %v10614_v60 }
 0x102   : > { %v1569_v11 = vpop.permute.xlu2 %1568 }
 0x103   : > { %9474 = vmatmul.msk.f32.vlgmr.msrb.gmra.mxu1 %vm286_vm1, %v10614_v60  ;;  %9476 = vmatmul.msk.f32.vlgmr.msrb.gmra.mxu2 %vm286_vm1, %v10614_v60  ;;  %v10736_v12 = vld.sshfl [vmem:[#allocation1 + $0x10] sm:$0xff pattern:$0x75316420] }
 0x104   : > { %2448 = vrot.lane.b32.xlu0 %v2444_v42, %s10216_s10  ;;  %2760 = vst [vmem:[#allocation1 + $0x10] ss:$2 sm:$0xff] %v10344_v1 }
 0x105   : > { %2349 = vrot.lane.b32.xlu1 %v10664_v32, %s10235_s29  ;;  %v10742_v13 = vld.sshfl [vmem:[#allocation1] sm:$0xff pattern:$0x75316420]  ;;  %v10744_v14 = vld.sshfl [vmem:[#allocation1 + $0x8] sm:$0xff pattern:$0x75316420] }
 0x106   : > { %v1481_v15 = vpop.permute.xlu1 %1480  ;;  %v1392_v16 = vpop.permute.xlu0 %1391  ;;  %2758 = vst [vmem:[#allocation1] ss:$2 sm:$0xff] %v10348_v2 }
 0x107   : > { %v1395_v18 = vsel %vm1307_vm5, %v1390_v61, %v1392_v16 }
 0x108   : > { %2351 = vrot.lane.b32.xlu2 %v10666_v34, %s10235_s29  ;;  %9477 = vmatpush.msk.msrb.mxu3 %vm289_vm0, %v1395_v18 }
 0x109   : > { %9478 = vmatmul.msk.f32.vlgmr.msrb.gmra.mxu3 %vm286_vm1, %v10598_v54 }
 0x10a   : > { %v1567_v20 = vpop.permute.xlu2 %1566 }
 0x10b   : > { %v10753_v21 = vld.sshfl [vmem:[#allocation1 + $0x10] sm:$0xff pattern:$0x75316420]  ;;  %v1571_v47 = vsel %vm1132_vm4, %v1567_v20, %v1569_v11 }
 0x10c   : > { %2341 = vrot.lane.b32.xlu0 %v10324_v0, %s10236_s9  ;;  %2843 = vst [vmem:[#allocation1 + $0x10] ss:$2 sm:$0xff] %v10398_v22 }
 0x10d   : > { %2353 = vrot.lane.b32.xlu1 %v10657_v31, %s10235_s29  ;;  %v2762_v30 = vld.sshfl [vmem:[#allocation1 + $0x8] sm:$0xff pattern:$0x75316420]  ;;  %v2761_v32 = vld.sshfl [vmem:[#allocation1] sm:$0xff pattern:$0x75316420] }
 0x10e   : > { %v1394_v25 = vpop.permute.xlu0 %1393  ;;  %v1477_v34 = vpop.permute.xlu1 %1476  ;;  %2841 = vst [vmem:[#allocation1] ss:$2 sm:$0xff] %v10403_v24 }
 0x10f   : > { %v1396_v36 = vsel %vm1307_vm5, %v1392_v16, %v1394_v25  ;;  %9481 = vmatpush.msk.msra.mxu1 %vm289_vm0, %v1394_v25 }
 0x110   : > { %2450 = vrot.lane.b32.xlu2 %v10678_v29, %s10216_s10  ;;  %9479 = vmatpush.msk.msra.mxu0 %vm289_vm0, %v1396_v36 }
 0x111   : > { %9482 = vmatmul.msk.f32.vlgmr.msra.gmra.mxu1 %vm286_vm1, %v10598_v54  ;;  %9480 = vmatmul.msk.f32.vlgmr.msra.gmra.mxu0 %vm286_vm1, %v10598_v54 }
 0x112   : > { %v10769_v0 = vpop.permute.xlu2 %1643  ;;  %9487 = vmatpush.msk.msrb.mxu0 %vm289_vm0, %v1481_v15 }
 0x113   : > { %v10772_v31 = vld.sshfl [vmem:[#allocation1 + $0x10] sm:$0xff pattern:$0x75316420] }
 0x114   : > { %2602 = vrot.lane.b32.xlu0 %v2597_v62, %s10216_s10  ;;  %2918 = vst [vmem:[#allocation1 + $0x10] ss:$2 sm:$0xff] %v10387_v17 }
 0x115   : > { %2598 = vrot.lane.b32.xlu1 %v2595_v63, %s10216_s10  ;;  %v10777_v37 = vld.sshfl [vmem:[#allocation1] sm:$0xff pattern:$0x75316420]  ;;  %v10779_v38 = vld.sshfl [vmem:[#allocation1 + $0x8] sm:$0xff pattern:$0x75316420] }
 0x116   : > { %v1479_v39 = vpop.permute.xlu0 %1478  ;;  %v1565_v29 = vpop.permute.xlu1 %1564  ;;  %2916 = vst [vmem:[#allocation1] ss:$2 sm:$0xff] %v10390_v19 }
 0x117   : > { %v1483_v42 = vsel %vm1482_vm6, %v1477_v34, %v1479_v39  ;;  %v1484_v44 = vsel %vm1482_vm6, %v1479_v39, %v1481_v15  ;;  %v1570_v45 = vsel %vm1132_vm4, %v1565_v29, %v1567_v20 }
 0x118   : > { %2600 = vrot.lane.b32.xlu2 %v2596_v6, %s10216_s10  ;;  %9483 = vmatpush.msk.msra.mxu2 %vm289_vm0, %v1483_v42 }
 0x119   : > { %9485 = vmatpush.msk.msra.mxu3 %vm289_vm0, %v1484_v44  ;;  %9489 = vmatpush.msk.msrb.mxu1 %vm289_vm0, %v1570_v45 }
 0x11a   : > { %9484 = vmatmul.msk.f32.vlgmr.msra.gmra.mxu2 %vm286_vm1, %v10539_v35  ;;  %v10792_v48 = vpop.permute.xlu2 %1829  ;;  %9486 = vmatmul.msk.f32.vlgmr.msra.gmra.mxu3 %vm286_vm1, %v10539_v35 }
 0x11b   : > { %9488 = vmatmul.msk.f32.vlgmr.msrb.gmra.mxu0 %vm286_vm1, %v10539_v35  ;;  %9490 = vmatmul.msk.f32.vlgmr.msrb.gmra.mxu1 %vm286_vm1, %v10588_v27  ;;  %v2921_v26 = vld.sshfl [vmem:[#allocation1 + $0x10] sm:$0xff pattern:$0x75316420] }
 0x11c   : > { %9491 = vmatpush.msk.msrb.mxu2 %vm289_vm0, %v1571_v47  ;;  %2764 = vrot.lane.b32.xlu0 %v2761_v32, %s10218_s12  ;;  %3001 = vst [vmem:[#allocation1 + $0x10] ss:$2 sm:$0xff] %v10398_v22 }
 0x11d   : > { %9493 = vmatpush.msk.msrb.mxu3 %vm289_vm0, %v1569_v11  ;;  %2766 = vrot.lane.b32.xlu1 %v2762_v30, %s10218_s12  ;;  %v2919_v28 = vld.sshfl [vmem:[#allocation1] sm:$0xff pattern:$0x75316420]  ;;  %v2920_v23 = vld.sshfl [vmem:[#allocation1 + $0x8] sm:$0xff pattern:$0x75316420] }
 0x11e   : > { %v1654_v56 = vpop.permute.xlu1 %1653  ;;  %v1652_v58 = vpop.permute.xlu0 %1651  ;;  %2999 = vst [vmem:[#allocation1] ss:$2 sm:$0xff] %v10403_v24 }
 0x11f   : > { %v1657_v61 = vsel %vm1132_vm4, %v1652_v58, %v1654_v56 }
 0x120   : > { %2681 = vrot.lane.b32.xlu2 %v10742_v13, %s10218_s12  ;;  %9495 = vmatpush.msk.msra.mxu0 %vm289_vm0, %v1657_v61 }
 0x122   : > { %9492 = vmatmul.msk.f32.vlgmr.msrb.gmra.mxu2 %vm286_vm1, %v10588_v27  ;;  %v1826_v62 = vpop.permute.xlu2 %1825  ;;  %9494 = vmatmul.msk.f32.vlgmr.msrb.gmra.mxu3 %vm286_vm1, %v10588_v27 }
 0x123   : > { %9496 = vmatmul.msk.f32.vlgmr.msra.gmra.mxu0 %vm286_vm1, %v10769_v0  ;;  %v3004_v63 = vld.sshfl [vmem:[#allocation1 + $0x10] sm:$0xff pattern:$0x75316420] }
 0x124   : > { %2683 = vrot.lane.b32.xlu0 %v10744_v14, %s10218_s12  ;;  %3084 = vst [vmem:[#allocation1 + $0x10] ss:$2 sm:$0xff] %v10387_v17 }
 0x125   : > { %2685 = vrot.lane.b32.xlu1 %v10736_v12, %s10218_s12  ;;  %v3003_v6 = vld.sshfl [vmem:[#allocation1 + $0x8] sm:$0xff pattern:$0x75316420]  ;;  %v3002_v7 = vld.sshfl [vmem:[#allocation1] sm:$0xff pattern:$0x75316420] }
 0x126   : > { %v1656_v9 = vpop.permute.xlu0 %1655  ;;  %3082 = vst [vmem:[#allocation1] ss:$2 sm:$0xff] %v10390_v19 }
 0x127   : > { %v1658_v10 = vsel %vm1132_vm4, %v1654_v56, %v1656_v9  ;;  %v1741_v11 = vpop.permute.xlu1 %1740  ;;  %9499 = vmatpush.msk.msra.mxu2 %vm289_vm0, %v1656_v9 }
 0x128   : > { %2768 = vrot.lane.b32.xlu2 %v10753_v21, %s10218_s12  ;;  %9497 = vmatpush.msk.msra.mxu1 %vm289_vm0, %v1658_v10 }
 0x129   : > { %9498 = vmatmul.msk.f32.vlgmr.msra.gmra.mxu1 %vm286_vm1, %v10769_v0 }
 0x12a   : > { %9500 = vmatmul.msk.f32.vlgmr.msra.gmra.mxu2 %vm286_vm1, %v10769_v0  ;;  %v1913_v12 = vpop.permute.xlu2 %1912 }
 0x12b   : > { %v3087_v13 = vld.sshfl [vmem:[#allocation1 + $0x10] sm:$0xff pattern:$0x75316420] }
 0x12c   : > { %2926 = vrot.lane.b32.xlu0 %v2921_v26, %s10216_s10  ;;  %3167 = vst [vmem:[#allocation1 + $0x10] ss:$2 sm:$0xff] %v10398_v22 }
 0x12d   : > { %2922 = vrot.lane.b32.xlu1 %v2919_v28, %s10216_s10  ;;  %v3086_v14 = vld.sshfl [vmem:[#allocation1 + $0x8] sm:$0xff pattern:$0x75316420]  ;;  %v3085_v15 = vld.sshfl [vmem:[#allocation1] sm:$0xff pattern:$0x75316420] }
 0x12e   : > { %3165 = vst [vmem:[#allocation1] ss:$2 sm:$0xff] %v10403_v24  ;;  %v1739_v18 = vpop.permute.xlu0 %1738 }
 0x12f   : > { %v1743_v16 = vpop.permute.xlu1 %1742  ;;  %v1744_v21 = vsel %vm1307_vm5, %v1739_v18, %v1741_v11 }
 0x130   : > { %2924 = vrot.lane.b32.xlu2 %v2920_v23, %s10216_s10  ;;  %v1745_v20 = vsel %vm1307_vm5, %v1741_v11, %v1743_v16  ;;  %9505 = vmatpush.msk.msrb.mxu1 %vm289_vm0, %v1743_v16 }
 0x131   : > { %9501 = vmatpush.msk.msra.mxu3 %vm289_vm0, %v1744_v21  ;;  %9503 = vmatpush.msk.msrb.mxu0 %vm289_vm0, %v1745_v20 }
 0x132   : > { %v10841_v30 = vpop.permute.xlu2 %2001  ;;  %9502 = vmatmul.msk.f32.vlgmr.msra.gmra.mxu3 %vm286_vm1, %v10556_v40  ;;  %9504 = vmatmul.msk.f32.vlgmr.msrb.gmra.mxu0 %vm286_vm1, %v10556_v40 }
 0x133   : > { %9506 = vmatmul.msk.f32.vlgmr.msrb.gmra.mxu1 %vm286_vm1, %v10556_v40  ;;  %9511 = vmatpush.msk.msra.mxu0 %vm289_vm0, %v10792_v48  ;;  %v3170_v32 = vld.sshfl [vmem:[#allocation1 + $0x10] sm:$0xff pattern:$0x75316420] }
 0x134   : > { %3007 = vrot.lane.b32.xlu0 %v3003_v6, %s10216_s10  ;;  %3250 = vst [vmem:[#allocation1 + $0x10] ss:$2 sm:$0xff] %v10344_v1 }
 0x135   : > { %3009 = vrot.lane.b32.xlu1 %v3004_v63, %s10216_s10  ;;  %v3169_v25 = vld.sshfl [vmem:[#allocation1 + $0x8] sm:$0xff pattern:$0x75316420]  ;;  %v3168_v34 = vld.sshfl [vmem:[#allocation1] sm:$0xff pattern:$0x75316420] }
 0x136   : > { %3248 = vst [vmem:[#allocation1] ss:$2 sm:$0xff] %v10348_v2  ;;  %v10855_v36 = vpop.permute.xlu0 %1817 }
 0x137   : > { %v1828_v39 = vpop.permute.xlu1 %1827 }
 0x138   : > { %3005 = vrot.lane.b32.xlu2 %v3002_v7, %s10216_s10  ;;  %v1831_v29 = vsel %vm1307_vm5, %v1826_v62, %v1828_v39  ;;  %v1832_v42 = vsel %vm1307_vm5, %v1828_v39, %v10792_v48 }
 0x139   : > { %9507 = vmatpush.msk.msrb.mxu2 %vm289_vm0, %v1831_v29  ;;  %9509 = vmatpush.msk.msrb.mxu3 %vm289_vm0, %v1832_v42 }
 0x13a   : > { %v2090_v44 = vpop.permute.xlu2 %2089  ;;  %9508 = vmatmul.msk.f32.vlgmr.msrb.gmra.mxu2 %vm286_vm1, %v10855_v36  ;;  %9510 = vmatmul.msk.f32.vlgmr.msrb.gmra.mxu3 %vm286_vm1, %v10855_v36 }
 0x13b   : > { %v3253_v45 = vld.sshfl [vmem:[#allocation1 + $0x10] sm:$0xff pattern:$0x75316420]  ;;  %9512 = vmatmul.msk.f32.vlgmr.msra.gmra.mxu0 %vm286_vm1, %v10855_v36 }
 0x13c   : > { %3088 = vrot.lane.b32.xlu0 %v3085_v15, %s10218_s12  ;;  %3333 = vst [vmem:[#allocation1 + $0x10] ss:$2 sm:$0xff] %v10354_v3 }
 0x13d   : > { %3090 = vrot.lane.b32.xlu1 %v3086_v14, %s10218_s12  ;;  %v3251_v47 = vld.sshfl [vmem:[#allocation1] sm:$0xff pattern:$0x75316420]  ;;  %v3252_v48 = vld.sshfl [vmem:[#allocation1 + $0x8] sm:$0xff pattern:$0x75316420] }
 0x13e   : > { %3331 = vst [vmem:[#allocation1] ss:$2 sm:$0xff] %v10359_v5  ;;  %v1917_v26 = vpop.permute.xlu0 %1916 }
 0x13f   : > { %9517 = vmatpush.msk.msra.mxu3 %vm289_vm0, %v1917_v26  ;;  %v10875_v28 = vpop.permute.xlu1 %1904 }
 0x140   : > { %3173 = vrot.lane.b32.xlu2 %v3169_v25, %s10218_s12 }
 0x142   : > { %v10877_v23 = vpop.permute.xlu2 %2176  ;;  %9518 = vmatmul.msk.f32.vlgmr.msra.gmra.mxu3 %vm286_vm1, %v10875_v28 }
 0x143   : > { %v3336_v56 = vld.sshfl [vmem:[#allocation1 + $0x10] sm:$0xff pattern:$0x75316420] }
 0x144   : > { %3175 = vrot.lane.b32.xlu0 %v3170_v32, %s10218_s12  ;;  %3416 = vst [vmem:[#allocation1 + $0x10] ss:$2 sm:$0xff] %v10344_v1 }
 0x145   : > { %3092 = vrot.lane.b32.xlu1 %v3087_v13, %s10218_s12  ;;  %v3335_v58 = vld.sshfl [vmem:[#allocation1 + $0x8] sm:$0xff pattern:$0x75316420]  ;;  %v3334_v61 = vld.sshfl [vmem:[#allocation1] sm:$0xff pattern:$0x75316420] }
 0x146   : > { %3414 = vst [vmem:[#allocation1] ss:$2 sm:$0xff] %v10348_v2  ;;  %v1915_v62 = vpop.permute.xlu0 %1914 }
 0x147   : > { %v1918_v63 = vsel %vm1482_vm6, %v1913_v12, %v1915_v62  ;;  %v1919_v6 = vsel %vm1482_vm6, %v1915_v62, %v1917_v26  ;;  %v2000_v7 = vpop.permute.xlu1 %1999 }
 0x148   : > { %3171 = vrot.lane.b32.xlu2 %v3168_v34, %s10218_s12  ;;  %9513 = vmatpush.msk.msra.mxu1 %vm289_vm0, %v1918_v63  ;;  %v2006_v10 = vsel %vm2005_vm7, %v2000_v7, %v10841_v30  ;;  %v10954_v63 = vpop.f32.mrf.mxu0 }
 0x149   : > { %9515 = vmatpush.msk.msra.mxu2 %vm289_vm0, %v1919_v6  ;;  %9514 = vmatmul.msk.f32.vlgmr.msra.gmra.mxu1 %vm286_vm1, %v10875_v28 }
 0x14a   : > { %v2092_v9 = vpop.permute.xlu2 %2091  ;;  %9516 = vmatmul.msk.f32.vlgmr.msra.gmra.mxu2 %vm286_vm1, %v10875_v28  ;;  %9519 = vmatpush.msk.msrb.mxu0 %vm289_vm0, %v2006_v10 }
 0x14b   : > { %v2094_v11 = vsel %vm2005_vm7, %v2090_v44, %v2092_v9  ;;  %v3419_v12 = vld.sshfl [vmem:[#allocation1 + $0x10] sm:$0xff pattern:$0x75316420] }
 0x14c   : > { %3258 = vrot.lane.b32.xlu0 %v3253_v45, %s10209_s13  ;;  %9527 = vmatpush.msk.msra.mxu0 %vm289_vm0, %v2094_v11  ;;  %3499 = vst [vmem:[#allocation1 + $0x10] ss:$2 sm:$0xff] %v10354_v3 }
 0x14d   : > { %3254 = vrot.lane.b32.xlu1 %v3251_v47, %s10209_s13  ;;  %v3418_v13 = vld.sshfl [vmem:[#allocation1 + $0x8] sm:$0xff pattern:$0x75316420]  ;;  %v3417_v14 = vld.sshfl [vmem:[#allocation1] sm:$0xff pattern:$0x75316420] }
 0x14e   : > { %3497 = vst [vmem:[#allocation1] ss:$2 sm:$0xff] %v10359_v5  ;;  %v10903_v15 = vpop.permute.xlu0 %2079 }
 0x14f   : > { %v2088_v16 = vpop.permute.xlu1 %2087 }
 0x150   : > { %3256 = vrot.lane.b32.xlu2 %v3252_v48, %s10209_s13  ;;  %v2093_v20 = vsel %vm2005_vm7, %v2088_v16, %v2090_v44  ;;  %v10979_v16 = vpop.f32.mrf.mxu3 }
 0x151   : > { %9525 = vmatpush.msk.msrb.mxu3 %vm289_vm0, %v2093_v20 }
 0x152   : > { %v10906_v18 = vpop.permute.xlu2 %2254  ;;  %9526 = vmatmul.msk.f32.vlgmr.msrb.gmra.mxu3 %vm286_vm1, %v10903_v15 }
 0x153   : > { %v3502_v21 = vld.sshfl [vmem:[#allocation1 + $0x10] sm:$0xff pattern:$0x75316420] }
 0x154   : > { %3339 = vrot.lane.b32.xlu0 %v3335_v58, %s10225_s26  ;;  %3582 = vst [vmem:[#allocation1 + $0x10] ss:$2 sm:$0xff] %v10344_v1 }
 0x155   : > { %3341 = vrot.lane.b32.xlu1 %v3336_v56, %s10225_s26  ;;  %v3501_v32 = vld.sshfl [vmem:[#allocation1 + $0x8] sm:$0xff pattern:$0x75316420]  ;;  %v3500_v25 = vld.sshfl [vmem:[#allocation1] sm:$0xff pattern:$0x75316420] }
 0x156   : > { %3580 = vst [vmem:[#allocation1] ss:$2 sm:$0xff] %v10348_v2  ;;  %v10916_v34 = vpop.permute.xlu0 %1991 }
 0x157   : > { %9520 = vmatmul.msk.f32.vlgmr.msrb.gmra.mxu0 %vm286_vm1, %v10916_v34  ;;  %v2004_v39 = vpop.permute.xlu1 %2003 }
 0x158   : > { %3337 = vrot.lane.b32.xlu2 %v3334_v61, %s10225_s26  ;;  %v2007_v42 = vsel %vm2005_vm7, %v10841_v30, %v2004_v39  ;;  %9523 = vmatpush.msk.msrb.mxu2 %vm289_vm0, %v2004_v39 }
 0x159   : > { %9521 = vmatpush.msk.msrb.mxu1 %vm289_vm0, %v2007_v42  ;;  %9524 = vmatmul.msk.f32.vlgmr.msrb.gmra.mxu2 %vm286_vm1, %v10916_v34 }
 0x15a   : > { %v10921_v29 = vpop.permute.xlu2 %2446  ;;  %9522 = vmatmul.msk.f32.vlgmr.msrb.gmra.mxu1 %vm286_vm1, %v10916_v34 }
 0x15b   : > { %v3585_v44 = vld.sshfl [vmem:[#allocation1 + $0x10] sm:$0xff pattern:$0x75316420]  ;;  %9529 = vmatpush.msk.msra.mxu1 %vm289_vm0, %v2092_v9  ;;  %v10962_v9 = vpop.f32.mrf.mxu1 }
 0x15c   : > { %3420 = vrot.lane.b32.xlu0 %v3417_v14, %s10225_s26  ;;  %3665 = vst [vmem:[#allocation1 + $0x10] ss:$2 sm:$0xff] %v10398_v22 }
 0x15d   : > { %3422 = vrot.lane.b32.xlu1 %v3418_v13, %s10225_s26  ;;  %v3583_v30 = vld.sshfl [vmem:[#allocation1] sm:$0xff pattern:$0x75316420]  ;;  %v3584_v45 = vld.sshfl [vmem:[#allocation1 + $0x8] sm:$0xff pattern:$0x75316420] }
 0x15e   : > { %3663 = vst [vmem:[#allocation1] ss:$2 sm:$0xff] %v10403_v24  ;;  %v2179_v47 = vpop.permute.xlu0 %2178 }
 0x15f   : > { %v2182_v48 = vsel %vm2180_vm8, %v10877_v23, %v2179_v47  ;;  %9528 = vmatmul.msk.f32.vlgmr.msra.gmra.mxu0 %vm286_vm1, %v10903_v15  ;;  %v10941_v26 = vpop.permute.xlu1 %2166 }
 0x160   : > { %3505 = vrot.lane.b32.xlu2 %v3501_v32, %s10226_s28  ;;  %9533 = vmatpush.msk.msra.mxu3 %vm289_vm0, %v2182_v48 }
 0x161   : > { %9535 = vmatpush.msk.msrb.mxu0 %vm289_vm0, %v2179_v47  ;;  %9534 = vmatmul.msk.f32.vlgmr.msra.gmra.mxu3 %vm286_vm1, %v10941_v26 }
 0x162   : > { %v10945_v56 = vpop.permute.xlu2 %2351  ;;  %9530 = vmatmul.msk.f32.vlgmr.msra.gmra.mxu1 %vm286_vm1, %v10903_v15 }
 0x163   : > { %v3668_v58 = vld.sshfl [vmem:[#allocation1 + $0x10] sm:$0xff pattern:$0x75316420] }
 0x164   : > { %3507 = vrot.lane.b32.xlu0 %v3502_v21, %s10226_s28  ;;  %3748 = vst [vmem:[#allocation1 + $0x10] ss:$2 sm:$0xff] %v10387_v17  ;;  %v10983_v21 = vpop.f32.mrf.mxu0 }
 0x165   : > { %3424 = vrot.lane.b32.xlu1 %v3419_v12, %s10225_s26  ;;  %v3667_v61 = vld.sshfl [vmem:[#allocation1 + $0x8] sm:$0xff pattern:$0x75316420]  ;;  %v3666_v62 = vld.sshfl [vmem:[#allocation1] sm:$0xff pattern:$0x75316420] }
 0x166   : > { %3746 = vst [vmem:[#allocation1] ss:$2 sm:$0xff] %v10390_v19  ;;  %v2175_v6 = vpop.permute.xlu0 %2174 }
 0x167   : > { %v2181_v7 = vsel %vm2180_vm8, %v2175_v6, %v10877_v23  ;;  %9536 = vmatmul.msk.f32.vlgmr.msrb.gmra.mxu0 %vm286_vm1, %v10941_v26  ;;  %v2267_v10 = vpop.permute.xlu1 %2266  ;;  %v10976_v23 = vpop.f32.mrf.mxu2 }
 0x168   : > { %3503 = vrot.lane.b32.xlu2 %v3500_v25, %s10226_s28  ;;  %9531 = vmatpush.msk.msra.mxu2 %vm289_vm0, %v2181_v7  ;;  %v11002_v6 = vpop.f32.mrf.mxu3 }
 0x169   : > { %9541 = vmatpush.msk.msrb.mxu3 %vm289_vm0, %v2267_v10  ;;  %9532 = vmatmul.msk.f32.vlgmr.msra.gmra.mxu2 %vm286_vm1, %v10941_v26 }
 0x16a   : > { %v10968_v11 = vpop.permute.xlu2 %2450  ;;  %9542 = vmatmul.msk.f32.vlgmr.msrb.gmra.mxu3 %vm286_vm1, %v10906_v18 }
 0x16b   : > { %v10972_v12 = vld.sshfl [vmem:[#allocation1 + $0x10] sm:$0xff pattern:$0x75316420] }
 0x16c   : > { %3590 = vrot.lane.b32.xlu0 %v3585_v44, %s10226_s28  ;;  %3831 = vst [vmem:[#allocation1 + $0x10] ss:$2 sm:$0xff] %v10398_v22  ;;  %v10989_v44 = vpop.f32.mrf.mxu1 }
 0x16d   : > { %3586 = vrot.lane.b32.xlu1 %v3583_v30, %s10226_s28  ;;  %v3750_v13 = vld.sshfl [vmem:[#allocation1 + $0x8] sm:$0xff pattern:$0x75316420]  ;;  %v3749_v14 = vld.sshfl [vmem:[#allocation1] sm:$0xff pattern:$0x75316420] }
 0x16e   : > { %3829 = vst [vmem:[#allocation1] ss:$2 sm:$0xff] %v10403_v24  ;;  %v2263_v20 = vpop.permute.xlu0 %2262 }
 0x16f   : > { %v2265_v32 = vpop.permute.xlu1 %2264 }
 0x170   : > { %3588 = vrot.lane.b32.xlu2 %v3584_v45, %s10226_s28  ;;  %v2269_v25 = vsel %vm2180_vm8, %v2265_v32, %v2267_v10  ;;  %v2268_v39 = vsel %vm2180_vm8, %v2263_v20, %v2265_v32  ;;  %v10998_v45 = vpop.f32.mrf.mxu2 }
 0x171   : > { %9537 = vmatpush.msk.msrb.mxu1 %vm289_vm0, %v2268_v39  ;;  %9539 = vmatpush.msk.msrb.mxu2 %vm289_vm0, %v2269_v25 }
 0x172   : > { %v10987_v42 = vpop.permute.xlu2 %2600  ;;  %9538 = vmatmul.msk.f32.vlgmr.msrb.gmra.mxu1 %vm286_vm1, %v10906_v18  ;;  %9540 = vmatmul.msk.f32.vlgmr.msrb.gmra.mxu2 %vm286_vm1, %v10906_v18 }
 0x173   : > { %v3834_v30 = vld.sshfl [vmem:[#allocation1 + $0x10] sm:$0xff pattern:$0x75316420] }
 0x174   : > { %3914 = vst [vmem:[#allocation1 + $0x10] ss:$2 sm:$0xff] %v10387_v17  ;;  %3671 = vrot.lane.b32.xlu0 %v3667_v61, %s10209_s13 }
 0x175   : > { %3673 = vrot.lane.b32.xlu1 %v3668_v58, %s10209_s13  ;;  %v3833_v47 = vld.sshfl [vmem:[#allocation1 + $0x8] sm:$0xff pattern:$0x75316420]  ;;  %v3832_v48 = vld.sshfl [vmem:[#allocation1] sm:$0xff pattern:$0x75316420]  ;;  %v11011_v58 = vpop.f32.mrf.mxu0 }
 0x176   : > { %3912 = vst [vmem:[#allocation1] ss:$2 sm:$0xff] %v10390_v19  ;;  %v2449_v7 = vpop.permute.xlu0 %2448 }
 0x177   : > { %v2452_v10 = vsel %vm446_vm2, %v10921_v29, %v2449_v7  ;;  %v2350_v20 = vpop.permute.xlu1 %2349  ;;  %v2453_v32 = vsel %vm446_vm2, %v2449_v7, %v10968_v11 }
 0x178   : > { %3669 = vrot.lane.b32.xlu2 %v3666_v62, %s10209_s13  ;;  %9549 = vmatpush.msk.msra.mxu3 %vm289_vm0, %v2452_v10  ;;  %v2356_v61 = vsel %vm2355_vm9, %v2350_v20, %v10945_v56  ;;  %v11019_v62 = vpop.f32.mrf.mxu1  ;;  %v11029_v10 = vpop.f32.mrf.mxu2 }
 0x179   : > { %9550 = vmatmul.msk.f32.vlgmr.msra.gmra.mxu3 %vm286_vm1, %v10465_v46  ;;  %13290 = vst [vmem:[#allocation5_spill] sm:$0xff] %v11019_v62  ;;  %9543 = vmatpush.msk.msra.mxu0 %vm289_vm0, %v2356_v61 }
 0x17a   : > { %v11017_v25 = vpop.permute.xlu2 %2681  ;;  %9557 = vmatpush.msk.msrb.mxu3 %vm289_vm0, %v10704_v55  ;;  %13291 = vst [vmem:[#allocation6_spill] sm:$0xff] %v11029_v10  ;;  %v11034_v55 = vpop.f32.mrf.mxu3 }
 0x17b   : > { %v3917_v29 = vld.sshfl [vmem:[#allocation1 + $0x10] sm:$0xff pattern:$0x75316420]  ;;  %9551 = vmatpush.msk.msrb.mxu0 %vm289_vm0, %v2453_v32 }
 0x17c   : > { %3997 = vst [vmem:[#allocation1 + $0x10] ss:$2 sm:$0xff] %v10398_v22  ;;  %3752 = vrot.lane.b32.xlu0 %v3749_v14, %s10225_s26 }
 0x17d   : > { %3754 = vrot.lane.b32.xlu1 %v3750_v13, %s10225_s26  ;;  %v3915_v39 = vld.sshfl [vmem:[#allocation1] sm:$0xff pattern:$0x75316420]  ;;  %v3916_v7 = vld.sshfl [vmem:[#allocation1 + $0x8] sm:$0xff pattern:$0x75316420]  ;;  %v11040_v13 = vpop.f32.mrf.mxu0 }
 0x17e   : > { %3995 = vst [vmem:[#allocation1] ss:$2 sm:$0xff] %v10403_v24  ;;  %v11031_v20 = vpop.permute.xlu0 %2341 }
 0x17f   : > { %9544 = vmatmul.msk.f32.vlgmr.msra.gmra.mxu0 %vm286_vm1, %v11031_v20  ;;  %v2354_v32 = vpop.permute.xlu1 %2353  ;;  %13292 = vst [vmem:[#allocation7_spill] sm:$0xff] %v11040_v13 }
 0x180   : > { %3837 = vrot.lane.b32.xlu2 %v3833_v47, %s10225_s26  ;;  %9559 = vmatpush.msk.msra.mxu0 %vm289_vm0, %v10696_v49  ;;  %v2357_v14 = vsel %vm2355_vm9, %v10945_v56, %v2354_v32  ;;  %v10140_v47 = vld [vmem:[%s13282_s1] sm:$0xff]  ;;  %v11051_v62 = vpop.f32.mrf.mxu1 }
 0x181   : > { %9547 = vmatpush.msk.msra.mxu2 %vm289_vm0, %v2354_v32  ;;  %9558 = vmatmul.msk.f32.vlgmr.msrb.gmra.mxu3 %vm286_vm1, %v10140_v47  ;;  %13293 = vst [vmem:[#allocation8_spill] sm:$0xff] %v11051_v62 }
 0x182   : > { %v11049_v61 = vpop.permute.xlu2 %2768  ;;  %9545 = vmatpush.msk.msra.mxu1 %vm289_vm0, %v2357_v14  ;;  %9548 = vmatmul.msk.f32.vlgmr.msra.gmra.mxu2 %vm286_vm1, %v11031_v20  ;;  %v11067_v14 = vpop.f32.mrf.mxu2 }
 0x183   : > { %v4000_v49 = vld.sshfl [vmem:[#allocation1 + $0x10] sm:$0xff pattern:$0x75316420]  ;;  %9546 = vmatmul.msk.f32.vlgmr.msra.gmra.mxu1 %vm286_vm1, %v11031_v20  ;;  %9555 = vmatpush.msk.msrb.mxu2 %vm289_vm0, %v10702_v53  ;;  %13294 = vst [vmem:[#allocation9_spill] sm:$0xff] %v11067_v14 }
 0x184   : > { %4080 = vst [vmem:[#allocation1 + $0x10] ss:$2 sm:$0xff] %v10344_v1  ;;  %3839 = vrot.lane.b32.xlu0 %v3834_v30, %s10225_s26  ;;  %9553 = vmatpush.msk.msrb.mxu1 %vm289_vm0, %v10968_v11  ;;  %v11076_v30 = vpop.f32.mrf.mxu3 }
 0x185   : > { %3756 = vrot.lane.b32.xlu1 %v10972_v12, %s10225_s26  ;;  %v3999_v56 = vld.sshfl [vmem:[#allocation1 + $0x8] sm:$0xff pattern:$0x75316420]  ;;  %v3998_v32 = vld.sshfl [vmem:[#allocation1] sm:$0xff pattern:$0x75316420] }
 0x186   : > { %4078 = vst [vmem:[#allocation1] ss:$2 sm:$0xff] %v10348_v2  ;;  %v2603_v13 = vpop.permute.xlu0 %2602 }
 0x187   : > { %v2605_v53 = vsel %vm446_vm2, %v10987_v42, %v2603_v13  ;;  %9552 = vmatmul.msk.f32.vlgmr.msrb.gmra.mxu0 %vm286_vm1, %v10465_v46  ;;  %9565 = vmatpush.msk.msra.mxu3 %vm289_vm0, %v2603_v13  ;;  %v2599_v12 = vpop.permute.xlu1 %2598  ;;  %13295 = vst [vmem:[#allocation10_spill] sm:$0xff] %v11076_v30  ;;  %v11088_v13 = vpop.f32.mrf.mxu0 }
 0x188   : > { %3835 = vrot.lane.b32.xlu2 %v3832_v48, %s10225_s26  ;;  %9563 = vmatpush.msk.msra.mxu2 %vm289_vm0, %v2605_v53  ;;  %v2604_v11 = vsel %vm446_vm2, %v2599_v12, %v10987_v42  ;;  %13296 = vst [vmem:[#allocation11_spill] sm:$0xff] %v11088_v13  ;;  %v11093_v53 = vpop.f32.mrf.mxu1 }
 0x189   : > { %9566 = vmatmul.msk.f32.vlgmr.msra.gmra.mxu3 %vm286_vm1, %v10480_v51  ;;  %9561 = vmatpush.msk.msra.mxu1 %vm289_vm0, %v2604_v11 }
 0x18a   : > { %v11082_v48 = vpop.permute.xlu2 %2924  ;;  %9556 = vmatmul.msk.f32.vlgmr.msrb.gmra.mxu2 %vm286_vm1, %v10140_v47  ;;  %v11100_v13 = vpop.f32.mrf.mxu2 }
 0x18b   : > { %v11086_v62 = vld.sshfl [vmem:[#allocation1 + $0x10] sm:$0xff pattern:$0x75316420]  ;;  %9554 = vmatmul.msk.f32.vlgmr.msrb.gmra.mxu1 %vm286_vm1, %v10465_v46  ;;  %13297 = vst [vmem:[#allocation12_spill] sm:$0xff] %v11100_v13 }
 0x18c   : > { %4163 = vst [vmem:[#allocation1 + $0x10] ss:$2 sm:$0xff] %v10354_v3  ;;  %3922 = vrot.lane.b32.xlu0 %v3917_v29, %s10226_s28 }
 0x18d   : > { %3918 = vrot.lane.b32.xlu1 %v3915_v39, %s10226_s28  ;;  %v4082_v42 = vld.sshfl [vmem:[#allocation1 + $0x8] sm:$0xff pattern:$0x75316420]  ;;  %v4081_v12 = vld.sshfl [vmem:[#allocation1] sm:$0xff pattern:$0x75316420]  ;;  %v11108_v39 = vpop.f32.mrf.mxu3 }
 0x18e   : > { %4161 = vst [vmem:[#allocation1] ss:$2 sm:$0xff] %v10359_v5  ;;  %v2765_v11 = vpop.permute.xlu0 %2764 }
 0x18f   : > { %9560 = vmatmul.msk.f32.vlgmr.msra.gmra.mxu0 %vm286_vm1, %v10140_v47  ;;  %v2767_v30 = vpop.permute.xlu1 %2766  ;;  %13298 = vst [vmem:[#allocation13_spill] sm:$0xff] %v11108_v39 }
 0x190   : > { %3920 = vrot.lane.b32.xlu2 %v3916_v7, %s10226_s28  ;;  %v2770_v14 = vsel %vm621_vm3, %v2765_v11, %v2767_v30  ;;  %v11115_v7 = vpop.f32.mrf.mxu1 }
 0x191   : > { %9573 = vmatpush.msk.msrb.mxu3 %vm289_vm0, %v2770_v14  ;;  %13299 = vst [vmem:[#allocation14_spill] sm:$0xff] %v11115_v7  ;;  %v11119_v14 = vpop.f32.mrf.mxu0 }
 0x192   : > { %v11103_v10 = vpop.permute.xlu2 %3005  ;;  %9564 = vmatmul.msk.f32.vlgmr.msra.gmra.mxu2 %vm286_vm1, %v10480_v51  ;;  %9574 = vmatmul.msk.f32.vlgmr.msrb.gmra.mxu3 %vm286_vm1, %v10506_v8  ;;  %v11127_v7 = vpop.f32.mrf.mxu2 }
 0x193   : > { %v4166_v29 = vld.sshfl [vmem:[#allocation1 + $0x10] sm:$0xff pattern:$0x75316420]  ;;  %9562 = vmatmul.msk.f32.vlgmr.msra.gmra.mxu1 %vm286_vm1, %v10480_v51  ;;  %9581 = vmatpush.msk.msra.mxu3 %vm289_vm0, %v10779_v38  ;;  %13300 = vst [vmem:[#allocation15_spill] sm:$0xff] %v11127_v7 }
 0x194   : > { %4246 = vst [vmem:[#allocation1 + $0x10] ss:$2 sm:$0xff] %v10344_v1  ;;  %4003 = vrot.lane.b32.xlu0 %v3999_v56, %s10226_s28 }
 0x195   : > { %4005 = vrot.lane.b32.xlu1 %v4000_v49, %s10226_s28  ;;  %v4165_v47 = vld.sshfl [vmem:[#allocation1 + $0x8] sm:$0xff pattern:$0x75316420]  ;;  %v4164_v11 = vld.sshfl [vmem:[#allocation1] sm:$0xff pattern:$0x75316420]  ;;  %v11141_v7 = vpop.f32.mrf.mxu3 }
 0x196   : > { %4244 = vst [vmem:[#allocation1] ss:$2 sm:$0xff] %v10348_v2  ;;  %v2684_v39 = vpop.permute.xlu0 %2683 }
 0x197   : > { %v2687_v13 = vsel %vm621_vm3, %v11017_v25, %v2684_v39  ;;  %v2686_v49 = vpop.permute.xlu1 %2685  ;;  %13301 = vst [vmem:[#allocation16_spill] sm:$0xff] %v11141_v7 }
 0x198   : > { %4001 = vrot.lane.b32.xlu2 %v3998_v32, %s10226_s28  ;;  %9567 = vmatpush.msk.msrb.mxu0 %vm289_vm0, %v2687_v13  ;;  %v2688_v56 = vsel %vm621_vm3, %v2684_v39, %v2686_v49  ;;  %v2771_v32 = vsel %vm621_vm3, %v2767_v30, %v11049_v61 }
 0x199   : > { %9571 = vmatpush.msk.msrb.mxu2 %vm289_vm0, %v2686_v49  ;;  %9568 = vmatmul.msk.f32.vlgmr.msrb.gmra.mxu0 %vm286_vm1, %v10482_v52  ;;  %v11150_v39 = vpop.f32.mrf.mxu0  ;;  %v11156_v49 = vpop.f32.mrf.mxu1 }
 0x19a   : > { %v11134_v38 = vpop.permute.xlu2 %3173  ;;  %9569 = vmatpush.msk.msrb.mxu1 %vm289_vm0, %v2688_v56  ;;  %9572 = vmatmul.msk.f32.vlgmr.msrb.gmra.mxu2 %vm286_vm1, %v10482_v52  ;;  %13302 = vst [vmem:[#allocation17_spill] sm:$0xff] %v11150_v39 }
 0x19b   : > { %v4249_v25 = vld.sshfl [vmem:[#allocation1 + $0x10] sm:$0xff pattern:$0x75316420]  ;;  %9570 = vmatmul.msk.f32.vlgmr.msrb.gmra.mxu1 %vm286_vm1, %v10482_v52  ;;  %9582 = vmatmul.msk.f32.vlgmr.msra.gmra.mxu3 %vm286_vm1, %v10497_v59  ;;  %13303 = vst [vmem:[#allocation18_spill] sm:$0xff] %v11156_v49 }
 0x19c   : > { %4329 = vst [vmem:[#allocation1 + $0x10] ss:$2 sm:$0xff] %v10354_v3  ;;  %4084 = vrot.lane.b32.xlu0 %v4081_v12, %s10223_s19  ;;  %9579 = vmatpush.msk.msra.mxu2 %vm289_vm0, %v10777_v37 }
 0x19d   : > { %4086 = vrot.lane.b32.xlu1 %v4082_v42, %s10223_s19  ;;  %v4247_v30 = vld.sshfl [vmem:[#allocation1] sm:$0xff pattern:$0x75316420]  ;;  %v4248_v13 = vld.sshfl [vmem:[#allocation1 + $0x8] sm:$0xff pattern:$0x75316420]  ;;  %9575 = vmatpush.msk.msra.mxu0 %vm289_vm0, %v2771_v32  ;;  %v11171_v32 = vpop.f32.mrf.mxu2 }
 0x19e   : > { %4327 = vst [vmem:[#allocation1] ss:$2 sm:$0xff] %v10359_v5  ;;  %v2927_v56 = vpop.permute.xlu0 %2926  ;;  %9577 = vmatpush.msk.msra.mxu1 %vm289_vm0, %v11049_v61 }
 0x19f   : > { %9583 = vmatpush.msk.msrb.mxu0 %vm289_vm0, %v10772_v31  ;;  %v2929_v42 = vsel %vm446_vm2, %v11082_v48, %v2927_v56  ;;  %9589 = vmatpush.msk.msrb.mxu3 %vm289_vm0, %v2927_v56  ;;  %v2923_v37 = vpop.permute.xlu1 %2922  ;;  %13304 = vst [vmem:[#allocation19_spill] sm:$0xff] %v11171_v32  ;;  %v11176_v56 = vpop.f32.mrf.mxu3 }
 0x1a0   : > { %4169 = vrot.lane.b32.xlu2 %v4165_v47, %s10232_s17  ;;  %9587 = vmatpush.msk.msrb.mxu2 %vm289_vm0, %v2929_v42  ;;  %v2928_v12 = vsel %vm446_vm2, %v2923_v37, %v11082_v48  ;;  %13305 = vst [vmem:[#allocation20_spill] sm:$0xff] %v11176_v56 }
 0x1a1   : > { %9576 = vmatmul.msk.f32.vlgmr.msra.gmra.mxu0 %vm286_vm1, %v10506_v8  ;;  %9585 = vmatpush.msk.msrb.mxu1 %vm289_vm0, %v2928_v12  ;;  %v11187_v37 = vpop.f32.mrf.mxu0  ;;  %v11192_v56 = vpop.f32.mrf.mxu1 }
 0x1a2   : > { %v3172_v61 = vpop.permute.xlu2 %3171  ;;  %9580 = vmatmul.msk.f32.vlgmr.msra.gmra.mxu2 %vm286_vm1, %v10497_v59  ;;  %13306 = vst [vmem:[#allocation21_spill] sm:$0xff] %v11187_v37 }
 0x1a3   : > { %v4332_v31 = vld.sshfl [vmem:[#allocation1 + $0x10] sm:$0xff pattern:$0x75316420]  ;;  %9578 = vmatmul.msk.f32.vlgmr.msra.gmra.mxu1 %vm286_vm1, %v10506_v8  ;;  %9590 = vmatmul.msk.f32.vlgmr.msrb.gmra.mxu3 %vm286_vm1, %v10460_v43  ;;  %13307 = vst [vmem:[#allocation22_spill] sm:$0xff] %v11192_v56 }
 0x1a4   : > { %4412 = vst [vmem:[#allocation1 + $0x10] ss:$2 sm:$0xff] %v10344_v1  ;;  %4171 = vrot.lane.b32.xlu0 %v4166_v29, %s10232_s17 }
 0x1a5   : > { %4088 = vrot.lane.b32.xlu1 %v11086_v62, %s10223_s19  ;;  %v4331_v48 = vld.sshfl [vmem:[#allocation1 + $0x8] sm:$0xff pattern:$0x75316420]  ;;  %v4330_v47 = vld.sshfl [vmem:[#allocation1] sm:$0xff pattern:$0x75316420]  ;;  %v3177_v62 = vsel %vm621_vm3, %v3172_v61, %v11134_v38 }
 0x1a6   : > { %4410 = vst [vmem:[#allocation1] ss:$2 sm:$0xff] %v10348_v2  ;;  %v3008_v42 = vpop.permute.xlu0 %3007 }
 0x1a7   : > { %v3011_v12 = vsel %vm446_vm2, %v11103_v10, %v3008_v42  ;;  %v3010_v49 = vpop.permute.xlu1 %3009  ;;  %v11203_v10 = vpop.f32.mrf.mxu2 }
 0x1a8   : > { %4167 = vrot.lane.b32.xlu2 %v4164_v11, %s10232_s17  ;;  %9591 = vmatpush.msk.msra.mxu0 %vm289_vm0, %v3011_v12  ;;  %v3012_v29 = vsel %vm446_vm2, %v3008_v42, %v3010_v49  ;;  %13308 = vst [vmem:[#allocation23_spill] sm:$0xff] %v11203_v10  ;;  %v11214_v42 = vpop.f32.mrf.mxu3 }
 0x1a9   : > { %9584 = vmatmul.msk.f32.vlgmr.msrb.gmra.mxu0 %vm286_vm1, %v10497_v59  ;;  %9595 = vmatpush.msk.msra.mxu2 %vm289_vm0, %v3010_v49  ;;  %13309 = vst [vmem:[#allocation24_spill] sm:$0xff] %v11214_v42  ;;  %v11220_v56 = vpop.f32.mrf.mxu0 }
 0x1aa   : > { %v11201_v37 = vpop.permute.xlu2 %3256  ;;  %9588 = vmatmul.msk.f32.vlgmr.msrb.gmra.mxu2 %vm286_vm1, %v10460_v43  ;;  %9593 = vmatpush.msk.msra.mxu1 %vm289_vm0, %v3012_v29  ;;  %v11218_v29 = vpop.f32.mrf.mxu1  ;;  %13311 = vst [vmem:[#allocation26_spill] sm:$0xff] %v11220_v56 }
 0x1ab   : > { %v4415_v11 = vld.sshfl [vmem:[#allocation1 + $0x10] sm:$0xff pattern:$0x75316420]  ;;  %9586 = vmatmul.msk.f32.vlgmr.msrb.gmra.mxu1 %vm286_vm1, %v10460_v43  ;;  %9603 = vmatpush.msk.msrb.mxu2 %vm289_vm0, %v3177_v62  ;;  %13310 = vst [vmem:[#allocation25_spill] sm:$0xff] %v11218_v29 }
 0x1ac   : > { %4504 = vst [vmem:[#allocation1 + $0x10] ss:$2 sm:$0xff] %v10398_v22  ;;  %4254 = vrot.lane.b32.xlu0 %v4249_v25, %s10232_s17 }
 0x1ad   : > { %4250 = vrot.lane.b32.xlu1 %v4247_v30, %s10232_s17  ;;  %v4414_v49 = vld.sshfl [vmem:[#allocation1 + $0x8] sm:$0xff pattern:$0x75316420]  ;;  %v4413_v61 = vld.sshfl [vmem:[#allocation1] sm:$0xff pattern:$0x75316420] }
 0x1ae   : > { %4502 = vst [vmem:[#allocation1] ss:$2 sm:$0xff] %v10403_v24  ;;  %v3089_v12 = vpop.permute.xlu0 %3088 }
 0x1af   : > { %v3091_v10 = vpop.permute.xlu1 %3090 }
 0x1b0   : > { %4252 = vrot.lane.b32.xlu2 %v4248_v13, %s10232_s17  ;;  %v3094_v62 = vsel %vm621_vm3, %v3089_v12, %v3091_v10  ;;  %v11237_v13 = vpop.f32.mrf.mxu2  ;;  %v11246_v56 = vpop.f32.mrf.mxu3 }
 0x1b1   : > { %9592 = vmatmul.msk.f32.vlgmr.msra.gmra.mxu0 %vm286_vm1, %v10492_v57  ;;  %9597 = vmatpush.msk.msra.mxu3 %vm289_vm0, %v3094_v62  ;;  %13312 = vst [vmem:[#allocation27_spill] sm:$0xff] %v11237_v13 }
 0x1b2   : > { %v11225_v25 = vpop.permute.xlu2 %3337  ;;  %9596 = vmatmul.msk.f32.vlgmr.msra.gmra.mxu2 %vm286_vm1, %v10492_v57  ;;  %9598 = vmatmul.msk.f32.vlgmr.msra.gmra.mxu3 %vm286_vm1, %v10559_v41  ;;  %13313 = vst [vmem:[#allocation28_spill] sm:$0xff] %v11246_v56  ;;  %v11258_v39 = vpop.f32.mrf.mxu1 }
 0x1b3   : > { %v11230_v30 = vld.sshfl [vmem:[#allocation1 + $0x10] sm:$0xff pattern:$0x75316420]  ;;  %9594 = vmatmul.msk.f32.vlgmr.msra.gmra.mxu1 %vm286_vm1, %v10492_v57  ;;  %13315 = vst [vmem:[#allocation30_spill] sm:$0xff] %v11258_v39 }
 0x1b4   : > { %4576 = vst [vmem:[#allocation1 + $0x10] ss:$2 sm:$0xff] %v10387_v17  ;;  %4335 = vrot.lane.b32.xlu0 %v4331_v48, %s10235_s29 }
 0x1b5   : > { %4337 = vrot.lane.b32.xlu1 %v4332_v31, %s10235_s29  ;;  %v11241_v12 = vld.sshfl [vmem:[#allocation1] sm:$0xff pattern:$0x75316420]  ;;  %v11243_v29 = vld.sshfl [vmem:[#allocation1 + $0x8] sm:$0xff pattern:$0x75316420]  ;;  %v11252_v31 = vpop.f32.mrf.mxu0 }
 0x1b6   : > { %4574 = vst [vmem:[#allocation1] ss:$2 sm:$0xff] %v10390_v19  ;;  %v3176_v62 = vpop.permute.xlu0 %3175 }
 0x1b7   : > { %v3178_v42 = vsel %vm621_vm3, %v11134_v38, %v3176_v62  ;;  %v3093_v32 = vpop.permute.xlu1 %3092  ;;  %13314 = vst [vmem:[#allocation29_spill] sm:$0xff] %v11252_v31 }
 0x1b8   : > { %4333 = vrot.lane.b32.xlu2 %v4330_v47, %s10235_s29  ;;  %9605 = vmatpush.msk.msrb.mxu3 %vm289_vm0, %v3178_v42  ;;  %v3095_v48 = vsel %vm621_vm3, %v3091_v10, %v3093_v32  ;;  %v11280_v10 = vpop.f32.mrf.mxu2 }
 0x1b9   : > { %9601 = vmatpush.msk.msrb.mxu1 %vm289_vm0, %v3093_v32  ;;  %9599 = vmatpush.msk.msrb.mxu0 %vm289_vm0, %v3095_v48  ;;  %13316 = vst [vmem:[#allocation31_spill] sm:$0xff] %v11280_v10  ;;  %v11282_v48 = vpop.f32.mrf.mxu3 }
 0x1ba   : > { %v11256_v13 = vpop.permute.xlu2 %3505  ;;  %9604 = vmatmul.msk.f32.vlgmr.msrb.gmra.mxu2 %vm286_vm1, %v10536_v33  ;;  %9600 = vmatmul.msk.f32.vlgmr.msrb.gmra.mxu0 %vm286_vm1, %v10559_v41  ;;  %13317 = vst [vmem:[#allocation32_spill] sm:$0xff] %v11282_v48  ;;  %v11293_v10 = vpop.f32.mrf.mxu1 }
 0x1bb   : > { %v11263_v38 = vld.sshfl [vmem:[#allocation1 + $0x10] sm:$0xff pattern:$0x75316420]  ;;  %9602 = vmatmul.msk.f32.vlgmr.msrb.gmra.mxu1 %vm286_vm1, %v10559_v41  ;;  %9606 = vmatmul.msk.f32.vlgmr.msrb.gmra.mxu3 %vm286_vm1, %v10536_v33  ;;  %13319 = vst [vmem:[#allocation34_spill] sm:$0xff] %v11293_v10 }
 0x1bc   : > { %4648 = vst [vmem:[#allocation1 + $0x10] ss:$2 sm:$0xff] %v10387_v17  ;;  %4416 = vrot.lane.b32.xlu0 %v4413_v61, %s10235_s29  ;;  %9607 = vmatpush.msk.msra.mxu0 %vm289_vm0, %v3176_v62 }
 0x1bd   : > { %4418 = vrot.lane.b32.xlu1 %v4414_v49, %s10235_s29  ;;  %v11273_v32 = vld.sshfl [vmem:[#allocation1] sm:$0xff pattern:$0x75316420]  ;;  %v11275_v47 = vld.sshfl [vmem:[#allocation1 + $0x8] sm:$0xff pattern:$0x75316420]  ;;  %v11289_v61 = vpop.f32.mrf.mxu0 }
 0x1be   : > { %4646 = vst [vmem:[#allocation1] ss:$2 sm:$0xff] %v10390_v19  ;;  %v3259_v42 = vpop.permute.xlu0 %3258 }
 0x1bf   : > { %v3261_v39 = vsel %vm1132_vm4, %v11201_v37, %v3259_v42  ;;  %9613 = vmatpush.msk.msra.mxu3 %vm289_vm0, %v3259_v42  ;;  %v3255_v49 = vpop.permute.xlu1 %3254  ;;  %13318 = vst [vmem:[#allocation33_spill] sm:$0xff] %v11289_v61 }
 0x1c0   : > { %4420 = vrot.lane.b32.xlu2 %v4415_v11, %s10235_s29  ;;  %9611 = vmatpush.msk.msra.mxu2 %vm289_vm0, %v3261_v39  ;;  %v3260_v62 = vsel %vm1132_vm4, %v3255_v49, %v11201_v37  ;;  %v11308_v11 = vpop.f32.mrf.mxu2 }
 0x1c1   : > { %9609 = vmatpush.msk.msra.mxu1 %vm289_vm0, %v3260_v62  ;;  %13320 = vst [vmem:[#allocation35_spill] sm:$0xff] %v11308_v11  ;;  %v11310_v49 = vpop.f32.mrf.mxu3 }
 0x1c2   : > { %v3504_v31 = vpop.permute.xlu2 %3503  ;;  %9612 = vmatmul.msk.f32.vlgmr.msra.gmra.mxu2 %vm286_vm1, %v10503_v4  ;;  %9608 = vmatmul.msk.f32.vlgmr.msra.gmra.mxu0 %vm286_vm1, %v10536_v33  ;;  %13321 = vst [vmem:[#allocation36_spill] sm:$0xff] %v11310_v49 }
 0x1c3   : > { %v4651_v48 = vld.sshfl [vmem:[#allocation1 + $0x10] sm:$0xff pattern:$0x75316420]  ;;  %9610 = vmatmul.msk.f32.vlgmr.msra.gmra.mxu1 %vm286_vm1, %v10503_v4  ;;  %9614 = vmatmul.msk.f32.vlgmr.msra.gmra.mxu3 %vm286_vm1, %v10503_v4 }
 0x1c4   : > { %4731 = vst [vmem:[#allocation1 + $0x10] ss:$2 sm:$0xff] %v10398_v22 }
 0x1c5   : > { %4656 = vrot.lane.b32.xlu1 %v4651_v48, %s10216_s10  ;;  %v4650_v39 = vld.sshfl [vmem:[#allocation1 + $0x8] sm:$0xff pattern:$0x75316420]  ;;  %v4649_v37 = vld.sshfl [vmem:[#allocation1] sm:$0xff pattern:$0x75316420]  ;;  %v11325_v49 = vpop.f32.mrf.mxu0 }
 0x1c6   : > { %4654 = vrot.lane.b32.xlu0 %v4650_v39, %s10216_s10  ;;  %4729 = vst [vmem:[#allocation1] ss:$2 sm:$0xff] %v10403_v24  ;;  %v3340_v42 = vpop.permute.xlu0 %3339  ;;  %v3509_v39 = vsel %vm1482_vm6, %v3504_v31, %v11256_v13 }
 0x1c7   : > { %v3343_v62 = vsel %vm1307_vm5, %v11225_v25, %v3340_v42  ;;  %v3342_v61 = vpop.permute.xlu1 %3341  ;;  %13322 = vst [vmem:[#allocation37_spill] sm:$0xff] %v11325_v49 }
 0x1c8   : > { %4652 = vrot.lane.b32.xlu2 %v4649_v37, %s10216_s10  ;;  %9615 = vmatpush.msk.msrb.mxu0 %vm289_vm0, %v3343_v62  ;;  %v3344_v48 = vsel %vm1307_vm5, %v3340_v42, %v3342_v61  ;;  %v11338_v62 = vpop.f32.mrf.mxu2 }
 0x1c9   : > { %9619 = vmatpush.msk.msrb.mxu2 %vm289_vm0, %v3342_v61  ;;  %9617 = vmatpush.msk.msrb.mxu1 %vm289_vm0, %v3344_v48  ;;  %v11332_v61 = vpop.f32.mrf.mxu1  ;;  %13324 = vst [vmem:[#allocation39_spill] sm:$0xff] %v11338_v62  ;;  %v11340_v49 = vpop.f32.mrf.mxu3 }
 0x1ca   : > { %v11320_v10 = vpop.permute.xlu2 %3588  ;;  %9620 = vmatmul.msk.f32.vlgmr.msrb.gmra.mxu2 %vm286_vm1, %v10477_v50  ;;  %9616 = vmatmul.msk.f32.vlgmr.msrb.gmra.mxu0 %vm286_vm1, %v10477_v50  ;;  %13323 = vst [vmem:[#allocation38_spill] sm:$0xff] %v11332_v61 }
 0x1cb   : > { %v4734_v25 = vld.sshfl [vmem:[#allocation1 + $0x10] sm:$0xff pattern:$0x75316420]  ;;  %9618 = vmatmul.msk.f32.vlgmr.msrb.gmra.mxu1 %vm286_vm1, %v10477_v50  ;;  %9627 = vmatpush.msk.msra.mxu2 %vm289_vm0, %v3509_v39  ;;  %13325 = vst [vmem:[#allocation40_spill] sm:$0xff] %v11340_v49 }
 0x1cc   : > { %4814 = vst [vmem:[#allocation1 + $0x10] ss:$2 sm:$0xff] %v10387_v17 }
 0x1cd   : > { %v4733_v31 = vld.sshfl [vmem:[#allocation1 + $0x8] sm:$0xff pattern:$0x75316420]  ;;  %v4732_v37 = vld.sshfl [vmem:[#allocation1] sm:$0xff pattern:$0x75316420] }
 0x1ce   : > { %4737 = vrot.lane.b32.xlu1 %v4733_v31, %s10216_s10  ;;  %4735 = vrot.lane.b32.xlu0 %v4732_v37, %s10216_s10  ;;  %4812 = vst [vmem:[#allocation1] ss:$2 sm:$0xff] %v10390_v19  ;;  %v3421_v42 = vpop.permute.xlu0 %3420  ;;  %v11348_v31 = vpop.f32.mrf.mxu0 }
 0x1cf   : > { %v3423_v48 = vpop.permute.xlu1 %3422  ;;  %13326 = vst [vmem:[#allocation41_spill] sm:$0xff] %v11348_v31 }
 0x1d0   : > { %v3426_v11 = vsel %vm1307_vm5, %v3421_v42, %v3423_v48 }
 0x1d1   : > { %9621 = vmatpush.msk.msrb.mxu3 %vm289_vm0, %v3426_v11  ;;  %v11353_v37 = vpop.f32.mrf.mxu1  ;;  %v11362_v61 = vpop.f32.mrf.mxu3 }
 0x1d2   : > { %v11343_v56 = vpop.permute.xlu2 %3669  ;;  %9628 = vmatmul.msk.f32.vlgmr.msra.gmra.mxu2 %vm286_vm1, %v10598_v54  ;;  %9622 = vmatmul.msk.f32.vlgmr.msrb.gmra.mxu3 %vm286_vm1, %v10614_v60  ;;  %13327 = vst [vmem:[#allocation42_spill] sm:$0xff] %v11353_v37 }
 0x1d3   : > { %v4817_v39 = vld.sshfl [vmem:[#allocation1 + $0x10] sm:$0xff pattern:$0x75316420]  ;;  %13328 = vst [vmem:[#allocation43_spill] sm:$0xff] %v11362_v61 }
 0x1d4   : > { %4897 = vst [vmem:[#allocation1 + $0x10] ss:$2 sm:$0xff] %v10354_v3 }
 0x1d5   : > { %v4816_v62 = vld.sshfl [vmem:[#allocation1 + $0x8] sm:$0xff pattern:$0x75316420]  ;;  %v4815_v49 = vld.sshfl [vmem:[#allocation1] sm:$0xff pattern:$0x75316420] }
 0x1d6   : > { %4739 = vrot.lane.b32.xlu1 %v4734_v25, %s10216_s10  ;;  %4822 = vrot.lane.b32.xlu0 %v4817_v39, %s10218_s12  ;;  %4895 = vst [vmem:[#allocation1] ss:$2 sm:$0xff] %v10359_v5  ;;  %v3508_v11 = vpop.permute.xlu0 %3507  ;;  %v11368_v39 = vpop.f32.mrf.mxu2 }
 0x1d7   : > { %4820 = vrot.lane.b32.xlu2 %v4816_v62, %s10218_s12  ;;  %v3510_v42 = vsel %vm1482_vm6, %v11256_v13, %v3508_v11  ;;  %v3425_v31 = vpop.permute.xlu1 %3424  ;;  %13329 = vst [vmem:[#allocation44_spill] sm:$0xff] %v11368_v39  ;;  %v11373_v13 = vpop.f32.mrf.mxu0 }
 0x1d8   : > { %9629 = vmatpush.msk.msra.mxu3 %vm289_vm0, %v3510_v42  ;;  %v3427_v37 = vsel %vm1307_vm5, %v3423_v48, %v3425_v31  ;;  %9625 = vmatpush.msk.msra.mxu1 %vm289_vm0, %v3425_v31  ;;  %13330 = vst [vmem:[#allocation45_spill] sm:$0xff] %v11373_v13 }
 0x1d9   : > { %9623 = vmatpush.msk.msra.mxu0 %vm289_vm0, %v3427_v37  ;;  %9626 = vmatmul.msk.f32.vlgmr.msra.gmra.mxu1 %vm286_vm1, %v10614_v60  ;;  %v11384_v37 = vpop.f32.mrf.mxu1 }
 0x1da   : > { %v11366_v25 = vpop.permute.xlu2 %3837  ;;  %9624 = vmatmul.msk.f32.vlgmr.msra.gmra.mxu0 %vm286_vm1, %v10614_v60  ;;  %9630 = vmatmul.msk.f32.vlgmr.msra.gmra.mxu3 %vm286_vm1, %v10598_v54  ;;  %13331 = vst [vmem:[#allocation46_spill] sm:$0xff] %v11384_v37  ;;  %v11398_v37 = vpop.f32.mrf.mxu3 }
 0x1db   : > { %v4900_v62 = vld.sshfl [vmem:[#allocation1 + $0x10] sm:$0xff pattern:$0x75316420]  ;;  %9631 = vmatpush.msk.msrb.mxu0 %vm289_vm0, %v3508_v11  ;;  %13333 = vst [vmem:[#allocation48_spill] sm:$0xff] %v11398_v37 }
 0x1dc   : > { %4980 = vst [vmem:[#allocation1 + $0x10] ss:$2 sm:$0xff] %v10344_v1 }
 0x1dd   : > { %v4898_v48 = vld.sshfl [vmem:[#allocation1] sm:$0xff pattern:$0x75316420]  ;;  %v4899_v31 = vld.sshfl [vmem:[#allocation1 + $0x8] sm:$0xff pattern:$0x75316420] }
 0x1de   : > { %4905 = vrot.lane.b32.xlu0 %v4900_v62, %s10209_s13  ;;  %4901 = vrot.lane.b32.xlu1 %v4898_v48, %s10209_s13  ;;  %4978 = vst [vmem:[#allocation1] ss:$2 sm:$0xff] %v10348_v2  ;;  %v3591_v42 = vpop.permute.xlu0 %3590  ;;  %v11395_v48 = vpop.f32.mrf.mxu2 }
 0x1df   : > { %4818 = vrot.lane.b32.xlu2 %v4815_v49, %s10218_s12  ;;  %v3593_v13 = vsel %vm1482_vm6, %v11320_v10, %v3591_v42  ;;  %9637 = vmatpush.msk.msrb.mxu3 %vm289_vm0, %v3591_v42  ;;  %v3587_v61 = vpop.permute.xlu1 %3586  ;;  %13332 = vst [vmem:[#allocation47_spill] sm:$0xff] %v11395_v48 }
 0x1e0   : > { %9635 = vmatpush.msk.msrb.mxu2 %vm289_vm0, %v3593_v13  ;;  %v3592_v11 = vsel %vm1482_vm6, %v3587_v61, %v11320_v10  ;;  %v11407_v13 = vpop.f32.mrf.mxu0 }
 0x1e1   : > { %9636 = vmatmul.msk.f32.vlgmr.msrb.gmra.mxu2 %vm286_vm1, %v10539_v35  ;;  %9633 = vmatpush.msk.msrb.mxu1 %vm289_vm0, %v3592_v11  ;;  %13334 = vst [vmem:[#allocation49_spill] sm:$0xff] %v11407_v13  ;;  %v11412_v42 = vpop.f32.mrf.mxu1 }
 0x1e2   : > { %v3836_v62 = vpop.permute.xlu2 %3835  ;;  %9632 = vmatmul.msk.f32.vlgmr.msrb.gmra.mxu0 %vm286_vm1, %v10598_v54  ;;  %9634 = vmatmul.msk.f32.vlgmr.msrb.gmra.mxu1 %vm286_vm1, %v10539_v35  ;;  %13335 = vst [vmem:[#allocation50_spill] sm:$0xff] %v11412_v42 }
 0x1e3   : > { %v4983_v49 = vld.sshfl [vmem:[#allocation1 + $0x10] sm:$0xff pattern:$0x75316420]  ;;  %9638 = vmatmul.msk.f32.vlgmr.msrb.gmra.mxu3 %vm286_vm1, %v10539_v35 }
 0x1e4   : > { %5063 = vst [vmem:[#allocation1 + $0x10] ss:$2 sm:$0xff] %v10354_v3 }
 0x1e5   : > { %v4982_v10 = vld.sshfl [vmem:[#allocation1 + $0x8] sm:$0xff pattern:$0x75316420]  ;;  %v4981_v61 = vld.sshfl [vmem:[#allocation1] sm:$0xff pattern:$0x75316420] }
 0x1e6   : > { %4988 = vrot.lane.b32.xlu1 %v4983_v49, %s10209_s13  ;;  %4986 = vrot.lane.b32.xlu0 %v4982_v10, %s10209_s13  ;;  %5061 = vst [vmem:[#allocation1] ss:$2 sm:$0xff] %v10359_v5  ;;  %v3672_v11 = vpop.permute.xlu0 %3671  ;;  %v3841_v49 = vsel %vm1307_vm5, %v3836_v62, %v11366_v25  ;;  %v11424_v13 = vpop.f32.mrf.mxu2 }
 0x1e7   : > { %4903 = vrot.lane.b32.xlu2 %v4899_v31, %s10209_s13  ;;  %v3675_v37 = vsel %vm1132_vm4, %v11343_v56, %v3672_v11  ;;  %v3674_v48 = vpop.permute.xlu1 %3673  ;;  %13336 = vst [vmem:[#allocation51_spill] sm:$0xff] %v11424_v13  ;;  %v11435_v62 = vpop.f32.mrf.mxu3 }
 0x1e8   : > { %9639 = vmatpush.msk.msra.mxu0 %vm289_vm0, %v3675_v37  ;;  %v3676_v39 = vsel %vm1132_vm4, %v3672_v11, %v3674_v48  ;;  %9643 = vmatpush.msk.msra.mxu2 %vm289_vm0, %v3674_v48  ;;  %13337 = vst [vmem:[#allocation52_spill] sm:$0xff] %v11435_v62  ;;  %v11437_v48 = vpop.f32.mrf.mxu0 }
 0x1e9   : > { %9641 = vmatpush.msk.msra.mxu1 %vm289_vm0, %v3676_v39  ;;  %9644 = vmatmul.msk.f32.vlgmr.msra.gmra.mxu2 %vm286_vm1, %v10588_v27  ;;  %13338 = vst [vmem:[#allocation53_spill] sm:$0xff] %v11437_v48  ;;  %v11442_v39 = vpop.f32.mrf.mxu1 }
 0x1ea   : > { %v11422_v10 = vpop.permute.xlu2 %3920  ;;  %9640 = vmatmul.msk.f32.vlgmr.msra.gmra.mxu0 %vm286_vm1, %v10588_v27  ;;  %9642 = vmatmul.msk.f32.vlgmr.msra.gmra.mxu1 %vm286_vm1, %v10588_v27  ;;  %13339 = vst [vmem:[#allocation54_spill] sm:$0xff] %v11442_v39 }
 0x1eb   : > { %v5066_v56 = vld.sshfl [vmem:[#allocation1 + $0x10] sm:$0xff pattern:$0x75316420]  ;;  %9651 = vmatpush.msk.msrb.mxu2 %vm289_vm0, %v3841_v49 }
 0x1ec   : > { %5146 = vst [vmem:[#allocation1 + $0x10] ss:$2 sm:$0xff] %v10344_v1 }
 0x1ed   : > { %v5065_v31 = vld.sshfl [vmem:[#allocation1 + $0x8] sm:$0xff pattern:$0x75316420]  ;;  %v5064_v37 = vld.sshfl [vmem:[#allocation1] sm:$0xff pattern:$0x75316420] }
 0x1ee   : > { %5069 = vrot.lane.b32.xlu1 %v5065_v31, %s10225_s26  ;;  %5067 = vrot.lane.b32.xlu0 %v5064_v37, %s10225_s26  ;;  %5144 = vst [vmem:[#allocation1] ss:$2 sm:$0xff] %v10348_v2  ;;  %v3753_v11 = vpop.permute.xlu0 %3752  ;;  %v11448_v49 = vpop.f32.mrf.mxu2 }
 0x1ef   : > { %4984 = vrot.lane.b32.xlu2 %v4981_v61, %s10209_s13  ;;  %v3755_v13 = vpop.permute.xlu1 %3754  ;;  %13340 = vst [vmem:[#allocation55_spill] sm:$0xff] %v11448_v49  ;;  %v11456_v39 = vpop.f32.mrf.mxu3 }
 0x1f0   : > { %v3758_v42 = vsel %vm1307_vm5, %v3753_v11, %v3755_v13  ;;  %13341 = vst [vmem:[#allocation56_spill] sm:$0xff] %v11456_v39  ;;  %v11462_v11 = vpop.f32.mrf.mxu0 }
 0x1f1   : > { %9645 = vmatpush.msk.msra.mxu3 %vm289_vm0, %v3758_v42  ;;  %9652 = vmatmul.msk.f32.vlgmr.msrb.gmra.mxu2 %vm286_vm1, %v10556_v40  ;;  %13342 = vst [vmem:[#allocation57_spill] sm:$0xff] %v11462_v11  ;;  %v11466_v48 = vpop.f32.mrf.mxu1 }
 0x1f2   : > { %v11446_v7 = vpop.permute.xlu2 %4001  ;;  %9646 = vmatmul.msk.f32.vlgmr.msra.gmra.mxu3 %vm286_vm1, %v10769_v0  ;;  %13343 = vst [vmem:[#allocation58_spill] sm:$0xff] %v11466_v48 }
 0x1f3   : > { %v5149_v31 = vld.sshfl [vmem:[#allocation1 + $0x10] sm:$0xff pattern:$0x75316420] }
 0x1f4   : > { %5229 = vst [vmem:[#allocation1 + $0x10] ss:$2 sm:$0xff] %v10354_v3 }
 0x1f5   : > { %v5148_v37 = vld.sshfl [vmem:[#allocation1 + $0x8] sm:$0xff pattern:$0x75316420]  ;;  %v5147_v61 = vld.sshfl [vmem:[#allocation1] sm:$0xff pattern:$0x75316420] }
 0x1f6   : > { %5071 = vrot.lane.b32.xlu1 %v5066_v56, %s10225_s26  ;;  %5154 = vrot.lane.b32.xlu0 %v5149_v31, %s10225_s26  ;;  %5227 = vst [vmem:[#allocation1] ss:$2 sm:$0xff] %v10359_v5  ;;  %v3840_v42 = vpop.permute.xlu0 %3839  ;;  %v11473_v31 = vpop.f32.mrf.mxu2 }
 0x1f7   : > { %5152 = vrot.lane.b32.xlu2 %v5148_v37, %s10225_s26  ;;  %v3842_v49 = vsel %vm1307_vm5, %v11366_v25, %v3840_v42  ;;  %v3757_v62 = vpop.permute.xlu1 %3756  ;;  %13344 = vst [vmem:[#allocation59_spill] sm:$0xff] %v11473_v31 }
 0x1f8   : > { %9653 = vmatpush.msk.msrb.mxu3 %vm289_vm0, %v3842_v49  ;;  %v3759_v39 = vsel %vm1307_vm5, %v3755_v13, %v3757_v62  ;;  %9649 = vmatpush.msk.msrb.mxu1 %vm289_vm0, %v3757_v62  ;;  %v11484_v62 = vpop.f32.mrf.mxu3 }
 0x1f9   : > { %9647 = vmatpush.msk.msrb.mxu0 %vm289_vm0, %v3759_v39  ;;  %9650 = vmatmul.msk.f32.vlgmr.msrb.gmra.mxu1 %vm286_vm1, %v10769_v0  ;;  %13345 = vst [vmem:[#allocation60_spill] sm:$0xff] %v11484_v62  ;;  %v11493_v31 = vpop.f32.mrf.mxu1 }
 0x1fa   : > { %v11471_v56 = vpop.permute.xlu2 %4169  ;;  %9648 = vmatmul.msk.f32.vlgmr.msrb.gmra.mxu0 %vm286_vm1, %v10769_v0  ;;  %9654 = vmatmul.msk.f32.vlgmr.msrb.gmra.mxu3 %vm286_vm1, %v10556_v40  ;;  %13346 = vst [vmem:[#allocation61_spill] sm:$0xff] %v11493_v31 }
 0x1fb   : > { %v5232_v37 = vld.sshfl [vmem:[#allocation1 + $0x10] sm:$0xff pattern:$0x75316420]  ;;  %9655 = vmatpush.msk.msra.mxu0 %vm289_vm0, %v3840_v42  ;;  %v11496_v42 = vpop.f32.mrf.mxu0 }
 0x1fc   : > { %5312 = vst [vmem:[#allocation1 + $0x10] ss:$2 sm:$0xff] %v10387_v17 }
 0x1fd   : > { %v5230_v25 = vld.sshfl [vmem:[#allocation1] sm:$0xff pattern:$0x75316420]  ;;  %v5231_v13 = vld.sshfl [vmem:[#allocation1 + $0x8] sm:$0xff pattern:$0x75316420] }
 0x1fe   : > { %5237 = vrot.lane.b32.xlu0 %v5232_v37, %s10226_s28  ;;  %5233 = vrot.lane.b32.xlu1 %v5230_v25, %s10226_s28  ;;  %5310 = vst [vmem:[#allocation1] ss:$2 sm:$0xff] %v10390_v19  ;;  %v3923_v39 = vpop.permute.xlu0 %3922 }
 0x1ff   : > { %5150 = vrot.lane.b32.xlu2 %v5147_v61, %s10225_s26  ;;  %v3925_v49 = vsel %vm1482_vm6, %v11422_v10, %v3923_v39  ;;  %9661 = vmatpush.msk.msra.mxu3 %vm289_vm0, %v3923_v39  ;;  %v3919_v48 = vpop.permute.xlu1 %3918  ;;  %13347 = vst [vmem:[#allocation62_spill] sm:$0xff] %v11496_v42  ;;  %v11508_v39 = vpop.f32.mrf.mxu2 }
 0x200   : > { %9659 = vmatpush.msk.msra.mxu2 %vm289_vm0, %v3925_v49  ;;  %v3924_v37 = vsel %vm1482_vm6, %v3919_v48, %v11422_v10  ;;  %13348 = vst [vmem:[#allocation63_spill] sm:$0xff] %v11508_v39 }
 0x201   : > { %9660 = vmatmul.msk.f32.vlgmr.msra.gmra.mxu2 %vm286_vm1, %v10855_v36  ;;  %9657 = vmatpush.msk.msra.mxu1 %vm289_vm0, %v3924_v37  ;;  %v11516_v37 = vpop.f32.mrf.mxu3  ;;  %v11520_v39 = vpop.f32.mrf.mxu1 }
 0x202   : > { %v4168_v25 = vpop.permute.xlu2 %4167  ;;  %9656 = vmatmul.msk.f32.vlgmr.msra.gmra.mxu0 %vm286_vm1, %v10556_v40  ;;  %9658 = vmatmul.msk.f32.vlgmr.msra.gmra.mxu1 %vm286_vm1, %v10855_v36  ;;  %13349 = vst [vmem:[#allocation64_spill] sm:$0xff] %v11516_v37 }
 0x203   : > { %v5315_v61 = vld.sshfl [vmem:[#allocation1 + $0x10] sm:$0xff pattern:$0x75316420]  ;;  %9662 = vmatmul.msk.f32.vlgmr.msra.gmra.mxu3 %vm286_vm1, %v10855_v36  ;;  %13350 = vst [vmem:[#allocation65_spill] sm:$0xff] %v11520_v39  ;;  %v11523_v42 = vpop.f32.mrf.mxu0 }
 0x204   : > { %5395 = vst [vmem:[#allocation1 + $0x10] ss:$2 sm:$0xff] %v10398_v22 }
 0x205   : > { %v5314_v10 = vld.sshfl [vmem:[#allocation1 + $0x8] sm:$0xff pattern:$0x75316420]  ;;  %v5313_v48 = vld.sshfl [vmem:[#allocation1] sm:$0xff pattern:$0x75316420] }
 0x206   : > { %5320 = vrot.lane.b32.xlu1 %v5315_v61, %s10209_s13  ;;  %5318 = vrot.lane.b32.xlu0 %v5314_v10, %s10209_s13  ;;  %5393 = vst [vmem:[#allocation1] ss:$2 sm:$0xff] %v10403_v24  ;;  %v4004_v49 = vpop.permute.xlu0 %4003  ;;  %v4173_v10 = vsel %vm2180_vm8, %v4168_v25, %v11471_v56 }
 0x207   : > { %5235 = vrot.lane.b32.xlu2 %v5231_v13, %s10226_s28  ;;  %v4007_v31 = vsel %vm1482_vm6, %v11446_v7, %v4004_v49  ;;  %v4006_v62 = vpop.permute.xlu1 %4005  ;;  %13351 = vst [vmem:[#allocation66_spill] sm:$0xff] %v11523_v42 }
 0x208   : > { %9663 = vmatpush.msk.msrb.mxu0 %vm289_vm0, %v4007_v31  ;;  %v4008_v61 = vsel %vm1482_vm6, %v4004_v49, %v4006_v62  ;;  %9667 = vmatpush.msk.msrb.mxu2 %vm289_vm0, %v4006_v62  ;;  %v11539_v31 = vpop.f32.mrf.mxu2 }
 0x209   : > { %9665 = vmatpush.msk.msrb.mxu1 %vm289_vm0, %v4008_v61  ;;  %9668 = vmatmul.msk.f32.vlgmr.msrb.gmra.mxu2 %vm286_vm1, %v10875_v28  ;;  %13352 = vst [vmem:[#allocation67_spill] sm:$0xff] %v11539_v31  ;;  %v11546_v61 = vpop.f32.mrf.mxu3  ;;  %v11549_v37 = vpop.f32.mrf.mxu1 }
 0x20a   : > { %v11529_v13 = vpop.permute.xlu2 %4252  ;;  %9664 = vmatmul.msk.f32.vlgmr.msrb.gmra.mxu0 %vm286_vm1, %v10875_v28  ;;  %9666 = vmatmul.msk.f32.vlgmr.msrb.gmra.mxu1 %vm286_vm1, %v10875_v28  ;;  %13353 = vst [vmem:[#allocation68_spill] sm:$0xff] %v11549_v37 }
 0x20b   : > { %v5398_v7 = vld.sshfl [vmem:[#allocation1 + $0x10] sm:$0xff pattern:$0x75316420]  ;;  %9675 = vmatpush.msk.msra.mxu2 %vm289_vm0, %v4173_v10 }
 0x20c   : > { %5478 = vst [vmem:[#allocation1 + $0x10] ss:$2 sm:$0xff] %v10387_v17 }
 0x20d   : > { %v5397_v62 = vld.sshfl [vmem:[#allocation1 + $0x8] sm:$0xff pattern:$0x75316420]  ;;  %v5396_v25 = vld.sshfl [vmem:[#allocation1] sm:$0xff pattern:$0x75316420] }
 0x20e   : > { %5401 = vrot.lane.b32.xlu1 %v5397_v62, %s10209_s13  ;;  %5399 = vrot.lane.b32.xlu0 %v5396_v25, %s10209_s13  ;;  %5476 = vst [vmem:[#allocation1] ss:$2 sm:$0xff] %v10390_v19  ;;  %v4085_v49 = vpop.permute.xlu0 %4084  ;;  %v11554_v62 = vpop.f32.mrf.mxu0 }
 0x20f   : > { %5316 = vrot.lane.b32.xlu2 %v5313_v48, %s10209_s13  ;;  %v4087_v39 = vpop.permute.xlu1 %4086  ;;  %13354 = vst [vmem:[#allocation69_spill] sm:$0xff] %v11554_v62 }
 0x210   : > { %v4090_v42 = vsel %vm2005_vm7, %v4085_v49, %v4087_v39 }
 0x211   : > { %9669 = vmatpush.msk.msrb.mxu3 %vm289_vm0, %v4090_v42  ;;  %9676 = vmatmul.msk.f32.vlgmr.msra.gmra.mxu2 %vm286_vm1, %v10903_v15  ;;  %v11562_v42 = vpop.f32.mrf.mxu2 }
 0x212   : > { %9670 = vmatmul.msk.f32.vlgmr.msrb.gmra.mxu3 %vm286_vm1, %v10916_v34  ;;  %v4334_v48 = vpop.permute.xlu2 %4333  ;;  %13355 = vst [vmem:[#allocation70_spill] sm:$0xff] %v11562_v42 }
 0x213   : > { %v5481_v10 = vld.sshfl [vmem:[#allocation1 + $0x10] sm:$0xff pattern:$0x75316420] }
 0x214   : > { %5561 = vst [vmem:[#allocation1 + $0x10] ss:$2 sm:$0xff] %v10398_v22 }
 0x215   : > { %v5480_v25 = vld.sshfl [vmem:[#allocation1 + $0x8] sm:$0xff pattern:$0x75316420]  ;;  %v5479_v31 = vld.sshfl [vmem:[#allocation1] sm:$0xff pattern:$0x75316420] }
 0x216   : > { %5403 = vrot.lane.b32.xlu1 %v5398_v7, %s10209_s13  ;;  %5486 = vrot.lane.b32.xlu0 %v5481_v10, %s10225_s26  ;;  %5559 = vst [vmem:[#allocation1] ss:$2 sm:$0xff] %v10403_v24  ;;  %v4172_v49 = vpop.permute.xlu0 %4171  ;;  %v11570_v7 = vpop.f32.mrf.mxu3 }
 0x217   : > { %5484 = vrot.lane.b32.xlu2 %v5480_v25, %s10225_s26  ;;  %v4089_v11 = vpop.permute.xlu1 %4088  ;;  %v4174_v37 = vsel %vm2180_vm8, %v11471_v56, %v4172_v49  ;;  %13356 = vst [vmem:[#allocation71_spill] sm:$0xff] %v11570_v7  ;;  %v11580_v56 = vpop.f32.mrf.mxu1 }
 0x218   : > { %v4091_v62 = vsel %vm2005_vm7, %v4087_v39, %v4089_v11  ;;  %9673 = vmatpush.msk.msra.mxu1 %vm289_vm0, %v4089_v11  ;;  %9677 = vmatpush.msk.msra.mxu3 %vm289_vm0, %v4174_v37  ;;  %13357 = vst [vmem:[#allocation72_spill] sm:$0xff] %v11580_v56  ;;  %v11583_v37 = vpop.f32.mrf.mxu0 }
 0x219   : > { %9671 = vmatpush.msk.msra.mxu0 %vm289_vm0, %v4091_v62  ;;  %9674 = vmatmul.msk.f32.vlgmr.msra.gmra.mxu1 %vm286_vm1, %v10916_v34  ;;  %13358 = vst [vmem:[#allocation73_spill] sm:$0xff] %v11583_v37  ;;  %v11589_v7 = vpop.f32.mrf.mxu2 }
 0x21a   : > { %9672 = vmatmul.msk.f32.vlgmr.msra.gmra.mxu0 %vm286_vm1, %v10916_v34  ;;  %9678 = vmatmul.msk.f32.vlgmr.msra.gmra.mxu3 %vm286_vm1, %v10903_v15  ;;  %v4421_v62 = vpop.permute.xlu2 %4420  ;;  %13359 = vst [vmem:[#allocation74_spill] sm:$0xff] %v11589_v7 }
 0x21b   : > { %v5564_v10 = vld.sshfl [vmem:[#allocation1 + $0x10] sm:$0xff pattern:$0x75316420]  ;;  %9679 = vmatpush.msk.msrb.mxu0 %vm289_vm0, %v4172_v49 }
 0x21c   : > { %5644 = vst [vmem:[#allocation1 + $0x10] ss:$2 sm:$0xff] %v10387_v17 }
 0x21d   : > { %v5562_v11 = vld.sshfl [vmem:[#allocation1] sm:$0xff pattern:$0x75316420]  ;;  %v5563_v39 = vld.sshfl [vmem:[#allocation1 + $0x8] sm:$0xff pattern:$0x75316420] }
 0x21e   : > { %5569 = vrot.lane.b32.xlu0 %v5564_v10, %s10225_s26  ;;  %5565 = vrot.lane.b32.xlu1 %v5562_v11, %s10225_s26  ;;  %5642 = vst [vmem:[#allocation1] ss:$2 sm:$0xff] %v10390_v19  ;;  %v4255_v25 = vpop.permute.xlu0 %4254  ;;  %v11605_v10 = vpop.f32.mrf.mxu3 }
 0x21f   : > { %5482 = vrot.lane.b32.xlu2 %v5479_v31, %s10225_s26  ;;  %v4257_v56 = vsel %vm2180_vm8, %v11529_v13, %v4255_v25  ;;  %v4251_v42 = vpop.permute.xlu1 %4250  ;;  %9685 = vmatpush.msk.msrb.mxu3 %vm289_vm0, %v4255_v25  ;;  %13360 = vst [vmem:[#allocation75_spill] sm:$0xff] %v11605_v10  ;;  %v11614_v11 = vpop.f32.mrf.mxu1 }
 0x220   : > { %v4256_v49 = vsel %vm2180_vm8, %v4251_v42, %v11529_v13  ;;  %9683 = vmatpush.msk.msrb.mxu2 %vm289_vm0, %v4257_v56  ;;  %v11609_v56 = vpop.f32.mrf.mxu0  ;;  %13361 = vst [vmem:[#allocation76_spill] sm:$0xff] %v11614_v11 }
 0x221   : > { %9681 = vmatpush.msk.msrb.mxu1 %vm289_vm0, %v4256_v49  ;;  %9684 = vmatmul.msk.f32.vlgmr.msrb.gmra.mxu2 %vm286_vm1, %v10941_v26 }
 0x222   : > { %9680 = vmatmul.msk.f32.vlgmr.msrb.gmra.mxu0 %vm286_vm1, %v10903_v15  ;;  %9682 = vmatmul.msk.f32.vlgmr.msrb.gmra.mxu1 %vm286_vm1, %v10941_v26  ;;  %v4653_v49 = vpop.permute.xlu2 %4652 }
 0x223   : > { %v5647_v31 = vld.sshfl [vmem:[#allocation1 + $0x10] sm:$0xff pattern:$0x75316420]  ;;  %9686 = vmatmul.msk.f32.vlgmr.msrb.gmra.mxu3 %vm286_vm1, %v10941_v26 }
 0x224   : > { %5727 = vst [vmem:[#allocation1 + $0x10] ss:$2 sm:$0xff] %v10354_v3 }
 0x225   : > { %v5646_v13 = vld.sshfl [vmem:[#allocation1 + $0x8] sm:$0xff pattern:$0x75316420]  ;;  %v5645_v42 = vld.sshfl [vmem:[#allocation1] sm:$0xff pattern:$0x75316420] }
 0x226   : > { %5652 = vrot.lane.b32.xlu1 %v5647_v31, %s10226_s28  ;;  %5650 = vrot.lane.b32.xlu0 %v5646_v13, %s10226_s28  ;;  %5725 = vst [vmem:[#allocation1] ss:$2 sm:$0xff] %v10359_v5  ;;  %v4336_v25 = vpop.permute.xlu0 %4335  ;;  %v11621_v31 = vpop.f32.mrf.mxu2 }
 0x227   : > { %5567 = vrot.lane.b32.xlu2 %v5563_v39, %s10225_s26  ;;  %v4338_v10 = vpop.permute.xlu1 %4337  ;;  %v4339_v7 = vsel %vm2355_vm9, %v4334_v48, %v4336_v25  ;;  %13362 = vst [vmem:[#allocation77_spill] sm:$0xff] %v11621_v31  ;;  %v11637_v39 = vpop.f32.mrf.mxu3 }
 0x228   : > { %v4340_v37 = vsel %vm2355_vm9, %v4336_v25, %v4338_v10  ;;  %9687 = vmatpush.msk.msra.mxu0 %vm289_vm0, %v4339_v7  ;;  %9691 = vmatpush.msk.msra.mxu2 %vm289_vm0, %v4338_v10  ;;  %13363 = vst [vmem:[#allocation78_spill] sm:$0xff] %v11637_v39 }
 0x229   : > { %9689 = vmatpush.msk.msra.mxu1 %vm289_vm0, %v4340_v37  ;;  %9692 = vmatmul.msk.f32.vlgmr.msra.gmra.mxu2 %vm286_vm1, %v10906_v18  ;;  %v11642_v37 = vpop.f32.mrf.mxu0 }
 0x22a   : > { %9688 = vmatmul.msk.f32.vlgmr.msra.gmra.mxu0 %vm286_vm1, %v10906_v18  ;;  %9690 = vmatmul.msk.f32.vlgmr.msra.gmra.mxu1 %vm286_vm1, %v10906_v18  ;;  %13364 = vst [vmem:[#allocation79_spill] sm:$0xff] %v11642_v37 }
 0x22b   : > { %v5730_v13 = vld.sshfl [vmem:[#allocation1 + $0x10] sm:$0xff pattern:$0x75316420]  ;;  %9697 = vmatpush.msk.msrb.mxu1 %vm289_vm0, %v4421_v62  ;;  %9699 = vmatpush.msk.msrb.mxu2 %vm289_vm0, %v11241_v12  ;;  %v11646_v12 = vpop.f32.mrf.mxu1 }
 0x22c   : > { %5810 = vst [vmem:[#allocation1 + $0x10] ss:$2 sm:$0xff] %v10344_v1 }
 0x22d   : > { %v5729_v48 = vld.sshfl [vmem:[#allocation1 + $0x8] sm:$0xff pattern:$0x75316420]  ;;  %v5728_v7 = vld.sshfl [vmem:[#allocation1] sm:$0xff pattern:$0x75316420]  ;;  %9705 = vmatpush.msk.msra.mxu1 %vm289_vm0, %v11273_v32  ;;  %9707 = vmatpush.msk.msra.mxu2 %vm289_vm0, %v11275_v47 }
 0x22e   : > { %5733 = vrot.lane.b32.xlu1 %v5729_v48, %s10223_s19  ;;  %5731 = vrot.lane.b32.xlu0 %v5728_v7, %s10223_s19  ;;  %5808 = vst [vmem:[#allocation1] ss:$2 sm:$0xff] %v10348_v2  ;;  %v4417_v10 = vpop.permute.xlu0 %4416  ;;  %v11659_v47 = vpop.f32.mrf.mxu2 }
 0x22f   : > { %5648 = vrot.lane.b32.xlu2 %v5645_v42, %s10226_s28  ;;  %13365 = vst [vmem:[#allocation80_spill] sm:$0xff] %v11646_v12  ;;  %v4419_v25 = vpop.permute.xlu1 %4418 }
 0x230   : > { %v4423_v48 = vsel %vm2355_vm9, %v4419_v25, %v4421_v62  ;;  %v4422_v7 = vsel %vm2355_vm9, %v4417_v10, %v4419_v25  ;;  %13366 = vst [vmem:[#allocation81_spill] sm:$0xff] %v11659_v47  ;;  %v11675_v25 = vpop.f32.mrf.mxu3 }
 0x231   : > { %v11650_v31 = vpop.permute.xlu2 %4820  ;;  %9693 = vmatpush.msk.msra.mxu3 %vm289_vm0, %v4422_v7  ;;  %9695 = vmatpush.msk.msrb.mxu0 %vm289_vm0, %v4423_v48  ;;  %13367 = vst [vmem:[#allocation82_spill] sm:$0xff] %v11675_v25 }
 0x232   : > { %9694 = vmatmul.msk.f32.vlgmr.msra.gmra.mxu3 %vm286_vm1, %v11031_v20  ;;  %9696 = vmatmul.msk.f32.vlgmr.msrb.gmra.mxu0 %vm286_vm1, %v11031_v20 }
 0x233   : > { %v5813_v32 = vld.sshfl [vmem:[#allocation1 + $0x10] sm:$0xff pattern:$0x75316420]  ;;  %9698 = vmatmul.msk.f32.vlgmr.msrb.gmra.mxu1 %vm286_vm1, %v11031_v20  ;;  %9700 = vmatmul.msk.f32.vlgmr.msrb.gmra.mxu2 %vm286_vm1, %v10465_v46 }
 0x234   : > { %5893 = vst [vmem:[#allocation1 + $0x10] ss:$2 sm:$0xff] %v10354_v3  ;;  %9701 = vmatpush.msk.msrb.mxu3 %vm289_vm0, %v11243_v29  ;;  %9703 = vmatpush.msk.msra.mxu0 %vm289_vm0, %v11230_v30  ;;  %v11681_v29 = vpop.f32.mrf.mxu1 }
 0x235   : > { %v5812_v62 = vld.sshfl [vmem:[#allocation1 + $0x8] sm:$0xff pattern:$0x75316420]  ;;  %v5811_v42 = vld.sshfl [vmem:[#allocation1] sm:$0xff pattern:$0x75316420] }
 0x236   : > { %5735 = vrot.lane.b32.xlu1 %v5730_v13, %s10223_s19  ;;  %5818 = vrot.lane.b32.xlu0 %v5813_v32, %s10223_s19  ;;  %5891 = vst [vmem:[#allocation1] ss:$2 sm:$0xff] %v10359_v5  ;;  %v11679_v32 = vpop.f32.mrf.mxu0 }
 0x237   : > { %5816 = vrot.lane.b32.xlu2 %v5812_v62, %s10223_s19  ;;  %9709 = vmatpush.msk.msra.mxu3 %vm289_vm0, %v11263_v38  ;;  %v4657_v48 = vpop.permute.xlu1 %4656  ;;  %13368 = vst [vmem:[#allocation83_spill] sm:$0xff] %v11679_v32 }
 0x238   : > { %v4655_v10 = vpop.permute.xlu0 %4654  ;;  %13369 = vst [vmem:[#allocation84_spill] sm:$0xff] %v11681_v29  ;;  %9715 = vmatpush.msk.msrb.mxu2 %vm289_vm0, %v4657_v48  ;;  %v11705_v25 = vpop.f32.mrf.mxu3 }
 0x239   : > { %v4658_v13 = vsel %vm446_vm2, %v4653_v49, %v4655_v10  ;;  %v4819_v7 = vpop.permute.xlu2 %4818  ;;  %v4659_v30 = vsel %vm446_vm2, %v4655_v10, %v4657_v48  ;;  %v10141_v49 = vld [vmem:[%s13282_s1] sm:$0xff]  ;;  %13371 = vst [vmem:[#allocation86_spill] sm:$0xff] %v11705_v25 }
 0x23a   : > { %9711 = vmatpush.msk.msrb.mxu0 %vm289_vm0, %v4658_v13  ;;  %9702 = vmatmul.msk.f32.vlgmr.msrb.gmra.mxu3 %vm286_vm1, %v10465_v46  ;;  %v4824_v38 = vsel %vm621_vm3, %v4819_v7, %v11650_v31  ;;  %v11700_v13 = vpop.f32.mrf.mxu2 }
 0x23b   : > { %v5896_v12 = vld.sshfl [vmem:[#allocation1 + $0x10] sm:$0xff pattern:$0x75316420]  ;;  %9704 = vmatmul.msk.f32.vlgmr.msra.gmra.mxu0 %vm286_vm1, %v10465_v46  ;;  %9706 = vmatmul.msk.f32.vlgmr.msra.gmra.mxu1 %vm286_vm1, %v10141_v49  ;;  %13370 = vst [vmem:[#allocation85_spill] sm:$0xff] %v11700_v13 }
 0x23c   : > { %5976 = vst [vmem:[#allocation1 + $0x10] ss:$2 sm:$0xff] %v10344_v1  ;;  %9708 = vmatmul.msk.f32.vlgmr.msra.gmra.mxu2 %vm286_vm1, %v10141_v49  ;;  %9713 = vmatpush.msk.msrb.mxu1 %vm289_vm0, %v4659_v30 }
 0x23d   : > { %v5894_v62 = vld.sshfl [vmem:[#allocation1] sm:$0xff pattern:$0x75316420]  ;;  %v5895_v10 = vld.sshfl [vmem:[#allocation1 + $0x8] sm:$0xff pattern:$0x75316420]  ;;  %9723 = vmatpush.msk.msra.mxu2 %vm289_vm0, %v4824_v38  ;;  %v11714_v38 = vpop.f32.mrf.mxu1 }
 0x23e   : > { %5901 = vrot.lane.b32.xlu0 %v5896_v12, %s10232_s17  ;;  %5897 = vrot.lane.b32.xlu1 %v5894_v62, %s10232_s17  ;;  %5974 = vst [vmem:[#allocation1] ss:$2 sm:$0xff] %v10348_v2  ;;  %v11712_v30 = vpop.f32.mrf.mxu0 }
 0x23f   : > { %5814 = vrot.lane.b32.xlu2 %v5811_v42, %s10223_s19  ;;  %13372 = vst [vmem:[#allocation87_spill] sm:$0xff] %v11712_v30 }
 0x240   : > { %v4736_v48 = vpop.permute.xlu0 %4735  ;;  %v4738_v7 = vpop.permute.xlu1 %4737  ;;  %13373 = vst [vmem:[#allocation88_spill] sm:$0xff] %v11714_v38 }
 0x241   : > { %v4904_v29 = vpop.permute.xlu2 %4903  ;;  %v4741_v12 = vsel %vm446_vm2, %v4736_v48, %v4738_v7 }
 0x242   : > { %9710 = vmatmul.msk.f32.vlgmr.msra.gmra.mxu3 %vm286_vm1, %v10141_v49  ;;  %v11725_v48 = vpop.f32.mrf.mxu2 }
 0x243   : > { %v5979_v32 = vld.sshfl [vmem:[#allocation1 + $0x10] sm:$0xff pattern:$0x75316420]  ;;  %9712 = vmatmul.msk.f32.vlgmr.msrb.gmra.mxu0 %vm286_vm1, %v10480_v51  ;;  %9714 = vmatmul.msk.f32.vlgmr.msrb.gmra.mxu1 %vm286_vm1, %v10480_v51  ;;  %13374 = vst [vmem:[#allocation89_spill] sm:$0xff] %v11725_v48 }
 0x244   : > { %6059 = vst [vmem:[#allocation1 + $0x10] ss:$2 sm:$0xff] %v10354_v3  ;;  %9716 = vmatmul.msk.f32.vlgmr.msrb.gmra.mxu2 %vm286_vm1, %v10480_v51  ;;  %9717 = vmatpush.msk.msrb.mxu3 %vm289_vm0, %v4741_v12 }
 0x245   : > { %v5978_v42 = vld.sshfl [vmem:[#allocation1 + $0x8] sm:$0xff pattern:$0x75316420]  ;;  %v5977_v62 = vld.sshfl [vmem:[#allocation1] sm:$0xff pattern:$0x75316420]  ;;  %v11748_v12 = vpop.f32.mrf.mxu1 }
 0x246   : > { %5984 = vrot.lane.b32.xlu1 %v5979_v32, %s10232_s17  ;;  %5982 = vrot.lane.b32.xlu0 %v5978_v42, %s10232_s17  ;;  %6057 = vst [vmem:[#allocation1] ss:$2 sm:$0xff] %v10359_v5 }
 0x247   : > { %5899 = vrot.lane.b32.xlu2 %v5895_v10, %s10232_s17  ;;  %v11736_v10 = vpop.f32.mrf.mxu3  ;;  %13377 = vst [vmem:[#allocation92_spill] sm:$0xff] %v11748_v12 }
 0x248   : > { %v4823_v49 = vpop.permute.xlu0 %4822  ;;  %v4740_v25 = vpop.permute.xlu1 %4739  ;;  %13375 = vst [vmem:[#allocation90_spill] sm:$0xff] %v11736_v10 }
 0x249   : > { %v4825_v38 = vsel %vm621_vm3, %v11650_v31, %v4823_v49  ;;  %v4985_v30 = vpop.permute.xlu2 %4984  ;;  %v4742_v32 = vsel %vm446_vm2, %v4738_v7, %v4740_v25  ;;  %9721 = vmatpush.msk.msra.mxu1 %vm289_vm0, %v4740_v25  ;;  %v11746_v25 = vpop.f32.mrf.mxu0 }
 0x24a   : > { %9725 = vmatpush.msk.msra.mxu3 %vm289_vm0, %v4825_v38  ;;  %9719 = vmatpush.msk.msra.mxu0 %vm289_vm0, %v4742_v32  ;;  %13376 = vst [vmem:[#allocation91_spill] sm:$0xff] %v11746_v25  ;;  %v11758_v10 = vpop.f32.mrf.mxu2 }
 0x24b   : > { %v6062_v42 = vld.sshfl [vmem:[#allocation1 + $0x10] sm:$0xff pattern:$0x75316420]  ;;  %9718 = vmatmul.msk.f32.vlgmr.msrb.gmra.mxu3 %vm286_vm1, %v10482_v52  ;;  %9720 = vmatmul.msk.f32.vlgmr.msra.gmra.mxu0 %vm286_vm1, %v10482_v52  ;;  %13378 = vst [vmem:[#allocation93_spill] sm:$0xff] %v11758_v10 }
 0x24c   : > { %6142 = vst [vmem:[#allocation1 + $0x10] ss:$2 sm:$0xff] %v10387_v17  ;;  %9722 = vmatmul.msk.f32.vlgmr.msra.gmra.mxu1 %vm286_vm1, %v10482_v52  ;;  %9724 = vmatmul.msk.f32.vlgmr.msra.gmra.mxu2 %vm286_vm1, %v10506_v8 }
 0x24d   : > { %v6061_v31 = vld.sshfl [vmem:[#allocation1 + $0x8] sm:$0xff pattern:$0x75316420]  ;;  %v6060_v7 = vld.sshfl [vmem:[#allocation1] sm:$0xff pattern:$0x75316420]  ;;  %9727 = vmatpush.msk.msrb.mxu0 %vm289_vm0, %v4823_v49 }
 0x24e   : > { %6065 = vrot.lane.b32.xlu1 %v6061_v31, %s10235_s29  ;;  %6140 = vst [vmem:[#allocation1] ss:$2 sm:$0xff] %v10390_v19  ;;  %6063 = vrot.lane.b32.xlu0 %v6060_v7, %s10235_s29 }
 0x24f   : > { %5980 = vrot.lane.b32.xlu2 %v5977_v62, %s10232_s17 }
 0x250   : > { %v4906_v38 = vpop.permute.xlu0 %4905  ;;  %v4902_v48 = vpop.permute.xlu1 %4901 }
 0x251   : > { %v4908_v32 = vsel %vm1132_vm4, %v4904_v29, %v4906_v38  ;;  %9733 = vmatpush.msk.msrb.mxu3 %vm289_vm0, %v4906_v38  ;;  %v11756_v31 = vpop.permute.xlu2 %5152  ;;  %v4907_v12 = vsel %vm1132_vm4, %v4902_v48, %v4904_v29  ;;  %v11773_v29 = vpop.f32.mrf.mxu3 }
 0x252   : > { %9731 = vmatpush.msk.msrb.mxu2 %vm289_vm0, %v4908_v32  ;;  %9729 = vmatpush.msk.msrb.mxu1 %vm289_vm0, %v4907_v12  ;;  %13379 = vst [vmem:[#allocation94_spill] sm:$0xff] %v11773_v29  ;;  %v11777_v7 = vpop.f32.mrf.mxu0  ;;  %v11779_v12 = vpop.f32.mrf.mxu1 }
 0x253   : > { %v6145_v25 = vld.sshfl [vmem:[#allocation1 + $0x10] sm:$0xff pattern:$0x75316420]  ;;  %9726 = vmatmul.msk.f32.vlgmr.msra.gmra.mxu3 %vm286_vm1, %v10506_v8  ;;  %9728 = vmatmul.msk.f32.vlgmr.msrb.gmra.mxu0 %vm286_vm1, %v10506_v8  ;;  %13380 = vst [vmem:[#allocation95_spill] sm:$0xff] %v11777_v7 }
 0x254   : > { %6225 = vst [vmem:[#allocation1 + $0x10] ss:$2 sm:$0xff] %v10398_v22  ;;  %9730 = vmatmul.msk.f32.vlgmr.msrb.gmra.mxu1 %vm286_vm1, %v10497_v59  ;;  %9732 = vmatmul.msk.f32.vlgmr.msrb.gmra.mxu2 %vm286_vm1, %v10497_v59 }
 0x255   : > { %v6144_v62 = vld.sshfl [vmem:[#allocation1 + $0x8] sm:$0xff pattern:$0x75316420]  ;;  %v6143_v49 = vld.sshfl [vmem:[#allocation1] sm:$0xff pattern:$0x75316420] }
 0x256   : > { %6067 = vrot.lane.b32.xlu1 %v6062_v42, %s10235_s29  ;;  %6223 = vst [vmem:[#allocation1] ss:$2 sm:$0xff] %v10403_v24  ;;  %6150 = vrot.lane.b32.xlu0 %v6145_v25, %s10223_s19 }
 0x257   : > { %6148 = vrot.lane.b32.xlu2 %v6144_v62, %s10223_s19  ;;  %13381 = vst [vmem:[#allocation96_spill] sm:$0xff] %v11779_v12 }
 0x258   : > { %v4987_v48 = vpop.permute.xlu0 %4986  ;;  %v4989_v32 = vpop.permute.xlu1 %4988 }
 0x259   : > { %v4990_v38 = vsel %vm1132_vm4, %v4985_v30, %v4987_v48  ;;  %v5151_v10 = vpop.permute.xlu2 %5150  ;;  %v4991_v42 = vsel %vm1132_vm4, %v4987_v48, %v4989_v32  ;;  %9739 = vmatpush.msk.msra.mxu2 %vm289_vm0, %v4989_v32  ;;  %v11791_v30 = vpop.f32.mrf.mxu2 }
 0x25a   : > { %9735 = vmatpush.msk.msra.mxu0 %vm289_vm0, %v4990_v38  ;;  %9737 = vmatpush.msk.msra.mxu1 %vm289_vm0, %v4991_v42  ;;  %v5156_v25 = vsel %vm1307_vm5, %v5151_v10, %v11756_v31  ;;  %13382 = vst [vmem:[#allocation97_spill] sm:$0xff] %v11791_v30  ;;  %v11804_v38 = vpop.f32.mrf.mxu3  ;;  %v11806_v7 = vpop.f32.mrf.mxu0 }
 0x25b   : > { %v6228_v29 = vld.sshfl [vmem:[#allocation1 + $0x10] sm:$0xff pattern:$0x75316420]  ;;  %9734 = vmatmul.msk.f32.vlgmr.msrb.gmra.mxu3 %vm286_vm1, %v10497_v59  ;;  %9736 = vmatmul.msk.f32.vlgmr.msra.gmra.mxu0 %vm286_vm1, %v10460_v43  ;;  %13383 = vst [vmem:[#allocation98_spill] sm:$0xff] %v11804_v38  ;;  %v11808_v30 = vpop.f32.mrf.mxu1 }
 0x25c   : > { %6308 = vst [vmem:[#allocation1 + $0x10] ss:$2 sm:$0xff] %v10387_v17  ;;  %9738 = vmatmul.msk.f32.vlgmr.msra.gmra.mxu1 %vm286_vm1, %v10460_v43  ;;  %9740 = vmatmul.msk.f32.vlgmr.msra.gmra.mxu2 %vm286_vm1, %v10460_v43 }
 0x25d   : > { %v6226_v62 = vld.sshfl [vmem:[#allocation1] sm:$0xff pattern:$0x75316420]  ;;  %v6227_v48 = vld.sshfl [vmem:[#allocation1 + $0x8] sm:$0xff pattern:$0x75316420]  ;;  %9747 = vmatpush.msk.msrb.mxu2 %vm289_vm0, %v5156_v25 }
 0x25e   : > { %6229 = vrot.lane.b32.xlu1 %v6226_v62, %s10223_s19  ;;  %6306 = vst [vmem:[#allocation1] ss:$2 sm:$0xff] %v10390_v19  ;;  %6233 = vrot.lane.b32.xlu0 %v6228_v29, %s10223_s19 }
 0x25f   : > { %6146 = vrot.lane.b32.xlu2 %v6143_v49, %s10223_s19  ;;  %13384 = vst [vmem:[#allocation99_spill] sm:$0xff] %v11806_v7 }
 0x260   : > { %v5068_v10 = vpop.permute.xlu0 %5067  ;;  %v5070_v32 = vpop.permute.xlu1 %5069  ;;  %13385 = vst [vmem:[#allocation100_spill] sm:$0xff] %v11808_v30 }
 0x261   : > { %v5236_v42 = vpop.permute.xlu2 %5235  ;;  %v5073_v12 = vsel %vm1307_vm5, %v5068_v10, %v5070_v32  ;;  %v11819_v25 = vpop.f32.mrf.mxu2 }
 0x262   : > { %9741 = vmatpush.msk.msra.mxu3 %vm289_vm0, %v5073_v12  ;;  %13386 = vst [vmem:[#allocation101_spill] sm:$0xff] %v11819_v25  ;;  %v11823_v12 = vpop.f32.mrf.mxu3 }
 0x263   : > { %v6311_v62 = vld.sshfl [vmem:[#allocation1 + $0x10] sm:$0xff pattern:$0x75316420]  ;;  %9742 = vmatmul.msk.f32.vlgmr.msra.gmra.mxu3 %vm286_vm1, %v10492_v57  ;;  %13387 = vst [vmem:[#allocation102_spill] sm:$0xff] %v11823_v12  ;;  %v11828_v13 = vpop.f32.mrf.mxu1 }
 0x264   : > { %6391 = vst [vmem:[#allocation1 + $0x10] ss:$2 sm:$0xff] %v10398_v22  ;;  %9748 = vmatmul.msk.f32.vlgmr.msrb.gmra.mxu2 %vm286_vm1, %v10559_v41 }
 0x265   : > { %v6310_v29 = vld.sshfl [vmem:[#allocation1 + $0x8] sm:$0xff pattern:$0x75316420]  ;;  %v6309_v49 = vld.sshfl [vmem:[#allocation1] sm:$0xff pattern:$0x75316420] }
 0x266   : > { %6316 = vrot.lane.b32.xlu1 %v6311_v62, %s10232_s17  ;;  %6389 = vst [vmem:[#allocation1] ss:$2 sm:$0xff] %v10403_v24  ;;  %6314 = vrot.lane.b32.xlu0 %v6310_v29, %s10232_s17  ;;  %v11830_v62 = vpop.f32.mrf.mxu0 }
 0x267   : > { %6231 = vrot.lane.b32.xlu2 %v6227_v48, %s10223_s19  ;;  %13388 = vst [vmem:[#allocation103_spill] sm:$0xff] %v11828_v13 }
 0x268   : > { %v5155_v10 = vpop.permute.xlu0 %5154  ;;  %v5072_v38 = vpop.permute.xlu1 %5071  ;;  %13389 = vst [vmem:[#allocation104_spill] sm:$0xff] %v11830_v62 }
 0x269   : > { %v5157_v30 = vsel %vm1307_vm5, %v11756_v31, %v5155_v10  ;;  %v5317_v7 = vpop.permute.xlu2 %5316  ;;  %v5074_v25 = vsel %vm1307_vm5, %v5070_v32, %v5072_v38  ;;  %9745 = vmatpush.msk.msrb.mxu1 %vm289_vm0, %v5072_v38  ;;  %v11847_v38 = vpop.f32.mrf.mxu2 }
 0x26a   : > { %9749 = vmatpush.msk.msrb.mxu3 %vm289_vm0, %v5157_v30  ;;  %9743 = vmatpush.msk.msrb.mxu0 %vm289_vm0, %v5074_v25  ;;  %13390 = vst [vmem:[#allocation105_spill] sm:$0xff] %v11847_v38 }
 0x26b   : > { %v6394_v29 = vld.sshfl [vmem:[#allocation1 + $0x10] sm:$0xff pattern:$0x75316420]  ;;  %9746 = vmatmul.msk.f32.vlgmr.msrb.gmra.mxu1 %vm286_vm1, %v10492_v57  ;;  %9744 = vmatmul.msk.f32.vlgmr.msrb.gmra.mxu0 %vm286_vm1, %v10492_v57 }
 0x26c   : > { %6474 = vst [vmem:[#allocation1 + $0x10] ss:$2 sm:$0xff] %v10387_v17  ;;  %9750 = vmatmul.msk.f32.vlgmr.msrb.gmra.mxu3 %vm286_vm1, %v10559_v41  ;;  %9751 = vmatpush.msk.msra.mxu0 %vm289_vm0, %v5155_v10 }
 0x26d   : > { %v6393_v31 = vld.sshfl [vmem:[#allocation1 + $0x8] sm:$0xff pattern:$0x75316420]  ;;  %v6392_v30 = vld.sshfl [vmem:[#allocation1] sm:$0xff pattern:$0x75316420] }
 0x26e   : > { %6397 = vrot.lane.b32.xlu1 %v6393_v31, %s10232_s17  ;;  %6472 = vst [vmem:[#allocation1] ss:$2 sm:$0xff] %v10390_v19  ;;  %6395 = vrot.lane.b32.xlu0 %v6392_v30, %s10232_s17  ;;  %v11852_v31 = vpop.f32.mrf.mxu3  ;;  %v11861_v30 = vpop.f32.mrf.mxu1 }
 0x26f   : > { %6312 = vrot.lane.b32.xlu2 %v6309_v49, %s10232_s17  ;;  %13391 = vst [vmem:[#allocation106_spill] sm:$0xff] %v11852_v31  ;;  %v11859_v49 = vpop.f32.mrf.mxu0 }
 0x270   : > { %v5238_v48 = vpop.permute.xlu0 %5237  ;;  %v5234_v25 = vpop.permute.xlu1 %5233  ;;  %13392 = vst [vmem:[#allocation107_spill] sm:$0xff] %v11859_v49 }
 0x271   : > { %v5240_v32 = vsel %vm1482_vm6, %v5236_v42, %v5238_v48  ;;  %9757 = vmatpush.msk.msra.mxu3 %vm289_vm0, %v5238_v48  ;;  %v5485_v13 = vpop.permute.xlu2 %5484  ;;  %v5239_v62 = vsel %vm1482_vm6, %v5234_v25, %v5236_v42  ;;  %13393 = vst [vmem:[#allocation108_spill] sm:$0xff] %v11861_v30 }
 0x272   : > { %9755 = vmatpush.msk.msra.mxu2 %vm289_vm0, %v5240_v32  ;;  %9753 = vmatpush.msk.msra.mxu1 %vm289_vm0, %v5239_v62  ;;  %v11873_v32 = vpop.f32.mrf.mxu2 }
 0x273   : > { %9756 = vmatmul.msk.f32.vlgmr.msra.gmra.mxu2 %vm286_vm1, %v10536_v33  ;;  %v6477_v10 = vld.sshfl [vmem:[#allocation1 + $0x10] sm:$0xff pattern:$0x75316420]  ;;  %9752 = vmatmul.msk.f32.vlgmr.msra.gmra.mxu0 %vm286_vm1, %v10559_v41  ;;  %13394 = vst [vmem:[#allocation109_spill] sm:$0xff] %v11873_v32 }
 0x274   : > { %6566 = vst [vmem:[#allocation1 + $0x10] ss:$2 sm:$0xff] %v10387_v17  ;;  %9754 = vmatmul.msk.f32.vlgmr.msra.gmra.mxu1 %vm286_vm1, %v10536_v33  ;;  %9758 = vmatmul.msk.f32.vlgmr.msra.gmra.mxu3 %vm286_vm1, %v10536_v33 }
 0x275   : > { %v6476_v48 = vld.sshfl [vmem:[#allocation1 + $0x8] sm:$0xff pattern:$0x75316420]  ;;  %v6475_v42 = vld.sshfl [vmem:[#allocation1] sm:$0xff pattern:$0x75316420] }
 0x276   : > { %6399 = vrot.lane.b32.xlu1 %v6394_v29, %s10232_s17  ;;  %6564 = vst [vmem:[#allocation1] ss:$2 sm:$0xff] %v10390_v19  ;;  %6482 = vrot.lane.b32.xlu0 %v6477_v10, %s10235_s29  ;;  %v11884_v10 = vpop.f32.mrf.mxu3 }
 0x277   : > { %6480 = vrot.lane.b32.xlu2 %v6476_v48, %s10235_s29  ;;  %13395 = vst [vmem:[#allocation110_spill] sm:$0xff] %v11884_v10 }
 0x278   : > { %v5319_v62 = vpop.permute.xlu0 %5318  ;;  %v5321_v30 = vpop.permute.xlu1 %5320 }
 0x279   : > { %v5322_v25 = vsel %vm1132_vm4, %v5317_v7, %v5319_v62  ;;  %v5483_v49 = vpop.permute.xlu2 %5482  ;;  %v5323_v31 = vsel %vm1132_vm4, %v5319_v62, %v5321_v30  ;;  %9763 = vmatpush.msk.msrb.mxu2 %vm289_vm0, %v5321_v30 }
 0x27a   : > { %9759 = vmatpush.msk.msrb.mxu0 %vm289_vm0, %v5322_v25  ;;  %v5488_v38 = vsel %vm1307_vm5, %v5483_v49, %v5485_v13  ;;  %9761 = vmatpush.msk.msrb.mxu1 %vm289_vm0, %v5323_v31  ;;  %v11893_v31 = vpop.f32.mrf.mxu0  ;;  %v11895_v49 = vpop.f32.mrf.mxu1 }
 0x27b   : > { %v6569_v29 = vld.sshfl [vmem:[#allocation1 + $0x10] sm:$0xff pattern:$0x75316420]  ;;  %9764 = vmatmul.msk.f32.vlgmr.msrb.gmra.mxu2 %vm286_vm1, %v10503_v4  ;;  %9760 = vmatmul.msk.f32.vlgmr.msrb.gmra.mxu0 %vm286_vm1, %v10503_v4  ;;  %13396 = vst [vmem:[#allocation111_spill] sm:$0xff] %v11893_v31  ;;  %v11899_v10 = vpop.f32.mrf.mxu2 }
 0x27c   : > { %6646 = vst [vmem:[#allocation1 + $0x10] ss:$2 sm:$0xff] %v10398_v22  ;;  %9762 = vmatmul.msk.f32.vlgmr.msrb.gmra.mxu1 %vm286_vm1, %v10503_v4  ;;  %9771 = vmatpush.msk.msra.mxu2 %vm289_vm0, %v5488_v38 }
 0x27d   : > { %v6567_v7 = vld.sshfl [vmem:[#allocation1] sm:$0xff pattern:$0x75316420]  ;;  %v6568_v30 = vld.sshfl [vmem:[#allocation1 + $0x8] sm:$0xff pattern:$0x75316420] }
 0x27e   : > { %6570 = vrot.lane.b32.xlu1 %v6567_v7, %s10216_s10  ;;  %6644 = vst [vmem:[#allocation1] ss:$2 sm:$0xff] %v10403_v24  ;;  %6574 = vrot.lane.b32.xlu0 %v6569_v29, %s10216_s10  ;;  %v11908_v38 = vpop.f32.mrf.mxu3 }
 0x27f   : > { %13397 = vst [vmem:[#allocation112_spill] sm:$0xff] %v11895_v49  ;;  %6478 = vrot.lane.b32.xlu2 %v6475_v42, %s10235_s29 }
 0x280   : > { %v5400_v48 = vpop.permute.xlu0 %5399  ;;  %v5402_v62 = vpop.permute.xlu1 %5401  ;;  %13398 = vst [vmem:[#allocation113_spill] sm:$0xff] %v11899_v10 }
 0x281   : > { %v5568_v25 = vpop.permute.xlu2 %5567  ;;  %v5405_v7 = vsel %vm1132_vm4, %v5400_v48, %v5402_v62  ;;  %13399 = vst [vmem:[#allocation114_spill] sm:$0xff] %v11908_v38 }
 0x282   : > { %9765 = vmatpush.msk.msrb.mxu3 %vm289_vm0, %v5405_v7  ;;  %v11917_v49 = vpop.f32.mrf.mxu1  ;;  %v11919_v48 = vpop.f32.mrf.mxu0 }
 0x283   : > { %v11901_v32 = vld.sshfl [vmem:[#allocation1 + $0x10] sm:$0xff pattern:$0x75316420]  ;;  %9772 = vmatmul.msk.f32.vlgmr.msra.gmra.mxu2 %vm286_vm1, %v10614_v60  ;;  %9766 = vmatmul.msk.f32.vlgmr.msrb.gmra.mxu3 %vm286_vm1, %v10477_v50  ;;  %13400 = vst [vmem:[#allocation115_spill] sm:$0xff] %v11917_v49 }
 0x284   : > { %6718 = vst [vmem:[#allocation1 + $0x10] ss:$2 sm:$0xff] %v10398_v22 }
 0x285   : > { %v11910_v29 = vld.sshfl [vmem:[#allocation1] sm:$0xff pattern:$0x75316420]  ;;  %v11912_v42 = vld.sshfl [vmem:[#allocation1 + $0x8] sm:$0xff pattern:$0x75316420] }
 0x286   : > { %6716 = vst [vmem:[#allocation1] ss:$2 sm:$0xff] %v10403_v24 }
 0x287   : > { %13401 = vst [vmem:[#allocation116_spill] sm:$0xff] %v11919_v48  ;;  %6572 = vrot.lane.b32.xlu2 %v6568_v30, %s10216_s10  ;;  %v11930_v48 = vpop.f32.mrf.mxu2 }
 0x288   : > { %v5487_v10 = vpop.permute.xlu0 %5486  ;;  %v5404_v31 = vpop.permute.xlu1 %5403  ;;  %13402 = vst [vmem:[#allocation117_spill] sm:$0xff] %v11930_v48 }
 0x289   : > { %v5489_v7 = vsel %vm1307_vm5, %v5485_v13, %v5487_v10  ;;  %v5649_v38 = vpop.permute.xlu2 %5648  ;;  %v5406_v12 = vsel %vm1132_vm4, %v5402_v62, %v5404_v31  ;;  %9769 = vmatpush.msk.msra.mxu1 %vm289_vm0, %v5404_v31 }
 0x28a   : > { %9773 = vmatpush.msk.msra.mxu3 %vm289_vm0, %v5489_v7  ;;  %9767 = vmatpush.msk.msra.mxu0 %vm289_vm0, %v5406_v12  ;;  %v11939_v12 = vpop.f32.mrf.mxu3  ;;  %v11942_v62 = vpop.f32.mrf.mxu0 }
 0x28b   : > { %v6721_v47 = vld.sshfl [vmem:[#allocation1 + $0x10] sm:$0xff pattern:$0x75316420]  ;;  %9770 = vmatmul.msk.f32.vlgmr.msra.gmra.mxu1 %vm286_vm1, %v10477_v50  ;;  %9768 = vmatmul.msk.f32.vlgmr.msra.gmra.mxu0 %vm286_vm1, %v10477_v50  ;;  %13403 = vst [vmem:[#allocation118_spill] sm:$0xff] %v11939_v12  ;;  %v11944_v7 = vpop.f32.mrf.mxu1 }
 0x28c   : > { %6801 = vst [vmem:[#allocation1 + $0x10] ss:$2 sm:$0xff] %v10387_v17  ;;  %9774 = vmatmul.msk.f32.vlgmr.msra.gmra.mxu3 %vm286_vm1, %v10614_v60  ;;  %9775 = vmatpush.msk.msrb.mxu0 %vm289_vm0, %v5487_v10 }
 0x28d   : > { %v6720_v13 = vld.sshfl [vmem:[#allocation1 + $0x8] sm:$0xff pattern:$0x75316420]  ;;  %v6719_v30 = vld.sshfl [vmem:[#allocation1] sm:$0xff pattern:$0x75316420] }
 0x28e   : > { %6724 = vrot.lane.b32.xlu1 %v6720_v13, %s10216_s10  ;;  %6722 = vrot.lane.b32.xlu0 %v6719_v30, %s10216_s10  ;;  %6799 = vst [vmem:[#allocation1] ss:$2 sm:$0xff] %v10390_v19 }
 0x28f   : > { %13404 = vst [vmem:[#allocation119_spill] sm:$0xff] %v11942_v62  ;;  %v11954_v10 = vpop.f32.mrf.mxu2 }
 0x290   : > { %v5570_v31 = vpop.permute.xlu0 %5569  ;;  %13405 = vst [vmem:[#allocation120_spill] sm:$0xff] %v11944_v7  ;;  %v5566_v49 = vpop.permute.xlu1 %5565 }
 0x291   : > { %v5572_v48 = vsel %vm1307_vm5, %v5568_v25, %v5570_v31  ;;  %9781 = vmatpush.msk.msrb.mxu3 %vm289_vm0, %v5570_v31  ;;  %v5817_v13 = vpop.permute.xlu2 %5816  ;;  %v5571_v30 = vsel %vm1307_vm5, %v5566_v49, %v5568_v25  ;;  %13406 = vst [vmem:[#allocation121_spill] sm:$0xff] %v11954_v10 }
 0x292   : > { %9779 = vmatpush.msk.msrb.mxu2 %vm289_vm0, %v5572_v48  ;;  %9777 = vmatpush.msk.msrb.mxu1 %vm289_vm0, %v5571_v30  ;;  %v11966_v25 = vpop.f32.mrf.mxu3  ;;  %v11975_v39 = vpop.f32.mrf.mxu0 }
 0x293   : > { %9780 = vmatmul.msk.f32.vlgmr.msrb.gmra.mxu2 %vm286_vm1, %v10598_v54  ;;  %v6804_v12 = vld.sshfl [vmem:[#allocation1 + $0x10] sm:$0xff pattern:$0x75316420]  ;;  %9776 = vmatmul.msk.f32.vlgmr.msrb.gmra.mxu0 %vm286_vm1, %v10614_v60  ;;  %13407 = vst [vmem:[#allocation122_spill] sm:$0xff] %v11966_v25  ;;  %v11970_v62 = vpop.f32.mrf.mxu1 }
 0x294   : > { %6884 = vst [vmem:[#allocation1 + $0x10] ss:$2 sm:$0xff] %v10398_v22  ;;  %9778 = vmatmul.msk.f32.vlgmr.msrb.gmra.mxu1 %vm286_vm1, %v10598_v54  ;;  %9782 = vmatmul.msk.f32.vlgmr.msrb.gmra.mxu3 %vm286_vm1, %v10598_v54 }
 0x295   : > { %v6803_v48 = vld.sshfl [vmem:[#allocation1 + $0x8] sm:$0xff pattern:$0x75316420]  ;;  %v6802_v31 = vld.sshfl [vmem:[#allocation1] sm:$0xff pattern:$0x75316420] }
 0x296   : > { %6726 = vrot.lane.b32.xlu1 %v6721_v47, %s10216_s10  ;;  %6882 = vst [vmem:[#allocation1] ss:$2 sm:$0xff] %v10403_v24  ;;  %6809 = vrot.lane.b32.xlu0 %v6804_v12, %s10218_s12 }
 0x297   : > { %6807 = vrot.lane.b32.xlu2 %v6803_v48, %s10218_s12  ;;  %13408 = vst [vmem:[#allocation123_spill] sm:$0xff] %v11970_v62 }
 0x298   : > { %v5651_v49 = vpop.permute.xlu0 %5650  ;;  %v5653_v10 = vpop.permute.xlu1 %5652  ;;  %13409 = vst [vmem:[#allocation124_spill] sm:$0xff] %v11975_v39 }
 0x299   : > { %v5654_v30 = vsel %vm1482_vm6, %v5649_v38, %v5651_v49  ;;  %v5815_v7 = vpop.permute.xlu2 %5814  ;;  %v5655_v37 = vsel %vm1482_vm6, %v5651_v49, %v5653_v10  ;;  %9787 = vmatpush.msk.msra.mxu2 %vm289_vm0, %v5653_v10 }
 0x29a   : > { %9783 = vmatpush.msk.msra.mxu0 %vm289_vm0, %v5654_v30  ;;  %v5820_v12 = vsel %vm2005_vm7, %v5815_v7, %v5817_v13  ;;  %9785 = vmatpush.msk.msra.mxu1 %vm289_vm0, %v5655_v37  ;;  %v11988_v37 = vpop.f32.mrf.mxu2  ;;  %v11992_v48 = vpop.f32.mrf.mxu3 }
 0x29b   : > { %v6887_v47 = vld.sshfl [vmem:[#allocation1 + $0x10] sm:$0xff pattern:$0x75316420]  ;;  %9788 = vmatmul.msk.f32.vlgmr.msra.gmra.mxu2 %vm286_vm1, %v10539_v35  ;;  %9784 = vmatmul.msk.f32.vlgmr.msra.gmra.mxu0 %vm286_vm1, %v10539_v35  ;;  %13410 = vst [vmem:[#allocation125_spill] sm:$0xff] %v11988_v37  ;;  %v11994_v62 = vpop.f32.mrf.mxu1  ;;  %v11997_v25 = vpop.f32.mrf.mxu0 }
 0x29c   : > { %6967 = vst [vmem:[#allocation1 + $0x10] ss:$2 sm:$0xff] %v10344_v1  ;;  %9786 = vmatmul.msk.f32.vlgmr.msra.gmra.mxu1 %vm286_vm1, %v10539_v35  ;;  %9795 = vmatpush.msk.msrb.mxu2 %vm289_vm0, %v5820_v12 }
 0x29d   : > { %v6885_v38 = vld.sshfl [vmem:[#allocation1] sm:$0xff pattern:$0x75316420]  ;;  %v6886_v10 = vld.sshfl [vmem:[#allocation1 + $0x8] sm:$0xff pattern:$0x75316420] }
 0x29e   : > { %6888 = vrot.lane.b32.xlu1 %v6885_v38, %s10218_s12  ;;  %6965 = vst [vmem:[#allocation1] ss:$2 sm:$0xff] %v10348_v2  ;;  %6892 = vrot.lane.b32.xlu0 %v6887_v47, %s10218_s12 }
 0x29f   : > { %6805 = vrot.lane.b32.xlu2 %v6802_v31, %s10218_s12  ;;  %13411 = vst [vmem:[#allocation126_spill] sm:$0xff] %v11992_v48 }
 0x2a0   : > { %v5732_v7 = vpop.permute.xlu0 %5731  ;;  %v5734_v49 = vpop.permute.xlu1 %5733  ;;  %13412 = vst [vmem:[#allocation127_spill] sm:$0xff] %v11994_v62 }
 0x2a1   : > { %v5900_v30 = vpop.permute.xlu2 %5899  ;;  %v5737_v39 = vsel %vm2005_vm7, %v5732_v7, %v5734_v49  ;;  %13413 = vst [vmem:[#allocation128_spill] sm:$0xff] %v11997_v25 }
 0x2a2   : > { %9789 = vmatpush.msk.msra.mxu3 %vm289_vm0, %v5737_v39  ;;  %v12009_v39 = vpop.f32.mrf.mxu2  ;;  %v12015_v37 = vpop.f32.mrf.mxu3 }
 0x2a3   : > { %v6970_v38 = vld.sshfl [vmem:[#allocation1 + $0x10] sm:$0xff pattern:$0x75316420]  ;;  %9796 = vmatmul.msk.f32.vlgmr.msrb.gmra.mxu2 %vm286_vm1, %v10769_v0  ;;  %9790 = vmatmul.msk.f32.vlgmr.msra.gmra.mxu3 %vm286_vm1, %v10588_v27  ;;  %13414 = vst [vmem:[#allocation129_spill] sm:$0xff] %v12009_v39 }
 0x2a4   : > { %7050 = vst [vmem:[#allocation1 + $0x10] ss:$2 sm:$0xff] %v10354_v3 }
 0x2a5   : > { %v6969_v31 = vld.sshfl [vmem:[#allocation1 + $0x8] sm:$0xff pattern:$0x75316420]  ;;  %v6968_v47 = vld.sshfl [vmem:[#allocation1] sm:$0xff pattern:$0x75316420] }
 0x2a6   : > { %6975 = vrot.lane.b32.xlu1 %v6970_v38, %s10209_s13  ;;  %7048 = vst [vmem:[#allocation1] ss:$2 sm:$0xff] %v10359_v5  ;;  %6973 = vrot.lane.b32.xlu0 %v6969_v31, %s10209_s13 }
 0x2a7   : > { %6890 = vrot.lane.b32.xlu2 %v6886_v10, %s10218_s12  ;;  %13415 = vst [vmem:[#allocation130_spill] sm:$0xff] %v12015_v37  ;;  %v12021_v10 = vpop.f32.mrf.mxu1 }
 0x2a8   : > { %v5819_v12 = vpop.permute.xlu0 %5818  ;;  %v5736_v25 = vpop.permute.xlu1 %5735  ;;  %13416 = vst [vmem:[#allocation131_spill] sm:$0xff] %v12021_v10 }
 0x2a9   : > { %v5821_v7 = vsel %vm2005_vm7, %v5817_v13, %v5819_v12  ;;  %v5981_v62 = vpop.permute.xlu2 %5980  ;;  %v5738_v48 = vsel %vm2005_vm7, %v5734_v49, %v5736_v25  ;;  %9793 = vmatpush.msk.msrb.mxu1 %vm289_vm0, %v5736_v25  ;;  %v12027_v49 = vpop.f32.mrf.mxu0 }
 0x2aa   : > { %9797 = vmatpush.msk.msrb.mxu3 %vm289_vm0, %v5821_v7  ;;  %9791 = vmatpush.msk.msrb.mxu0 %vm289_vm0, %v5738_v48  ;;  %13417 = vst [vmem:[#allocation132_spill] sm:$0xff] %v12027_v49  ;;  %v12034_v31 = vpop.f32.mrf.mxu2 }
 0x2ab   : > { %v7053_v38 = vld.sshfl [vmem:[#allocation1 + $0x10] sm:$0xff pattern:$0x75316420]  ;;  %9794 = vmatmul.msk.f32.vlgmr.msrb.gmra.mxu1 %vm286_vm1, %v10588_v27  ;;  %9792 = vmatmul.msk.f32.vlgmr.msrb.gmra.mxu0 %vm286_vm1, %v10588_v27  ;;  %13418 = vst [vmem:[#allocation133_spill] sm:$0xff] %v12034_v31 }
 0x2ac   : > { %7133 = vst [vmem:[#allocation1 + $0x10] ss:$2 sm:$0xff] %v10344_v1  ;;  %9798 = vmatmul.msk.f32.vlgmr.msrb.gmra.mxu3 %vm286_vm1, %v10769_v0  ;;  %9799 = vmatpush.msk.msra.mxu0 %vm289_vm0, %v5819_v12 }
 0x2ad   : > { %v7052_v13 = vld.sshfl [vmem:[#allocation1 + $0x8] sm:$0xff pattern:$0x75316420]  ;;  %v7051_v25 = vld.sshfl [vmem:[#allocation1] sm:$0xff pattern:$0x75316420] }
 0x2ae   : > { %7056 = vrot.lane.b32.xlu1 %v7052_v13, %s10225_s26  ;;  %7131 = vst [vmem:[#allocation1] ss:$2 sm:$0xff] %v10348_v2  ;;  %7054 = vrot.lane.b32.xlu0 %v7051_v25, %s10225_s26 }
 0x2af   : > { %6971 = vrot.lane.b32.xlu2 %v6968_v47, %s10209_s13 }
 0x2b0   : > { %v5902_v48 = vpop.permute.xlu0 %5901  ;;  %v5898_v10 = vpop.permute.xlu1 %5897 }
 0x2b1   : > { %v5904_v7 = vsel %vm2180_vm8, %v5900_v30, %v5902_v48  ;;  %9805 = vmatpush.msk.msra.mxu3 %vm289_vm0, %v5902_v48  ;;  %v5903_v13 = vsel %vm2180_vm8, %v5898_v10, %v5900_v30  ;;  %v6149_v39 = vpop.permute.xlu2 %6148  ;;  %v12048_v48 = vpop.f32.mrf.mxu3 }
 0x2b2   : > { %9803 = vmatpush.msk.msra.mxu2 %vm289_vm0, %v5904_v7  ;;  %9801 = vmatpush.msk.msra.mxu1 %vm289_vm0, %v5903_v13  ;;  %13419 = vst [vmem:[#allocation134_spill] sm:$0xff] %v12048_v48  ;;  %v12054_v30 = vpop.f32.mrf.mxu1  ;;  %v12058_v10 = vpop.f32.mrf.mxu0 }
 0x2b3   : > { %9804 = vmatmul.msk.f32.vlgmr.msra.gmra.mxu2 %vm286_vm1, %v10556_v40  ;;  %v7136_v12 = vld.sshfl [vmem:[#allocation1 + $0x10] sm:$0xff pattern:$0x75316420]  ;;  %9800 = vmatmul.msk.f32.vlgmr.msra.gmra.mxu0 %vm286_vm1, %v10769_v0  ;;  %13420 = vst [vmem:[#allocation135_spill] sm:$0xff] %v12054_v30  ;;  %v12062_v48 = vpop.f32.mrf.mxu2 }
 0x2b4   : > { %7216 = vst [vmem:[#allocation1 + $0x10] ss:$2 sm:$0xff] %v10354_v3  ;;  %9802 = vmatmul.msk.f32.vlgmr.msra.gmra.mxu1 %vm286_vm1, %v10556_v40  ;;  %9806 = vmatmul.msk.f32.vlgmr.msra.gmra.mxu3 %vm286_vm1, %v10556_v40 }
 0x2b5   : > { %v7135_v47 = vld.sshfl [vmem:[#allocation1 + $0x8] sm:$0xff pattern:$0x75316420]  ;;  %v7134_v25 = vld.sshfl [vmem:[#allocation1] sm:$0xff pattern:$0x75316420] }
 0x2b6   : > { %7058 = vrot.lane.b32.xlu1 %v7053_v38, %s10225_s26  ;;  %7214 = vst [vmem:[#allocation1] ss:$2 sm:$0xff] %v10359_v5  ;;  %7141 = vrot.lane.b32.xlu0 %v7136_v12, %s10225_s26 }
 0x2b7   : > { %7139 = vrot.lane.b32.xlu2 %v7135_v47, %s10225_s26  ;;  %13421 = vst [vmem:[#allocation136_spill] sm:$0xff] %v12058_v10 }
 0x2b8   : > { %v5983_v7 = vpop.permute.xlu0 %5982  ;;  %v5985_v31 = vpop.permute.xlu1 %5984  ;;  %13422 = vst [vmem:[#allocation137_spill] sm:$0xff] %v12062_v48 }
 0x2b9   : > { %v5986_v13 = vsel %vm2180_vm8, %v5981_v62, %v5983_v7  ;;  %v5987_v38 = vsel %vm2180_vm8, %v5983_v7, %v5985_v31  ;;  %9811 = vmatpush.msk.msrb.mxu2 %vm289_vm0, %v5985_v31  ;;  %v6147_v30 = vpop.permute.xlu2 %6146  ;;  %v12075_v31 = vpop.f32.mrf.mxu3 }
 0x2ba   : > { %9807 = vmatpush.msk.msrb.mxu0 %vm289_vm0, %v5986_v13  ;;  %9809 = vmatpush.msk.msrb.mxu1 %vm289_vm0, %v5987_v38  ;;  %v6152_v62 = vsel %vm2005_vm7, %v6147_v30, %v6149_v39  ;;  %13423 = vst [vmem:[#allocation138_spill] sm:$0xff] %v12075_v31  ;;  %v12082_v30 = vpop.f32.mrf.mxu1  ;;  %v12084_v13 = vpop.f32.mrf.mxu0 }
 0x2bb   : > { %v7219_v49 = vld.sshfl [vmem:[#allocation1 + $0x10] sm:$0xff pattern:$0x75316420]  ;;  %9812 = vmatmul.msk.f32.vlgmr.msrb.gmra.mxu2 %vm286_vm1, %v10855_v36  ;;  %9808 = vmatmul.msk.f32.vlgmr.msrb.gmra.mxu0 %vm286_vm1, %v10855_v36  ;;  %13424 = vst [vmem:[#allocation139_spill] sm:$0xff] %v12082_v30 }
 0x2bc   : > { %7299 = vst [vmem:[#allocation1 + $0x10] ss:$2 sm:$0xff] %v10344_v1  ;;  %9810 = vmatmul.msk.f32.vlgmr.msrb.gmra.mxu1 %vm286_vm1, %v10855_v36  ;;  %9819 = vmatpush.msk.msra.mxu2 %vm289_vm0, %v6152_v62 }
 0x2bd   : > { %v7217_v12 = vld.sshfl [vmem:[#allocation1] sm:$0xff pattern:$0x75316420]  ;;  %v7218_v47 = vld.sshfl [vmem:[#allocation1 + $0x8] sm:$0xff pattern:$0x75316420] }
 0x2be   : > { %7220 = vrot.lane.b32.xlu1 %v7217_v12, %s10226_s28  ;;  %7297 = vst [vmem:[#allocation1] ss:$2 sm:$0xff] %v10348_v2  ;;  %7224 = vrot.lane.b32.xlu0 %v7219_v49, %s10226_s28  ;;  %v12091_v49 = vpop.f32.mrf.mxu2 }
 0x2bf   : > { %7137 = vrot.lane.b32.xlu2 %v7134_v25, %s10225_s26  ;;  %13425 = vst [vmem:[#allocation140_spill] sm:$0xff] %v12084_v13 }
 0x2c0   : > { %v6064_v7 = vpop.permute.xlu0 %6063  ;;  %v6066_v38 = vpop.permute.xlu1 %6065  ;;  %13426 = vst [vmem:[#allocation141_spill] sm:$0xff] %v12091_v49 }
 0x2c1   : > { %v6069_v10 = vsel %vm2355_vm9, %v6064_v7, %v6066_v38  ;;  %v6232_v31 = vpop.permute.xlu2 %6231 }
 0x2c2   : > { %9813 = vmatpush.msk.msrb.mxu3 %vm289_vm0, %v6069_v10  ;;  %v12099_v10 = vpop.f32.mrf.mxu3  ;;  %v12102_v13 = vpop.f32.mrf.mxu1 }
 0x2c3   : > { %v7302_v48 = vld.sshfl [vmem:[#allocation1 + $0x10] sm:$0xff pattern:$0x75316420]  ;;  %9820 = vmatmul.msk.f32.vlgmr.msra.gmra.mxu2 %vm286_vm1, %v10916_v34  ;;  %9814 = vmatmul.msk.f32.vlgmr.msrb.gmra.mxu3 %vm286_vm1, %v10875_v28  ;;  %v12107_v11 = vpop.f32.mrf.mxu0 }
 0x2c4   : > { %7382 = vst [vmem:[#allocation1 + $0x10] ss:$2 sm:$0xff] %v10398_v22 }
 0x2c5   : > { %v7301_v25 = vld.sshfl [vmem:[#allocation1 + $0x8] sm:$0xff pattern:$0x75316420]  ;;  %v7300_v62 = vld.sshfl [vmem:[#allocation1] sm:$0xff pattern:$0x75316420] }
 0x2c6   : > { %7307 = vrot.lane.b32.xlu1 %v7302_v48, %s10226_s28  ;;  %7380 = vst [vmem:[#allocation1] ss:$2 sm:$0xff] %v10403_v24  ;;  %7305 = vrot.lane.b32.xlu0 %v7301_v25, %s10226_s28 }
 0x2c7   : > { %7222 = vrot.lane.b32.xlu2 %v7218_v47, %s10226_s28  ;;  %13427 = vst [vmem:[#allocation142_spill] sm:$0xff] %v12107_v11 }
 0x2c8   : > { %v6151_v12 = vpop.permute.xlu0 %6150  ;;  %v6068_v7 = vpop.permute.xlu1 %6067 }
 0x2c9   : > { %v6153_v30 = vsel %vm2005_vm7, %v6149_v39, %v6151_v12  ;;  %v6070_v37 = vsel %vm2355_vm9, %v6066_v38, %v6068_v7  ;;  %9817 = vmatpush.msk.msra.mxu1 %vm289_vm0, %v6068_v7  ;;  %v6313_v48 = vpop.permute.xlu2 %6312 }
 0x2ca   : > { %9821 = vmatpush.msk.msra.mxu3 %vm289_vm0, %v6153_v30  ;;  %9815 = vmatpush.msk.msra.mxu0 %vm289_vm0, %v6070_v37  ;;  %v12120_v37 = vpop.f32.mrf.mxu2  ;;  %v12124_v38 = vpop.f32.mrf.mxu3 }
 0x2cb   : > { %v7385_v49 = vld.sshfl [vmem:[#allocation1 + $0x10] sm:$0xff pattern:$0x75316420]  ;;  %9818 = vmatmul.msk.f32.vlgmr.msra.gmra.mxu1 %vm286_vm1, %v10875_v28  ;;  %9816 = vmatmul.msk.f32.vlgmr.msra.gmra.mxu0 %vm286_vm1, %v10875_v28  ;;  %13428 = vst [vmem:[#allocation143_spill] sm:$0xff] %v12120_v37 }
 0x2cc   : > { %7465 = vst [vmem:[#allocation1 + $0x10] ss:$2 sm:$0xff] %v10387_v17  ;;  %9822 = vmatmul.msk.f32.vlgmr.msra.gmra.mxu3 %vm286_vm1, %v10916_v34  ;;  %9823 = vmatpush.msk.msrb.mxu0 %vm289_vm0, %v6151_v12 }
 0x2cd   : > { %v7384_v39 = vld.sshfl [vmem:[#allocation1 + $0x8] sm:$0xff pattern:$0x75316420]  ;;  %v7383_v47 = vld.sshfl [vmem:[#allocation1] sm:$0xff pattern:$0x75316420] }
 0x2ce   : > { %7388 = vrot.lane.b32.xlu1 %v7384_v39, %s10209_s13  ;;  %7463 = vst [vmem:[#allocation1] ss:$2 sm:$0xff] %v10390_v19  ;;  %7386 = vrot.lane.b32.xlu0 %v7383_v47, %s10209_s13 }
 0x2cf   : > { %7303 = vrot.lane.b32.xlu2 %v7300_v62, %s10226_s28  ;;  %13429 = vst [vmem:[#allocation144_spill] sm:$0xff] %v12124_v38  ;;  %v12136_v62 = vpop.f32.mrf.mxu1 }
 0x2d0   : > { %v6234_v30 = vpop.permute.xlu0 %6233  ;;  %v6230_v7 = vpop.permute.xlu1 %6229  ;;  %13430 = vst [vmem:[#allocation145_spill] sm:$0xff] %v12136_v62 }
 0x2d1   : > { %v6236_v25 = vsel %vm2005_vm7, %v6232_v31, %v6234_v30  ;;  %9829 = vmatpush.msk.msrb.mxu3 %vm289_vm0, %v6234_v30  ;;  %v6235_v39 = vsel %vm2005_vm7, %v6230_v7, %v6232_v31  ;;  %v12130_v12 = vpop.permute.xlu2 %6480  ;;  %v12142_v30 = vpop.f32.mrf.mxu0 }
 0x2d2   : > { %9827 = vmatpush.msk.msrb.mxu2 %vm289_vm0, %v6236_v25  ;;  %9825 = vmatpush.msk.msrb.mxu1 %vm289_vm0, %v6235_v39  ;;  %13431 = vst [vmem:[#allocation146_spill] sm:$0xff] %v12142_v30  ;;  %v12150_v25 = vpop.f32.mrf.mxu2  ;;  %v12156_v37 = vpop.f32.mrf.mxu3 }
 0x2d3   : > { %v7468_v11 = vld.sshfl [vmem:[#allocation1 + $0x10] sm:$0xff pattern:$0x75316420]  ;;  %9828 = vmatmul.msk.f32.vlgmr.msrb.gmra.mxu2 %vm286_vm1, %v10903_v15  ;;  %9824 = vmatmul.msk.f32.vlgmr.msrb.gmra.mxu0 %vm286_vm1, %v10916_v34  ;;  %13432 = vst [vmem:[#allocation147_spill] sm:$0xff] %v12150_v25 }
 0x2d4   : > { %7548 = vst [vmem:[#allocation1 + $0x10] ss:$2 sm:$0xff] %v10398_v22  ;;  %9826 = vmatmul.msk.f32.vlgmr.msrb.gmra.mxu1 %vm286_vm1, %v10903_v15  ;;  %9830 = vmatmul.msk.f32.vlgmr.msrb.gmra.mxu3 %vm286_vm1, %v10903_v15 }
 0x2d5   : > { %v7467_v31 = vld.sshfl [vmem:[#allocation1 + $0x8] sm:$0xff pattern:$0x75316420]  ;;  %v7466_v47 = vld.sshfl [vmem:[#allocation1] sm:$0xff pattern:$0x75316420] }
 0x2d6   : > { %7390 = vrot.lane.b32.xlu1 %v7385_v49, %s10209_s13  ;;  %7546 = vst [vmem:[#allocation1] ss:$2 sm:$0xff] %v10403_v24  ;;  %7473 = vrot.lane.b32.xlu0 %v7468_v11, %s10225_s26 }
 0x2d7   : > { %7471 = vrot.lane.b32.xlu2 %v7467_v31, %s10225_s26  ;;  %13433 = vst [vmem:[#allocation148_spill] sm:$0xff] %v12156_v37 }
 0x2d8   : > { %v6315_v7 = vpop.permute.xlu0 %6314  ;;  %v6317_v39 = vpop.permute.xlu1 %6316 }
 0x2d9   : > { %v6318_v38 = vsel %vm2180_vm8, %v6313_v48, %v6315_v7  ;;  %v6319_v62 = vsel %vm2180_vm8, %v6315_v7, %v6317_v39  ;;  %9835 = vmatpush.msk.msra.mxu2 %vm289_vm0, %v6317_v39  ;;  %v6479_v49 = vpop.permute.xlu2 %6478  ;;  %v12175_v31 = vpop.f32.mrf.mxu0 }
 0x2da   : > { %9831 = vmatpush.msk.msra.mxu0 %vm289_vm0, %v6318_v38  ;;  %9833 = vmatpush.msk.msra.mxu1 %vm289_vm0, %v6319_v62  ;;  %v6484_v11 = vsel %vm2355_vm9, %v6479_v49, %v12130_v12  ;;  %v12171_v62 = vpop.f32.mrf.mxu1  ;;  %13435 = vst [vmem:[#allocation150_spill] sm:$0xff] %v12175_v31  ;;  %v12177_v49 = vpop.f32.mrf.mxu2 }
 0x2db   : > { %v7551_v30 = vld.sshfl [vmem:[#allocation1 + $0x10] sm:$0xff pattern:$0x75316420]  ;;  %9836 = vmatmul.msk.f32.vlgmr.msra.gmra.mxu2 %vm286_vm1, %v10941_v26  ;;  %9832 = vmatmul.msk.f32.vlgmr.msra.gmra.mxu0 %vm286_vm1, %v10941_v26  ;;  %13434 = vst [vmem:[#allocation149_spill] sm:$0xff] %v12171_v62 }
 0x2dc   : > { %7631 = vst [vmem:[#allocation1 + $0x10] ss:$2 sm:$0xff] %v10387_v17  ;;  %9834 = vmatmul.msk.f32.vlgmr.msra.gmra.mxu1 %vm286_vm1, %v10941_v26  ;;  %9843 = vmatpush.msk.msrb.mxu2 %vm289_vm0, %v6484_v11  ;;  %v12186_v11 = vpop.f32.mrf.mxu3 }
 0x2dd   : > { %v7549_v48 = vld.sshfl [vmem:[#allocation1] sm:$0xff pattern:$0x75316420]  ;;  %v7550_v38 = vld.sshfl [vmem:[#allocation1 + $0x8] sm:$0xff pattern:$0x75316420] }
 0x2de   : > { %7552 = vrot.lane.b32.xlu1 %v7549_v48, %s10225_s26  ;;  %7629 = vst [vmem:[#allocation1] ss:$2 sm:$0xff] %v10390_v19  ;;  %7556 = vrot.lane.b32.xlu0 %v7551_v30, %s10225_s26 }
 0x2df   : > { %7469 = vrot.lane.b32.xlu2 %v7466_v47, %s10225_s26  ;;  %13436 = vst [vmem:[#allocation151_spill] sm:$0xff] %v12177_v49 }
 0x2e0   : > { %v6396_v7 = vpop.permute.xlu0 %6395  ;;  %v6398_v39 = vpop.permute.xlu1 %6397  ;;  %13437 = vst [vmem:[#allocation152_spill] sm:$0xff] %v12186_v11 }
 0x2e1   : > { %v6401_v25 = vsel %vm2180_vm8, %v6396_v7, %v6398_v39  ;;  %v12194_v7 = vpop.f32.mrf.mxu0 }
 0x2e2   : > { %9837 = vmatpush.msk.msra.mxu3 %vm289_vm0, %v6401_v25  ;;  %v6573_v25 = vpop.permute.xlu2 %6572  ;;  %v12192_v48 = vpop.f32.mrf.mxu1  ;;  %13439 = vst [vmem:[#allocation154_spill] sm:$0xff] %v12194_v7 }
 0x2e3   : > { %v7634_v37 = vld.sshfl [vmem:[#allocation1 + $0x10] sm:$0xff pattern:$0x75316420]  ;;  %9844 = vmatmul.msk.f32.vlgmr.msrb.gmra.mxu2 %vm286_vm1, %v11031_v20  ;;  %9838 = vmatmul.msk.f32.vlgmr.msra.gmra.mxu3 %vm286_vm1, %v10906_v18  ;;  %13438 = vst [vmem:[#allocation153_spill] sm:$0xff] %v12192_v48 }
 0x2e4   : > { %7714 = vst [vmem:[#allocation1 + $0x10] ss:$2 sm:$0xff] %v10398_v22 }
 0x2e5   : > { %v7633_v47 = vld.sshfl [vmem:[#allocation1 + $0x8] sm:$0xff pattern:$0x75316420]  ;;  %v7632_v30 = vld.sshfl [vmem:[#allocation1] sm:$0xff pattern:$0x75316420] }
 0x2e6   : > { %7639 = vrot.lane.b32.xlu1 %v7634_v37, %s10226_s28  ;;  %7712 = vst [vmem:[#allocation1] ss:$2 sm:$0xff] %v10403_v24  ;;  %7637 = vrot.lane.b32.xlu0 %v7633_v47, %s10226_s28 }
 0x2e7   : > { %7554 = vrot.lane.b32.xlu2 %v7550_v38, %s10225_s26  ;;  %v12204_v38 = vpop.f32.mrf.mxu2 }
 0x2e8   : > { %v6400_v62 = vpop.permute.xlu1 %6399  ;;  %v6483_v31 = vpop.permute.xlu0 %6482  ;;  %13440 = vst [vmem:[#allocation155_spill] sm:$0xff] %v12204_v38 }
 0x2e9   : > { %v6402_v49 = vsel %vm2180_vm8, %v6398_v39, %v6400_v62  ;;  %9841 = vmatpush.msk.msrb.mxu1 %vm289_vm0, %v6400_v62  ;;  %v6485_v37 = vsel %vm2355_vm9, %v12130_v12, %v6483_v31  ;;  %v12215_v12 = vpop.f32.mrf.mxu3  ;;  %v12225_v48 = vpop.f32.mrf.mxu0 }
 0x2ea   : > { %9839 = vmatpush.msk.msrb.mxu0 %vm289_vm0, %v6402_v49  ;;  %9842 = vmatmul.msk.f32.vlgmr.msrb.gmra.mxu1 %vm286_vm1, %v10906_v18 }
 0x2eb   : > { %v7717_v11 = vld.sshfl [vmem:[#allocation1 + $0x10] sm:$0xff pattern:$0x75316420]  ;;  %9845 = vmatpush.msk.msrb.mxu3 %vm289_vm0, %v6485_v37  ;;  %9840 = vmatmul.msk.f32.vlgmr.msrb.gmra.mxu0 %vm286_vm1, %v10906_v18  ;;  %v12222_v37 = vpop.f32.mrf.mxu1 }
 0x2ec   : > { %7797 = vst [vmem:[#allocation1 + $0x10] ss:$2 sm:$0xff] %v10344_v1  ;;  %9846 = vmatmul.msk.f32.vlgmr.msrb.gmra.mxu3 %vm286_vm1, %v11031_v20  ;;  %9847 = vmatpush.msk.msra.mxu0 %vm289_vm0, %v6483_v31 }
 0x2ed   : > { %v7716_v39 = vld.sshfl [vmem:[#allocation1 + $0x8] sm:$0xff pattern:$0x75316420]  ;;  %v7715_v62 = vld.sshfl [vmem:[#allocation1] sm:$0xff pattern:$0x75316420] }
 0x2ee   : > { %7720 = vrot.lane.b32.xlu1 %v7716_v39, %s10226_s28  ;;  %7795 = vst [vmem:[#allocation1] ss:$2 sm:$0xff] %v10348_v2  ;;  %7718 = vrot.lane.b32.xlu0 %v7715_v62, %s10226_s28 }
 0x2ef   : > { %7635 = vrot.lane.b32.xlu2 %v7632_v30, %s10226_s28  ;;  %9855 = vmatpush.msk.msrb.mxu0 %vm289_vm0, %v11910_v29 }
 0x2f0   : > { %v6571_v47 = vpop.permute.xlu1 %6570  ;;  %v6575_v7 = vpop.permute.xlu0 %6574 }
 0x2f1   : > { %v12220_v49 = vpop.permute.xlu2 %6807  ;;  %v6576_v39 = vsel %vm446_vm2, %v6571_v47, %v6573_v25  ;;  %v6577_v31 = vsel %vm446_vm2, %v6573_v25, %v6575_v7  ;;  %9853 = vmatpush.msk.msra.mxu3 %vm289_vm0, %v6575_v7  ;;  %v12239_v25 = vpop.f32.mrf.mxu2 }
 0x2f2   : > { %9849 = vmatpush.msk.msra.mxu1 %vm289_vm0, %v6576_v39  ;;  %9851 = vmatpush.msk.msra.mxu2 %vm289_vm0, %v6577_v31  ;;  %13441 = vst [vmem:[#allocation156_spill] sm:$0xff] %v12239_v25  ;;  %v12250_v62 = vpop.f32.mrf.mxu3 }
 0x2f3   : > { %v7800_v38 = vld.sshfl [vmem:[#allocation1 + $0x10] sm:$0xff pattern:$0x75316420]  ;;  %9848 = vmatmul.msk.f32.vlgmr.msra.gmra.mxu0 %vm286_vm1, %v11031_v20  ;;  %9850 = vmatmul.msk.f32.vlgmr.msra.gmra.mxu1 %vm286_vm1, %v10465_v46  ;;  %v12254_v39 = vpop.f32.mrf.mxu1 }
 0x2f4   : > { %7880 = vst [vmem:[#allocation1 + $0x10] ss:$2 sm:$0xff] %v10354_v3  ;;  %9852 = vmatmul.msk.f32.vlgmr.msra.gmra.mxu2 %vm286_vm1, %v10465_v46  ;;  %9854 = vmatmul.msk.f32.vlgmr.msra.gmra.mxu3 %vm286_vm1, %v10465_v46 }
 0x2f5   : > { %v7799_v29 = vld.sshfl [vmem:[#allocation1 + $0x8] sm:$0xff pattern:$0x75316420]  ;;  %v7798_v30 = vld.sshfl [vmem:[#allocation1] sm:$0xff pattern:$0x75316420]  ;;  %9857 = vmatpush.msk.msrb.mxu1 %vm289_vm0, %v11912_v42  ;;  %9859 = vmatpush.msk.msrb.mxu2 %vm289_vm0, %v11901_v32 }
 0x2f6   : > { %7878 = vst [vmem:[#allocation1] ss:$2 sm:$0xff] %v10359_v5  ;;  %7722 = vrot.lane.b32.xlu1 %v7717_v11, %s10226_s28  ;;  %7805 = vrot.lane.b32.xlu0 %v7800_v38, %s10223_s19  ;;  %v12257_v11 = vpop.f32.mrf.mxu0  ;;  %v10142_v32 = vld [vmem:[%s13282_s1] sm:$0xff] }
 0x2f7   : > { %7803 = vrot.lane.b32.xlu2 %v7799_v29, %s10223_s19  ;;  %13442 = vst [vmem:[#allocation157_spill] sm:$0xff] %v12254_v39 }
 0x2f8   : > { %13443 = vst [vmem:[#allocation158_spill] sm:$0xff] %v12257_v11 }
 0x2f9   : > { %v6806_v7 = vpop.permute.xlu2 %6805 }
 0x2fa   : > { %v6811_v47 = vsel %vm621_vm3, %v6806_v7, %v12220_v49  ;;  %v12269_v7 = vpop.f32.mrf.mxu2  ;;  %v12276_v25 = vpop.f32.mrf.mxu3 }
 0x2fb   : > { %v7883_v46 = vld.sshfl [vmem:[#allocation1 + $0x10] sm:$0xff pattern:$0x75316420]  ;;  %9867 = vmatpush.msk.msra.mxu2 %vm289_vm0, %v6811_v47  ;;  %9856 = vmatmul.msk.f32.vlgmr.msrb.gmra.mxu0 %vm286_vm1, %v10142_v32  ;;  %13444 = vst [vmem:[#allocation159_spill] sm:$0xff] %v12269_v7 }
 0x2fc   : > { %7963 = vst [vmem:[#allocation1 + $0x10] ss:$2 sm:$0xff] %v10344_v1  ;;  %9858 = vmatmul.msk.f32.vlgmr.msrb.gmra.mxu1 %vm286_vm1, %v10142_v32  ;;  %9860 = vmatmul.msk.f32.vlgmr.msrb.gmra.mxu2 %vm286_vm1, %v10142_v32 }
 0x2fd   : > { %v7881_v42 = vld.sshfl [vmem:[#allocation1] sm:$0xff pattern:$0x75316420]  ;;  %v7882_v38 = vld.sshfl [vmem:[#allocation1 + $0x8] sm:$0xff pattern:$0x75316420] }
 0x2fe   : > { %7961 = vst [vmem:[#allocation1] ss:$2 sm:$0xff] %v10348_v2  ;;  %7884 = vrot.lane.b32.xlu1 %v7881_v42, %s10232_s17  ;;  %7888 = vrot.lane.b32.xlu0 %v7883_v46, %s10232_s17  ;;  %v12279_v46 = vpop.f32.mrf.mxu1  ;;  %v12281_v7 = vpop.f32.mrf.mxu0 }
 0x2ff   : > { %7801 = vrot.lane.b32.xlu2 %v7798_v30, %s10223_s19  ;;  %13445 = vst [vmem:[#allocation160_spill] sm:$0xff] %v12281_v7 }
 0x300   : > { %v6725_v31 = vpop.permute.xlu1 %6724  ;;  %v6723_v29 = vpop.permute.xlu0 %6722 }
 0x301   : > { %v6728_v47 = vsel %vm446_vm2, %v6723_v29, %v6725_v31  ;;  %v6891_v39 = vpop.permute.xlu2 %6890 }
 0x302   : > { %9861 = vmatpush.msk.msrb.mxu3 %vm289_vm0, %v6728_v47  ;;  %v12288_v29 = vpop.f32.mrf.mxu2 }
 0x303   : > { %9862 = vmatmul.msk.f32.vlgmr.msrb.gmra.mxu3 %vm286_vm1, %v10480_v51  ;;  %v7966_v32 = vld.sshfl [vmem:[#allocation1 + $0x10] sm:$0xff pattern:$0x75316420] }
 0x304   : > { %8046 = vst [vmem:[#allocation1 + $0x10] ss:$2 sm:$0xff] %v10354_v3  ;;  %9868 = vmatmul.msk.f32.vlgmr.msra.gmra.mxu2 %vm286_vm1, %v10482_v52 }
 0x305   : > { %v7965_v42 = vld.sshfl [vmem:[#allocation1 + $0x8] sm:$0xff pattern:$0x75316420]  ;;  %v7964_v11 = vld.sshfl [vmem:[#allocation1] sm:$0xff pattern:$0x75316420] }
 0x306   : > { %8044 = vst [vmem:[#allocation1] ss:$2 sm:$0xff] %v10359_v5  ;;  %7971 = vrot.lane.b32.xlu1 %v7966_v32, %s10232_s17  ;;  %7969 = vrot.lane.b32.xlu0 %v7965_v42, %s10232_s17  ;;  %v12305_v32 = vpop.f32.mrf.mxu3  ;;  %v12308_v42 = vpop.f32.mrf.mxu1 }
 0x307   : > { %7886 = vrot.lane.b32.xlu2 %v7882_v38, %s10232_s17 }
 0x308   : > { %v6727_v30 = vpop.permute.xlu1 %6726  ;;  %v6810_v47 = vpop.permute.xlu0 %6809 }
 0x309   : > { %v6729_v3 = vsel %vm446_vm2, %v6725_v31, %v6727_v30  ;;  %9865 = vmatpush.msk.msra.mxu1 %vm289_vm0, %v6727_v30  ;;  %v6812_v7 = vsel %vm621_vm3, %v12220_v49, %v6810_v47  ;;  %v6972_v5 = vpop.permute.xlu2 %6971 }
 0x30a   : > { %9863 = vmatpush.msk.msra.mxu0 %vm289_vm0, %v6729_v3  ;;  %9866 = vmatmul.msk.f32.vlgmr.msra.gmra.mxu1 %vm286_vm1, %v10480_v51 }
 0x30b   : > { %9869 = vmatpush.msk.msra.mxu3 %vm289_vm0, %v6812_v7  ;;  %9864 = vmatmul.msk.f32.vlgmr.msra.gmra.mxu0 %vm286_vm1, %v10480_v51  ;;  %v8049_v31 = vld.sshfl [vmem:[#allocation1 + $0x10] sm:$0xff pattern:$0x75316420]  ;;  %v12311_v7 = vpop.f32.mrf.mxu0 }
 0x30c   : > { %9870 = vmatmul.msk.f32.vlgmr.msra.gmra.mxu3 %vm286_vm1, %v10482_v52  ;;  %9871 = vmatpush.msk.msrb.mxu0 %vm289_vm0, %v6810_v47  ;;  %8129 = vst [vmem:[#allocation1 + $0x10] ss:$2 sm:$0xff] %v10344_v1 }
 0x30d   : > { %v8048_v49 = vld.sshfl [vmem:[#allocation1 + $0x8] sm:$0xff pattern:$0x75316420]  ;;  %v8047_v38 = vld.sshfl [vmem:[#allocation1] sm:$0xff pattern:$0x75316420] }
 0x30e   : > { %8127 = vst [vmem:[#allocation1] ss:$2 sm:$0xff] %v10348_v2  ;;  %8052 = vrot.lane.b32.xlu1 %v8048_v49, %s10235_s29  ;;  %8050 = vrot.lane.b32.xlu0 %v8047_v38, %s10235_s29  ;;  %v12319_v2 = vpop.f32.mrf.mxu2  ;;  %v12331_v38 = vpop.f32.mrf.mxu3 }
 0x30f   : > { %7967 = vrot.lane.b32.xlu2 %v7964_v11, %s10232_s17  ;;  %13446 = vst [vmem:[#allocation161_spill] sm:$0xff] %v12319_v2 }
 0x310   : > { %v6889_v51 = vpop.permute.xlu1 %6888  ;;  %v6893_v30 = vpop.permute.xlu0 %6892 }
 0x311   : > { %v6894_v3 = vsel %vm621_vm3, %v6889_v51, %v6891_v39  ;;  %v6895_v1 = vsel %vm621_vm3, %v6891_v39, %v6893_v30  ;;  %9877 = vmatpush.msk.msrb.mxu3 %vm289_vm0, %v6893_v30  ;;  %v7140_v49 = vpop.permute.xlu2 %7139 }
 0x312   : > { %9873 = vmatpush.msk.msrb.mxu1 %vm289_vm0, %v6894_v3  ;;  %9875 = vmatpush.msk.msrb.mxu2 %vm289_vm0, %v6895_v1 }
 0x313   : > { %9872 = vmatmul.msk.f32.vlgmr.msrb.gmra.mxu0 %vm286_vm1, %v10482_v52  ;;  %v8132_v47 = vld.sshfl [vmem:[#allocation1 + $0x10] sm:$0xff pattern:$0x75316420]  ;;  %9874 = vmatmul.msk.f32.vlgmr.msrb.gmra.mxu1 %vm286_vm1, %v10506_v8  ;;  %v12334_v52 = vpop.f32.mrf.mxu1  ;;  %v12337_v51 = vpop.f32.mrf.mxu0 }
 0x314   : > { %9876 = vmatmul.msk.f32.vlgmr.msrb.gmra.mxu2 %vm286_vm1, %v10506_v8  ;;  %8212 = vst [vmem:[#allocation1 + $0x10] ss:$2 sm:$0xff] %v10398_v22  ;;  %9878 = vmatmul.msk.f32.vlgmr.msrb.gmra.mxu3 %vm286_vm1, %v10506_v8 }
 0x315   : > { %v8131_v39 = vld.sshfl [vmem:[#allocation1 + $0x8] sm:$0xff pattern:$0x75316420]  ;;  %v8130_v11 = vld.sshfl [vmem:[#allocation1] sm:$0xff pattern:$0x75316420] }
 0x316   : > { %8210 = vst [vmem:[#allocation1] ss:$2 sm:$0xff] %v10403_v24  ;;  %8054 = vrot.lane.b32.xlu1 %v8049_v31, %s10235_s29  ;;  %8137 = vrot.lane.b32.xlu0 %v8132_v47, %s10235_s29 }
 0x317   : > { %13447 = vst [vmem:[#allocation162_spill] sm:$0xff] %v12334_v52  ;;  %8135 = vrot.lane.b32.xlu2 %v8131_v39, %s10235_s29  ;;  %v12352_v39 = vpop.f32.mrf.mxu2 }
 0x318   : > { %13448 = vst [vmem:[#allocation163_spill] sm:$0xff] %v12337_v51  ;;  %v6976_v30 = vpop.permute.xlu1 %6975  ;;  %v6974_v3 = vpop.permute.xlu0 %6973 }
 0x319   : > { %9883 = vmatpush.msk.msra.mxu2 %vm289_vm0, %v6976_v30  ;;  %v6977_v8 = vsel %vm1132_vm4, %v6972_v5, %v6974_v3  ;;  %v6978_v1 = vsel %vm1132_vm4, %v6974_v3, %v6976_v30  ;;  %v7138_v31 = vpop.permute.xlu2 %7137  ;;  %v12359_v3 = vpop.f32.mrf.mxu3 }
 0x31a   : > { %9879 = vmatpush.msk.msra.mxu0 %vm289_vm0, %v6977_v8  ;;  %9881 = vmatpush.msk.msra.mxu1 %vm289_vm0, %v6978_v1  ;;  %v7143_v47 = vsel %vm1307_vm5, %v7138_v31, %v7140_v49  ;;  %13449 = vst [vmem:[#allocation164_spill] sm:$0xff] %v12359_v3 }
 0x31b   : > { %v8215_v52 = vld.sshfl [vmem:[#allocation1 + $0x10] sm:$0xff pattern:$0x75316420]  ;;  %9880 = vmatmul.msk.f32.vlgmr.msra.gmra.mxu0 %vm286_vm1, %v10497_v59  ;;  %9882 = vmatmul.msk.f32.vlgmr.msra.gmra.mxu1 %vm286_vm1, %v10497_v59  ;;  %v12362_v1 = vpop.f32.mrf.mxu1  ;;  %v12365_v2 = vpop.f32.mrf.mxu0 }
 0x31c   : > { %8295 = vst [vmem:[#allocation1 + $0x10] ss:$2 sm:$0xff] %v10387_v17  ;;  %9884 = vmatmul.msk.f32.vlgmr.msra.gmra.mxu2 %vm286_vm1, %v10497_v59 }
 0x31d   : > { %v8213_v5 = vld.sshfl [vmem:[#allocation1] sm:$0xff pattern:$0x75316420]  ;;  %v8214_v30 = vld.sshfl [vmem:[#allocation1 + $0x8] sm:$0xff pattern:$0x75316420]  ;;  %9891 = vmatpush.msk.msrb.mxu2 %vm289_vm0, %v7143_v47 }
 0x31e   : > { %8293 = vst [vmem:[#allocation1] ss:$2 sm:$0xff] %v10390_v19  ;;  %8216 = vrot.lane.b32.xlu1 %v8213_v5, %s10223_s19  ;;  %8220 = vrot.lane.b32.xlu0 %v8215_v52, %s10223_s19 }
 0x31f   : > { %13450 = vst [vmem:[#allocation165_spill] sm:$0xff] %v12362_v1  ;;  %8133 = vrot.lane.b32.xlu2 %v8130_v11, %s10235_s29  ;;  %v12372_v52 = vpop.f32.mrf.mxu2 }
 0x320   : > { %v7057_v8 = vpop.permute.xlu1 %7056  ;;  %v7055_v31 = vpop.permute.xlu0 %7054  ;;  %13451 = vst [vmem:[#allocation166_spill] sm:$0xff] %v12365_v2  ;;  %v10237_v2 = vmov 0  }
 0x321   : > { %v7060_v59 = vsel %vm1307_vm5, %v7055_v31, %v7057_v8  ;;  %v7223_v51 = vpop.permute.xlu2 %7222  ;;  %13452 = vst [vmem:[#allocation167_spill] sm:$0xff] %v12372_v52  ;;  %10139 = vset.pattern.permute.xlu0 %v10237_v2  ;;  %v12381_v52 = vpop.f32.mrf.mxu3 }
 0x322   : > { %9885 = vmatpush.msk.msra.mxu3 %vm289_vm0, %v7060_v59  ;;  %13453 = vst [vmem:[#allocation168_spill] sm:$0xff] %v12381_v52 }
 0x323   : > { %v8298_v47 = vld.sshfl [vmem:[#allocation1 + $0x10] sm:$0xff pattern:$0x75316420]  ;;  %9886 = vmatmul.msk.f32.vlgmr.msra.gmra.mxu3 %vm286_vm1, %v10460_v43  ;;  %v12387_v2 = vpop.f32.mrf.mxu1 }
 0x324   : > { %8378 = vst [vmem:[#allocation1 + $0x10] ss:$2 sm:$0xff] %v10398_v22  ;;  %9892 = vmatmul.msk.f32.vlgmr.msrb.gmra.mxu2 %vm286_vm1, %v10492_v57 }
 0x325   : > { %v8297_v5 = vld.sshfl [vmem:[#allocation1 + $0x8] sm:$0xff pattern:$0x75316420]  ;;  %v8296_v11 = vld.sshfl [vmem:[#allocation1] sm:$0xff pattern:$0x75316420] }
 0x326   : > { %8376 = vst [vmem:[#allocation1] ss:$2 sm:$0xff] %v10403_v24  ;;  %8301 = vrot.lane.b32.xlu0 %v8297_v5, %s10232_s17 }
 0x327   : > { %8218 = vrot.lane.b32.xlu2 %v8214_v30, %s10223_s19  ;;  %13454 = vst [vmem:[#allocation169_spill] sm:$0xff] %v12387_v2  ;;  %s243_s19 = sand.u32 1, %s10197_s22  }
 0x328   : > { %v7059_v31 = vpop.permute.xlu1 %7058  ;;  %v7142_v1 = vpop.permute.xlu0 %7141  ;;  %s244_s20 = scalar_lea.vmem [#allocation2], %s243_s19  ;;  %s9287_s11 = scalar_lea.sflag [#allocation3], %s243_s19 }
 0x329   : > { %v7061_v59 = vsel %vm1307_vm5, %v7057_v8, %v7059_v31  ;;  %9889 = vmatpush.msk.msrb.mxu1 %vm289_vm0, %v7059_v31  ;;  %v7144_v3 = vsel %vm1307_vm5, %v7140_v49, %v7142_v1  ;;  %v7304_v8 = vpop.permute.xlu2 %7303  ;;  %v12392_v31 = vpop.f32.mrf.mxu0 }
 0x32a   : > { %9887 = vmatpush.msk.msrb.mxu0 %vm289_vm0, %v7061_v59  ;;  %9890 = vmatmul.msk.f32.vlgmr.msrb.gmra.mxu1 %vm286_vm1, %v10460_v43  ;;  %v12405_v52 = vpop.f32.mrf.mxu3 }
 0x32b   : > { %9893 = vmatpush.msk.msrb.mxu3 %vm289_vm0, %v7144_v3  ;;  %9888 = vmatmul.msk.f32.vlgmr.msrb.gmra.mxu0 %vm286_vm1, %v10460_v43  ;;  %v8381_v5 = vld.sshfl [vmem:[#allocation1 + $0x10] sm:$0xff pattern:$0x75316420]  ;;  %v12400_v3 = vpop.f32.mrf.mxu2 }
 0x32c   : > { %9894 = vmatmul.msk.f32.vlgmr.msrb.gmra.mxu3 %vm286_vm1, %v10492_v57  ;;  %9895 = vmatpush.msk.msra.mxu0 %vm289_vm0, %v7142_v1  ;;  %8461 = vst [vmem:[#allocation1 + $0x10] ss:$2 sm:$0xff] %v10387_v17  ;;  %v12410_v1 = vpop.f32.mrf.mxu1 }
 0x32d   : > { %v8380_v49 = vld.sshfl [vmem:[#allocation1 + $0x8] sm:$0xff pattern:$0x75316420]  ;;  %v8379_v30 = vld.sshfl [vmem:[#allocation1] sm:$0xff pattern:$0x75316420] }
 0x32e   : > { %8384 = vrot.lane.b32.xlu1 %v8380_v49, %s10232_s17  ;;  %8459 = vst [vmem:[#allocation1] ss:$2 sm:$0xff] %v10390_v19  ;;  %8382 = vrot.lane.b32.xlu0 %v8379_v30, %s10232_s17 }
 0x32f   : > { %8299 = vrot.lane.b32.xlu2 %v8296_v11, %s10232_s17 }
 0x330   : > { %v7221_v43 = vpop.permute.xlu1 %7220  ;;  %v7225_v59 = vpop.permute.xlu0 %7224 }
 0x331   : > { %v7226_v2 = vsel %vm1482_vm6, %v7221_v43, %v7223_v51  ;;  %v7227_v17 = vsel %vm1482_vm6, %v7223_v51, %v7225_v59  ;;  %9901 = vmatpush.msk.msra.mxu3 %vm289_vm0, %v7225_v59  ;;  %v7472_v49 = vpop.permute.xlu2 %7471  ;;  %v12415_v30 = vpop.f32.mrf.mxu0 }
 0x332   : > { %9897 = vmatpush.msk.msra.mxu1 %vm289_vm0, %v7226_v2  ;;  %9899 = vmatpush.msk.msra.mxu2 %vm289_vm0, %v7227_v17 }
 0x333   : > { %9896 = vmatmul.msk.f32.vlgmr.msra.gmra.mxu0 %vm286_vm1, %v10492_v57  ;;  %v8464_v19 = vld.sshfl [vmem:[#allocation1 + $0x10] sm:$0xff pattern:$0x75316420]  ;;  %9898 = vmatmul.msk.f32.vlgmr.msra.gmra.mxu1 %vm286_vm1, %v10559_v41  ;;  %v12427_v2 = vpop.f32.mrf.mxu2 }
 0x334   : > { %9900 = vmatmul.msk.f32.vlgmr.msra.gmra.mxu2 %vm286_vm1, %v10559_v41  ;;  %8544 = vst [vmem:[#allocation1 + $0x10] ss:$2 sm:$0xff] %v10398_v22  ;;  %9902 = vmatmul.msk.f32.vlgmr.msra.gmra.mxu3 %vm286_vm1, %v10559_v41  ;;  %v12435_v41 = vpop.f32.mrf.mxu3  ;;  %v12442_v17 = vpop.f32.mrf.mxu1 }
 0x335   : > { %v8462_v51 = vld.sshfl [vmem:[#allocation1] sm:$0xff pattern:$0x75316420]  ;;  %v8463_v11 = vld.sshfl [vmem:[#allocation1 + $0x8] sm:$0xff pattern:$0x75316420] }
 0x336   : > { %8542 = vst [vmem:[#allocation1] ss:$2 sm:$0xff] %v10403_v24  ;;  %8303 = vrot.lane.b32.xlu1 %v8298_v47, %s10232_s17  ;;  %8469 = vrot.lane.b32.xlu0 %v8464_v19, %s10235_s29 }
 0x337   : > { %8467 = vrot.lane.b32.xlu2 %v8463_v11, %s10235_s29  ;;  %13455 = vst [vmem:[#allocation170_spill] sm:$0xff] %v12435_v41  ;;  %v13535_v41 = vld [vmem:[#allocation33_spill] sm:$0xff] }
 0x338   : > { %v7308_v57 = vpop.permute.xlu1 %7307  ;;  %v7306_v43 = vpop.permute.xlu0 %7305  ;;  %13456 = vst [vmem:[#allocation171_spill] sm:$0xff] %v12442_v17 }
 0x339   : > { %9907 = vmatpush.msk.msrb.mxu2 %vm289_vm0, %v7308_v57  ;;  %v7309_v22 = vsel %vm1482_vm6, %v7304_v8, %v7306_v43  ;;  %v7310_v59 = vsel %vm1482_vm6, %v7306_v43, %v7308_v57  ;;  %v7470_v24 = vpop.permute.xlu2 %7469  ;;  %v12446_v19 = vpop.f32.mrf.mxu0 }
 0x33a   : > { %9903 = vmatpush.msk.msrb.mxu0 %vm289_vm0, %v7309_v22  ;;  %9905 = vmatpush.msk.msrb.mxu1 %vm289_vm0, %v7310_v59  ;;  %v7475_v47 = vsel %vm1307_vm5, %v7470_v24, %v7472_v49  ;;  %13457 = vst [vmem:[#allocation172_spill] sm:$0xff] %v12446_v19 }
 0x33b   : > { %9904 = vmatmul.msk.f32.vlgmr.msrb.gmra.mxu0 %vm286_vm1, %v10536_v33  ;;  %9906 = vmatmul.msk.f32.vlgmr.msrb.gmra.mxu1 %vm286_vm1, %v10536_v33  ;;  %v8547_v8 = vld.sshfl [vmem:[#allocation1 + $0x10] sm:$0xff pattern:$0x75316420]  ;;  %v12451_v57 = vpop.f32.mrf.mxu2 }
 0x33c   : > { %9908 = vmatmul.msk.f32.vlgmr.msrb.gmra.mxu2 %vm286_vm1, %v10536_v33  ;;  %13458 = vst [vmem:[#allocation173_spill] sm:$0xff] %v12451_v57  ;;  %v12463_v24 = vpop.f32.mrf.mxu3 }
 0x33d   : > { %9915 = vmatpush.msk.msra.mxu2 %vm289_vm0, %v7475_v47  ;;  %v8545_v33 = vld.sshfl [vmem:[#allocation1] sm:$0xff pattern:$0x75316420]  ;;  %13459 = vst [vmem:[#allocation174_spill] sm:$0xff] %v12463_v24  ;;  %v12466_v47 = vpop.f32.mrf.mxu1 }
 0x33e   : > { %8386 = vrot.lane.b32.xlu1 %v8381_v5, %s10232_s17  ;;  %8552 = vrot.lane.b32.xlu0 %v8547_v8, %s10235_s29  ;;  %v274_v5 = vld [vmem:[%s13283_s2] sm:$0xff]  ;;  %13460 = vst [vmem:[#allocation175_spill] sm:$0xff] %v12466_v47  ;;  %s9300_s17 = scalar_lea.hbm %s13286_s5, %s10294_s25 }
 0x33f   : > { %8465 = vrot.lane.b32.xlu2 %v8462_v51, %s10235_s29  ;;  %v8546_v51 = vld.sshfl [vmem:[#allocation1 + $0x8] sm:$0xff pattern:$0x75316420]  ;;  %s9304_s9 = sshll.u32 %s9300_s17, 4  ;;  %s9305_s9 = int_to_ptr.hbm [resolvable:$true] %s9304_s9 }
 0x340   : > { %v7389_v11 = vpop.permute.xlu1 %7388  ;;  %v7387_v43 = vpop.permute.xlu0 %7386  ;;  %s10157_s15 = sshra.s32 %s9305_s9, 4  ;;  %s10158_s15 = int_to_ptr.hbm [resolvable:$true] %s10157_s15 }
 0x341   : > { %v7392_v22 = vsel %vm1132_vm4, %v7387_v43, %v7389_v11  ;;  %v7555_v59 = vpop.permute.xlu2 %7554  ;;  %v12468_v8 = vpop.f32.mrf.mxu0  ;;  %s10159_s25 = scalar_lea.hbm %s10158_s15, 1  ;;  %p10164_p0 = scmp.lt.s32.totalorder %s10158_s15, %s13286_s5 }
 0x342   : > { %9909 = vmatpush.msk.msrb.mxu3 %vm289_vm0, %v7392_v22  ;;  %13461 = vst [vmem:[#allocation176_spill] sm:$0xff] %v12468_v8  ;;  %p10160_p11 = scmp.ne.s32.totalorder %s10158_s15, %s10159_s25  ;;  %p10165_p1 = scmp.lt.s32.totalorder %s10163_s18, %s10159_s25 }
 0x343   : > { %9910 = vmatmul.msk.f32.vlgmr.msrb.gmra.mxu3 %vm286_vm1, %v10503_v4 }
 0x344   : > { %9916 = vmatmul.msk.f32.vlgmr.msra.gmra.mxu2 %vm286_vm1, %v10477_v50  ;;  %p10161_p12 = pnand %p10160_p11, %p10311_p5  ;;  %p10166_p2 = por %p10165_p1, %p10164_p0 }
 0x346   : > { %8548 = vrot.lane.b32.xlu1 %v8545_v33, %s10235_s29  ;;  %2431 = vperm.xlu0 %10139, %v274_v5   ;;  %v12477_v33 = vpop.f32.mrf.mxu2  ;;  %v12485_v5 = vpop.f32.mrf.mxu3  ;;  %p10162_p13 = pneg %p10161_p12 }
 0x347   : > { %8550 = vrot.lane.b32.xlu2 %v8546_v51, %s10235_s29  ;;  %13462 = vst [vmem:[#allocation177_spill] sm:$0xff] %v12477_v33  ;;  %s10068_s29 = smul.u32 24, %s10332_s14 }
 0x348   : > { %v7391_v43 = vpop.permute.xlu1 %7390  ;;  %v7474_v57 = vpop.permute.xlu0 %7473  ;;  %13463 = vst [vmem:[#allocation178_spill] sm:$0xff] %v12485_v5  ;;  %p10167_p3 = pnand %p10166_p2, %p10162_p13 }
 0x349   : > { %v7393_v22 = vsel %vm1132_vm4, %v7389_v11, %v7391_v43  ;;  %9913 = vmatpush.msk.msra.mxu1 %vm289_vm0, %v7391_v43  ;;  %v7476_v19 = vsel %vm1307_vm5, %v7472_v49, %v7474_v57  ;;  %v7636_v11 = vpop.permute.xlu2 %7635  ;;  %v12487_v49 = vpop.f32.mrf.mxu1  ;;  %s261_s14 = scalar_lea.vmem %s13287_s6, %s10068_s29  ;;  %s9302_s29 = sshll.u32 %s244_s20, 4  ;;  %s9303_s29 = int_to_ptr.vmem [resolvable:$true] %s9302_s29 }
 0x34a   : > { %9911 = vmatpush.msk.msra.mxu0 %vm289_vm0, %v7393_v22  ;;  %9914 = vmatmul.msk.f32.vlgmr.msra.gmra.mxu1 %vm286_vm1, %v10503_v4  ;;  %13464 = vst [vmem:[#allocation179_spill] sm:$0xff] %v12487_v49  ;;  %v12489_v51 = vpop.f32.mrf.mxu0 }
 0x34b   : > { %9917 = vmatpush.msk.msra.mxu3 %vm289_vm0, %v7476_v19  ;;  %9912 = vmatmul.msk.f32.vlgmr.msra.gmra.mxu0 %vm286_vm1, %v10503_v4  ;;  %13465 = vst [vmem:[#allocation180_spill] sm:$0xff] %v12489_v51 }
 0x34c   : > { %9918 = vmatmul.msk.f32.vlgmr.msra.gmra.mxu3 %vm286_vm1, %v10477_v50  ;;  %9919 = vmatpush.msk.msrb.mxu0 %vm289_vm0, %v7474_v57 }
 0x34e   : > { %v12502_v57 = vpop.f32.mrf.mxu2 }
 0x34f   : > { %13466 = vst [vmem:[#allocation181_spill] sm:$0xff] %v12502_v57 }
 0x350   : > { %v7553_v43 = vpop.permute.xlu1 %7552  ;;  %v7557_v22 = vpop.permute.xlu0 %7556 }
 0x351   : > { %v7558_v47 = vsel %vm1307_vm5, %v7553_v43, %v7555_v59  ;;  %v7559_v19 = vsel %vm1307_vm5, %v7555_v59, %v7557_v22  ;;  %9925 = vmatpush.msk.msrb.mxu3 %vm289_vm0, %v7557_v22  ;;  %v7804_v4 = vpop.permute.xlu2 %7803  ;;  %v12506_v59 = vpop.f32.mrf.mxu3 }
 0x352   : > { %9921 = vmatpush.msk.msrb.mxu1 %vm289_vm0, %v7558_v47  ;;  %9923 = vmatpush.msk.msrb.mxu2 %vm289_vm0, %v7559_v19  ;;  %13467 = vst [vmem:[#allocation182_spill] sm:$0xff] %v12506_v59  ;;  %v12508_v43 = vpop.f32.mrf.mxu1 }
 0x353   : > { %9920 = vmatmul.msk.f32.vlgmr.msrb.gmra.mxu0 %vm286_vm1, %v10477_v50  ;;  %9922 = vmatmul.msk.f32.vlgmr.msrb.gmra.mxu1 %vm286_vm1, %v10614_v60  ;;  %13468 = vst [vmem:[#allocation183_spill] sm:$0xff] %v12508_v43  ;;  %v12511_v50 = vpop.f32.mrf.mxu0 }
 0x354   : > { %9924 = vmatmul.msk.f32.vlgmr.msrb.gmra.mxu2 %vm286_vm1, %v10614_v60  ;;  %9926 = vmatmul.msk.f32.vlgmr.msrb.gmra.mxu3 %vm286_vm1, %v10614_v60  ;;  %13469 = vst [vmem:[#allocation184_spill] sm:$0xff] %v12511_v50 }
 0x356   : > { %v12522_v43 = vpop.f32.mrf.mxu2 }
 0x357   : > { %13470 = vst [vmem:[#allocation185_spill] sm:$0xff] %v12522_v43 }
 0x358   : > { %v7640_v47 = vpop.permute.xlu1 %7639  ;;  %v7638_v22 = vpop.permute.xlu0 %7637 }
 0x359   : > { %9931 = vmatpush.msk.msra.mxu2 %vm289_vm0, %v7640_v47  ;;  %v7641_v19 = vsel %vm1482_vm6, %v7636_v11, %v7638_v22  ;;  %v7642_v51 = vsel %vm1482_vm6, %v7638_v22, %v7640_v47  ;;  %v7802_v57 = vpop.permute.xlu2 %7801  ;;  %v12527_v22 = vpop.f32.mrf.mxu3 }
 0x35a   : > { %9927 = vmatpush.msk.msra.mxu0 %vm289_vm0, %v7641_v19  ;;  %9929 = vmatpush.msk.msra.mxu1 %vm289_vm0, %v7642_v51  ;;  %v7807_v60 = vsel %vm2005_vm7, %v7802_v57, %v7804_v4  ;;  %13471 = vst [vmem:[#allocation186_spill] sm:$0xff] %v12527_v22  ;;  %v12530_v19 = vpop.f32.mrf.mxu1 }
 0x35b   : > { %9928 = vmatmul.msk.f32.vlgmr.msra.gmra.mxu0 %vm286_vm1, %v10598_v54  ;;  %9930 = vmatmul.msk.f32.vlgmr.msra.gmra.mxu1 %vm286_vm1, %v10598_v54  ;;  %13472 = vst [vmem:[#allocation187_spill] sm:$0xff] %v12530_v19  ;;  %v12533_v59 = vpop.f32.mrf.mxu0 }
 0x35c   : > { %9932 = vmatmul.msk.f32.vlgmr.msra.gmra.mxu2 %vm286_vm1, %v10598_v54  ;;  %13473 = vst [vmem:[#allocation188_spill] sm:$0xff] %v12533_v59 }
 0x35d   : > { %9939 = vmatpush.msk.msrb.mxu2 %vm289_vm0, %v7807_v60 }
 0x35e   : > { %v12539_v54 = vpop.f32.mrf.mxu2 }
 0x35f   : > { %13474 = vst [vmem:[#allocation189_spill] sm:$0xff] %v12539_v54 }
 0x360   : > { %v7721_v11 = vpop.permute.xlu1 %7720  ;;  %v7719_v47 = vpop.permute.xlu0 %7718 }
 0x361   : > { %v7724_v51 = vsel %vm1482_vm6, %v7719_v47, %v7721_v11  ;;  %v7887_v50 = vpop.permute.xlu2 %7886 }
 0x362   : > { %9933 = vmatpush.msk.msra.mxu3 %vm289_vm0, %v7724_v51 }
 0x363   : > { %9934 = vmatmul.msk.f32.vlgmr.msra.gmra.mxu3 %vm286_vm1, %v10539_v35 }
 0x364   : > { %9940 = vmatmul.msk.f32.vlgmr.msrb.gmra.mxu2 %vm286_vm1, %v10588_v27 }
 0x366   : > { %v12541_v60 = vpop.f32.mrf.mxu3 }
 0x367   : > { %13475 = vst [vmem:[#allocation190_spill] sm:$0xff] %v12541_v60  ;;  %v12545_v51 = vpop.f32.mrf.mxu1 }
 0x368   : > { %v7723_v57 = vpop.permute.xlu1 %7722  ;;  %v7806_v22 = vpop.permute.xlu0 %7805  ;;  %13476 = vst [vmem:[#allocation191_spill] sm:$0xff] %v12545_v51 }
 0x369   : > { %v7725_v47 = vsel %vm1482_vm6, %v7721_v11, %v7723_v57  ;;  %9937 = vmatpush.msk.msrb.mxu1 %vm289_vm0, %v7723_v57  ;;  %v7808_v19 = vsel %vm2005_vm7, %v7804_v4, %v7806_v22  ;;  %v7968_v59 = vpop.permute.xlu2 %7967  ;;  %v12551_v43 = vpop.f32.mrf.mxu0 }
 0x36a   : > { %9935 = vmatpush.msk.msrb.mxu0 %vm289_vm0, %v7725_v47  ;;  %9938 = vmatmul.msk.f32.vlgmr.msrb.gmra.mxu1 %vm286_vm1, %v10539_v35  ;;  %13477 = vst [vmem:[#allocation192_spill] sm:$0xff] %v12551_v43  ;;  %v12559_v11 = vpop.f32.mrf.mxu2 }
 0x36b   : > { %9941 = vmatpush.msk.msrb.mxu3 %vm289_vm0, %v7808_v19  ;;  %9936 = vmatmul.msk.f32.vlgmr.msrb.gmra.mxu0 %vm286_vm1, %v10539_v35  ;;  %13478 = vst [vmem:[#allocation193_spill] sm:$0xff] %v12559_v11 }
 0x36c   : > { %9942 = vmatmul.msk.f32.vlgmr.msrb.gmra.mxu3 %vm286_vm1, %v10588_v27  ;;  %9943 = vmatpush.msk.msra.mxu0 %vm289_vm0, %v7806_v22 }
 0x36f   : > { %v12565_v43 = vpop.f32.mrf.mxu3 }
 0x370   : > { %v7885_v4 = vpop.permute.xlu1 %7884  ;;  %v7889_v57 = vpop.permute.xlu0 %7888  ;;  %13479 = vst [vmem:[#allocation194_spill] sm:$0xff] %v12565_v43 }
 0x371   : > { %v7890_v47 = vsel %vm2180_vm8, %v7885_v4, %v7887_v50  ;;  %v7891_v51 = vsel %vm2180_vm8, %v7887_v50, %v7889_v57  ;;  %9949 = vmatpush.msk.msra.mxu3 %vm289_vm0, %v7889_v57  ;;  %v8136_v19 = vpop.permute.xlu2 %8135  ;;  %v6601_v35 = vpop.f32.mrf.mxu1 }
 0x372   : > { %9945 = vmatpush.msk.msra.mxu1 %vm289_vm0, %v7890_v47  ;;  %9947 = vmatpush.msk.msra.mxu2 %vm289_vm0, %v7891_v51  ;;  %v12574_v50 = vpop.f32.mrf.mxu0 }
 0x373   : > { %9944 = vmatmul.msk.f32.vlgmr.msra.gmra.mxu0 %vm286_vm1, %v10588_v27  ;;  %9946 = vmatmul.msk.f32.vlgmr.msra.gmra.mxu1 %vm286_vm1, %v10769_v0  ;;  %13480 = vst [vmem:[#allocation195_spill] sm:$0xff] %v12574_v50 }
 0x374   : > { %9948 = vmatmul.msk.f32.vlgmr.msra.gmra.mxu2 %vm286_vm1, %v10769_v0  ;;  %9950 = vmatmul.msk.f32.vlgmr.msra.gmra.mxu3 %vm286_vm1, %v10769_v0 }
 0x377   : > { %v6621_v22 = vpop.f32.mrf.mxu2  ;;  %v6641_v43 = vpop.f32.mrf.mxu3 }
 0x378   : > { %v7972_v4 = vpop.permute.xlu1 %7971  ;;  %v7970_v57 = vpop.permute.xlu0 %7969 }
 0x379   : > { %9955 = vmatpush.msk.msrb.mxu2 %vm289_vm0, %v7972_v4  ;;  %v7973_v51 = vsel %vm2180_vm8, %v7968_v59, %v7970_v57  ;;  %v7974_v27 = vsel %vm2180_vm8, %v7970_v57, %v7972_v4  ;;  %v8134_v47 = vpop.permute.xlu2 %8133  ;;  %v6693_v59 = vpop.f32.mrf.mxu1 }
 0x37a   : > { %9951 = vmatpush.msk.msrb.mxu0 %vm289_vm0, %v7973_v51  ;;  %9953 = vmatpush.msk.msrb.mxu1 %vm289_vm0, %v7974_v27  ;;  %v8139_v0 = vsel %vm2355_vm9, %v8134_v47, %v8136_v19  ;;  %v6673_v4 = vpop.f32.mrf.mxu0  ;;  %v6694_v60 = vadd.f32 %v6693_v59, %v6621_v22 }
 0x37b   : > { %9952 = vmatmul.msk.f32.vlgmr.msrb.gmra.mxu0 %vm286_vm1, %v10556_v40  ;;  %9954 = vmatmul.msk.f32.vlgmr.msrb.gmra.mxu1 %vm286_vm1, %v10556_v40  ;;  %v6674_v11 = vadd.f32 %v6673_v4, %v6601_v35 }
 0x37c   : > { %9956 = vmatmul.msk.f32.vlgmr.msrb.gmra.mxu2 %vm286_vm1, %v10556_v40 }
 0x37d   : > { %9963 = vmatpush.msk.msra.mxu2 %vm289_vm0, %v8139_v0 }
 0x37f   : > { %v6713_v57 = vpop.f32.mrf.mxu2 }
 0x380   : > { %v8053_v51 = vpop.permute.xlu1 %8052  ;;  %v8051_v27 = vpop.permute.xlu0 %8050  ;;  %v6714_v47 = vadd.f32 %v6713_v57, %v6641_v43 }
 0x381   : > { %v8056_v50 = vsel %vm2355_vm9, %v8051_v27, %v8053_v51  ;;  %v8219_v5 = vpop.permute.xlu2 %8218 }
 0x382   : > { %9957 = vmatpush.msk.msrb.mxu3 %vm289_vm0, %v8056_v50 }
 0x383   : > { %9958 = vmatmul.msk.f32.vlgmr.msrb.gmra.mxu3 %vm286_vm1, %v10855_v36 }
 0x384   : > { %9964 = vmatmul.msk.f32.vlgmr.msra.gmra.mxu2 %vm286_vm1, %v10875_v28 }
 0x386   : > { %v6753_v40 = vpop.f32.mrf.mxu3 }
 0x387   : > { %v6796_v54 = vadd.f32 %v6753_v40, %v6674_v11  ;;  %v6793_v0 = vpop.f32.mrf.mxu1  ;;  %v6836_v24 = vpop.f32.mrf.mxu2 }
 0x388   : > { %v6798_v49 = vadd.f32 %v6793_v0, %v6714_v47  ;;  %v6773_v33 = vpop.f32.mrf.mxu0  ;;  %v8055_v8 = vpop.permute.xlu1 %8054 }
 0x389   : > { %v6797_v27 = vadd.f32 %v6773_v33, %v6694_v60  ;;  %v6879_v17 = vadd.f32 %v6836_v24, %v6796_v54  ;;  %v8057_v35 = vsel %vm2355_vm9, %v8053_v51, %v8055_v8  ;;  %v8138_v50 = vpop.permute.xlu0 %8137  ;;  %9961 = vmatpush.msk.msra.mxu1 %vm289_vm0, %v8055_v8 }
 0x38a   : > { %v8140_v43 = vsel %vm2355_vm9, %v8136_v19, %v8138_v50  ;;  %9959 = vmatpush.msk.msra.mxu0 %vm289_vm0, %v8057_v35  ;;  %9962 = vmatmul.msk.f32.vlgmr.msra.gmra.mxu1 %vm286_vm1, %v10855_v36 }
 0x38b   : > { %9965 = vmatpush.msk.msra.mxu3 %vm289_vm0, %v8140_v43  ;;  %9960 = vmatmul.msk.f32.vlgmr.msra.gmra.mxu0 %vm286_vm1, %v10855_v36  ;;  %v8300_v36 = vpop.permute.xlu2 %8299 }
 0x38c   : > { %9966 = vmatmul.msk.f32.vlgmr.msra.gmra.mxu3 %vm286_vm1, %v10875_v28  ;;  %9967 = vmatpush.msk.msrb.mxu0 %vm289_vm0, %v8138_v50 }
 0x38f   : > { %v6856_v24 = vpop.f32.mrf.mxu3 }
 0x390   : > { %v6880_v33 = vadd.f32 %v6856_v24, %v6797_v27  ;;  %v6876_v8 = vpop.f32.mrf.mxu0  ;;  %v8217_v54 = vpop.permute.xlu1 %8216 }
 0x391   : > { %v6881_v60 = vadd.f32 %v6876_v8, %v6798_v49  ;;  %v6919_v11 = vpop.f32.mrf.mxu1  ;;  %v8221_v19 = vpop.permute.xlu0 %8220  ;;  %v8222_v22 = vsel %vm2005_vm7, %v8217_v54, %v8219_v5 }
 0x392   : > { %v6962_v59 = vadd.f32 %v6919_v11, %v6879_v17  ;;  %v8223_v4 = vsel %vm2005_vm7, %v8219_v5, %v8221_v19  ;;  %9969 = vmatpush.msk.msrb.mxu1 %vm289_vm0, %v8222_v22  ;;  %9973 = vmatpush.msk.msrb.mxu3 %vm289_vm0, %v8221_v19 }
 0x393   : > { %9971 = vmatpush.msk.msrb.mxu2 %vm289_vm0, %v8223_v4  ;;  %9968 = vmatmul.msk.f32.vlgmr.msrb.gmra.mxu0 %vm286_vm1, %v10875_v28  ;;  %v8468_v35 = vpop.permute.xlu2 %8467 }
 0x394   : > { %9970 = vmatmul.msk.f32.vlgmr.msrb.gmra.mxu1 %vm286_vm1, %v10916_v34  ;;  %9972 = vmatmul.msk.f32.vlgmr.msrb.gmra.mxu2 %vm286_vm1, %v10916_v34 }
 0x395   : > { %9974 = vmatmul.msk.f32.vlgmr.msrb.gmra.mxu3 %vm286_vm1, %v10916_v34 }
 0x397   : > { %v6939_v17 = vpop.f32.mrf.mxu2  ;;  %v6959_v49 = vpop.f32.mrf.mxu3 }
 0x398   : > { %v6963_v5 = vadd.f32 %v6939_v17, %v6880_v33  ;;  %v6964_v57 = vadd.f32 %v6959_v49, %v6881_v60  ;;  %v7002_v51 = vpop.f32.mrf.mxu0 }
 0x399   : > { %v7022_v47 = vpop.f32.mrf.mxu1  ;;  %v8302_v40 = vpop.permute.xlu0 %8301  ;;  %v7045_v0 = vadd.f32 %v7002_v51, %v6962_v59 }
 0x39a   : > { %v7046_v27 = vadd.f32 %v7022_v47, %v6963_v5  ;;  %v8305_v28 = vsel %vm2180_vm8, %v8300_v36, %v8302_v40 }
 0x39b   : > { %9975 = vmatpush.msk.msra.mxu0 %vm289_vm0, %v8305_v28  ;;  %v8466_v8 = vpop.permute.xlu2 %8465 }
 0x39c   : > { %9976 = vmatmul.msk.f32.vlgmr.msra.gmra.mxu0 %vm286_vm1, %v10903_v15  ;;  %v8471_v59 = vsel %vm2355_vm9, %v8466_v8, %v8468_v35 }
 0x39f   : > { %v7042_v50 = vpop.f32.mrf.mxu2 }
 0x3a0   : > { %v8385_v43 = vpop.permute.xlu1 %8384  ;;  %v7047_v34 = vadd.f32 %v7042_v50, %v6964_v57 }
 0x3a1   : > { %v8383_v24 = vpop.permute.xlu0 %8382 }
 0x3a2   : > { %v8388_v33 = vsel %vm2180_vm8, %v8383_v24, %v8385_v43 }
 0x3a3   : > { %9981 = vmatpush.msk.msra.mxu3 %vm289_vm0, %v8388_v33 }
 0x3a4   : > { %9982 = vmatmul.msk.f32.vlgmr.msra.gmra.mxu3 %vm286_vm1, %v10941_v26 }
 0x3a6   : > { %v7085_v54 = vpop.f32.mrf.mxu3 }
 0x3a7   : > { %v7125_v60 = vpop.f32.mrf.mxu1  ;;  %v7128_v11 = vadd.f32 %v7085_v54, %v7045_v0  ;;  %v7168_v4 = vpop.f32.mrf.mxu2 }
 0x3a8   : > { %v7130_v19 = vadd.f32 %v7125_v60, %v7047_v34  ;;  %v8304_v22 = vpop.permute.xlu1 %8303  ;;  %v7105_v17 = vpop.f32.mrf.mxu0 }
 0x3a9   : > { %v8306_v36 = vsel %vm2180_vm8, %v8302_v40, %v8304_v22  ;;  %9979 = vmatpush.msk.msra.mxu2 %vm289_vm0, %v8304_v22  ;;  %v7211_v5 = vadd.f32 %v7168_v4, %v7128_v11  ;;  %v8470_v49 = vpop.permute.xlu0 %8469  ;;  %v7129_v57 = vadd.f32 %v7105_v17, %v7046_v27  ;;  %v8551_v27 = vpop.permute.xlu2 %8550  ;;  %v430_v17 = vadd.f32 %v10989_v44, %v10976_v23  ;;  %v13482_v44 = vld [vmem:[#allocation5_spill] sm:$0xff] }
 0x3aa   : > { %9977 = vmatpush.msk.msra.mxu1 %vm289_vm0, %v8306_v36  ;;  %9980 = vmatmul.msk.f32.vlgmr.msra.gmra.mxu2 %vm286_vm1, %v10903_v15  ;;  %v8472_v51 = vsel %vm2355_vm9, %v8468_v35, %v8470_v49 }
 0x3ab   : > { %9978 = vmatmul.msk.f32.vlgmr.msra.gmra.mxu1 %vm286_vm1, %v10903_v15  ;;  %9987 = vmatpush.msk.msrb.mxu2 %vm289_vm0, %v8471_v59 }
 0x3ac   : > { %9989 = vmatpush.msk.msrb.mxu3 %vm289_vm0, %v8472_v51 }
 0x3ad   : > { %9990 = vmatmul.msk.f32.vlgmr.msrb.gmra.mxu3 %vm286_vm1, %v10906_v18 }
 0x3af   : > { %v7188_v47 = vpop.f32.mrf.mxu3 }
 0x3b0   : > { %v7212_v40 = vadd.f32 %v7188_v47, %v7129_v57  ;;  %v8387_v0 = vpop.permute.xlu1 %8386  ;;  %v7208_v50 = vpop.f32.mrf.mxu0  ;;  %v519_v57 = vadd.f32 %v11011_v58, %v430_v17  ;;  %v13486_v58 = vld [vmem:[#allocation10_spill] sm:$0xff] }
 0x3b1   : > { %v8389_v28 = vsel %vm2180_vm8, %v8385_v43, %v8387_v0  ;;  %v7251_v34 = vpop.f32.mrf.mxu1  ;;  %9985 = vmatpush.msk.msrb.mxu1 %vm289_vm0, %v8387_v0  ;;  %v8553_v35 = vpop.permute.xlu0 %8552  ;;  %v7213_v24 = vadd.f32 %v7208_v50, %v7130_v19  ;;  %v13481_v0 = vld [vmem:[#allocation6_spill] sm:$0xff] }
 0x3b2   : > { %v12645_v15 = vadd.f32 %v7251_v34, %v7211_v5  ;;  %9983 = vmatpush.msk.msrb.mxu0 %vm289_vm0, %v8389_v28  ;;  %9988 = vmatmul.msk.f32.vlgmr.msrb.gmra.mxu2 %vm286_vm1, %v10906_v18  ;;  %v8555_v43 = vsel %vm2355_vm9, %v8551_v27, %v8553_v35  ;;  %v390_v5 = vadd.f32 %v10979_v16, %v10954_v63  ;;  %v13483_v63 = vld [vmem:[#allocation9_spill] sm:$0xff]  ;;  %v13484_v28 = vld [vmem:[#allocation8_spill] sm:$0xff] }
 0x3b3   : > { %9997 = vmatpush.msk.msra.mxu3 %vm289_vm0, %v8553_v35  ;;  %9984 = vmatmul.msk.f32.vlgmr.msrb.gmra.mxu0 %vm286_vm1, %v10941_v26 }
 0x3b4   : > { %9986 = vmatmul.msk.f32.vlgmr.msrb.gmra.mxu1 %vm286_vm1, %v10941_v26  ;;  %9991 = vmatpush.msk.msra.mxu0 %vm289_vm0, %v8470_v49  ;;  %v517_v51 = vadd.f32 %v10998_v45, %v390_v5 }
 0x3b5   : > { %9998 = vmatmul.msk.f32.vlgmr.msra.gmra.mxu3 %vm286_vm1, %v11031_v20  ;;  %9995 = vmatpush.msk.msra.mxu2 %vm289_vm0, %v8555_v43  ;;  %v13487_v43 = vld [vmem:[#allocation11_spill] sm:$0xff] }
 0x3b7   : > { %v7271_v33 = vpop.f32.mrf.mxu2  ;;  %v7291_v54 = vpop.f32.mrf.mxu3 }
 0x3b8   : > { %v12660_v8 = vadd.f32 %v7271_v33, %v7212_v40  ;;  %v8549_v60 = vpop.permute.xlu1 %8548  ;;  %v12662_v11 = vadd.f32 %v7291_v54, %v7213_v24  ;;  %v12672_v26 = vpop.f32.mrf.mxu0  ;;  %v606_v40 = vadd.f32 %v11034_v55, %v519_v57  ;;  %v13488_v54 = vld [vmem:[#allocation12_spill] sm:$0xff] }
 0x3b9   : > { %v8554_v19 = vsel %vm2355_vm9, %v8549_v60, %v8551_v27  ;;  %v12676_v59 = vpop.f32.mrf.mxu1  ;;  %v604_v27 = vadd.f32 %v13482_v44, %v517_v51  ;;  %v13491_v51 = vld [vmem:[#allocation15_spill] sm:$0xff] }
 0x3ba   : > { %9993 = vmatpush.msk.msra.mxu1 %vm289_vm0, %v8554_v19  ;;  %9996 = vmatmul.msk.f32.vlgmr.msra.gmra.mxu2 %vm286_vm1, %v11031_v20  ;;  %v694_v16 = vadd.f32 %v13483_v63, %v606_v40  ;;  %v13489_v19 = vld [vmem:[#allocation13_spill] sm:$0xff] }
 0x3bb   : > { %9992 = vmatmul.msk.f32.vlgmr.msra.gmra.mxu0 %vm286_vm1, %v10906_v18  ;;  %v13494_v63 = vld [vmem:[#allocation17_spill] sm:$0xff] }
 0x3bc   : > { %9994 = vmatmul.msk.f32.vlgmr.msra.gmra.mxu1 %vm286_vm1, %v11031_v20  ;;  %v410_v20 = vadd.f32 %v10983_v21, %v10962_v9  ;;  %v13485_v9 = vld [vmem:[#allocation7_spill] sm:$0xff] }
 0x3bd   : > { %v692_v21 = vadd.f32 %v13485_v9, %v604_v27 }
 0x3be   : > { %v518_v47 = vadd.f32 %v11002_v6, %v410_v20  ;;  %v775_v6 = vadd.f32 %v11093_v53, %v694_v16  ;;  %v13490_v20 = vld [vmem:[#allocation14_spill] sm:$0xff] }
 0x3bf   : > { %v12678_v4 = vpop.f32.mrf.mxu2  ;;  %v773_v45 = vadd.f32 %v13486_v58, %v692_v21  ;;  %v13497_v58 = vld [vmem:[#allocation20_spill] sm:$0xff] }
 0x3c0   : > { %v605_v23 = vadd.f32 %v13481_v0, %v518_v47  ;;  %v856_v5 = vadd.f32 %v11119_v14, %v775_v6  ;;  %v13492_v0 = vld [vmem:[#allocation16_spill] sm:$0xff]  ;;  %v13496_v14 = vld [vmem:[#allocation18_spill] sm:$0xff]  ;;  %v13498_v6 = vld [vmem:[#allocation69_spill] sm:$0xff] }
 0x3c1   : > { %v854_v60 = vadd.f32 %v13488_v54, %v773_v45 }
 0x3c2   : > { %v693_v50 = vadd.f32 %v13484_v28, %v605_v23  ;;  %v943_v53 = vadd.f32 %v13492_v0, %v856_v5  ;;  %v13493_v23 = vld [vmem:[#allocation70_spill] sm:$0xff]  ;;  %v13495_v28 = vld [vmem:[#allocation19_spill] sm:$0xff] }
 0x3c3   : > { %v941_v57 = vadd.f32 %v13490_v20, %v854_v60  ;;  %v2550_v44 = vadd.f32 %v13493_v23, %v11546_v61  ;;  %v13501_v60 = vld [vmem:[#allocation68_spill] sm:$0xff]  ;;  %v13504_v20 = vld [vmem:[#allocation22_spill] sm:$0xff] }
 0x3c4   : > { %v774_v33 = vadd.f32 %v13487_v43, %v693_v50  ;;  %v1030_v50 = vadd.f32 %v13495_v28, %v943_v53  ;;  %v13499_v43 = vld [vmem:[#allocation71_spill] sm:$0xff]  ;;  %v13506_v53 = vld [vmem:[#allocation74_spill] sm:$0xff]  ;;  %v13508_v28 = vld [vmem:[#allocation24_spill] sm:$0xff] }
 0x3c5   : > { %v1028_v16 = vadd.f32 %v13494_v63, %v941_v57  ;;  %v13507_v63 = vld [vmem:[#allocation21_spill] sm:$0xff] }
 0x3c6   : > { %v12674_v22 = vpop.f32.mrf.mxu3  ;;  %v855_v17 = vadd.f32 %v13489_v19, %v774_v33  ;;  %v2570_v33 = vadd.f32 %v13499_v43, %v13498_v6  ;;  %v13502_v19 = vld [vmem:[#allocation73_spill] sm:$0xff]  ;;  %v1117_v57 = vadd.f32 %v13504_v20, %v1030_v50  ;;  %v13515_v20 = vld [vmem:[#allocation27_spill] sm:$0xff] }
 0x3c7   : > { %v12686_v18 = vpop.f32.mrf.mxu1  ;;  %v12700_v34 = vpop.f32.mrf.mxu2  ;;  %v1115_v45 = vadd.f32 %v13497_v58, %v1028_v16  ;;  %v2590_v61 = vadd.f32 %v13502_v19, %v13501_v60  ;;  %v13509_v58 = vld [vmem:[#allocation75_spill] sm:$0xff]  ;;  %v13512_v60 = vld [vmem:[#allocation26_spill] sm:$0xff]  ;;  %v13513_v19 = vld [vmem:[#allocation25_spill] sm:$0xff] }
 0x3c8   : > { %v12680_v36 = vpop.f32.mrf.mxu0  ;;  %v942_v47 = vadd.f32 %v13491_v51, %v855_v17  ;;  %v13503_v17 = vld [vmem:[#allocation72_spill] sm:$0xff]  ;;  %v13505_v51 = vld [vmem:[#allocation23_spill] sm:$0xff]  ;;  %v2673_v23 = vadd.f32 %v13506_v53, %v2570_v33  ;;  %v13517_v53 = vld [vmem:[#allocation78_spill] sm:$0xff] }
 0x3c9   : > { %v2672_v5 = vadd.f32 %v13503_v17, %v2550_v44  ;;  %v1203_v0 = vadd.f32 %v13505_v51, %v1115_v45  ;;  %v2674_v6 = vadd.f32 %v13509_v58, %v2590_v61  ;;  %v1205_v44 = vadd.f32 %v13512_v60, %v1117_v57  ;;  %v13514_v17 = vld [vmem:[#allocation76_spill] sm:$0xff]  ;;  %v13516_v51 = vld [vmem:[#allocation77_spill] sm:$0xff] }
 0x3ca   : > { %v1029_v21 = vadd.f32 %v13496_v14, %v942_v47  ;;  %v2756_v45 = vadd.f32 %v13514_v17, %v2673_v23  ;;  %v13519_v61 = vld [vmem:[#allocation28_spill] sm:$0xff]  ;;  %v13524_v23 = vld [vmem:[#allocation81_spill] sm:$0xff]  ;;  %v13527_v17 = vld [vmem:[#allocation31_spill] sm:$0xff] }
 0x3cb   : > { %v2755_v16 = vadd.f32 %v11609_v56, %v2672_v5  ;;  %v1290_v50 = vadd.f32 %v13513_v19, %v1203_v0  ;;  %v13518_v5 = vld [vmem:[#allocation141_spill] sm:$0xff]  ;;  %v13526_v19 = vld [vmem:[#allocation146_spill] sm:$0xff] }
 0x3cc   : > { %v1116_v47 = vadd.f32 %v13507_v63, %v1029_v21  ;;  %v2757_v21 = vadd.f32 %v13516_v51, %v2674_v6  ;;  %v4604_v63 = vadd.f32 %v12102_v13, %v13518_v5  ;;  %v13528_v13 = vld [vmem:[#allocation32_spill] sm:$0xff] }
 0x3cd   : > { %v2838_v56 = vadd.f32 %v13517_v53, %v2755_v16 }
 0x3ce   : > { %v1204_v14 = vadd.f32 %v13508_v28, %v1116_v47  ;;  %v1292_v47 = vadd.f32 %v13519_v61, %v1205_v44  ;;  %v13520_v28 = vld [vmem:[#allocation29_spill] sm:$0xff]  ;;  %v4726_v16 = vadd.f32 %v13526_v19, %v4604_v63  ;;  %v13529_v44 = vld [vmem:[#allocation30_spill] sm:$0xff]  ;;  %v13537_v19 = vld [vmem:[#allocation84_spill] sm:$0xff] }
 0x3cf   : > { %v12688_v49 = vpop.f32.mrf.mxu3  ;;  %v1378_v58 = vadd.f32 %v13520_v28, %v1290_v50  ;;  %v2913_v60 = vadd.f32 %v13524_v23, %v2838_v56  ;;  %v13530_v50 = vld [vmem:[#allocation80_spill] sm:$0xff]  ;;  %v13532_v61 = vld [vmem:[#allocation34_spill] sm:$0xff] }
 0x3d0   : > { %v12702_v35 = vpop.f32.mrf.mxu0  ;;  %v12707_v24 = vpop.f32.mrf.mxu1  ;;  %v1291_v33 = vadd.f32 %v13515_v20, %v1204_v14  ;;  %v13525_v14 = vld [vmem:[#allocation143_spill] sm:$0xff]  ;;  %v1380_v20 = vadd.f32 %v13527_v17, %v1292_v47  ;;  %v2840_v5 = vadd.f32 %v13530_v50, %v2757_v21  ;;  %v13534_v56 = vld [vmem:[#allocation82_spill] sm:$0xff]  ;;  %v13538_v17 = vld [vmem:[#allocation145_spill] sm:$0xff] }
 0x3d1   : > { %v4624_v6 = vadd.f32 %v13525_v14, %v12099_v10  ;;  %v1465_v51 = vadd.f32 %v13528_v13, %v1378_v58  ;;  %v13536_v14 = vld [vmem:[#allocation83_spill] sm:$0xff]  ;;  %v2996_v47 = vadd.f32 %v13537_v19, %v2913_v60  ;;  %v13539_v13 = vld [vmem:[#allocation37_spill] sm:$0xff]  ;;  %v13541_v50 = vld [vmem:[#allocation142_spill] sm:$0xff] }
 0x3d2   : > { %v1379_v53 = vadd.f32 %v13529_v44, %v1291_v33  ;;  %v1467_v28 = vadd.f32 %v13532_v61, %v1380_v20  ;;  %v2915_v63 = vadd.f32 %v13536_v14, %v2840_v5  ;;  %v13540_v44 = vld [vmem:[#allocation85_spill] sm:$0xff]  ;;  %v13543_v20 = vld [vmem:[#allocation36_spill] sm:$0xff] }
 0x3d3   : > { %v4727_v58 = vadd.f32 %v13538_v17, %v4624_v6  ;;  %v13549_v6 = vld [vmem:[#allocation38_spill] sm:$0xff] }
 0x3d4   : > { %v1466_v10 = vadd.f32 %v13535_v41, %v1379_v53  ;;  %v1555_v33 = vadd.f32 %v13539_v13, %v1467_v28  ;;  %v13546_v41 = vld [vmem:[#allocation151_spill] sm:$0xff]  ;;  %v13550_v28 = vld [vmem:[#allocation40_spill] sm:$0xff]  ;;  %v13552_v13 = vld [vmem:[#allocation86_spill] sm:$0xff] }
 0x3d6   : > { %v1554_v61 = vadd.f32 %v13543_v20, %v1466_v10  ;;  %v1642_v19 = vadd.f32 %v13550_v28, %v1555_v33  ;;  %v13555_v20 = vld [vmem:[#allocation44_spill] sm:$0xff]  ;;  %v13562_v28 = vld [vmem:[#allocation153_spill] sm:$0xff] }
 0x3d7   : > { %v12709_v55 = vpop.f32.mrf.mxu3  ;;  %v12717_v40 = vpop.f32.mrf.mxu2 }
 0x3d8   : > { %v12722_v27 = vpop.f32.mrf.mxu0  ;;  %v12732_v54 = vpop.f32.mrf.mxu1 }
 0x3d9   : > { %13500 = vst [vmem:[#allocation6_spill] sm:$0xff] %v12732_v54 }
 0x3df   : > { %v12744_v43 = vpop.f32.mrf.mxu2 }
 0x3e0   : > { %13510 = vst [vmem:[#allocation5_spill] sm:$0xff] %v12744_v43 }
 0x3e6   : > { %v12726_v9 = vpop.f32.mrf.mxu3 }
 0x3e7   : > { %v12759_v57 = vpop.f32.mrf.mxu1  ;;  %v12787_v5 = vpop.f32.mrf.mxu2 }
 0x3e8   : > { %v12746_v54 = vpop.f32.mrf.mxu0  ;;  %13522 = vst [vmem:[#allocation8_spill] sm:$0xff] %v12759_v57 }
 0x3e9   : > { %13511 = vst [vmem:[#allocation9_spill] sm:$0xff] %v12746_v54  ;;  %v13521_v54 = vld [vmem:[#allocation79_spill] sm:$0xff] }
 0x3ea   : > { %v2839_v43 = vadd.f32 %v13521_v54, %v2756_v45  ;;  %v13531_v54 = vld [vmem:[#allocation148_spill] sm:$0xff]  ;;  %13547 = vst [vmem:[#allocation10_spill] sm:$0xff] %v12787_v5 }
 0x3eb   : > { %v4809_v45 = vadd.f32 %v13531_v54, %v4726_v16  ;;  %v13542_v16 = vld [vmem:[#allocation144_spill] sm:$0xff] }
 0x3ec   : > { %v2914_v23 = vadd.f32 %v13534_v56, %v2839_v43  ;;  %v4644_v54 = vadd.f32 %v13542_v16, %v13541_v50  ;;  %v13545_v43 = vld [vmem:[#allocation150_spill] sm:$0xff]  ;;  %v13554_v16 = vld [vmem:[#allocation152_spill] sm:$0xff] }
 0x3ed   : > { %v4810_v56 = vadd.f32 %v13545_v43, %v4727_v58  ;;  %v4892_v53 = vadd.f32 %v13546_v41, %v4809_v45  ;;  %v13553_v50 = vld [vmem:[#allocation90_spill] sm:$0xff]  ;;  %v1729_v58 = vadd.f32 %v13555_v20, %v1642_v19  ;;  %v13557_v43 = vld [vmem:[#allocation147_spill] sm:$0xff] }
 0x3ee   : > { %v2997_v21 = vadd.f32 %v13540_v44, %v2914_v23  ;;  %v13551_v23 = vld [vmem:[#allocation39_spill] sm:$0xff]  ;;  %v2998_v44 = vadd.f32 %v13552_v13, %v2915_v63  ;;  %v4728_v41 = vadd.f32 %v13557_v43, %v4644_v54  ;;  %v13567_v20 = vld [vmem:[#allocation46_spill] sm:$0xff] }
 0x3ef   : > { %v12761_v0 = vpop.f32.mrf.mxu3  ;;  %v1641_v17 = vadd.f32 %v13551_v23, %v1554_v61  ;;  %v4975_v63 = vadd.f32 %v13562_v28, %v4892_v53  ;;  %v13563_v23 = vld [vmem:[#allocation41_spill] sm:$0xff]  ;;  %v13564_v13 = vld [vmem:[#allocation91_spill] sm:$0xff]  ;;  %v13572_v28 = vld [vmem:[#allocation92_spill] sm:$0xff] }
 0x3f0   : > { %13523 = vst [vmem:[#allocation7_spill] sm:$0xff] %v12761_v0  ;;  %v13533_v0 = vld [vmem:[#allocation35_spill] sm:$0xff]  ;;  %v12789_v60 = vpop.f32.mrf.mxu0  ;;  %v12800_v5 = vpop.f32.mrf.mxu1 }
 0x3f1   : > { %v1553_v57 = vadd.f32 %v13533_v0, %v1465_v51  ;;  %v13544_v0 = vld [vmem:[#allocation87_spill] sm:$0xff]  ;;  %13548 = vst [vmem:[#allocation11_spill] sm:$0xff] %v12789_v60  ;;  %v5058_v54 = vadd.f32 %v12225_v48, %v4975_v63 }
 0x3f2   : > { %v3079_v51 = vadd.f32 %v13544_v0, %v2996_v47  ;;  %v4893_v47 = vadd.f32 %v13554_v16, %v4810_v56  ;;  %v13556_v0 = vld [vmem:[#allocation88_spill] sm:$0xff]  ;;  %13558 = vst [vmem:[#allocation12_spill] sm:$0xff] %v12800_v5  ;;  %v13566_v16 = vld [vmem:[#allocation155_spill] sm:$0xff]  ;;  %v13569_v5 = vld [vmem:[#allocation94_spill] sm:$0xff] }
 0x3f3   : > { %v1640_v14 = vadd.f32 %v13549_v6, %v1553_v57  ;;  %v3080_v45 = vadd.f32 %v13556_v0, %v2997_v21  ;;  %v13560_v57 = vld [vmem:[#allocation89_spill] sm:$0xff]  ;;  %v1816_v0 = vadd.f32 %v13567_v20, %v1729_v58  ;;  %v13568_v43 = vld [vmem:[#allocation43_spill] sm:$0xff] }
 0x3f4   : > { %v3162_v10 = vadd.f32 %v13553_v50, %v3079_v51  ;;  %v3081_v33 = vadd.f32 %v13560_v57, %v2998_v44  ;;  %v13561_v6 = vld [vmem:[#allocation93_spill] sm:$0xff]  ;;  %v13565_v50 = vld [vmem:[#allocation42_spill] sm:$0xff]  ;;  %v4976_v21 = vadd.f32 %v13566_v16, %v4893_v47  ;;  %v13575_v63 = vld [vmem:[#allocation47_spill] sm:$0xff] }
 0x3f5   : > { %v1727_v51 = vadd.f32 %v13563_v23, %v1640_v14  ;;  %v3163_v56 = vadd.f32 %v13564_v13, %v3080_v45  ;;  %v1728_v19 = vadd.f32 %v13565_v50, %v1641_v17  ;;  %v13570_v57 = vld [vmem:[#allocation149_spill] sm:$0xff]  ;;  %v13573_v23 = vld [vmem:[#allocation96_spill] sm:$0xff]  ;;  %v5141_v17 = vadd.f32 %v12250_v62, %v5058_v54  ;;  %v13577_v16 = vld [vmem:[#allocation154_spill] sm:$0xff] }
 0x3f6   : > { %v3245_v61 = vadd.f32 %v13561_v6, %v3162_v10  ;;  %v4811_v10 = vadd.f32 %v13570_v57, %v4728_v41  ;;  %v13571_v6 = vld [vmem:[#allocation45_spill] sm:$0xff]  ;;  %v3164_v14 = vadd.f32 %v13572_v28, %v3081_v33  ;;  %v13579_v20 = vld [vmem:[#allocation99_spill] sm:$0xff]  ;;  %v5059_v33 = vadd.f32 %v12222_v37, %v4976_v21  ;;  %v13581_v54 = vld [vmem:[#allocation52_spill] sm:$0xff] }
 0x3f7   : > { %v12802_v60 = vpop.f32.mrf.mxu3  ;;  %v3246_v44 = vadd.f32 %v13569_v5, %v3163_v56  ;;  %v1815_v53 = vadd.f32 %v13571_v6, %v1728_v19  ;;  %v12820_v13 = vpop.f32.mrf.mxu2  ;;  %v13574_v47 = vld [vmem:[#allocation49_spill] sm:$0xff]  ;;  %v13578_v56 = vld [vmem:[#allocation95_spill] sm:$0xff]  ;;  %v13582_v6 = vld [vmem:[#allocation50_spill] sm:$0xff] }
 0x3f8   : > { %13559 = vst [vmem:[#allocation13_spill] sm:$0xff] %v12802_v60  ;;  %v1814_v60 = vadd.f32 %v13568_v43, %v1727_v51  ;;  %v3328_v45 = vadd.f32 %v13573_v23, %v3245_v61  ;;  %v1903_v48 = vadd.f32 %v13574_v47, %v1816_v0  ;;  %v13576_v50 = vld [vmem:[#allocation97_spill] sm:$0xff]  ;;  %v4894_v5 = vadd.f32 %v13577_v16, %v4811_v10  ;;  %v12829_v43 = vpop.f32.mrf.mxu0  ;;  %v13580_v61 = vld [vmem:[#allocation48_spill] sm:$0xff]  ;;  %v13584_v23 = vld [vmem:[#allocation102_spill] sm:$0xff] }
 0x3f9   : > { %v3329_v51 = vadd.f32 %v13576_v50, %v3246_v44  ;;  %v3247_v41 = vadd.f32 %v13578_v56, %v3164_v14  ;;  %v1902_v62 = vadd.f32 %v13580_v61, %v1815_v53  ;;  %v13583_v44 = vld [vmem:[#allocation98_spill] sm:$0xff]  ;;  %v13585_v47 = vld [vmem:[#allocation159_spill] sm:$0xff]  ;;  %v13588_v16 = vld [vmem:[#allocation53_spill] sm:$0xff] }
 0x3fa   : > { %v1901_v58 = vadd.f32 %v13575_v63, %v1814_v60  ;;  %v3411_v19 = vadd.f32 %v13579_v20, %v3328_v45  ;;  %v1990_v57 = vadd.f32 %v13581_v54, %v1903_v48  ;;  %v4977_v60 = vadd.f32 %v12215_v12, %v4894_v5  ;;  %v13586_v63 = vld [vmem:[#allocation158_spill] sm:$0xff]  ;;  %v13587_v21 = vld [vmem:[#allocation51_spill] sm:$0xff]  ;;  %v13589_v56 = vld [vmem:[#allocation100_spill] sm:$0xff]  ;;  %v12844_v20 = vpop.f32.mrf.mxu1 }
 0x3fb   : > { %v3330_v10 = vadd.f32 %v13583_v44, %v3247_v41  ;;  %v5224_v45 = vadd.f32 %v13585_v47, %v5141_v17  ;;  %v5142_v37 = vadd.f32 %v13586_v63, %v5059_v33  ;;  %v1989_v50 = vadd.f32 %v13587_v21, %v1902_v62  ;;  %v13591_v5 = vld [vmem:[#allocation101_spill] sm:$0xff]  ;;  %v13592_v54 = vld [vmem:[#allocation54_spill] sm:$0xff]  ;;  %v13594_v44 = vld [vmem:[#allocation156_spill] sm:$0xff] }
 0x3fc   : > { %v1988_v0 = vadd.f32 %v13582_v6, %v1901_v58  ;;  %v3494_v14 = vadd.f32 %v13584_v23, %v3411_v19  ;;  %v3412_v48 = vadd.f32 %v13589_v56, %v3329_v51  ;;  %v13590_v58 = vld [vmem:[#allocation55_spill] sm:$0xff]  ;;  %v13593_v6 = vld [vmem:[#allocation104_spill] sm:$0xff]  ;;  %v5060_v62 = vadd.f32 %v13594_v44, %v4977_v60  ;;  %v13595_v23 = vld [vmem:[#allocation105_spill] sm:$0xff] }
 0x3fd   : > { %v2078_v12 = vadd.f32 %v13590_v58, %v1990_v57  ;;  %v3413_v61 = vadd.f32 %v13591_v5, %v3330_v10  ;;  %v5225_v41 = vadd.f32 %v12276_v25, %v5142_v37  ;;  %v5307_v19 = vadd.f32 %v12279_v46, %v5224_v45  ;;  %v13596_v47 = vld [vmem:[#allocation103_spill] sm:$0xff]  ;;  %v13597_v21 = vld [vmem:[#allocation56_spill] sm:$0xff]  ;;  %v13599_v37 = vld [vmem:[#allocation106_spill] sm:$0xff] }
 0x3fe   : > { %v2076_v53 = vadd.f32 %v13588_v16, %v1988_v0  ;;  %v2077_v17 = vadd.f32 %v13592_v54, %v1989_v50  ;;  %v3495_v33 = vadd.f32 %v13593_v6, %v3412_v48  ;;  %v3577_v0 = vadd.f32 %v13595_v23, %v3494_v14  ;;  %v13598_v16 = vld [vmem:[#allocation57_spill] sm:$0xff]  ;;  %v13601_v56 = vld [vmem:[#allocation58_spill] sm:$0xff]  ;;  %v13602_v58 = vld [vmem:[#allocation107_spill] sm:$0xff] }
 0x3ff   : > { %v3496_v51 = vadd.f32 %v13596_v47, %v3413_v61  ;;  %v5308_v63 = vadd.f32 %v12288_v29, %v5225_v41  ;;  %v5390_v57 = vadd.f32 %v12311_v7, %v5307_v19  ;;  %v13600_v45 = vld [vmem:[#allocation157_spill] sm:$0xff]  ;;  %v2165_v48 = vadd.f32 %v13601_v56, %v2078_v12  ;;  %v13603_v5 = vld [vmem:[#allocation108_spill] sm:$0xff]  ;;  %v12865_v54 = vpop.f32.mrf.mxu2  ;;  %v13604_v7 = vld [vmem:[#allocation59_spill] sm:$0xff] }
 0x400   : > { %v2163_v10 = vadd.f32 %v13597_v21, %v2076_v53  ;;  %v2164_v25 = vadd.f32 %v13598_v16, %v2077_v17  ;;  %v3578_v46 = vadd.f32 %v13599_v37, %v3495_v33  ;;  %v5143_v50 = vadd.f32 %v13600_v45, %v5060_v62  ;;  %v13605_v41 = vld [vmem:[#allocation109_spill] sm:$0xff]  ;;  %v13606_v17 = vld [vmem:[#allocation160_spill] sm:$0xff]  ;;  %v13607_v12 = vld [vmem:[#allocation110_spill] sm:$0xff] }
 0x401   : > { %v3579_v60 = vadd.f32 %v13602_v58, %v3496_v51  ;;  %v3660_v14 = vadd.f32 %v13603_v5, %v3577_v0  ;;  %v5473_v61 = vadd.f32 %v12331_v38, %v5390_v57  ;;  %v7377_v33 = vadd.f32 %v12672_v26, %v12645_v15  ;;  %v13608_v62 = vld [vmem:[#allocation111_spill] sm:$0xff]  ;;  %v13609_v38 = vld [vmem:[#allocation62_spill] sm:$0xff]  ;;  %v13610_v51 = vld [vmem:[#allocation60_spill] sm:$0xff] }
 0x402   : > { %v2251_v53 = vadd.f32 %v13604_v7, %v2163_v10  ;;  %v3661_v19 = vadd.f32 %v13605_v41, %v3578_v46  ;;  %v5226_v6 = vadd.f32 %v13606_v17, %v5143_v50  ;;  %v5391_v0 = vadd.f32 %v12308_v42, %v5308_v63  ;;  %v13611_v46 = vld [vmem:[#allocation113_spill] sm:$0xff]  ;;  %v13612_v26 = vld [vmem:[#allocation114_spill] sm:$0xff]  ;;  %v13613_v56 = vld [vmem:[#allocation163_spill] sm:$0xff] }
 0x403   : > { %v3662_v44 = vadd.f32 %v13607_v12, %v3579_v60  ;;  %v3743_v23 = vadd.f32 %v13608_v62, %v3660_v14  ;;  %v2253_v47 = vadd.f32 %v13609_v38, %v2165_v48  ;;  %v2252_v57 = vadd.f32 %v13610_v51, %v2164_v25  ;;  %v13614_v63 = vld [vmem:[#allocation64_spill] sm:$0xff]  ;;  %v13615_v25 = vld [vmem:[#allocation61_spill] sm:$0xff]  ;;  %v13618_v14 = vld [vmem:[#allocation63_spill] sm:$0xff] }
 0x404   : > { %v5309_v21 = vadd.f32 %v12305_v32, %v5226_v6  ;;  %v7460_v10 = vadd.f32 %v12674_v22, %v7377_v33  ;;  %v5556_v50 = vadd.f32 %v12352_v39, %v5473_v61  ;;  %v5474_v42 = vadd.f32 %v13613_v56, %v5391_v0  ;;  %v13616_v32 = vld [vmem:[#allocation112_spill] sm:$0xff]  ;;  %v13617_v22 = vld [vmem:[#allocation161_spill] sm:$0xff]  ;;  %v13619_v41 = vld [vmem:[#allocation115_spill] sm:$0xff] }
 0x405   : > { %v3745_v15 = vadd.f32 %v13611_v46, %v3662_v44  ;;  %v3826_v45 = vadd.f32 %v13612_v26, %v3743_v23  ;;  %v12890_v48 = vadd.f32 %v13614_v63, %v2253_v47  ;;  %v2338_v58 = vadd.f32 %v13615_v25, %v2251_v53  ;;  %v13620_v6 = vld [vmem:[#allocation164_spill] sm:$0xff]  ;;  %v13621_v12 = vld [vmem:[#allocation165_spill] sm:$0xff]  ;;  %v13623_v62 = vld [vmem:[#allocation162_spill] sm:$0xff] }
 0x406   : > { %v12835_v28 = vpop.f32.mrf.mxu3  ;;  %v3744_v60 = vadd.f32 %v13616_v32, %v3661_v19  ;;  %v5392_v5 = vadd.f32 %v13617_v22, %v5309_v21  ;;  %v12896_v7 = vadd.f32 %v13618_v14, %v2252_v57  ;;  %v5557_v33 = vadd.f32 %v13620_v6, %v5474_v42  ;;  %v13622_v61 = vld [vmem:[#allocation116_spill] sm:$0xff]  ;;  %v13624_v0 = vld [vmem:[#allocation117_spill] sm:$0xff]  ;;  %v13625_v47 = vld [vmem:[#allocation167_spill] sm:$0xff] }
 0x407   : > { %v12881_v16 = vpop.f32.mrf.mxu1  ;;  %v3828_v17 = vadd.f32 %v13619_v41, %v3745_v15  ;;  %v5639_v39 = vadd.f32 %v13621_v12, %v5556_v50  ;;  %v7378_v53 = vadd.f32 %v12676_v59, %v12660_v8  ;;  %v7543_v19 = vadd.f32 %v12700_v34, %v7460_v10  ;;  %v13626_v46 = vld [vmem:[#allocation118_spill] sm:$0xff]  ;;  %v13628_v8 = vld [vmem:[#allocation119_spill] sm:$0xff]  ;;  %v13629_v34 = vld [vmem:[#allocation120_spill] sm:$0xff] }
 0x408   : > { %v12867_v29 = vpop.f32.mrf.mxu0  ;;  %v3827_v44 = vadd.f32 %v13622_v61, %v3744_v60  ;;  %v5475_v23 = vadd.f32 %v13623_v62, %v5392_v5  ;;  %v3909_v38 = vadd.f32 %v13624_v0, %v3826_v45  ;;  %v5640_v51 = vadd.f32 %v13625_v47, %v5557_v33  ;;  %v13627_v26 = vld [vmem:[#allocation166_spill] sm:$0xff]  ;;  %v13631_v32 = vld [vmem:[#allocation168_spill] sm:$0xff] }
 0x409   : > { %v5722_v57 = vadd.f32 %v12392_v31, %v5639_v39  ;;  %v7379_v21 = vadd.f32 %v12678_v4, %v12662_v11  ;;  %v7461_v56 = vadd.f32 %v12680_v36, %v7378_v53  ;;  %v7626_v42 = vadd.f32 %v12707_v24, %v7543_v19  ;;  %v12919_v31 = vpop.f32.mrf.mxu2  ;;  %v8642_v11 = vld [vmem:[%s13284_s3 + $0x18] sm:$0x3]  ;;  %v13630_v4 = vld [vmem:[#allocation121_spill] sm:$0xff]  ;;  %v10005_v6 = vld [vmem:[%s13284_s3 + $0x48] sm:$0x3] }
 0x40a   : > { %v3910_v15 = vadd.f32 %v13626_v46, %v3827_v44  ;;  %v5558_v50 = vadd.f32 %v13627_v26, %v5475_v23  ;;  %v3911_v59 = vadd.f32 %v13628_v8, %v3828_v17  ;;  %v3992_v10 = vadd.f32 %v13629_v34, %v3909_v38  ;;  %8668 = vmatpush.xpose.msrb.mxu0 %v8642_v11  ;;  %v8644_v17 = vld [vmem:[%s13284_s3 + $0x28] sm:$0x3]  ;;  %v13637_v19 = vld [vmem:[#allocation125_spill] sm:$0xff]  ;;  %v13638_v47 = vld [vmem:[#allocation126_spill] sm:$0xff] }
 0x40b   : > { %v5805_v45 = vadd.f32 %v12405_v52, %v5722_v57  ;;  %v7462_v63 = vadd.f32 %v12686_v18, %v7379_v21  ;;  %v7544_v60 = vadd.f32 %v12688_v49, %v7461_v56  ;;  %v7709_v22 = vadd.f32 %v12722_v27, %v7626_v42  ;;  %v13632_v52 = vld [vmem:[#allocation122_spill] sm:$0xff]  ;;  %v13633_v18 = vld [vmem:[#allocation169_spill] sm:$0xff]  ;;  %9999 = vmatpush.xpose.msk.msrb.mxu2 %vm8636_vm10, %v8644_v17  ;;  %v13640_v46 = vld [vmem:[#allocation171_spill] sm:$0xff] }
 0x40c   : > { %v3993_v36 = vadd.f32 %v13630_v4, %v3910_v15  ;;  %v5641_v24 = vadd.f32 %v13631_v32, %v5558_v50  ;;  %v3994_v5 = vadd.f32 %v13632_v52, %v3911_v59  ;;  %v5723_v14 = vadd.f32 %v13633_v18, %v5640_v51  ;;  %8751 = vmatpush.xpose.msrb.mxu3 %v10005_v6  ;;  %v13639_v57 = vld [vmem:[#allocation170_spill] sm:$0xff]  ;;  %v13643_v50 = vld [vmem:[#allocation172_spill] sm:$0xff]  ;;  %v8643_v34 = vld [vmem:[%s13284_s3 + $0x20] sm:$0x3] }
 0x40d   : > { %v7545_v41 = vadd.f32 %v12702_v35, %v7462_v63  ;;  %v7627_v27 = vadd.f32 %v12717_v40, %v7544_v60  ;;  %v7792_v33 = vadd.f32 %v12726_v9, %v7709_v22  ;;  %v13634_v35 = vld [vmem:[#allocation124_spill] sm:$0xff]  ;;  %v5888_v44 = vadd.f32 %v12427_v2, %v5805_v45  ;;  %v13636_v40 = vld [vmem:[#allocation123_spill] sm:$0xff]  ;;  %v13641_v2 = vld [vmem:[#allocation5_spill] sm:$0xff]  ;;  %8688 = vmatpush.xpose.msrb.mxu1 %v8643_v34 }
 0x40e   : > { %v5724_v49 = vadd.f32 %v12400_v3, %v5641_v24  ;;  %v4075_v61 = vadd.f32 %v13634_v35, %v3992_v10  ;;  %v5806_v62 = vadd.f32 %v12415_v30, %v5723_v14  ;;  %v13635_v3 = vld [vmem:[#allocation66_spill] sm:$0xff]  ;;  %v4076_v9 = vadd.f32 %v13636_v40, %v3993_v36  ;;  %v8639_v30 = vld [vmem:[%s13284_s3] sm:$0xff]  ;;  %v13647_v63 = vld [vmem:[#allocation173_spill] sm:$0xff] }
 0x40f   : > { %v12883_v37 = vpop.f32.mrf.mxu3  ;;  %v7628_v23 = vadd.f32 %v12709_v55, %v7545_v41  ;;  %v12952_v53 = vadd.f32 %v13635_v3, %v2338_v58  ;;  %v4077_v0 = vadd.f32 %v13637_v19, %v3994_v5  ;;  %v5971_v15 = vadd.f32 %v13640_v46, %v5888_v44  ;;  %v13642_v55 = vld [vmem:[#allocation127_spill] sm:$0xff]  ;;  %v13644_v42 = vld [vmem:[#allocation6_spill] sm:$0xff]  ;;  %8669 = vmatpush.xpose.msrb.mxu0 %v8639_v30  ;;  %v13646_v10 = vld [vmem:[#allocation128_spill] sm:$0xff] }
 0x410   : > { %v12921_v25 = vpop.f32.mrf.mxu0  ;;  %v5807_v38 = vadd.f32 %v12410_v1, %v5724_v49  ;;  %v4158_v51 = vadd.f32 %v13638_v47, %v4075_v61  ;;  %v5889_v21 = vadd.f32 %v13639_v57, %v5806_v62  ;;  %v7710_v8 = vadd.f32 %v13644_v42, %v7627_v27  ;;  %v13645_v59 = vld [vmem:[#allocation10_spill] sm:$0xff]  ;;  %v13648_v4 = vld [vmem:[#allocation176_spill] sm:$0xff]  ;;  %v13651_v14 = vld [vmem:[#allocation9_spill] sm:$0xff] }
 0x411   : > { %v12942_v12 = vpop.f32.mrf.mxu1  ;;  %v7711_v26 = vadd.f32 %v13641_v2, %v7628_v23  ;;  %v4160_v58 = vadd.f32 %v13642_v55, %v4077_v0  ;;  %v7875_v1 = vadd.f32 %v13645_v59, %v7792_v33  ;;  %v4159_v45 = vadd.f32 %v13646_v10, %v4076_v9  ;;  %v13649_v32 = vld [vmem:[#allocation8_spill] sm:$0xff]  ;;  %v8641_v22 = vld [vmem:[%s13284_s3 + $0x10] sm:$0xff]  ;;  %v10014_v33 = vld [vmem:[%s13284_s3 + $0x78] sm:$0x3] }
 0x412   : > { %v5890_v56 = vadd.f32 %v13643_v50, %v5807_v38  ;;  %v5972_v11 = vadd.f32 %v13647_v63, %v5889_v21  ;;  %v6054_v36 = vadd.f32 %v13648_v4, %v5971_v15  ;;  %v10002_v52 = vld [vmem:[%s13284_s3 + $0x30] sm:$0xff]  ;;  %v7793_v41 = vadd.f32 %v13651_v14, %v7710_v8  ;;  %v13652_v17 = vld [vmem:[#allocation12_spill] sm:$0xff]  ;;  %10000 = vmatpush.xpose.msk.msrb.mxu2 %vm8636_vm10, %v8641_v22  ;;  %v13655_v23 = vld [vmem:[#allocation11_spill] sm:$0xff] }
 0x413   : > { %v7794_v24 = vadd.f32 %v13649_v32, %v7711_v26  ;;  %v13650_v5 = vld [vmem:[#allocation174_spill] sm:$0xff]  ;;  %v7958_v6 = vadd.f32 %v13652_v17, %v7875_v1  ;;  %8752 = vmatpush.xpose.msrb.mxu3 %v10002_v52  ;;  %v10006_v49 = vld [vmem:[%s13284_s3 + $0x50] sm:$0x3]  ;;  %v8640_v27 = vld [vmem:[%s13284_s3 + $0x8] sm:$0xff] }
 0x414   : > { %v5973_v18 = vadd.f32 %v13650_v5, %v5890_v56  ;;  %v13653_v35 = vld [vmem:[#allocation130_spill] sm:$0xff]  ;;  %8771 = vmatpush.xpose.msra.mxu0 %v10006_v49  ;;  %v10015_v9 = vld [vmem:[%s13284_s3 + $0x80] sm:$0x3]  ;;  %v13656_v0 = vld [vmem:[#allocation132_spill] sm:$0xff]  ;;  %8689 = vmatpush.xpose.msrb.mxu1 %v8640_v27 }
 0x415   : > { %v4242_v61 = vadd.f32 %v13653_v35, %v4159_v45  ;;  %v13654_v44 = vld [vmem:[#allocation178_spill] sm:$0xff]  ;;  %v7877_v3 = vadd.f32 %v13655_v23, %v7794_v24  ;;  %v4243_v38 = vadd.f32 %v13656_v0, %v4160_v58  ;;  %v13657_v47 = vld [vmem:[#allocation177_spill] sm:$0xff]  ;;  %v13658_v21 = vld [vmem:[#allocation7_spill] sm:$0xff]  ;;  %v8041_v15 = vadd.f32 %v12829_v43, %v7958_v6 }
 0x416   : > { %v6137_v62 = vadd.f32 %v13654_v44, %v6054_v36  ;;  %8832 = vmatpush.xpose.msra.mxu2 %v10014_v33  ;;  %v10007_v19 = vld [vmem:[%s13284_s3 + $0x58] sm:$0x3]  ;;  %v6056_v57 = vadd.f32 %v13657_v47, %v5973_v18  ;;  %v7876_v46 = vadd.f32 %v13658_v21, %v7793_v41  ;;  %v10011_v55 = vld [vmem:[%s13284_s3 + $0x60] sm:$0xff]  ;;  %v13659_v58 = vld [vmem:[#allocation129_spill] sm:$0xff] }
 0x417   : > { %v12975_v60 = vpop.f32.mrf.mxu2  ;;  %8852 = vmatpush.xpose.msra.mxu3 %v10015_v9  ;;  %v10003_v30 = vld [vmem:[%s13284_s3 + $0x38] sm:$0xff]  ;;  %v4241_v50 = vadd.f32 %v13659_v58, %v4158_v51  ;;  %v13660_v56 = vld [vmem:[#allocation133_spill] sm:$0xff]  ;;  %v8124_v32 = vadd.f32 %v12835_v28, %v8041_v15  ;;  %v10004_v5 = vld [vmem:[%s13284_s3 + $0x40] sm:$0xff] }
 0x418   : > { %v12944_v39 = vpop.f32.mrf.mxu3  ;;  %v4325_v42 = vadd.f32 %v13660_v56, %v4242_v61  ;;  %v13661_v8 = vld [vmem:[#allocation175_spill] sm:$0xff]  ;;  %v13662_v43 = vld [vmem:[#allocation13_spill] sm:$0xff]  ;;  %v13663_v10 = vld [vmem:[#allocation134_spill] sm:$0xff]  ;;  %v7959_v36 = vadd.f32 %v12820_v13, %v7876_v46  ;;  %10008 = vmatpush.xpose.msk.msra.mxu1 %vm8636_vm10, %v10007_v19  ;;  %8772 = vmatpush.xpose.msra.mxu0 %v10003_v30  ;;  %v13057_v30 = vpop.permute.xlu0 %2431 }
 0x419   : > { %v12999_v40 = vpop.f32.mrf.mxu0  ;;  %v6055_v59 = vadd.f32 %v13661_v8, %v5972_v11  ;;  %v7960_v1 = vadd.f32 %v13662_v43, %v7877_v3  ;;  %v10012_v34 = vld [vmem:[%s13284_s3 + $0x68] sm:$0xff]  ;;  %v4326_v45 = vadd.f32 %v13663_v10, %v4243_v38  ;;  %v13664_v63 = vld [vmem:[#allocation179_spill] sm:$0xff]  ;;  %v13671_v27 = vld [vmem:[#allocation182_spill] sm:$0xff]  ;;  %v8207_v0 = vadd.f32 %v12919_v31, %v8124_v32 }
 0x41a   : > { %v6139_v4 = vadd.f32 %v13664_v63, %v6056_v57  ;;  %v13665_v51 = vld [vmem:[#allocation181_spill] sm:$0xff]  ;;  %v13666_v11 = vld [vmem:[#allocation180_spill] sm:$0xff]  ;;  %8833 = vmatpush.xpose.msra.mxu2 %v10011_v55  ;;  %v13668_v13 = vld [vmem:[#allocation67_spill] sm:$0xff] }
 0x41b   : > { %v6220_v24 = vadd.f32 %v13665_v51, %v6137_v62  ;;  %v6138_v22 = vadd.f32 %v13666_v11, %v6055_v59  ;;  %v8043_v52 = vadd.f32 %v12865_v54, %v7960_v1  ;;  %v13667_v18 = vld [vmem:[#allocation65_spill] sm:$0xff]  ;;  %v2428_v28 = vadd.f32 %v13668_v13, %v12890_v48  ;;  %v13669_v41 = vld [vmem:[#allocation131_spill] sm:$0xff]  ;;  %8853 = vmatpush.xpose.msra.mxu3 %v10012_v34  ;;  %v13672_v54 = vld [vmem:[#allocation184_spill] sm:$0xff] }
 0x41c   : > { %v2427_v14 = vadd.f32 %v13667_v18, %v12896_v7  ;;  %v4324_v17 = vadd.f32 %v13669_v41, %v4241_v50  ;;  %v13670_v6 = vld [vmem:[#allocation137_spill] sm:$0xff]  ;;  %v6222_v35 = vadd.f32 %v13672_v54, %v6139_v4  ;;  %v13673_v61 = vld [vmem:[#allocation183_spill] sm:$0xff]  ;;  %v13674_v3 = vld [vmem:[#allocation136_spill] sm:$0xff]  ;;  %v8042_v48 = vadd.f32 %v12844_v20, %v7959_v36  ;;  %10009 = vmatpush.xpose.msk.msra.mxu1 %vm8636_vm10, %v10004_v5 }
 0x41d   : > { %v4409_v49 = vadd.f32 %v13670_v6, %v4326_v45  ;;  %v6221_v33 = vadd.f32 %v13671_v27, %v6138_v22  ;;  %v6303_v44 = vadd.f32 %v13673_v61, %v6220_v24  ;;  %v8126_v62 = vadd.f32 %v12881_v16, %v8043_v52  ;;  %v13675_v7 = vld [vmem:[#allocation135_spill] sm:$0xff]  ;;  %v13676_v38 = vld [vmem:[#allocation185_spill] sm:$0xff]  ;;  %v13677_v57 = vld [vmem:[#allocation186_spill] sm:$0xff] }
 0x41e   : > { %v4407_v9 = vadd.f32 %v13674_v3, %v4324_v17  ;;  %v4408_v19 = vadd.f32 %v13675_v7, %v4325_v42  ;;  %v6305_v21 = vadd.f32 %v13677_v57, %v6222_v35  ;;  %v13678_v46 = vld [vmem:[#allocation188_spill] sm:$0xff]  ;;  %v13680_v50 = vld [vmem:[#allocation138_spill] sm:$0xff]  ;;  %v8125_v20 = vadd.f32 %v12867_v29, %v8042_v48  ;;  %v13681_v59 = vld [vmem:[#allocation139_spill] sm:$0xff] }
 0x41f   : > { %v6304_v47 = vadd.f32 %v13676_v38, %v6221_v33  ;;  %v6386_v15 = vadd.f32 %v13678_v46, %v6303_v44  ;;  %v8209_v16 = vadd.f32 %v12921_v25, %v8126_v62  ;;  %v13679_v55 = vld [vmem:[#allocation140_spill] sm:$0xff]  ;;  %v8290_v31 = vadd.f32 %v12942_v12, %v8207_v0  ;;  %v13682_v1 = vld [vmem:[#allocation189_spill] sm:$0xff]  ;;  %v13683_v10 = vld [vmem:[#allocation190_spill] sm:$0xff] }
 0x420   : > { %v4491_v58 = vadd.f32 %v13679_v55, %v4408_v19  ;;  %v4490_v56 = vadd.f32 %v13680_v50, %v4407_v9  ;;  %v4492_v43 = vadd.f32 %v13681_v59, %v4409_v49  ;;  %v6388_v34 = vadd.f32 %v13682_v1, %v6305_v21  ;;  %v13684_v32 = vld [vmem:[#allocation187_spill] sm:$0xff]  ;;  %v13686_v18 = vld [vmem:[#allocation193_spill] sm:$0xff]  ;;  %v13687_v13 = vld [vmem:[#allocation192_spill] sm:$0xff] }
 0x421   : > { %v6469_v45 = vadd.f32 %v13683_v10, %v6386_v15  ;;  %v8292_v63 = vadd.f32 %v12944_v39, %v8209_v16  ;;  %v8208_v25 = vadd.f32 %v12883_v37, %v8125_v20  ;;  %v8373_v36 = vadd.f32 %v12999_v40, %v8290_v31  ;;  %v13685_v52 = vld [vmem:[#allocation191_spill] sm:$0xff]  ;;  %v13689_v3 = vld [vmem:[#allocation194_spill] sm:$0xff] }
 0x422   : > { %v2434_v29 = vadd.f32 %v13057_v30, %v12952_v53  ;;  %v4493_v12 = vadd.f32 %v4490_v56, %v13057_v30  ;;  %v6387_v51 = vadd.f32 %v13684_v32, %v6304_v47  ;;  %v2436_v11 = vadd.f32 %v13057_v30, %v2428_v28  ;;  %v13688_v54 = vld [vmem:[#allocation195_spill] sm:$0xff]  ;;  %v10013_v32 = vld [vmem:[%s13284_s3 + $0x70] sm:$0xff] }
 0x423   : > { %v4495_v22 = vadd.f32 %v4492_v43, %v13057_v30  ;;  %v6471_v5 = vadd.f32 %v13685_v52, %v6388_v34  ;;  %v8291_v39 = vadd.f32 %v12975_v60, %v8208_v25  ;;  %v6552_v40 = vadd.f32 %v13686_v18, %v6469_v45  ;;  %v10032_v52 = vld [vmem:[%s13284_s3 + $0xd8] sm:$0x3]  ;;  %v10034_v18 = vld [vmem:[%s13284_s3 + $0xe8] sm:$0x3] }
 0x424   : > { %v6470_v41 = vadd.f32 %v13687_v13, %v6387_v51  ;;  %v2435_v17 = vadd.f32 %v13057_v30, %v2427_v14  ;;  %v4494_v6 = vadd.f32 %v4491_v58, %v13057_v30  ;;  %v2437_v27 = vmax.f32 %v2434_v29, 0.0  ;;  %v10023_v51 = vld [vmem:[%s13284_s3 + $0xa8] sm:$0x3] }
 0x425   : > { %v4496_v33 = vmax.f32 %v4493_v12, 0.0  ;;  %v6554_v35 = vadd.f32 %v13688_v54, %v6471_v5  ;;  %v2439_v61 = vmax.f32 %v2436_v11, 0.0 }
 0x426   : > { %v6553_v9 = vadd.f32 %v13689_v3, %v6470_v41  ;;  %v2438_v38 = vmax.f32 %v2435_v17, 0.0  ;;  %v4497_v47 = vmax.f32 %v4494_v6, 0.0  ;;  %v10029_v41 = vld [vmem:[%s13284_s3 + $0xc0] sm:$0xff]  ;;  %v10031_v17 = vld [vmem:[%s13284_s3 + $0xd0] sm:$0xff] }
 0x427   : > { %v13011_v2 = vpop.f32.mrf.mxu3  ;;  %v6557_v14 = vadd.f32 %v6554_v35, %v13057_v30  ;;  %v4499_v48 = vmax.f32 %v2437_v27, %v4496_v33  ;;  %v10038_v6 = vld [vmem:[%s13284_s3 + $0xf0] sm:$0xff]  ;;  %v10030_v33 = vld [vmem:[%s13284_s3 + $0xc8] sm:$0xff]  ;;  %v10050_v35 = vld [vmem:[%s13284_s3 + $0x138] sm:$0x3] }
 0x428   : > { %v13013_v26 = vpop.f32.mrf.mxu1  ;;  %v8456_v37 = vadd.f32 %v13011_v2, %v8373_v36  ;;  %v4498_v2 = vmax.f32 %v4495_v22, 0.0  ;;  %v6556_v16 = vadd.f32 %v6553_v9, %v13057_v30  ;;  %v10022_v22 = vld [vmem:[%s13284_s3 + $0xa0] sm:$0xff]  ;;  %v10052_v9 = vld [vmem:[%s13284_s3 + $0x148] sm:$0x3] }
 0x429   : > { %v8374_v49 = vadd.f32 %v13013_v26, %v8291_v39  ;;  %v6560_v58 = vmax.f32 %v6557_v14, 0.0  ;;  %v10020_v39 = vld [vmem:[%s13284_s3 + $0x90] sm:$0xff] }
 0x42a   : > { %v4501_v57 = vmax.f32 %v2439_v61, %v4498_v2  ;;  %v6559_v10 = vmax.f32 %v6556_v16, 0.0  ;;  %v10039_v2 = vld [vmem:[%s13284_s3 + $0xf8] sm:$0xff] }
 0x42c   : > { %v6563_v43 = vmax.f32 %v4501_v57, %v6560_v58  ;;  %v10057_v57 = vld [vmem:[%s13284_s3 + $0x158] sm:$0xff] }
 0x42d   : > { %v8370_v23 = vpop.f32.mrf.mxu2 }
 0x42e   : > { %v8375_v24 = vadd.f32 %v8370_v23, %v8292_v63  ;;  %v6555_v23 = vadd.f32 %v6552_v40, %v13057_v30  ;;  %v10041_v40 = vld [vmem:[%s13284_s3 + $0x108] sm:$0x3] }
 0x430   : > { %v8516_v42 = vpop.f32.mrf.mxu3  ;;  %v8433_v8 = vpop.f32.mrf.mxu0  ;;  %v6558_v46 = vmax.f32 %v6555_v23, 0.0  ;;  %v10048_v23 = vld [vmem:[%s13284_s3 + $0x128] sm:$0xff] }
 0x431   : > { %v8453_v4 = vpop.f32.mrf.mxu1  ;;  %v8457_v44 = vadd.f32 %v8433_v8, %v8374_v49  ;;  %v4500_v8 = vmax.f32 %v2438_v38, %v4497_v47  ;;  %v10049_v38 = vld [vmem:[%s13284_s3 + $0x130] sm:$0xff]  ;;  %v10059_v47 = vld [vmem:[%s13284_s3 + $0x168] sm:$0x3] }
 0x432   : > { %v8458_v60 = vadd.f32 %v8453_v4, %v8375_v24  ;;  %v6561_v20 = vmax.f32 %v4499_v48, %v6558_v46  ;;  %v10024_v4 = vld [vmem:[%s13284_s3 + $0xb0] sm:$0x3]  ;;  %v10021_v24 = vld [vmem:[%s13284_s3 + $0x98] sm:$0xff] }
 0x433   : > { %v8540_v55 = vadd.f32 %v8516_v42, %v8457_v44  ;;  %v10016_v42 = vld [vmem:[%s13284_s3 + $0x88] sm:$0x3]  ;;  %v6562_v25 = vmax.f32 %v4500_v8, %v6559_v10  ;;  %v10043_v44 = vld [vmem:[%s13284_s3 + $0x118] sm:$0x3] }
 0x434   : > { %v10061_v48 = vld [vmem:[%s13284_s3 + $0x178] sm:$0x3] }
 0x435   : > { %v8496_v53 = vpop.f32.mrf.mxu2 }
 0x436   : > { %v8539_v28 = vadd.f32 %v8496_v53, %v8456_v37  ;;  %v10033_v53 = vld [vmem:[%s13284_s3 + $0xe0] sm:$0x3] }
 0x438   : > { %v8536_v62 = vpop.f32.mrf.mxu0  ;;  %v8619_v26 = vpop.f32.mrf.mxu3 }
 0x439   : > { %v8541_v7 = vadd.f32 %v8536_v62, %v8458_v60  ;;  %v8579_v19 = vpop.f32.mrf.mxu1  ;;  %v10051_v60 = vld [vmem:[%s13284_s3 + $0x140] sm:$0x3] }
 0x43a   : > { %v8622_v0 = vadd.f32 %v8579_v19, %v8539_v28  ;;  %v10042_v28 = vld [vmem:[%s13284_s3 + $0x110] sm:$0x3]  ;;  %v10047_v62 = vld [vmem:[%s13284_s3 + $0x120] sm:$0xff] }
 0x43b   : > { %v8624_v21 = vadd.f32 %v8619_v26, %v8541_v7  ;;  %v10040_v7 = vld [vmem:[%s13284_s3 + $0x100] sm:$0xff]  ;;  %v10060_v26 = vld [vmem:[%s13284_s3 + $0x170] sm:$0x3] }
 0x43c   : > { %v8625_v15 = vadd.f32 %v8622_v0, %v13057_v30 }
 0x43d   : > { %v8627_v50 = vadd.f32 %v8624_v21, %v13057_v30  ;;  %v8599_v56 = vpop.f32.mrf.mxu2  ;;  %v10058_v21 = vld [vmem:[%s13284_s3 + $0x160] sm:$0xff] }
 0x43e   : > { %v8628_v31 = vmax.f32 %v8625_v15, 0.0  ;;  %v8623_v59 = vadd.f32 %v8599_v56, %v8540_v55  ;;  %v10056_v15 = vld [vmem:[%s13284_s3 + $0x150] sm:$0xff] }
 0x43f   : > { %v8630_v1 = vmax.f32 %v8627_v50, 0.0 }
 0x440   : > { %v13095_v34 = vmax.f32 %v6561_v20, %v8628_v31  ;;  %v8626_v45 = vadd.f32 %v8623_v59, %v13057_v30  ;;  %v10025_v30 = vld [vmem:[%s13284_s3 + $0xb8] sm:$0x3] }
 0x441   : > { %v13101_v63 = vmax.f32 %v6563_v43, %v8630_v1 }
 0x442   : > { %8634 = vst [vmem:[%s261_s14] sm:$0xff] %v13095_v34  ;;  %v8629_v36 = vmax.f32 %v8626_v45, 0.0  ;;  %8670 = vmatmul.f32.vlgmr.msrb.gmra.mxu0 %v13095_v34  ;;  %v8724_v29 = vrot.slane %v13095_v34, 1  ;;  %v8805_v5 = vrot.slane %v13095_v34, 2  ;;  %v8886_v61 = vrot.slane %v13095_v34, 3 }
 0x443   : > { %8637 = vst.msk [vmem:[%s261_s14 + $0x10] sm:$0xff] %vm8636_vm10, %v13101_v63  ;;  %10001 = vmatmul.msk.f32.vlgmr.msrb.gmra.mxu2 %vm8636_vm10, %v13101_v63  ;;  %10017 = vmatpush.xpose.msk.msrb.mxu0 %vm8636_vm10, %v10016_v42  ;;  %v8726_v13 = vrot.slane %v13101_v63, 1  ;;  %v8807_v49 = vrot.slane %v13101_v63, 2  ;;  %v8888_v54 = vrot.slane %v13101_v63, 3  ;;  %v8967_v3 = vrot.slane %v13095_v34, 4 }
 0x444   : > { %v13117_v12 = vmax.f32 %v6562_v25, %v8629_v36  ;;  %8753 = vmatmul.f32.vlgmr.msrb.gmra.mxu3 %v8724_v29  ;;  %8933 = vmatpush.xpose.msrb.mxu2 %v10024_v4  ;;  %v8969_v14 = vrot.slane %v13101_v63, 4  ;;  %v9048_v19 = vrot.slane %v13095_v34, 5  ;;  %v9129_v16 = vrot.slane %v13095_v34, 6 }
 0x445   : > { %10026 = vmatpush.xpose.msk.msrb.mxu3 %vm8636_vm10, %v10025_v30  ;;  %v9050_v58 = vrot.slane %v13101_v63, 5  ;;  %v9131_v50 = vrot.slane %v13101_v63, 6  ;;  %v9212_v20 = vrot.slane %v13101_v63, 7  ;;  %v9210_v31 = vrot.slane %v13095_v34, 7 }
 0x446   : > { %8635 = vst [vmem:[%s261_s14 + $0x8] sm:$0xff] %v13117_v12  ;;  %8690 = vmatmul.f32.vlgmr.msrb.gmra.mxu1 %v13117_v12  ;;  %v8725_v11 = vrot.slane %v13117_v12, 1  ;;  %v8806_v37 = vrot.slane %v13117_v12, 2  ;;  %v8887_v27 = vrot.slane %v13117_v12, 3  ;;  %v8968_v0 = vrot.slane %v13117_v12, 4 }
 0x447   : > { %10018 = vmatpush.xpose.msk.msrb.mxu0 %vm8636_vm10, %v10013_v32  ;;  %8913 = vmatpush.xpose.msrb.mxu1 %v10023_v51  ;;  %v9049_v46 = vrot.slane %v13117_v12, 5  ;;  %v9130_v55 = vrot.slane %v13117_v12, 6  ;;  %v9211_v56 = vrot.slane %v13117_v12, 7 }
 0x448   : > { %8934 = vmatpush.xpose.msrb.mxu2 %v10021_v24 }
 0x449   : > { %10027 = vmatpush.xpose.msk.msrb.mxu3 %vm8636_vm10, %v10022_v22 }
 0x44a   : > { %8773 = vmatmul.f32.vlgmr.msra.gmra.mxu0 %v8725_v11 }
 0x44b   : > { %8834 = vmatmul.f32.vlgmr.msra.gmra.mxu2 %v8805_v5  ;;  %8994 = vmatpush.xpose.msra.mxu0 %v10032_v52  ;;  %v8638_v52 = vld [vmem:[%s13285_s4] sm:$0x1] }
 0x44c   : > { %8854 = vmatmul.f32.vlgmr.msra.gmra.mxu3 %v8806_v37  ;;  %8914 = vmatpush.xpose.msrb.mxu1 %v10020_v39 }
 0x44d   : > { %10035 = vmatpush.xpose.msk.msra.mxu2 %vm8636_vm10, %v10034_v18  ;;  %9075 = vmatpush.xpose.msra.mxu3 %v10041_v40 }
 0x44e   : > { %10010 = vmatmul.msk.f32.vlgmr.msra.gmra.mxu1 %vm8636_vm10, %v8726_v13 }
 0x44f   : > { %8995 = vmatpush.xpose.msra.mxu0 %v10029_v41 }
 0x450   : > { %9014 = vmatpush.xpose.msra.mxu1 %v10033_v53 }
 0x451   : > { %10036 = vmatpush.xpose.msk.msra.mxu2 %vm8636_vm10, %v10031_v17  ;;  %9076 = vmatpush.xpose.msra.mxu3 %v10038_v6 }
 0x452   : > { %10019 = vmatmul.msk.f32.vlgmr.msrb.gmra.mxu0 %vm8636_vm10, %v8807_v49 }
 0x453   : > { %8935 = vmatmul.f32.vlgmr.msrb.gmra.mxu2 %v8887_v27  ;;  %9095 = vmatpush.xpose.msrb.mxu0 %v10042_v28 }
 0x454   : > { %10028 = vmatmul.msk.f32.vlgmr.msrb.gmra.mxu3 %vm8636_vm10, %v8888_v54  ;;  %9015 = vmatpush.xpose.msra.mxu1 %v10030_v33 }
 0x455   : > { %9156 = vmatpush.xpose.msrb.mxu2 %v10050_v35  ;;  %9176 = vmatpush.xpose.msrb.mxu3 %v10051_v60 }
 0x456   : > { %8915 = vmatmul.f32.vlgmr.msrb.gmra.mxu1 %v8886_v61 }
 0x457   : > { %9096 = vmatpush.xpose.msrb.mxu0 %v10039_v2 }
 0x458   : > { %10044 = vmatpush.xpose.msk.msrb.mxu1 %vm8636_vm10, %v10043_v44 }
 0x459   : > { %9157 = vmatpush.xpose.msrb.mxu2 %v10047_v62  ;;  %9177 = vmatpush.xpose.msrb.mxu3 %v10048_v23 }
 0x45a   : > { %8996 = vmatmul.f32.vlgmr.msra.gmra.mxu0 %v8967_v3 }
 0x45b   : > { %10037 = vmatmul.msk.f32.vlgmr.msra.gmra.mxu2 %vm8636_vm10, %v8969_v14  ;;  %10053 = vmatpush.xpose.msk.msra.mxu0 %vm8636_vm10, %v10052_v9 }
 0x45c   : > { %9077 = vmatmul.f32.vlgmr.msra.gmra.mxu3 %v9048_v19  ;;  %10045 = vmatpush.xpose.msk.msrb.mxu1 %vm8636_vm10, %v10040_v7 }
 0x45d   : > { %9257 = vmatpush.xpose.msra.mxu2 %v10060_v26  ;;  %10062 = vmatpush.xpose.msk.msra.mxu3 %vm8636_vm10, %v10061_v48 }
 0x45e   : > { %9016 = vmatmul.f32.vlgmr.msra.gmra.mxu1 %v8968_v0 }
 0x45f   : > { %10054 = vmatpush.xpose.msk.msra.mxu0 %vm8636_vm10, %v10049_v38 }
 0x460   : > { %9237 = vmatpush.xpose.msra.mxu1 %v10059_v47 }
 0x461   : > { %9258 = vmatpush.xpose.msra.mxu2 %v10057_v57  ;;  %10063 = vmatpush.xpose.msk.msra.mxu3 %vm8636_vm10, %v10058_v21 }
 0x462   : > { %9097 = vmatmul.f32.vlgmr.msrb.gmra.mxu0 %v9049_v46 }
 0x463   : > { %9158 = vmatmul.f32.vlgmr.msrb.gmra.mxu2 %v9129_v16 }
 0x464   : > { %9238 = vmatpush.xpose.msra.mxu1 %v10056_v15  ;;  %9178 = vmatmul.f32.vlgmr.msrb.gmra.mxu3 %v9130_v55 }
 0x466   : > { %10046 = vmatmul.msk.f32.vlgmr.msrb.gmra.mxu1 %vm8636_vm10, %v9050_v58 }
 0x46a   : > { %10055 = vmatmul.msk.f32.vlgmr.msra.gmra.mxu0 %vm8636_vm10, %v9131_v50 }
 0x46b   : > { %9259 = vmatmul.f32.vlgmr.msra.gmra.mxu2 %v9211_v56 }
 0x46c   : > { %10064 = vmatmul.msk.f32.vlgmr.msra.gmra.mxu3 %vm8636_vm10, %v9212_v20 }
 0x46e   : > { %9239 = vmatmul.f32.vlgmr.msra.gmra.mxu1 %v9210_v31 }
 0x4bf   : > { %v8671_v8 = vpop.f32.mrf.mxu0 }
 0x4c3   : > { %v8691_v59 = vpop.f32.mrf.mxu1 }
 0x4c4   : > { %v8692_v32 = vadd.f32 %v8691_v59, %v8671_v8 }
 0x4c6   : > { %v8711_v43 = vpop.f32.mrf.mxu2 }
 0x4c7   : > { %v8754_v1 = vpop.f32.mrf.mxu3  ;;  %v8774_v10 = vpop.f32.mrf.mxu0  ;;  %v8712_v11 = vadd.f32 %v8711_v43, %v8692_v32 }
 0x4c8   : > { %v8775_v34 = vadd.f32 %v8774_v10, %v8754_v1 }
 0x4c9   : > { %v8714_v40 = vadd.f32 %v8712_v11, %v8638_v52 }
 0x4cb   : > { %v8794_v45 = vpop.f32.mrf.mxu1 }
 0x4cc   : > { %v8795_v39 = vadd.f32 %v8794_v45, %v8775_v34 }
 0x4ce   : > { %v8835_v42 = vpop.f32.mrf.mxu2  ;;  %v8797_v17 = vadd.f32 %v8795_v39, %v8714_v40 }
 0x4cf   : > { %v8855_v4 = vpop.f32.mrf.mxu3  ;;  %v8875_v25 = vpop.f32.mrf.mxu0 }
 0x4d0   : > { %v8856_v22 = vadd.f32 %v8855_v4, %v8835_v42 }
 0x4d2   : > { %v8876_v13 = vadd.f32 %v8875_v25, %v8856_v22 }
 0x4d3   : > { %v8916_v36 = vpop.f32.mrf.mxu1 }
 0x4d4   : > { %v8878_v28 = vadd.f32 %v8876_v13, %v8797_v17 }
 0x4d6   : > { %v8936_v29 = vpop.f32.mrf.mxu2 }
 0x4d7   : > { %v8956_v30 = vpop.f32.mrf.mxu3  ;;  %v8997_v12 = vpop.f32.mrf.mxu0  ;;  %v8937_v37 = vadd.f32 %v8936_v29, %v8916_v36 }
 0x4d9   : > { %v8957_v6 = vadd.f32 %v8956_v30, %v8937_v37 }
 0x4db   : > { %v9017_v63 = vpop.f32.mrf.mxu1  ;;  %v8959_v35 = vadd.f32 %v8957_v6, %v8878_v28 }
 0x4dc   : > { %v9018_v41 = vadd.f32 %v9017_v63, %v8997_v12 }
 0x4de   : > { %v9037_v51 = vpop.f32.mrf.mxu2 }
 0x4df   : > { %v9078_v24 = vpop.f32.mrf.mxu3  ;;  %v9098_v5 = vpop.f32.mrf.mxu0  ;;  %v9038_v27 = vadd.f32 %v9037_v51, %v9018_v41 }
 0x4e0   : > { %v9099_v33 = vadd.f32 %v9098_v5, %v9078_v24 }
 0x4e1   : > { %v9040_v2 = vadd.f32 %v9038_v27, %v8959_v35 }
 0x4e3   : > { %v9118_v18 = vpop.f32.mrf.mxu1 }
 0x4e4   : > { %v9119_v60 = vadd.f32 %v9118_v18, %v9099_v33 }
 0x4e6   : > { %v9159_v53 = vpop.f32.mrf.mxu2  ;;  %v9121_v3 = vadd.f32 %v9119_v60, %v9040_v2 }
 0x4e7   : > { %v9179_v49 = vpop.f32.mrf.mxu3  ;;  %v9199_v61 = vpop.f32.mrf.mxu0 }
 0x4e8   : > { %v9180_v54 = vadd.f32 %v9179_v49, %v9159_v53 }
 0x4ea   : > { %v9200_v44 = vadd.f32 %v9199_v61, %v9180_v54 }
 0x4eb   : > { %v9240_v62 = vpop.f32.mrf.mxu1 }
 0x4ec   : > { %v9202_v7 = vadd.f32 %v9200_v44, %v9121_v3 }
 0x4ee   : > { %v9260_v23 = vpop.f32.mrf.mxu2 }
 0x4ef   : > { %v9261_v9 = vadd.f32 %v9260_v23, %v9240_v62  ;;  %v9280_v14 = vpop.f32.mrf.mxu3 }
 0x4f1   : > { %v9281_v19 = vadd.f32 %v9280_v14, %v9261_v9 }
 0x4f3   : > { %v9283_v26 = vadd.f32 %v9281_v19, %v9202_v7 }
 0x4f5   : > { %9285 = vst.msk [vmem:[%s244_s20] sm:$0x1] %vm9284_vm11, %v9283_v26 }
 0x4f6   : > { %10170 = shalt.err (!%p10167_p3)
}
 0x4f7   : > { %10069 = dma.vmem_to_hbm [thread:$0]  (%p10311_p5), %s9303_s29, 16, %s9305_s9, %s9287_s11  }
 0x4f8 PF: > { %p10075_p4 = scmp.ge.s32.totalorder %s10205_s24, 2  ;;  %s9319_s12 = sand.u32 1, %s10193_s21  }
 0x4f9   : > { %s9320_s19 = scalar_lea.sflag [#allocation3], %s9319_s12 }
 0x4fa   : > { %p10072_p7 = pnand %p10075_p4, %p10315_p6 }
 0x4fc   : > { %p10073_p8 = pneg %p10072_p7 }
 0x4fe   : > { %10188 = dma.done.wait (%p10073_p8), %s9320_s19, 16  }
 0x4ff   : > { %10190 = vsyncadd (%p10073_p8), %s9320_s19, 4294967280  ;;  %p17_p9 = scmp.ge.s32.totalorder %s10298_s27, 4   ;;  %s13690_s21 = smov %s10197_s22 }
 0x500   : > { %s13691_s22 = smov %s10201_s23  ;;  %s13692_s23 = smov %s10309_s30 }
 0x501   : > { %s13693_s24 = smov %s10298_s27  ;;  %19 = sbr.rel (!%p17_p9) target bundleno = 3 (0x3), region = 197 }
 0x506   :  { %9333 = vsyncpa [#allocation3], 1 }
 0x507   :  { %9335 = vsyncpa [#allocation3 + $0x1], 1 }

</bundles_post_ra>
